<compile_context>
chip_gen: v7x
topology: tpu7x:2x2x1
jax: 0.10.0
libtpu: 0.0.40
codegen_flags: <defaults>
</compile_context>

<pallas_src>
import numpy as np
import jax
import jax.numpy as jnp
from jax.experimental import pallas as pl
from jax.experimental.pallas import tpu as pltpu

# ---------------- synthetic config (small shapes) ----------------
BATCH = 2
MAX_LEN = 8
INPUT_DIMS = 32            # BERT hidden size
BERT_LAYERS = 2            # config.bert_tune == 0 -> input_depth = bert_layers
LSTM_HIDDENS = 16
HIDDEN_DIMS = 2 * LSTM_HIDDENS   # = 32 (NonLinear output dim)
WORD_DIMS = 32                   # == HIDDEN_DIMS so cat(...) has dim 2*WORD_DIMS
REL_SIZE = 10
TAG_SIZE = 5

# TPU-friendly packed/padded sizes
BP = 8              # batch padded to the 8-sublane granularity
HP = 128            # one full 128-lane block
GATE_W = 2 * HP     # per-direction packed gate width (two 128-lane blocks)
TAG_PAD = 128       # tag dim padded for a lane-dense output store
NDIR = 2            # dt/td tree directions == fwd/bwd LSTM directions


# ============================ fused Pallas kernel ============================

def sa_fused_kernel(x_ref, xrel_ref, P_ref, Q_ref, mgru_ref, mlstm_ref,
                    pw_ref, pb_ref, coef_ref,
                    gwi_ref, gbi_ref, gwh_ref, gbh_ref,
                    lwi_ref, lb_ref, lwh_ref, ow_ref,
                    out_ref,
                    gi_scr, gout_scr, glstm_scr):
    T = MAX_LEN
    GW = GATE_W
    L = x_ref.shape[0]
    BT = x_ref.shape[1]
    HD = pw_ref.shape[2]

    # ---- Phase A: per-layer NonLinear (Linear + GELU) fused with ScalarMix ----
    x_embed = jnp.zeros((BT, HD), jnp.float32)
    for li in range(L):                              # L tiny & static -> unrolled
        h = jnp.dot(x_ref[li], pw_ref[li],
                    preferred_element_type=jnp.float32) + pb_ref[li]
        x_embed = x_embed + coef_ref[li] * jax.nn.gelu(h, approximate=True)

    # ---- Phase B prologue: hoisted GRU input projection + traversal gather ----
    # x_lexical = cat(x_embed, x_rel): the concat is folded into two matmuls.
    gi_all = (jnp.dot(x_embed, gwi_ref[0], preferred_element_type=jnp.float32)
              + jnp.dot(xrel_ref[...], gwi_ref[1], preferred_element_type=jnp.float32)
              + gbi_ref[...])                                  # (B*T, NDIR*GW)
    for d in range(NDIR):
        # one-hot permutation matmul == gather into traversal order (MXU, off
        # the serial critical path; replaces the XLA gather between kernels).
        gi_scr[d, :, :] = jnp.dot(P_ref[d], gi_all[:, d * GW:(d + 1) * GW],
                                  preferred_element_type=jnp.float32)

    zeros_h = jnp.zeros((BP, HP), jnp.float32)
    gh_bias = [jnp.broadcast_to(gbh_ref[d], (BP, GW)) for d in range(NDIR)]

    # ---- Phase B: dt/td tree-GRU recurrences (packed gates, 2 EUP ops/step) ----
    # Gate layout per direction: block A (lanes 0:128): r@0:16, z@64:80;
    #                            block B (lanes 128:256): n@64:80; hidden h@0:16.
    # TODO(synk): DTTreeGRU / TDTreeGRU aggregate child states over the tree
    # (source not provided); approximated by a masked sequential GRU over the
    # bottom-up / top-down traversal order.
    h_gru = [zeros_h for _ in range(NDIR)]
    for s in range(T):                       # static unroll: full LLO visibility
        r0 = s * BP
        for d in range(NDIR):
            gi = gi_scr[d, r0:r0 + BP, :]                        # (8, 256)
            m = mgru_ref[d, r0:r0 + BP, :] > 0.0                 # (8, 128) bool
            gh = jnp.dot(h_gru[d], gwh_ref[d],
                         preferred_element_type=jnp.float32) + gh_bias[d]
            sA = jax.nn.sigmoid(gi[:, 0:HP] + gh[:, 0:HP])       # r@0:16, z@64:80
            sr = pltpu.roll(sA, 64, axis=1)                      # r->64:80, z->0:16
            n = jnp.tanh(gi[:, HP:GW] + sr * gh[:, HP:GW])       # n@64:80
            n0 = pltpu.roll(n, 64, axis=1)                       # n->0:16
            h_new = (1.0 - sr) * n0 + sr * h_gru[d]              # valid @0:16
            h_gru[d] = jnp.where(m, h_new, h_gru[d])
            gout_scr[d, r0:r0 + BP, :] = jnp.where(m, h_new, 0.0)

    # ---- Interlude: scatter GRU outputs back to time order (one-hot matmuls)
    #      and hoist the bi-LSTM input projection (all off the critical path) ----
    tree0 = jnp.dot(Q_ref[0], gout_scr[0], preferred_element_type=jnp.float32)
    tree1 = jnp.dot(Q_ref[1], gout_scr[1], preferred_element_type=jnp.float32)
    glstm_scr[...] = (jnp.dot(tree0, lwi_ref[0], preferred_element_type=jnp.float32)
                      + jnp.dot(tree1, lwi_ref[1], preferred_element_type=jnp.float32)
                      + lb_ref[...])                             # (T*BP, NDIR*GW)

    # ---- Phase C: bi-LSTM recurrences + fused masked max-pool epilogue ----
    # Gate layout per direction: block A: f@0:16, i@64:80;
    #                            block B: sigmoid(2g)@0:16, o@64:80.
    h_l = [zeros_h for _ in range(NDIR)]
    c_l = [zeros_h for _ in range(NDIR)]
    pool = [jnp.full((BP, HP), -1e6, jnp.float32) for _ in range(NDIR)]
    for t in range(T):
        for d in range(NDIR):
            src = (t if d == 0 else T - 1 - t) * BP
            gi = glstm_scr[src:src + BP, d * GW:(d + 1) * GW]    # (8, 256)
            m = mlstm_ref[d, t * BP:t * BP + BP, :] > 0.0
            gh = jnp.dot(h_l[d], lwh_ref[d], preferred_element_type=jnp.float32)
            S = jax.nn.sigmoid(gi + gh)                          # 2 EUP vregs
            SA = S[:, 0:HP]                                      # f@0:16, i@64:80
            SB = S[:, HP:GW]                                     # s(2g)@0:16, o@64:80
            gt = 2.0 * SB - 1.0                                  # tanh(g)@0:16
            i0 = pltpu.roll(SA, 64, axis=1)                      # i -> 0:16
            c_new = SA * c_l[d] + i0 * gt                        # f*c + i*g @0:16
            o0 = pltpu.roll(SB, 64, axis=1)                      # o -> 0:16
            h_new = o0 * jnp.tanh(c_new)                         # 1 EUP
            h_l[d] = jnp.where(m, h_new, h_l[d])
            c_l[d] = jnp.where(m, c_new, c_l[d])
            # masked running max == hiddens + (mask-1)*1e6 then max over time
            pool[d] = jnp.where(m, jnp.maximum(pool[d], h_new), pool[d])

    # ---- Epilogue: bias-free output projection, lane-dense (8,128) store ----
    out_ref[...] = (jnp.dot(pool[0], ow_ref[0], preferred_element_type=jnp.float32)
                    + jnp.dot(pool[1], ow_ref[1], preferred_element_type=jnp.float32))


def run_sa_fused(x_stack, x_rel, P, Q, m_gru, m_lstm, prep):
    BT = x_stack.shape[1]
    TBP = MAX_LEN * BP
    GW = GATE_W

    args = (x_stack, x_rel, P, Q, m_gru, m_lstm,
            prep["proj_w"], prep["proj_b"], prep["coefs"],
            prep["gru_wi"], prep["gru_bi"], prep["gru_wh"], prep["gru_bh"],
            prep["lstm_wi"], prep["lstm_b"], prep["lstm_wh"], prep["out_w"])

    def fs(a):
        nd = a.ndim
        return pl.BlockSpec(a.shape, lambda i: (0,) * nd)

    matmul_flops = 2 * (
        BERT_LAYERS * BT * INPUT_DIMS * HIDDEN_DIMS
        + 2 * BT * WORD_DIMS * NDIR * GW
        + NDIR * TBP * BT * GW
        + NDIR * MAX_LEN * BP * HP * GW          # GRU hidden matmuls
        + NDIR * TBP * TBP * HP                  # traversal scatter
        + NDIR * TBP * HP * NDIR * GW            # hoisted LSTM input matmul
        + NDIR * MAX_LEN * BP * HP * GW          # LSTM hidden matmuls
        + NDIR * BP * HP * TAG_PAD)
    trans = BERT_LAYERS * BT * HIDDEN_DIMS + NDIR * MAX_LEN * BP * 5 * HP
    in_bytes = 4 * sum(int(np.prod(a.shape)) for a in args)

    return pl.pallas_call(
        sa_fused_kernel,
        out_shape=jax.ShapeDtypeStruct((BP, TAG_PAD), jnp.float32),
        grid=(1,),
        in_specs=[fs(a) for a in args],
        out_specs=pl.BlockSpec((BP, TAG_PAD), lambda i: (0, 0)),
        scratch_shapes=[
            pltpu.VMEM((NDIR, TBP, GW), jnp.float32),    # ordered GRU gate pre-acts
            pltpu.VMEM((NDIR, TBP, HP), jnp.float32),    # GRU outputs (traversal order)
            pltpu.VMEM((TBP, NDIR * GW), jnp.float32),   # LSTM gate pre-acts (time order)
        ],
        compiler_params=pltpu.CompilerParams(dimension_semantics=("arbitrary",)),
        cost_estimate=pl.CostEstimate(flops=int(matmul_flops),
                                      transcendentals=int(trans),
                                      bytes_accessed=int(in_bytes + 4 * BP * TAG_PAD)),
    )(*args)


# ============================ one-time parameter packing ============================

def prepare_params(params):
    """One-time packing of weights into the fused kernel's padded layouts
    (hoisted out of the forward per the performance review)."""
    H = LSTM_HIDDENS
    GW = GATE_W

    def to_np(x):
        return np.asarray(x, dtype=np.float32)

    # --- GRU packing: r -> col 0, z -> col 64, n -> col 192 (block B hi) ---
    GRU_OFF = (0, 64, 128 + 64)
    gru_wi = np.zeros((2, WORD_DIMS, NDIR * GW), np.float32)   # [embed-part, rel-part]
    gru_bi = np.zeros((1, NDIR * GW), np.float32)
    gru_wh = np.zeros((NDIR, HP, GW), np.float32)
    gru_bh = np.zeros((NDIR, 1, GW), np.float32)
    for d, pfx in enumerate(("dt", "td")):
        wi, wh = to_np(params[pfx + "_wi"]), to_np(params[pfx + "_wh"])
        bi, bh = to_np(params[pfx + "_bi"]), to_np(params[pfx + "_bh"])
        for g, off in enumerate(GRU_OFF):
            col = d * GW + off
            gru_wi[0, :, col:col + H] = wi[:WORD_DIMS, g * H:(g + 1) * H]
            gru_wi[1, :, col:col + H] = wi[WORD_DIMS:, g * H:(g + 1) * H]
            gru_bi[0, col:col + H] = bi[0, g * H:(g + 1) * H]
            gru_wh[d, :H, off:off + H] = wh[:, g * H:(g + 1) * H]
            gru_bh[d, 0, off:off + H] = bh[0, g * H:(g + 1) * H]

    # --- LSTM packing: i -> 64, f -> 0, g -> 128 (x2 for tanh identity), o -> 192 ---
    LSTM_OFF = ((64, 1.0), (0, 1.0), (128, 2.0), (192, 1.0))   # i, f, g, o
    lstm_wi = np.zeros((2, HP, NDIR * GW), np.float32)         # [dt-tree-part, td-tree-part]
    lstm_bias = np.zeros((1, NDIR * GW), np.float32)
    lstm_wh = np.zeros((NDIR, HP, GW), np.float32)
    for d, pfx in enumerate(("lstm_f", "lstm_b")):
        wi, wh = to_np(params[pfx + "_wi"]), to_np(params[pfx + "_wh"])
        bb = to_np(params[pfx + "_b"])
        for g, (off, sc) in enumerate(LSTM_OFF):
            col = d * GW + off
            lstm_wi[0, :H, col:col + H] = sc * wi[:H, g * H:(g + 1) * H]
            lstm_wi[1, :H, col:col + H] = sc * wi[H:2 * H, g * H:(g + 1) * H]
            lstm_bias[0, col:col + H] = sc * bb[0, g * H:(g + 1) * H]
            lstm_wh[d, :H, off:off + H] = sc * wh[:, g * H:(g + 1) * H]

    # --- bias-free output projection, split into fwd/bwd halves, TAG padded ---
    ow = to_np(params["out_w"])
    out_w = np.zeros((NDIR, HP, TAG_PAD), np.float32)
    out_w[0, :H, :TAG_SIZE] = ow[:H]
    out_w[1, :H, :TAG_SIZE] = ow[H:2 * H]

    mix = np.asarray(jax.nn.softmax(params["scalar_mix_weights"]), dtype=np.float32)
    coefs = (float(params["scalar_mix_gamma"]) * mix).reshape(BERT_LAYERS, 1, 1)

    return {
        "proj_w": jnp.asarray(params["proj_w"], jnp.float32),
        "proj_b": jnp.asarray(params["proj_b"], jnp.float32),
        "coefs": jnp.asarray(coefs),
        "rel_embed": jnp.asarray(params["rel_embed"], jnp.float32),
        "gru_wi": jnp.asarray(gru_wi), "gru_bi": jnp.asarray(gru_bi),
        "gru_wh": jnp.asarray(gru_wh), "gru_bh": jnp.asarray(gru_bh),
        "lstm_wi": jnp.asarray(lstm_wi), "lstm_b": jnp.asarray(lstm_bias),
        "lstm_wh": jnp.asarray(lstm_wh), "out_w": jnp.asarray(out_w),
    }


# ============================ host-side glue ============================

def build_tree_order(head):
    """Post-order (children before parents) traversal of the dependency tree,
    mirroring creatTree()/root.traverse() ordering."""
    n = len(head)
    children = [[] for _ in range(n)]
    root = 0
    for i, h in enumerate(head):
        if h < 0:
            root = i
        else:
            children[h].append(i)
    order = []
    stack = [(root, False)]
    while stack:
        node, done = stack.pop()
        if done:
            order.append(node)
        else:
            stack.append((node, True))
            for c in reversed(children[node]):
                stack.append((c, False))
    return order


def sa_model_forward(prep, inputs_list, rels, heads, masks, lengths):
    B, T = rels.shape
    BT = B * T
    TBP = T * BP

    # XLA-side glue kept outside the kernel: input stacking & embedding lookup.
    x_stack = jnp.stack([x.reshape(BT, INPUT_DIMS) for x in inputs_list], axis=0)
    x_rel = jnp.take(prep["rel_embed"], rels, axis=0).reshape(BT, WORD_DIMS)

    # Host-side tree traversal orders (mirrors creatTree / root.traverse).
    masks_np = np.asarray(masks, dtype=np.float32)
    order = np.zeros((NDIR, T, B), dtype=np.int32)
    for b in range(B):
        post = build_tree_order(list(heads[b][:int(lengths[b])]))
        full = list(post) + list(range(int(lengths[b]), T))
        order[0, :, b] = np.asarray(full, np.int32)          # dt: bottom-up
        order[1, :, b] = np.asarray(full[::-1], np.int32)    # td: top-down

    # One-hot gather/scatter operators + lane-broadcast masks (pre-broadcast so
    # no per-step broadcast_in_dim appears inside the unrolled recurrences).
    P = np.zeros((NDIR, TBP, BT), np.float32)
    Q = np.zeros((NDIR, TBP, TBP), np.float32)
    m_gru = np.zeros((NDIR, TBP, HP), np.float32)
    m_lstm = np.zeros((NDIR, TBP, HP), np.float32)
    for d in range(NDIR):
        for s in range(T):
            for b in range(B):
                p = int(order[d, s, b])
                P[d, s * BP + b, b * T + p] = 1.0
                Q[d, p * BP + b, s * BP + b] = 1.0
                m_gru[d, s * BP + b, :] = masks_np[b, p]
                tpos = s if d == 0 else T - 1 - s
                m_lstm[d, s * BP + b, :] = masks_np[b, tpos]

    logits = run_sa_fused(x_stack, x_rel,
                          jnp.asarray(P), jnp.asarray(Q),
                          jnp.asarray(m_gru), jnp.asarray(m_lstm), prep)
    return logits[:B, :TAG_SIZE]


# ============================ parameter init (raw, unpacked) ============================

def init_params(key):
    def nrm(k, shape, scale=0.1):
        return (scale * jax.random.normal(k, shape)).astype(jnp.float32)

    ks = jax.random.split(key, 16)
    return {
        "proj_w": nrm(ks[0], (BERT_LAYERS, INPUT_DIMS, HIDDEN_DIMS)),
        "proj_b": nrm(ks[1], (BERT_LAYERS, 1, HIDDEN_DIMS)),
        "scalar_mix_weights": nrm(ks[2], (BERT_LAYERS,), scale=1.0),
        "scalar_mix_gamma": jnp.float32(1.0),
        "rel_embed": nrm(ks[3], (REL_SIZE, WORD_DIMS), scale=1.0),
        "dt_wi": nrm(ks[4], (2 * WORD_DIMS, 3 * LSTM_HIDDENS)),
        "dt_wh": nrm(ks[5], (LSTM_HIDDENS, 3 * LSTM_HIDDENS)),
        "dt_bi": nrm(ks[6], (1, 3 * LSTM_HIDDENS)),
        "dt_bh": nrm(ks[7], (1, 3 * LSTM_HIDDENS)),
        "td_wi": nrm(ks[8], (2 * WORD_DIMS, 3 * LSTM_HIDDENS)),
        "td_wh": nrm(ks[9], (LSTM_HIDDENS, 3 * LSTM_HIDDENS)),
        "td_bi": nrm(ks[10], (1, 3 * LSTM_HIDDENS)),
        "td_bh": nrm(ks[11], (1, 3 * LSTM_HIDDENS)),
        "lstm_f_wi": nrm(ks[12], (2 * LSTM_HIDDENS, 4 * LSTM_HIDDENS)),
        "lstm_f_wh": nrm(ks[13], (LSTM_HIDDENS, 4 * LSTM_HIDDENS)),
        "lstm_f_b": nrm(ks[14], (1, 4 * LSTM_HIDDENS)),
        "lstm_b_wi": nrm(ks[15], (2 * LSTM_HIDDENS, 4 * LSTM_HIDDENS)),
        "lstm_b_wh": nrm(jax.random.fold_in(key, 100), (LSTM_HIDDENS, 4 * LSTM_HIDDENS)),
        "lstm_b_b": nrm(jax.random.fold_in(key, 101), (1, 4 * LSTM_HIDDENS)),
        "out_w": nrm(jax.random.fold_in(key, 102), (2 * LSTM_HIDDENS, TAG_SIZE)),
    }


# ============================ main ============================

if __name__ == "__main__":
    key = jax.random.PRNGKey(0)
    k_in, k_rel, k_par = jax.random.split(key, 3)

    # inputs: list of BERT-layer hidden states, each (B, T, INPUT_DIMS)
    layer_keys = jax.random.split(k_in, BERT_LAYERS)
    inputs_list = [jax.random.normal(layer_keys[l], (BATCH, MAX_LEN, INPUT_DIMS),
                                     dtype=jnp.float32) for l in range(BERT_LAYERS)]

    # rels: relation ids, (B, T) int32
    rels = jax.random.randint(k_rel, (BATCH, MAX_LEN), 1, REL_SIZE, dtype=jnp.int32)

    # heads: dependency heads per batch (-1 = root); lengths & masks
    lengths = np.array([8, 6], dtype=np.int32)
    heads = [
        [-1, 0, 1, 2, 3, 4, 5, 6],          # chain
        [-1, 0, 0, 1, 1, 2, 0, 0],          # tree over first 6 tokens (rest padding)
    ]
    masks = jnp.asarray(
        (np.arange(MAX_LEN)[None, :] < lengths[:, None]).astype(np.float32))

    params = init_params(k_par)
    prep = prepare_params(params)      # one-time weight packing (hoisted out of forward)

    out = sa_model_forward(prep, inputs_list, rels, heads, masks, lengths)
    out = jax.block_until_ready(out)

    assert out.shape == (BATCH, TAG_SIZE), out.shape
    assert bool(jnp.all(jnp.isfinite(out)))
    print("KERNEL_OK")
</pallas_src>

<mosaic_0001>
module attributes {stable_mosaic.version = 11 : i64} {
  func.func @sa_fused_kernel(%arg0: i32, %arg1: memref<2x16x32xf32, #tpu.memory_space<vmem>>, %arg2: memref<16x32xf32, #tpu.memory_space<vmem>>, %arg3: memref<2x64x16xf32, #tpu.memory_space<vmem>>, %arg4: memref<2x64x64xf32, #tpu.memory_space<vmem>>, %arg5: memref<2x64x128xf32, #tpu.memory_space<vmem>>, %arg6: memref<2x64x128xf32, #tpu.memory_space<vmem>>, %arg7: memref<2x32x32xf32, #tpu.memory_space<vmem>>, %arg8: memref<2x1x32xf32, #tpu.memory_space<vmem>>, %arg9: memref<2x1x1xf32, #tpu.memory_space<vmem>>, %arg10: memref<2x32x512xf32, #tpu.memory_space<vmem>>, %arg11: memref<1x512xf32, #tpu.memory_space<vmem>>, %arg12: memref<2x128x256xf32, #tpu.memory_space<vmem>>, %arg13: memref<2x1x256xf32, #tpu.memory_space<vmem>>, %arg14: memref<2x128x512xf32, #tpu.memory_space<vmem>>, %arg15: memref<1x512xf32, #tpu.memory_space<vmem>>, %arg16: memref<2x128x256xf32, #tpu.memory_space<vmem>>, %arg17: memref<2x128x128xf32, #tpu.memory_space<vmem>>, %arg18: memref<8x128xf32, #tpu.memory_space<vmem>>, %arg19: memref<2x64x256xf32, #tpu.memory_space<vmem>>, %arg20: memref<2x64x128xf32, #tpu.memory_space<vmem>>, %arg21: memref<64x512xf32, #tpu.memory_space<vmem>>) attributes {dimension_semantics = [#tpu.dimension_semantics<arbitrary>], iteration_bounds = array<i64: 1>, scalar_prefetch = 0 : i64, scratch_operands = 3 : i64, tpu.core_type = #tpu.core_type<tc>, window_params = [{pipeline_mode = #tpu.pipeline_mode<synchronous>, transform_indices = @transform_0, window_bounds = array<i64: 2, 16, 32>}, {pipeline_mode = #tpu.pipeline_mode<synchronous>, transform_indices = @transform_1, window_bounds = array<i64: 16, 32>}, {pipeline_mode = #tpu.pipeline_mode<synchronous>, transform_indices = @transform_2, window_bounds = array<i64: 2, 64, 16>}, {pipeline_mode = #tpu.pipeline_mode<synchronous>, transform_indices = @transform_3, window_bounds = array<i64: 2, 64, 64>}, {pipeline_mode = #tpu.pipeline_mode<synchronous>, transform_indices = @transform_4, window_bounds = array<i64: 2, 64, 128>}, {pipeline_mode = #tpu.pipeline_mode<synchronous>, transform_indices = @transform_5, window_bounds = array<i64: 2, 64, 128>}, {pipeline_mode = #tpu.pipeline_mode<synchronous>, transform_indices = @transform_6, window_bounds = array<i64: 2, 32, 32>}, {pipeline_mode = #tpu.pipeline_mode<synchronous>, transform_indices = @transform_7, window_bounds = array<i64: 2, 1, 32>}, {pipeline_mode = #tpu.pipeline_mode<synchronous>, transform_indices = @transform_8, window_bounds = array<i64: 2, 1, 1>}, {pipeline_mode = #tpu.pipeline_mode<synchronous>, transform_indices = @transform_9, window_bounds = array<i64: 2, 32, 512>}, {pipeline_mode = #tpu.pipeline_mode<synchronous>, transform_indices = @transform_10, window_bounds = array<i64: 1, 512>}, {pipeline_mode = #tpu.pipeline_mode<synchronous>, transform_indices = @transform_11, window_bounds = array<i64: 2, 128, 256>}, {pipeline_mode = #tpu.pipeline_mode<synchronous>, transform_indices = @transform_12, window_bounds = array<i64: 2, 1, 256>}, {pipeline_mode = #tpu.pipeline_mode<synchronous>, transform_indices = @transform_13, window_bounds = array<i64: 2, 128, 512>}, {pipeline_mode = #tpu.pipeline_mode<synchronous>, transform_indices = @transform_14, window_bounds = array<i64: 1, 512>}, {pipeline_mode = #tpu.pipeline_mode<synchronous>, transform_indices = @transform_15, window_bounds = array<i64: 2, 128, 256>}, {pipeline_mode = #tpu.pipeline_mode<synchronous>, transform_indices = @transform_16, window_bounds = array<i64: 2, 128, 128>}, {pipeline_mode = #tpu.pipeline_mode<synchronous>, transform_indices = @transform_17, window_bounds = array<i64: 8, 128>}]} {
    %cst = arith.constant 0.000000e+00 : f32
    %0 = vector.broadcast %cst : f32 to vector<16x32xf32>
    %c0 = arith.constant 0 : index
    %c0_0 = arith.constant 0 : index
    %c0_1 = arith.constant 0 : index
    %1 = vector.load %arg1[%c0, %c0_0, %c0_1] : memref<2x16x32xf32, #tpu.memory_space<vmem>>, vector<1x16x32xf32>
    %2 = vector.shape_cast %1 : vector<1x16x32xf32> to vector<16x32xf32>
    %c0_2 = arith.constant 0 : index
    %c0_3 = arith.constant 0 : index
    %c0_4 = arith.constant 0 : index
    %3 = vector.load %arg7[%c0_2, %c0_3, %c0_4] : memref<2x32x32xf32, #tpu.memory_space<vmem>>, vector<1x32x32xf32>
    %4 = vector.shape_cast %3 : vector<1x32x32xf32> to vector<32x32xf32>
    %cst_5 = arith.constant dense<0.000000e+00> : vector<16x32xf32>
    %5 = tpu.matmul %2, %4, %cst_5 {dimension_numbers = #tpu.dot_dimension_numbers<[1], [0], [0], [1], [0, 0, 1, 1], [], []>} : vector<16x32xf32>, vector<32x32xf32>, vector<16x32xf32> -> vector<16x32xf32>
    %c0_6 = arith.constant 0 : index
    %c0_7 = arith.constant 0 : index
    %c0_8 = arith.constant 0 : index
    %6 = vector.load %arg8[%c0_6, %c0_7, %c0_8] : memref<2x1x32xf32, #tpu.memory_space<vmem>>, vector<1x1x32xf32>
    %7 = vector.shape_cast %6 : vector<1x1x32xf32> to vector<1x32xf32>
    %8 = vector.broadcast %7 : vector<1x32xf32> to vector<16x32xf32>
    %9 = arith.addf %5, %8 : vector<16x32xf32>
    %c0_9 = arith.constant 0 : index
    %c0_10 = arith.constant 0 : index
    %c0_11 = arith.constant 0 : index
    %10 = vector.load %arg9[%c0_9, %c0_10, %c0_11] : memref<2x1x1xf32, #tpu.memory_space<vmem>>, vector<1x1x1xf32>
    %11 = vector.shape_cast %10 : vector<1x1x1xf32> to vector<1x1xf32>
    %12 = arith.mulf %9, %9 : vector<16x32xf32>
    %13 = arith.mulf %9, %12 : vector<16x32xf32>
    %cst_12 = arith.constant 4.471500e-02 : f32
    %14 = vector.broadcast %cst_12 : f32 to vector<16x32xf32>
    %15 = arith.mulf %14, %13 : vector<16x32xf32>
    %16 = arith.addf %9, %15 : vector<16x32xf32>
    %cst_13 = arith.constant 0.797884583 : f32
    %17 = vector.broadcast %cst_13 : f32 to vector<16x32xf32>
    %18 = arith.mulf %17, %16 : vector<16x32xf32>
    %19 = math.tanh %18 : vector<16x32xf32>
    %cst_14 = arith.constant 1.000000e+00 : f32
    %20 = vector.broadcast %cst_14 : f32 to vector<16x32xf32>
    %21 = arith.addf %20, %19 : vector<16x32xf32>
    %cst_15 = arith.constant 5.000000e-01 : f32
    %22 = vector.broadcast %cst_15 : f32 to vector<16x32xf32>
    %23 = arith.mulf %22, %21 : vector<16x32xf32>
    %24 = arith.mulf %9, %23 : vector<16x32xf32>
    %25 = vector.broadcast %11 : vector<1x1xf32> to vector<16x32xf32>
    %26 = arith.mulf %25, %24 : vector<16x32xf32>
    %27 = arith.addf %0, %26 : vector<16x32xf32>
    %c1 = arith.constant 1 : index
    %c0_16 = arith.constant 0 : index
    %c0_17 = arith.constant 0 : index
    %28 = vector.load %arg1[%c1, %c0_16, %c0_17] : memref<2x16x32xf32, #tpu.memory_space<vmem>>, vector<1x16x32xf32>
    %29 = vector.shape_cast %28 : vector<1x16x32xf32> to vector<16x32xf32>
    %c1_18 = arith.constant 1 : index
    %c0_19 = arith.constant 0 : index
    %c0_20 = arith.constant 0 : index
    %30 = vector.load %arg7[%c1_18, %c0_19, %c0_20] : memref<2x32x32xf32, #tpu.memory_space<vmem>>, vector<1x32x32xf32>
    %31 = vector.shape_cast %30 : vector<1x32x32xf32> to vector<32x32xf32>
    %cst_21 = arith.constant dense<0.000000e+00> : vector<16x32xf32>
    %32 = tpu.matmul %29, %31, %cst_21 {dimension_numbers = #tpu.dot_dimension_numbers<[1], [0], [0], [1], [0, 0, 1, 1], [], []>} : vector<16x32xf32>, vector<32x32xf32>, vector<16x32xf32> -> vector<16x32xf32>
    %c1_22 = arith.constant 1 : index
    %c0_23 = arith.constant 0 : index
    %c0_24 = arith.constant 0 : index
    %33 = vector.load %arg8[%c1_22, %c0_23, %c0_24] : memref<2x1x32xf32, #tpu.memory_space<vmem>>, vector<1x1x32xf32>
    %34 = vector.shape_cast %33 : vector<1x1x32xf32> to vector<1x32xf32>
    %35 = vector.broadcast %34 : vector<1x32xf32> to vector<16x32xf32>
    %36 = arith.addf %32, %35 : vector<16x32xf32>
    %c1_25 = arith.constant 1 : index
    %c0_26 = arith.constant 0 : index
    %c0_27 = arith.constant 0 : index
    %37 = vector.load %arg9[%c1_25, %c0_26, %c0_27] : memref<2x1x1xf32, #tpu.memory_space<vmem>>, vector<1x1x1xf32>
    %38 = vector.shape_cast %37 : vector<1x1x1xf32> to vector<1x1xf32>
    %39 = arith.mulf %36, %36 : vector<16x32xf32>
    %40 = arith.mulf %36, %39 : vector<16x32xf32>
    %cst_28 = arith.constant 4.471500e-02 : f32
    %41 = vector.broadcast %cst_28 : f32 to vector<16x32xf32>
    %42 = arith.mulf %41, %40 : vector<16x32xf32>
    %43 = arith.addf %36, %42 : vector<16x32xf32>
    %cst_29 = arith.constant 0.797884583 : f32
    %44 = vector.broadcast %cst_29 : f32 to vector<16x32xf32>
    %45 = arith.mulf %44, %43 : vector<16x32xf32>
    %46 = math.tanh %45 : vector<16x32xf32>
    %cst_30 = arith.constant 1.000000e+00 : f32
    %47 = vector.broadcast %cst_30 : f32 to vector<16x32xf32>
    %48 = arith.addf %47, %46 : vector<16x32xf32>
    %cst_31 = arith.constant 5.000000e-01 : f32
    %49 = vector.broadcast %cst_31 : f32 to vector<16x32xf32>
    %50 = arith.mulf %49, %48 : vector<16x32xf32>
    %51 = arith.mulf %36, %50 : vector<16x32xf32>
    %52 = vector.broadcast %38 : vector<1x1xf32> to vector<16x32xf32>
    %53 = arith.mulf %52, %51 : vector<16x32xf32>
    %54 = arith.addf %27, %53 : vector<16x32xf32>
    %c0_32 = arith.constant 0 : index
    %c0_33 = arith.constant 0 : index
    %c0_34 = arith.constant 0 : index
    %55 = vector.load %arg10[%c0_32, %c0_33, %c0_34] : memref<2x32x512xf32, #tpu.memory_space<vmem>>, vector<1x32x512xf32>
    %56 = vector.shape_cast %55 : vector<1x32x512xf32> to vector<32x512xf32>
    %cst_35 = arith.constant dense<0.000000e+00> : vector<16x512xf32>
    %57 = tpu.matmul %54, %56, %cst_35 {dimension_numbers = #tpu.dot_dimension_numbers<[1], [0], [0], [1], [0, 0, 1, 1], [], []>} : vector<16x32xf32>, vector<32x512xf32>, vector<16x512xf32> -> vector<16x512xf32>
    %c0_36 = arith.constant 0 : index
    %c0_37 = arith.constant 0 : index
    %58 = vector.load %arg2[%c0_36, %c0_37] : memref<16x32xf32, #tpu.memory_space<vmem>>, vector<16x32xf32>
    %c1_38 = arith.constant 1 : index
    %c0_39 = arith.constant 0 : index
    %c0_40 = arith.constant 0 : index
    %59 = vector.load %arg10[%c1_38, %c0_39, %c0_40] : memref<2x32x512xf32, #tpu.memory_space<vmem>>, vector<1x32x512xf32>
    %60 = vector.shape_cast %59 : vector<1x32x512xf32> to vector<32x512xf32>
    %cst_41 = arith.constant dense<0.000000e+00> : vector<16x512xf32>
    %61 = tpu.matmul %58, %60, %cst_41 {dimension_numbers = #tpu.dot_dimension_numbers<[1], [0], [0], [1], [0, 0, 1, 1], [], []>} : vector<16x32xf32>, vector<32x512xf32>, vector<16x512xf32> -> vector<16x512xf32>
    %62 = arith.addf %57, %61 : vector<16x512xf32>
    %c0_42 = arith.constant 0 : index
    %c0_43 = arith.constant 0 : index
    %63 = vector.load %arg11[%c0_42, %c0_43] : memref<1x512xf32, #tpu.memory_space<vmem>>, vector<1x512xf32>
    %64 = vector.broadcast %63 : vector<1x512xf32> to vector<16x512xf32>
    %65 = arith.addf %62, %64 : vector<16x512xf32>
    %c0_44 = arith.constant 0 : index
    %c0_45 = arith.constant 0 : index
    %c0_46 = arith.constant 0 : index
    %66 = vector.load %arg3[%c0_44, %c0_45, %c0_46] : memref<2x64x16xf32, #tpu.memory_space<vmem>>, vector<1x64x16xf32>
    %67 = vector.shape_cast %66 : vector<1x64x16xf32> to vector<64x16xf32>
    %68 = vector.extract_strided_slice %65 {offsets = [0, 0], sizes = [16, 256], strides = [1, 1]} : vector<16x512xf32> to vector<16x256xf32>
    %cst_47 = arith.constant dense<0.000000e+00> : vector<64x256xf32>
    %69 = tpu.matmul %67, %68, %cst_47 {dimension_numbers = #tpu.dot_dimension_numbers<[1], [0], [0], [1], [0, 0, 1, 1], [], []>} : vector<64x16xf32>, vector<16x256xf32>, vector<64x256xf32> -> vector<64x256xf32>
    %c0_48 = arith.constant 0 : index
    %c0_49 = arith.constant 0 : index
    %c0_50 = arith.constant 0 : index
    %70 = vector.load %arg19[%c0_48, %c0_49, %c0_50] : memref<2x64x256xf32, #tpu.memory_space<vmem>>, vector<1x64x256xf32>
    %71 = vector.shape_cast %70 : vector<1x64x256xf32> to vector<64x256xf32>
    %72 = vector.shape_cast %69 : vector<64x256xf32> to vector<1x64x256xf32>
    tpu.vector_store %arg19[%c0_48, %c0_49, %c0_50], %72 {strides = array<i32>} : memref<2x64x256xf32, #tpu.memory_space<vmem>>, vector<1x64x256xf32>,
    %c1_51 = arith.constant 1 : index
    %c0_52 = arith.constant 0 : index
    %c0_53 = arith.constant 0 : index
    %73 = vector.load %arg3[%c1_51, %c0_52, %c0_53] : memref<2x64x16xf32, #tpu.memory_space<vmem>>, vector<1x64x16xf32>
    %74 = vector.shape_cast %73 : vector<1x64x16xf32> to vector<64x16xf32>
    %75 = vector.extract_strided_slice %65 {offsets = [0, 256], sizes = [16, 256], strides = [1, 1]} : vector<16x512xf32> to vector<16x256xf32>
    %cst_54 = arith.constant dense<0.000000e+00> : vector<64x256xf32>
    %76 = tpu.matmul %74, %75, %cst_54 {dimension_numbers = #tpu.dot_dimension_numbers<[1], [0], [0], [1], [0, 0, 1, 1], [], []>} : vector<64x16xf32>, vector<16x256xf32>, vector<64x256xf32> -> vector<64x256xf32>
    %c1_55 = arith.constant 1 : index
    %c0_56 = arith.constant 0 : index
    %c0_57 = arith.constant 0 : index
    %77 = vector.load %arg19[%c1_55, %c0_56, %c0_57] : memref<2x64x256xf32, #tpu.memory_space<vmem>>, vector<1x64x256xf32>
    %78 = vector.shape_cast %77 : vector<1x64x256xf32> to vector<64x256xf32>
    %79 = vector.shape_cast %76 : vector<64x256xf32> to vector<1x64x256xf32>
    tpu.vector_store %arg19[%c1_55, %c0_56, %c0_57], %79 {strides = array<i32>} : memref<2x64x256xf32, #tpu.memory_space<vmem>>, vector<1x64x256xf32>,
    %cst_58 = arith.constant 0.000000e+00 : f32
    %80 = vector.broadcast %cst_58 : f32 to vector<8x128xf32>
    %c0_59 = arith.constant 0 : index
    %c0_60 = arith.constant 0 : index
    %c0_61 = arith.constant 0 : index
    %81 = vector.load %arg13[%c0_59, %c0_60, %c0_61] : memref<2x1x256xf32, #tpu.memory_space<vmem>>, vector<1x1x256xf32>
    %82 = vector.shape_cast %81 : vector<1x1x256xf32> to vector<1x256xf32>
    %83 = vector.shape_cast %82 : vector<1x256xf32> to vector<1x256xf32>
    %84 = vector.broadcast %83 : vector<1x256xf32> to vector<8x256xf32>
    %c1_62 = arith.constant 1 : index
    %c0_63 = arith.constant 0 : index
    %c0_64 = arith.constant 0 : index
    %85 = vector.load %arg13[%c1_62, %c0_63, %c0_64] : memref<2x1x256xf32, #tpu.memory_space<vmem>>, vector<1x1x256xf32>
    %86 = vector.shape_cast %85 : vector<1x1x256xf32> to vector<1x256xf32>
    %87 = vector.shape_cast %86 : vector<1x256xf32> to vector<1x256xf32>
    %88 = vector.broadcast %87 : vector<1x256xf32> to vector<8x256xf32>
    %c0_65 = arith.constant 0 : index
    %c0_66 = arith.constant 0 : index
    %c0_67 = arith.constant 0 : index
    %89 = vector.load %arg19[%c0_65, %c0_66, %c0_67] : memref<2x64x256xf32, #tpu.memory_space<vmem>>, vector<1x8x256xf32>
    %90 = vector.shape_cast %89 : vector<1x8x256xf32> to vector<8x256xf32>
    %c0_68 = arith.constant 0 : index
    %c0_69 = arith.constant 0 : index
    %c0_70 = arith.constant 0 : index
    %91 = vector.load %arg5[%c0_68, %c0_69, %c0_70] : memref<2x64x128xf32, #tpu.memory_space<vmem>>, vector<1x8x128xf32>
    %92 = vector.shape_cast %91 : vector<1x8x128xf32> to vector<8x128xf32>
    %cst_71 = arith.constant 0.000000e+00 : f32
    %93 = vector.broadcast %cst_71 : f32 to vector<8x128xf32>
    %94 = arith.cmpf ogt, %92, %93 : vector<8x128xf32>
    %c0_72 = arith.constant 0 : index
    %c0_73 = arith.constant 0 : index
    %c0_74 = arith.constant 0 : index
    %95 = vector.load %arg12[%c0_72, %c0_73, %c0_74] : memref<2x128x256xf32, #tpu.memory_space<vmem>>, vector<1x128x256xf32>
    %96 = vector.shape_cast %95 : vector<1x128x256xf32> to vector<128x256xf32>
    %cst_75 = arith.constant dense<0.000000e+00> : vector<8x256xf32>
    %97 = tpu.matmul %80, %96, %cst_75 {dimension_numbers = #tpu.dot_dimension_numbers<[1], [0], [0], [1], [0, 0, 1, 1], [], []>} : vector<8x128xf32>, vector<128x256xf32>, vector<8x256xf32> -> vector<8x256xf32>
    %98 = arith.addf %97, %84 : vector<8x256xf32>
    %99 = vector.extract_strided_slice %90 {offsets = [0, 0], sizes = [8, 128], strides = [1, 1]} : vector<8x256xf32> to vector<8x128xf32>
    %100 = vector.extract_strided_slice %98 {offsets = [0, 0], sizes = [8, 128], strides = [1, 1]} : vector<8x256xf32> to vector<8x128xf32>
    %101 = arith.addf %99, %100 : vector<8x128xf32>
    %102 = arith.negf %101 : vector<8x128xf32>
    %103 = math.exp %102 : vector<8x128xf32>
    %cst_76 = arith.constant 1.000000e+00 : f32
    %104 = vector.broadcast %cst_76 : f32 to vector<8x128xf32>
    %105 = arith.addf %104, %103 : vector<8x128xf32>
    %106 = arith.divf %104, %105 : vector<8x128xf32>
    %c64_i32 = arith.constant 64 : i32
    %107 = tpu.dynamic_rotate %106 by %c64_i32 dim 1 : vector<8x128xf32>, i32 -> vector<8x128xf32>
    %108 = vector.extract_strided_slice %90 {offsets = [0, 128], sizes = [8, 128], strides = [1, 1]} : vector<8x256xf32> to vector<8x128xf32>
    %109 = vector.extract_strided_slice %98 {offsets = [0, 128], sizes = [8, 128], strides = [1, 1]} : vector<8x256xf32> to vector<8x128xf32>
    %110 = arith.mulf %107, %109 : vector<8x128xf32>
    %111 = arith.addf %108, %110 : vector<8x128xf32>
    %112 = math.tanh %111 : vector<8x128xf32>
    %c64_i32_77 = arith.constant 64 : i32
    %113 = tpu.dynamic_rotate %112 by %c64_i32_77 dim 1 : vector<8x128xf32>, i32 -> vector<8x128xf32>
    %cst_78 = arith.constant 1.000000e+00 : f32
    %114 = vector.broadcast %cst_78 : f32 to vector<8x128xf32>
    %115 = arith.subf %114, %107 : vector<8x128xf32>
    %116 = arith.mulf %115, %113 : vector<8x128xf32>
    %117 = arith.mulf %107, %80 : vector<8x128xf32>
    %118 = arith.addf %116, %117 : vector<8x128xf32>
    %119 = arith.select %94, %118, %80 : vector<8x128xi1>, vector<8x128xf32>
    %cst_79 = arith.constant 0.000000e+00 : f32
    %120 = vector.broadcast %cst_79 : f32 to vector<8x128xf32>
    %121 = arith.select %94, %118, %120 : vector<8x128xi1>, vector<8x128xf32>
    %c0_80 = arith.constant 0 : index
    %c0_81 = arith.constant 0 : index
    %c0_82 = arith.constant 0 : index
    %122 = vector.load %arg20[%c0_80, %c0_81, %c0_82] : memref<2x64x128xf32, #tpu.memory_space<vmem>>, vector<1x8x128xf32>
    %123 = vector.shape_cast %122 : vector<1x8x128xf32> to vector<8x128xf32>
    %124 = vector.shape_cast %121 : vector<8x128xf32> to vector<1x8x128xf32>
    tpu.vector_store %arg20[%c0_80, %c0_81, %c0_82], %124 {strides = array<i32>} : memref<2x64x128xf32, #tpu.memory_space<vmem>>, vector<1x8x128xf32>,
    %c1_83 = arith.constant 1 : index
    %c0_84 = arith.constant 0 : index
    %c0_85 = arith.constant 0 : index
    %125 = vector.load %arg19[%c1_83, %c0_84, %c0_85] : memref<2x64x256xf32, #tpu.memory_space<vmem>>, vector<1x8x256xf32>
    %126 = vector.shape_cast %125 : vector<1x8x256xf32> to vector<8x256xf32>
    %c1_86 = arith.constant 1 : index
    %c0_87 = arith.constant 0 : index
    %c0_88 = arith.constant 0 : index
    %127 = vector.load %arg5[%c1_86, %c0_87, %c0_88] : memref<2x64x128xf32, #tpu.memory_space<vmem>>, vector<1x8x128xf32>
    %128 = vector.shape_cast %127 : vector<1x8x128xf32> to vector<8x128xf32>
    %cst_89 = arith.constant 0.000000e+00 : f32
    %129 = vector.broadcast %cst_89 : f32 to vector<8x128xf32>
    %130 = arith.cmpf ogt, %128, %129 : vector<8x128xf32>
    %c1_90 = arith.constant 1 : index
    %c0_91 = arith.constant 0 : index
    %c0_92 = arith.constant 0 : index
    %131 = vector.load %arg12[%c1_90, %c0_91, %c0_92] : memref<2x128x256xf32, #tpu.memory_space<vmem>>, vector<1x128x256xf32>
    %132 = vector.shape_cast %131 : vector<1x128x256xf32> to vector<128x256xf32>
    %cst_93 = arith.constant dense<0.000000e+00> : vector<8x256xf32>
    %133 = tpu.matmul %80, %132, %cst_93 {dimension_numbers = #tpu.dot_dimension_numbers<[1], [0], [0], [1], [0, 0, 1, 1], [], []>} : vector<8x128xf32>, vector<128x256xf32>, vector<8x256xf32> -> vector<8x256xf32>
    %134 = arith.addf %133, %88 : vector<8x256xf32>
    %135 = vector.extract_strided_slice %126 {offsets = [0, 0], sizes = [8, 128], strides = [1, 1]} : vector<8x256xf32> to vector<8x128xf32>
    %136 = vector.extract_strided_slice %134 {offsets = [0, 0], sizes = [8, 128], strides = [1, 1]} : vector<8x256xf32> to vector<8x128xf32>
    %137 = arith.addf %135, %136 : vector<8x128xf32>
    %138 = arith.negf %137 : vector<8x128xf32>
    %139 = math.exp %138 : vector<8x128xf32>
    %cst_94 = arith.constant 1.000000e+00 : f32
    %140 = vector.broadcast %cst_94 : f32 to vector<8x128xf32>
    %141 = arith.addf %140, %139 : vector<8x128xf32>
    %142 = arith.divf %140, %141 : vector<8x128xf32>
    %c64_i32_95 = arith.constant 64 : i32
    %143 = tpu.dynamic_rotate %142 by %c64_i32_95 dim 1 : vector<8x128xf32>, i32 -> vector<8x128xf32>
    %144 = vector.extract_strided_slice %126 {offsets = [0, 128], sizes = [8, 128], strides = [1, 1]} : vector<8x256xf32> to vector<8x128xf32>
    %145 = vector.extract_strided_slice %134 {offsets = [0, 128], sizes = [8, 128], strides = [1, 1]} : vector<8x256xf32> to vector<8x128xf32>
    %146 = arith.mulf %143, %145 : vector<8x128xf32>
    %147 = arith.addf %144, %146 : vector<8x128xf32>
    %148 = math.tanh %147 : vector<8x128xf32>
    %c64_i32_96 = arith.constant 64 : i32
    %149 = tpu.dynamic_rotate %148 by %c64_i32_96 dim 1 : vector<8x128xf32>, i32 -> vector<8x128xf32>
    %cst_97 = arith.constant 1.000000e+00 : f32
    %150 = vector.broadcast %cst_97 : f32 to vector<8x128xf32>
    %151 = arith.subf %150, %143 : vector<8x128xf32>
    %152 = arith.mulf %151, %149 : vector<8x128xf32>
    %153 = arith.mulf %143, %80 : vector<8x128xf32>
    %154 = arith.addf %152, %153 : vector<8x128xf32>
    %155 = arith.select %130, %154, %80 : vector<8x128xi1>, vector<8x128xf32>
    %cst_98 = arith.constant 0.000000e+00 : f32
    %156 = vector.broadcast %cst_98 : f32 to vector<8x128xf32>
    %157 = arith.select %130, %154, %156 : vector<8x128xi1>, vector<8x128xf32>
    %c1_99 = arith.constant 1 : index
    %c0_100 = arith.constant 0 : index
    %c0_101 = arith.constant 0 : index
    %158 = vector.load %arg20[%c1_99, %c0_100, %c0_101] : memref<2x64x128xf32, #tpu.memory_space<vmem>>, vector<1x8x128xf32>
    %159 = vector.shape_cast %158 : vector<1x8x128xf32> to vector<8x128xf32>
    %160 = vector.shape_cast %157 : vector<8x128xf32> to vector<1x8x128xf32>
    tpu.vector_store %arg20[%c1_99, %c0_100, %c0_101], %160 {strides = array<i32>} : memref<2x64x128xf32, #tpu.memory_space<vmem>>, vector<1x8x128xf32>,
    %c0_102 = arith.constant 0 : index
    %c8 = arith.constant 8 : index
    %c0_103 = arith.constant 0 : index
    %161 = vector.load %arg19[%c0_102, %c8, %c0_103] : memref<2x64x256xf32, #tpu.memory_space<vmem>>, vector<1x8x256xf32>
    %162 = vector.shape_cast %161 : vector<1x8x256xf32> to vector<8x256xf32>
    %c0_104 = arith.constant 0 : index
    %c8_105 = arith.constant 8 : index
    %c0_106 = arith.constant 0 : index
    %163 = vector.load %arg5[%c0_104, %c8_105, %c0_106] : memref<2x64x128xf32, #tpu.memory_space<vmem>>, vector<1x8x128xf32>
    %164 = vector.shape_cast %163 : vector<1x8x128xf32> to vector<8x128xf32>
    %cst_107 = arith.constant 0.000000e+00 : f32
    %165 = vector.broadcast %cst_107 : f32 to vector<8x128xf32>
    %166 = arith.cmpf ogt, %164, %165 : vector<8x128xf32>
    %c0_108 = arith.constant 0 : index
    %c0_109 = arith.constant 0 : index
    %c0_110 = arith.constant 0 : index
    %167 = vector.load %arg12[%c0_108, %c0_109, %c0_110] : memref<2x128x256xf32, #tpu.memory_space<vmem>>, vector<1x128x256xf32>
    %168 = vector.shape_cast %167 : vector<1x128x256xf32> to vector<128x256xf32>
    %cst_111 = arith.constant dense<0.000000e+00> : vector<8x256xf32>
    %169 = tpu.matmul %119, %168, %cst_111 {dimension_numbers = #tpu.dot_dimension_numbers<[1], [0], [0], [1], [0, 0, 1, 1], [], []>} : vector<8x128xf32>, vector<128x256xf32>, vector<8x256xf32> -> vector<8x256xf32>
    %170 = arith.addf %169, %84 : vector<8x256xf32>
    %171 = vector.extract_strided_slice %162 {offsets = [0, 0], sizes = [8, 128], strides = [1, 1]} : vector<8x256xf32> to vector<8x128xf32>
    %172 = vector.extract_strided_slice %170 {offsets = [0, 0], sizes = [8, 128], strides = [1, 1]} : vector<8x256xf32> to vector<8x128xf32>
    %173 = arith.addf %171, %172 : vector<8x128xf32>
    %174 = arith.negf %173 : vector<8x128xf32>
    %175 = math.exp %174 : vector<8x128xf32>
    %cst_112 = arith.constant 1.000000e+00 : f32
    %176 = vector.broadcast %cst_112 : f32 to vector<8x128xf32>
    %177 = arith.addf %176, %175 : vector<8x128xf32>
    %178 = arith.divf %176, %177 : vector<8x128xf32>
    %c64_i32_113 = arith.constant 64 : i32
    %179 = tpu.dynamic_rotate %178 by %c64_i32_113 dim 1 : vector<8x128xf32>, i32 -> vector<8x128xf32>
    %180 = vector.extract_strided_slice %162 {offsets = [0, 128], sizes = [8, 128], strides = [1, 1]} : vector<8x256xf32> to vector<8x128xf32>
    %181 = vector.extract_strided_slice %170 {offsets = [0, 128], sizes = [8, 128], strides = [1, 1]} : vector<8x256xf32> to vector<8x128xf32>
    %182 = arith.mulf %179, %181 : vector<8x128xf32>
    %183 = arith.addf %180, %182 : vector<8x128xf32>
    %184 = math.tanh %183 : vector<8x128xf32>
    %c64_i32_114 = arith.constant 64 : i32
    %185 = tpu.dynamic_rotate %184 by %c64_i32_114 dim 1 : vector<8x128xf32>, i32 -> vector<8x128xf32>
    %cst_115 = arith.constant 1.000000e+00 : f32
    %186 = vector.broadcast %cst_115 : f32 to vector<8x128xf32>
    %187 = arith.subf %186, %179 : vector<8x128xf32>
    %188 = arith.mulf %187, %185 : vector<8x128xf32>
    %189 = arith.mulf %179, %119 : vector<8x128xf32>
    %190 = arith.addf %188, %189 : vector<8x128xf32>
    %191 = arith.select %166, %190, %119 : vector<8x128xi1>, vector<8x128xf32>
    %cst_116 = arith.constant 0.000000e+00 : f32
    %192 = vector.broadcast %cst_116 : f32 to vector<8x128xf32>
    %193 = arith.select %166, %190, %192 : vector<8x128xi1>, vector<8x128xf32>
    %c0_117 = arith.constant 0 : index
    %c8_118 = arith.constant 8 : index
    %c0_119 = arith.constant 0 : index
    %194 = vector.load %arg20[%c0_117, %c8_118, %c0_119] : memref<2x64x128xf32, #tpu.memory_space<vmem>>, vector<1x8x128xf32>
    %195 = vector.shape_cast %194 : vector<1x8x128xf32> to vector<8x128xf32>
    %196 = vector.shape_cast %193 : vector<8x128xf32> to vector<1x8x128xf32>
    tpu.vector_store %arg20[%c0_117, %c8_118, %c0_119], %196 {strides = array<i32>} : memref<2x64x128xf32, #tpu.memory_space<vmem>>, vector<1x8x128xf32>,
    %c1_120 = arith.constant 1 : index
    %c8_121 = arith.constant 8 : index
    %c0_122 = arith.constant 0 : index
    %197 = vector.load %arg19[%c1_120, %c8_121, %c0_122] : memref<2x64x256xf32, #tpu.memory_space<vmem>>, vector<1x8x256xf32>
    %198 = vector.shape_cast %197 : vector<1x8x256xf32> to vector<8x256xf32>
    %c1_123 = arith.constant 1 : index
    %c8_124 = arith.constant 8 : index
    %c0_125 = arith.constant 0 : index
    %199 = vector.load %arg5[%c1_123, %c8_124, %c0_125] : memref<2x64x128xf32, #tpu.memory_space<vmem>>, vector<1x8x128xf32>
    %200 = vector.shape_cast %199 : vector<1x8x128xf32> to vector<8x128xf32>
    %cst_126 = arith.constant 0.000000e+00 : f32
    %201 = vector.broadcast %cst_126 : f32 to vector<8x128xf32>
    %202 = arith.cmpf ogt, %200, %201 : vector<8x128xf32>
    %c1_127 = arith.constant 1 : index
    %c0_128 = arith.constant 0 : index
    %c0_129 = arith.constant 0 : index
    %203 = vector.load %arg12[%c1_127, %c0_128, %c0_129] : memref<2x128x256xf32, #tpu.memory_space<vmem>>, vector<1x128x256xf32>
    %204 = vector.shape_cast %203 : vector<1x128x256xf32> to vector<128x256xf32>
    %cst_130 = arith.constant dense<0.000000e+00> : vector<8x256xf32>
    %205 = tpu.matmul %155, %204, %cst_130 {dimension_numbers = #tpu.dot_dimension_numbers<[1], [0], [0], [1], [0, 0, 1, 1], [], []>} : vector<8x128xf32>, vector<128x256xf32>, vector<8x256xf32> -> vector<8x256xf32>
    %206 = arith.addf %205, %88 : vector<8x256xf32>
    %207 = vector.extract_strided_slice %198 {offsets = [0, 0], sizes = [8, 128], strides = [1, 1]} : vector<8x256xf32> to vector<8x128xf32>
    %208 = vector.extract_strided_slice %206 {offsets = [0, 0], sizes = [8, 128], strides = [1, 1]} : vector<8x256xf32> to vector<8x128xf32>
    %209 = arith.addf %207, %208 : vector<8x128xf32>
    %210 = arith.negf %209 : vector<8x128xf32>
    %211 = math.exp %210 : vector<8x128xf32>
    %cst_131 = arith.constant 1.000000e+00 : f32
    %212 = vector.broadcast %cst_131 : f32 to vector<8x128xf32>
    %213 = arith.addf %212, %211 : vector<8x128xf32>
    %214 = arith.divf %212, %213 : vector<8x128xf32>
    %c64_i32_132 = arith.constant 64 : i32
    %215 = tpu.dynamic_rotate %214 by %c64_i32_132 dim 1 : vector<8x128xf32>, i32 -> vector<8x128xf32>
    %216 = vector.extract_strided_slice %198 {offsets = [0, 128], sizes = [8, 128], strides = [1, 1]} : vector<8x256xf32> to vector<8x128xf32>
    %217 = vector.extract_strided_slice %206 {offsets = [0, 128], sizes = [8, 128], strides = [1, 1]} : vector<8x256xf32> to vector<8x128xf32>
    %218 = arith.mulf %215, %217 : vector<8x128xf32>
    %219 = arith.addf %216, %218 : vector<8x128xf32>
    %220 = math.tanh %219 : vector<8x128xf32>
    %c64_i32_133 = arith.constant 64 : i32
    %221 = tpu.dynamic_rotate %220 by %c64_i32_133 dim 1 : vector<8x128xf32>, i32 -> vector<8x128xf32>
    %cst_134 = arith.constant 1.000000e+00 : f32
    %222 = vector.broadcast %cst_134 : f32 to vector<8x128xf32>
    %223 = arith.subf %222, %215 : vector<8x128xf32>
    %224 = arith.mulf %223, %221 : vector<8x128xf32>
    %225 = arith.mulf %215, %155 : vector<8x128xf32>
    %226 = arith.addf %224, %225 : vector<8x128xf32>
    %227 = arith.select %202, %226, %155 : vector<8x128xi1>, vector<8x128xf32>
    %cst_135 = arith.constant 0.000000e+00 : f32
    %228 = vector.broadcast %cst_135 : f32 to vector<8x128xf32>
    %229 = arith.select %202, %226, %228 : vector<8x128xi1>, vector<8x128xf32>
    %c1_136 = arith.constant 1 : index
    %c8_137 = arith.constant 8 : index
    %c0_138 = arith.constant 0 : index
    %230 = vector.load %arg20[%c1_136, %c8_137, %c0_138] : memref<2x64x128xf32, #tpu.memory_space<vmem>>, vector<1x8x128xf32>
    %231 = vector.shape_cast %230 : vector<1x8x128xf32> to vector<8x128xf32>
    %232 = vector.shape_cast %229 : vector<8x128xf32> to vector<1x8x128xf32>
    tpu.vector_store %arg20[%c1_136, %c8_137, %c0_138], %232 {strides = array<i32>} : memref<2x64x128xf32, #tpu.memory_space<vmem>>, vector<1x8x128xf32>,
    %c0_139 = arith.constant 0 : index
    %c16 = arith.constant 16 : index
    %c0_140 = arith.constant 0 : index
    %233 = vector.load %arg19[%c0_139, %c16, %c0_140] : memref<2x64x256xf32, #tpu.memory_space<vmem>>, vector<1x8x256xf32>
    %234 = vector.shape_cast %233 : vector<1x8x256xf32> to vector<8x256xf32>
    %c0_141 = arith.constant 0 : index
    %c16_142 = arith.constant 16 : index
    %c0_143 = arith.constant 0 : index
    %235 = vector.load %arg5[%c0_141, %c16_142, %c0_143] : memref<2x64x128xf32, #tpu.memory_space<vmem>>, vector<1x8x128xf32>
    %236 = vector.shape_cast %235 : vector<1x8x128xf32> to vector<8x128xf32>
    %cst_144 = arith.constant 0.000000e+00 : f32
    %237 = vector.broadcast %cst_144 : f32 to vector<8x128xf32>
    %238 = arith.cmpf ogt, %236, %237 : vector<8x128xf32>
    %c0_145 = arith.constant 0 : index
    %c0_146 = arith.constant 0 : index
    %c0_147 = arith.constant 0 : index
    %239 = vector.load %arg12[%c0_145, %c0_146, %c0_147] : memref<2x128x256xf32, #tpu.memory_space<vmem>>, vector<1x128x256xf32>
    %240 = vector.shape_cast %239 : vector<1x128x256xf32> to vector<128x256xf32>
    %cst_148 = arith.constant dense<0.000000e+00> : vector<8x256xf32>
    %241 = tpu.matmul %191, %240, %cst_148 {dimension_numbers = #tpu.dot_dimension_numbers<[1], [0], [0], [1], [0, 0, 1, 1], [], []>} : vector<8x128xf32>, vector<128x256xf32>, vector<8x256xf32> -> vector<8x256xf32>
    %242 = arith.addf %241, %84 : vector<8x256xf32>
    %243 = vector.extract_strided_slice %234 {offsets = [0, 0], sizes = [8, 128], strides = [1, 1]} : vector<8x256xf32> to vector<8x128xf32>
    %244 = vector.extract_strided_slice %242 {offsets = [0, 0], sizes = [8, 128], strides = [1, 1]} : vector<8x256xf32> to vector<8x128xf32>
    %245 = arith.addf %243, %244 : vector<8x128xf32>
    %246 = arith.negf %245 : vector<8x128xf32>
    %247 = math.exp %246 : vector<8x128xf32>
    %cst_149 = arith.constant 1.000000e+00 : f32
    %248 = vector.broadcast %cst_149 : f32 to vector<8x128xf32>
    %249 = arith.addf %248, %247 : vector<8x128xf32>
    %250 = arith.divf %248, %249 : vector<8x128xf32>
    %c64_i32_150 = arith.constant 64 : i32
    %251 = tpu.dynamic_rotate %250 by %c64_i32_150 dim 1 : vector<8x128xf32>, i32 -> vector<8x128xf32>
    %252 = vector.extract_strided_slice %234 {offsets = [0, 128], sizes = [8, 128], strides = [1, 1]} : vector<8x256xf32> to vector<8x128xf32>
    %253 = vector.extract_strided_slice %242 {offsets = [0, 128], sizes = [8, 128], strides = [1, 1]} : vector<8x256xf32> to vector<8x128xf32>
    %254 = arith.mulf %251, %253 : vector<8x128xf32>
    %255 = arith.addf %252, %254 : vector<8x128xf32>
    %256 = math.tanh %255 : vector<8x128xf32>
    %c64_i32_151 = arith.constant 64 : i32
    %257 = tpu.dynamic_rotate %256 by %c64_i32_151 dim 1 : vector<8x128xf32>, i32 -> vector<8x128xf32>
    %cst_152 = arith.constant 1.000000e+00 : f32
    %258 = vector.broadcast %cst_152 : f32 to vector<8x128xf32>
    %259 = arith.subf %258, %251 : vector<8x128xf32>
    %260 = arith.mulf %259, %257 : vector<8x128xf32>
    %261 = arith.mulf %251, %191 : vector<8x128xf32>
    %262 = arith.addf %260, %261 : vector<8x128xf32>
    %263 = arith.select %238, %262, %191 : vector<8x128xi1>, vector<8x128xf32>
    %cst_153 = arith.constant 0.000000e+00 : f32
    %264 = vector.broadcast %cst_153 : f32 to vector<8x128xf32>
    %265 = arith.select %238, %262, %264 : vector<8x128xi1>, vector<8x128xf32>
    %c0_154 = arith.constant 0 : index
    %c16_155 = arith.constant 16 : index
    %c0_156 = arith.constant 0 : index
    %266 = vector.load %arg20[%c0_154, %c16_155, %c0_156] : memref<2x64x128xf32, #tpu.memory_space<vmem>>, vector<1x8x128xf32>
    %267 = vector.shape_cast %266 : vector<1x8x128xf32> to vector<8x128xf32>
    %268 = vector.shape_cast %265 : vector<8x128xf32> to vector<1x8x128xf32>
    tpu.vector_store %arg20[%c0_154, %c16_155, %c0_156], %268 {strides = array<i32>} : memref<2x64x128xf32, #tpu.memory_space<vmem>>, vector<1x8x128xf32>,
    %c1_157 = arith.constant 1 : index
    %c16_158 = arith.constant 16 : index
    %c0_159 = arith.constant 0 : index
    %269 = vector.load %arg19[%c1_157, %c16_158, %c0_159] : memref<2x64x256xf32, #tpu.memory_space<vmem>>, vector<1x8x256xf32>
    %270 = vector.shape_cast %269 : vector<1x8x256xf32> to vector<8x256xf32>
    %c1_160 = arith.constant 1 : index
    %c16_161 = arith.constant 16 : index
    %c0_162 = arith.constant 0 : index
    %271 = vector.load %arg5[%c1_160, %c16_161, %c0_162] : memref<2x64x128xf32, #tpu.memory_space<vmem>>, vector<1x8x128xf32>
    %272 = vector.shape_cast %271 : vector<1x8x128xf32> to vector<8x128xf32>
    %cst_163 = arith.constant 0.000000e+00 : f32
    %273 = vector.broadcast %cst_163 : f32 to vector<8x128xf32>
    %274 = arith.cmpf ogt, %272, %273 : vector<8x128xf32>
    %c1_164 = arith.constant 1 : index
    %c0_165 = arith.constant 0 : index
    %c0_166 = arith.constant 0 : index
    %275 = vector.load %arg12[%c1_164, %c0_165, %c0_166] : memref<2x128x256xf32, #tpu.memory_space<vmem>>, vector<1x128x256xf32>
    %276 = vector.shape_cast %275 : vector<1x128x256xf32> to vector<128x256xf32>
    %cst_167 = arith.constant dense<0.000000e+00> : vector<8x256xf32>
    %277 = tpu.matmul %227, %276, %cst_167 {dimension_numbers = #tpu.dot_dimension_numbers<[1], [0], [0], [1], [0, 0, 1, 1], [], []>} : vector<8x128xf32>, vector<128x256xf32>, vector<8x256xf32> -> vector<8x256xf32>
    %278 = arith.addf %277, %88 : vector<8x256xf32>
    %279 = vector.extract_strided_slice %270 {offsets = [0, 0], sizes = [8, 128], strides = [1, 1]} : vector<8x256xf32> to vector<8x128xf32>
    %280 = vector.extract_strided_slice %278 {offsets = [0, 0], sizes = [8, 128], strides = [1, 1]} : vector<8x256xf32> to vector<8x128xf32>
    %281 = arith.addf %279, %280 : vector<8x128xf32>
    %282 = arith.negf %281 : vector<8x128xf32>
    %283 = math.exp %282 : vector<8x128xf32>
    %cst_168 = arith.constant 1.000000e+00 : f32
    %284 = vector.broadcast %cst_168 : f32 to vector<8x128xf32>
    %285 = arith.addf %284, %283 : vector<8x128xf32>
    %286 = arith.divf %284, %285 : vector<8x128xf32>
    %c64_i32_169 = arith.constant 64 : i32
    %287 = tpu.dynamic_rotate %286 by %c64_i32_169 dim 1 : vector<8x128xf32>, i32 -> vector<8x128xf32>
    %288 = vector.extract_strided_slice %270 {offsets = [0, 128], sizes = [8, 128], strides = [1, 1]} : vector<8x256xf32> to vector<8x128xf32>
    %289 = vector.extract_strided_slice %278 {offsets = [0, 128], sizes = [8, 128], strides = [1, 1]} : vector<8x256xf32> to vector<8x128xf32>
    %290 = arith.mulf %287, %289 : vector<8x128xf32>
    %291 = arith.addf %288, %290 : vector<8x128xf32>
    %292 = math.tanh %291 : vector<8x128xf32>
    %c64_i32_170 = arith.constant 64 : i32
    %293 = tpu.dynamic_rotate %292 by %c64_i32_170 dim 1 : vector<8x128xf32>, i32 -> vector<8x128xf32>
    %cst_171 = arith.constant 1.000000e+00 : f32
    %294 = vector.broadcast %cst_171 : f32 to vector<8x128xf32>
    %295 = arith.subf %294, %287 : vector<8x128xf32>
    %296 = arith.mulf %295, %293 : vector<8x128xf32>
    %297 = arith.mulf %287, %227 : vector<8x128xf32>
    %298 = arith.addf %296, %297 : vector<8x128xf32>
    %299 = arith.select %274, %298, %227 : vector<8x128xi1>, vector<8x128xf32>
    %cst_172 = arith.constant 0.000000e+00 : f32
    %300 = vector.broadcast %cst_172 : f32 to vector<8x128xf32>
    %301 = arith.select %274, %298, %300 : vector<8x128xi1>, vector<8x128xf32>
    %c1_173 = arith.constant 1 : index
    %c16_174 = arith.constant 16 : index
    %c0_175 = arith.constant 0 : index
    %302 = vector.load %arg20[%c1_173, %c16_174, %c0_175] : memref<2x64x128xf32, #tpu.memory_space<vmem>>, vector<1x8x128xf32>
    %303 = vector.shape_cast %302 : vector<1x8x128xf32> to vector<8x128xf32>
    %304 = vector.shape_cast %301 : vector<8x128xf32> to vector<1x8x128xf32>
    tpu.vector_store %arg20[%c1_173, %c16_174, %c0_175], %304 {strides = array<i32>} : memref<2x64x128xf32, #tpu.memory_space<vmem>>, vector<1x8x128xf32>,
    %c0_176 = arith.constant 0 : index
    %c24 = arith.constant 24 : index
    %c0_177 = arith.constant 0 : index
    %305 = vector.load %arg19[%c0_176, %c24, %c0_177] : memref<2x64x256xf32, #tpu.memory_space<vmem>>, vector<1x8x256xf32>
    %306 = vector.shape_cast %305 : vector<1x8x256xf32> to vector<8x256xf32>
    %c0_178 = arith.constant 0 : index
    %c24_179 = arith.constant 24 : index
    %c0_180 = arith.constant 0 : index
    %307 = vector.load %arg5[%c0_178, %c24_179, %c0_180] : memref<2x64x128xf32, #tpu.memory_space<vmem>>, vector<1x8x128xf32>
    %308 = vector.shape_cast %307 : vector<1x8x128xf32> to vector<8x128xf32>
    %cst_181 = arith.constant 0.000000e+00 : f32
    %309 = vector.broadcast %cst_181 : f32 to vector<8x128xf32>
    %310 = arith.cmpf ogt, %308, %309 : vector<8x128xf32>
    %c0_182 = arith.constant 0 : index
    %c0_183 = arith.constant 0 : index
    %c0_184 = arith.constant 0 : index
    %311 = vector.load %arg12[%c0_182, %c0_183, %c0_184] : memref<2x128x256xf32, #tpu.memory_space<vmem>>, vector<1x128x256xf32>
    %312 = vector.shape_cast %311 : vector<1x128x256xf32> to vector<128x256xf32>
    %cst_185 = arith.constant dense<0.000000e+00> : vector<8x256xf32>
    %313 = tpu.matmul %263, %312, %cst_185 {dimension_numbers = #tpu.dot_dimension_numbers<[1], [0], [0], [1], [0, 0, 1, 1], [], []>} : vector<8x128xf32>, vector<128x256xf32>, vector<8x256xf32> -> vector<8x256xf32>
    %314 = arith.addf %313, %84 : vector<8x256xf32>
    %315 = vector.extract_strided_slice %306 {offsets = [0, 0], sizes = [8, 128], strides = [1, 1]} : vector<8x256xf32> to vector<8x128xf32>
    %316 = vector.extract_strided_slice %314 {offsets = [0, 0], sizes = [8, 128], strides = [1, 1]} : vector<8x256xf32> to vector<8x128xf32>
    %317 = arith.addf %315, %316 : vector<8x128xf32>
    %318 = arith.negf %317 : vector<8x128xf32>
    %319 = math.exp %318 : vector<8x128xf32>
    %cst_186 = arith.constant 1.000000e+00 : f32
    %320 = vector.broadcast %cst_186 : f32 to vector<8x128xf32>
    %321 = arith.addf %320, %319 : vector<8x128xf32>
    %322 = arith.divf %320, %321 : vector<8x128xf32>
    %c64_i32_187 = arith.constant 64 : i32
    %323 = tpu.dynamic_rotate %322 by %c64_i32_187 dim 1 : vector<8x128xf32>, i32 -> vector<8x128xf32>
    %324 = vector.extract_strided_slice %306 {offsets = [0, 128], sizes = [8, 128], strides = [1, 1]} : vector<8x256xf32> to vector<8x128xf32>
    %325 = vector.extract_strided_slice %314 {offsets = [0, 128], sizes = [8, 128], strides = [1, 1]} : vector<8x256xf32> to vector<8x128xf32>
    %326 = arith.mulf %323, %325 : vector<8x128xf32>
    %327 = arith.addf %324, %326 : vector<8x128xf32>
    %328 = math.tanh %327 : vector<8x128xf32>
    %c64_i32_188 = arith.constant 64 : i32
    %329 = tpu.dynamic_rotate %328 by %c64_i32_188 dim 1 : vector<8x128xf32>, i32 -> vector<8x128xf32>
    %cst_189 = arith.constant 1.000000e+00 : f32
    %330 = vector.broadcast %cst_189 : f32 to vector<8x128xf32>
    %331 = arith.subf %330, %323 : vector<8x128xf32>
    %332 = arith.mulf %331, %329 : vector<8x128xf32>
    %333 = arith.mulf %323, %263 : vector<8x128xf32>
    %334 = arith.addf %332, %333 : vector<8x128xf32>
    %335 = arith.select %310, %334, %263 : vector<8x128xi1>, vector<8x128xf32>
    %cst_190 = arith.constant 0.000000e+00 : f32
    %336 = vector.broadcast %cst_190 : f32 to vector<8x128xf32>
    %337 = arith.select %310, %334, %336 : vector<8x128xi1>, vector<8x128xf32>
    %c0_191 = arith.constant 0 : index
    %c24_192 = arith.constant 24 : index
    %c0_193 = arith.constant 0 : index
    %338 = vector.load %arg20[%c0_191, %c24_192, %c0_193] : memref<2x64x128xf32, #tpu.memory_space<vmem>>, vector<1x8x128xf32>
    %339 = vector.shape_cast %338 : vector<1x8x128xf32> to vector<8x128xf32>
    %340 = vector.shape_cast %337 : vector<8x128xf32> to vector<1x8x128xf32>
    tpu.vector_store %arg20[%c0_191, %c24_192, %c0_193], %340 {strides = array<i32>} : memref<2x64x128xf32, #tpu.memory_space<vmem>>, vector<1x8x128xf32>,
    %c1_194 = arith.constant 1 : index
    %c24_195 = arith.constant 24 : index
    %c0_196 = arith.constant 0 : index
    %341 = vector.load %arg19[%c1_194, %c24_195, %c0_196] : memref<2x64x256xf32, #tpu.memory_space<vmem>>, vector<1x8x256xf32>
    %342 = vector.shape_cast %341 : vector<1x8x256xf32> to vector<8x256xf32>
    %c1_197 = arith.constant 1 : index
    %c24_198 = arith.constant 24 : index
    %c0_199 = arith.constant 0 : index
    %343 = vector.load %arg5[%c1_197, %c24_198, %c0_199] : memref<2x64x128xf32, #tpu.memory_space<vmem>>, vector<1x8x128xf32>
    %344 = vector.shape_cast %343 : vector<1x8x128xf32> to vector<8x128xf32>
    %cst_200 = arith.constant 0.000000e+00 : f32
    %345 = vector.broadcast %cst_200 : f32 to vector<8x128xf32>
    %346 = arith.cmpf ogt, %344, %345 : vector<8x128xf32>
    %c1_201 = arith.constant 1 : index
    %c0_202 = arith.constant 0 : index
    %c0_203 = arith.constant 0 : index
    %347 = vector.load %arg12[%c1_201, %c0_202, %c0_203] : memref<2x128x256xf32, #tpu.memory_space<vmem>>, vector<1x128x256xf32>
    %348 = vector.shape_cast %347 : vector<1x128x256xf32> to vector<128x256xf32>
    %cst_204 = arith.constant dense<0.000000e+00> : vector<8x256xf32>
    %349 = tpu.matmul %299, %348, %cst_204 {dimension_numbers = #tpu.dot_dimension_numbers<[1], [0], [0], [1], [0, 0, 1, 1], [], []>} : vector<8x128xf32>, vector<128x256xf32>, vector<8x256xf32> -> vector<8x256xf32>
    %350 = arith.addf %349, %88 : vector<8x256xf32>
    %351 = vector.extract_strided_slice %342 {offsets = [0, 0], sizes = [8, 128], strides = [1, 1]} : vector<8x256xf32> to vector<8x128xf32>
    %352 = vector.extract_strided_slice %350 {offsets = [0, 0], sizes = [8, 128], strides = [1, 1]} : vector<8x256xf32> to vector<8x128xf32>
    %353 = arith.addf %351, %352 : vector<8x128xf32>
    %354 = arith.negf %353 : vector<8x128xf32>
    %355 = math.exp %354 : vector<8x128xf32>
    %cst_205 = arith.constant 1.000000e+00 : f32
    %356 = vector.broadcast %cst_205 : f32 to vector<8x128xf32>
    %357 = arith.addf %356, %355 : vector<8x128xf32>
    %358 = arith.divf %356, %357 : vector<8x128xf32>
    %c64_i32_206 = arith.constant 64 : i32
    %359 = tpu.dynamic_rotate %358 by %c64_i32_206 dim 1 : vector<8x128xf32>, i32 -> vector<8x128xf32>
    %360 = vector.extract_strided_slice %342 {offsets = [0, 128], sizes = [8, 128], strides = [1, 1]} : vector<8x256xf32> to vector<8x128xf32>
    %361 = vector.extract_strided_slice %350 {offsets = [0, 128], sizes = [8, 128], strides = [1, 1]} : vector<8x256xf32> to vector<8x128xf32>
    %362 = arith.mulf %359, %361 : vector<8x128xf32>
    %363 = arith.addf %360, %362 : vector<8x128xf32>
    %364 = math.tanh %363 : vector<8x128xf32>
    %c64_i32_207 = arith.constant 64 : i32
    %365 = tpu.dynamic_rotate %364 by %c64_i32_207 dim 1 : vector<8x128xf32>, i32 -> vector<8x128xf32>
    %cst_208 = arith.constant 1.000000e+00 : f32
    %366 = vector.broadcast %cst_208 : f32 to vector<8x128xf32>
    %367 = arith.subf %366, %359 : vector<8x128xf32>
    %368 = arith.mulf %367, %365 : vector<8x128xf32>
    %369 = arith.mulf %359, %299 : vector<8x128xf32>
    %370 = arith.addf %368, %369 : vector<8x128xf32>
    %371 = arith.select %346, %370, %299 : vector<8x128xi1>, vector<8x128xf32>
    %cst_209 = arith.constant 0.000000e+00 : f32
    %372 = vector.broadcast %cst_209 : f32 to vector<8x128xf32>
    %373 = arith.select %346, %370, %372 : vector<8x128xi1>, vector<8x128xf32>
    %c1_210 = arith.constant 1 : index
    %c24_211 = arith.constant 24 : index
    %c0_212 = arith.constant 0 : index
    %374 = vector.load %arg20[%c1_210, %c24_211, %c0_212] : memref<2x64x128xf32, #tpu.memory_space<vmem>>, vector<1x8x128xf32>
    %375 = vector.shape_cast %374 : vector<1x8x128xf32> to vector<8x128xf32>
    %376 = vector.shape_cast %373 : vector<8x128xf32> to vector<1x8x128xf32>
    tpu.vector_store %arg20[%c1_210, %c24_211, %c0_212], %376 {strides = array<i32>} : memref<2x64x128xf32, #tpu.memory_space<vmem>>, vector<1x8x128xf32>,
    %c0_213 = arith.constant 0 : index
    %c32 = arith.constant 32 : index
    %c0_214 = arith.constant 0 : index
    %377 = vector.load %arg19[%c0_213, %c32, %c0_214] : memref<2x64x256xf32, #tpu.memory_space<vmem>>, vector<1x8x256xf32>
    %378 = vector.shape_cast %377 : vector<1x8x256xf32> to vector<8x256xf32>
    %c0_215 = arith.constant 0 : index
    %c32_216 = arith.constant 32 : index
    %c0_217 = arith.constant 0 : index
    %379 = vector.load %arg5[%c0_215, %c32_216, %c0_217] : memref<2x64x128xf32, #tpu.memory_space<vmem>>, vector<1x8x128xf32>
    %380 = vector.shape_cast %379 : vector<1x8x128xf32> to vector<8x128xf32>
    %cst_218 = arith.constant 0.000000e+00 : f32
    %381 = vector.broadcast %cst_218 : f32 to vector<8x128xf32>
    %382 = arith.cmpf ogt, %380, %381 : vector<8x128xf32>
    %c0_219 = arith.constant 0 : index
    %c0_220 = arith.constant 0 : index
    %c0_221 = arith.constant 0 : index
    %383 = vector.load %arg12[%c0_219, %c0_220, %c0_221] : memref<2x128x256xf32, #tpu.memory_space<vmem>>, vector<1x128x256xf32>
    %384 = vector.shape_cast %383 : vector<1x128x256xf32> to vector<128x256xf32>
    %cst_222 = arith.constant dense<0.000000e+00> : vector<8x256xf32>
    %385 = tpu.matmul %335, %384, %cst_222 {dimension_numbers = #tpu.dot_dimension_numbers<[1], [0], [0], [1], [0, 0, 1, 1], [], []>} : vector<8x128xf32>, vector<128x256xf32>, vector<8x256xf32> -> vector<8x256xf32>
    %386 = arith.addf %385, %84 : vector<8x256xf32>
    %387 = vector.extract_strided_slice %378 {offsets = [0, 0], sizes = [8, 128], strides = [1, 1]} : vector<8x256xf32> to vector<8x128xf32>
    %388 = vector.extract_strided_slice %386 {offsets = [0, 0], sizes = [8, 128], strides = [1, 1]} : vector<8x256xf32> to vector<8x128xf32>
    %389 = arith.addf %387, %388 : vector<8x128xf32>
    %390 = arith.negf %389 : vector<8x128xf32>
    %391 = math.exp %390 : vector<8x128xf32>
    %cst_223 = arith.constant 1.000000e+00 : f32
    %392 = vector.broadcast %cst_223 : f32 to vector<8x128xf32>
    %393 = arith.addf %392, %391 : vector<8x128xf32>
    %394 = arith.divf %392, %393 : vector<8x128xf32>
    %c64_i32_224 = arith.constant 64 : i32
    %395 = tpu.dynamic_rotate %394 by %c64_i32_224 dim 1 : vector<8x128xf32>, i32 -> vector<8x128xf32>
    %396 = vector.extract_strided_slice %378 {offsets = [0, 128], sizes = [8, 128], strides = [1, 1]} : vector<8x256xf32> to vector<8x128xf32>
    %397 = vector.extract_strided_slice %386 {offsets = [0, 128], sizes = [8, 128], strides = [1, 1]} : vector<8x256xf32> to vector<8x128xf32>
    %398 = arith.mulf %395, %397 : vector<8x128xf32>
    %399 = arith.addf %396, %398 : vector<8x128xf32>
    %400 = math.tanh %399 : vector<8x128xf32>
    %c64_i32_225 = arith.constant 64 : i32
    %401 = tpu.dynamic_rotate %400 by %c64_i32_225 dim 1 : vector<8x128xf32>, i32 -> vector<8x128xf32>
    %cst_226 = arith.constant 1.000000e+00 : f32
    %402 = vector.broadcast %cst_226 : f32 to vector<8x128xf32>
    %403 = arith.subf %402, %395 : vector<8x128xf32>
    %404 = arith.mulf %403, %401 : vector<8x128xf32>
    %405 = arith.mulf %395, %335 : vector<8x128xf32>
    %406 = arith.addf %404, %405 : vector<8x128xf32>
    %407 = arith.select %382, %406, %335 : vector<8x128xi1>, vector<8x128xf32>
    %cst_227 = arith.constant 0.000000e+00 : f32
    %408 = vector.broadcast %cst_227 : f32 to vector<8x128xf32>
    %409 = arith.select %382, %406, %408 : vector<8x128xi1>, vector<8x128xf32>
    %c0_228 = arith.constant 0 : index
    %c32_229 = arith.constant 32 : index
    %c0_230 = arith.constant 0 : index
    %410 = vector.load %arg20[%c0_228, %c32_229, %c0_230] : memref<2x64x128xf32, #tpu.memory_space<vmem>>, vector<1x8x128xf32>
    %411 = vector.shape_cast %410 : vector<1x8x128xf32> to vector<8x128xf32>
    %412 = vector.shape_cast %409 : vector<8x128xf32> to vector<1x8x128xf32>
    tpu.vector_store %arg20[%c0_228, %c32_229, %c0_230], %412 {strides = array<i32>} : memref<2x64x128xf32, #tpu.memory_space<vmem>>, vector<1x8x128xf32>,
    %c1_231 = arith.constant 1 : index
    %c32_232 = arith.constant 32 : index
    %c0_233 = arith.constant 0 : index
    %413 = vector.load %arg19[%c1_231, %c32_232, %c0_233] : memref<2x64x256xf32, #tpu.memory_space<vmem>>, vector<1x8x256xf32>
    %414 = vector.shape_cast %413 : vector<1x8x256xf32> to vector<8x256xf32>
    %c1_234 = arith.constant 1 : index
    %c32_235 = arith.constant 32 : index
    %c0_236 = arith.constant 0 : index
    %415 = vector.load %arg5[%c1_234, %c32_235, %c0_236] : memref<2x64x128xf32, #tpu.memory_space<vmem>>, vector<1x8x128xf32>
    %416 = vector.shape_cast %415 : vector<1x8x128xf32> to vector<8x128xf32>
    %cst_237 = arith.constant 0.000000e+00 : f32
    %417 = vector.broadcast %cst_237 : f32 to vector<8x128xf32>
    %418 = arith.cmpf ogt, %416, %417 : vector<8x128xf32>
    %c1_238 = arith.constant 1 : index
    %c0_239 = arith.constant 0 : index
    %c0_240 = arith.constant 0 : index
    %419 = vector.load %arg12[%c1_238, %c0_239, %c0_240] : memref<2x128x256xf32, #tpu.memory_space<vmem>>, vector<1x128x256xf32>
    %420 = vector.shape_cast %419 : vector<1x128x256xf32> to vector<128x256xf32>
    %cst_241 = arith.constant dense<0.000000e+00> : vector<8x256xf32>
    %421 = tpu.matmul %371, %420, %cst_241 {dimension_numbers = #tpu.dot_dimension_numbers<[1], [0], [0], [1], [0, 0, 1, 1], [], []>} : vector<8x128xf32>, vector<128x256xf32>, vector<8x256xf32> -> vector<8x256xf32>
    %422 = arith.addf %421, %88 : vector<8x256xf32>
    %423 = vector.extract_strided_slice %414 {offsets = [0, 0], sizes = [8, 128], strides = [1, 1]} : vector<8x256xf32> to vector<8x128xf32>
    %424 = vector.extract_strided_slice %422 {offsets = [0, 0], sizes = [8, 128], strides = [1, 1]} : vector<8x256xf32> to vector<8x128xf32>
    %425 = arith.addf %423, %424 : vector<8x128xf32>
    %426 = arith.negf %425 : vector<8x128xf32>
    %427 = math.exp %426 : vector<8x128xf32>
    %cst_242 = arith.constant 1.000000e+00 : f32
    %428 = vector.broadcast %cst_242 : f32 to vector<8x128xf32>
    %429 = arith.addf %428, %427 : vector<8x128xf32>
    %430 = arith.divf %428, %429 : vector<8x128xf32>
    %c64_i32_243 = arith.constant 64 : i32
    %431 = tpu.dynamic_rotate %430 by %c64_i32_243 dim 1 : vector<8x128xf32>, i32 -> vector<8x128xf32>
    %432 = vector.extract_strided_slice %414 {offsets = [0, 128], sizes = [8, 128], strides = [1, 1]} : vector<8x256xf32> to vector<8x128xf32>
    %433 = vector.extract_strided_slice %422 {offsets = [0, 128], sizes = [8, 128], strides = [1, 1]} : vector<8x256xf32> to vector<8x128xf32>
    %434 = arith.mulf %431, %433 : vector<8x128xf32>
    %435 = arith.addf %432, %434 : vector<8x128xf32>
    %436 = math.tanh %435 : vector<8x128xf32>
    %c64_i32_244 = arith.constant 64 : i32
    %437 = tpu.dynamic_rotate %436 by %c64_i32_244 dim 1 : vector<8x128xf32>, i32 -> vector<8x128xf32>
    %cst_245 = arith.constant 1.000000e+00 : f32
    %438 = vector.broadcast %cst_245 : f32 to vector<8x128xf32>
    %439 = arith.subf %438, %431 : vector<8x128xf32>
    %440 = arith.mulf %439, %437 : vector<8x128xf32>
    %441 = arith.mulf %431, %371 : vector<8x128xf32>
    %442 = arith.addf %440, %441 : vector<8x128xf32>
    %443 = arith.select %418, %442, %371 : vector<8x128xi1>, vector<8x128xf32>
    %cst_246 = arith.constant 0.000000e+00 : f32
    %444 = vector.broadcast %cst_246 : f32 to vector<8x128xf32>
    %445 = arith.select %418, %442, %444 : vector<8x128xi1>, vector<8x128xf32>
    %c1_247 = arith.constant 1 : index
    %c32_248 = arith.constant 32 : index
    %c0_249 = arith.constant 0 : index
    %446 = vector.load %arg20[%c1_247, %c32_248, %c0_249] : memref<2x64x128xf32, #tpu.memory_space<vmem>>, vector<1x8x128xf32>
    %447 = vector.shape_cast %446 : vector<1x8x128xf32> to vector<8x128xf32>
    %448 = vector.shape_cast %445 : vector<8x128xf32> to vector<1x8x128xf32>
    tpu.vector_store %arg20[%c1_247, %c32_248, %c0_249], %448 {strides = array<i32>} : memref<2x64x128xf32, #tpu.memory_space<vmem>>, vector<1x8x128xf32>,
    %c0_250 = arith.constant 0 : index
    %c40 = arith.constant 40 : index
    %c0_251 = arith.constant 0 : index
    %449 = vector.load %arg19[%c0_250, %c40, %c0_251] : memref<2x64x256xf32, #tpu.memory_space<vmem>>, vector<1x8x256xf32>
    %450 = vector.shape_cast %449 : vector<1x8x256xf32> to vector<8x256xf32>
    %c0_252 = arith.constant 0 : index
    %c40_253 = arith.constant 40 : index
    %c0_254 = arith.constant 0 : index
    %451 = vector.load %arg5[%c0_252, %c40_253, %c0_254] : memref<2x64x128xf32, #tpu.memory_space<vmem>>, vector<1x8x128xf32>
    %452 = vector.shape_cast %451 : vector<1x8x128xf32> to vector<8x128xf32>
    %cst_255 = arith.constant 0.000000e+00 : f32
    %453 = vector.broadcast %cst_255 : f32 to vector<8x128xf32>
    %454 = arith.cmpf ogt, %452, %453 : vector<8x128xf32>
    %c0_256 = arith.constant 0 : index
    %c0_257 = arith.constant 0 : index
    %c0_258 = arith.constant 0 : index
    %455 = vector.load %arg12[%c0_256, %c0_257, %c0_258] : memref<2x128x256xf32, #tpu.memory_space<vmem>>, vector<1x128x256xf32>
    %456 = vector.shape_cast %455 : vector<1x128x256xf32> to vector<128x256xf32>
    %cst_259 = arith.constant dense<0.000000e+00> : vector<8x256xf32>
    %457 = tpu.matmul %407, %456, %cst_259 {dimension_numbers = #tpu.dot_dimension_numbers<[1], [0], [0], [1], [0, 0, 1, 1], [], []>} : vector<8x128xf32>, vector<128x256xf32>, vector<8x256xf32> -> vector<8x256xf32>
    %458 = arith.addf %457, %84 : vector<8x256xf32>
    %459 = vector.extract_strided_slice %450 {offsets = [0, 0], sizes = [8, 128], strides = [1, 1]} : vector<8x256xf32> to vector<8x128xf32>
    %460 = vector.extract_strided_slice %458 {offsets = [0, 0], sizes = [8, 128], strides = [1, 1]} : vector<8x256xf32> to vector<8x128xf32>
    %461 = arith.addf %459, %460 : vector<8x128xf32>
    %462 = arith.negf %461 : vector<8x128xf32>
    %463 = math.exp %462 : vector<8x128xf32>
    %cst_260 = arith.constant 1.000000e+00 : f32
    %464 = vector.broadcast %cst_260 : f32 to vector<8x128xf32>
    %465 = arith.addf %464, %463 : vector<8x128xf32>
    %466 = arith.divf %464, %465 : vector<8x128xf32>
    %c64_i32_261 = arith.constant 64 : i32
    %467 = tpu.dynamic_rotate %466 by %c64_i32_261 dim 1 : vector<8x128xf32>, i32 -> vector<8x128xf32>
    %468 = vector.extract_strided_slice %450 {offsets = [0, 128], sizes = [8, 128], strides = [1, 1]} : vector<8x256xf32> to vector<8x128xf32>
    %469 = vector.extract_strided_slice %458 {offsets = [0, 128], sizes = [8, 128], strides = [1, 1]} : vector<8x256xf32> to vector<8x128xf32>
    %470 = arith.mulf %467, %469 : vector<8x128xf32>
    %471 = arith.addf %468, %470 : vector<8x128xf32>
    %472 = math.tanh %471 : vector<8x128xf32>
    %c64_i32_262 = arith.constant 64 : i32
    %473 = tpu.dynamic_rotate %472 by %c64_i32_262 dim 1 : vector<8x128xf32>, i32 -> vector<8x128xf32>
    %cst_263 = arith.constant 1.000000e+00 : f32
    %474 = vector.broadcast %cst_263 : f32 to vector<8x128xf32>
    %475 = arith.subf %474, %467 : vector<8x128xf32>
    %476 = arith.mulf %475, %473 : vector<8x128xf32>
    %477 = arith.mulf %467, %407 : vector<8x128xf32>
    %478 = arith.addf %476, %477 : vector<8x128xf32>
    %479 = arith.select %454, %478, %407 : vector<8x128xi1>, vector<8x128xf32>
    %cst_264 = arith.constant 0.000000e+00 : f32
    %480 = vector.broadcast %cst_264 : f32 to vector<8x128xf32>
    %481 = arith.select %454, %478, %480 : vector<8x128xi1>, vector<8x128xf32>
    %c0_265 = arith.constant 0 : index
    %c40_266 = arith.constant 40 : index
    %c0_267 = arith.constant 0 : index
    %482 = vector.load %arg20[%c0_265, %c40_266, %c0_267] : memref<2x64x128xf32, #tpu.memory_space<vmem>>, vector<1x8x128xf32>
    %483 = vector.shape_cast %482 : vector<1x8x128xf32> to vector<8x128xf32>
    %484 = vector.shape_cast %481 : vector<8x128xf32> to vector<1x8x128xf32>
    tpu.vector_store %arg20[%c0_265, %c40_266, %c0_267], %484 {strides = array<i32>} : memref<2x64x128xf32, #tpu.memory_space<vmem>>, vector<1x8x128xf32>,
    %c1_268 = arith.constant 1 : index
    %c40_269 = arith.constant 40 : index
    %c0_270 = arith.constant 0 : index
    %485 = vector.load %arg19[%c1_268, %c40_269, %c0_270] : memref<2x64x256xf32, #tpu.memory_space<vmem>>, vector<1x8x256xf32>
    %486 = vector.shape_cast %485 : vector<1x8x256xf32> to vector<8x256xf32>
    %c1_271 = arith.constant 1 : index
    %c40_272 = arith.constant 40 : index
    %c0_273 = arith.constant 0 : index
    %487 = vector.load %arg5[%c1_271, %c40_272, %c0_273] : memref<2x64x128xf32, #tpu.memory_space<vmem>>, vector<1x8x128xf32>
    %488 = vector.shape_cast %487 : vector<1x8x128xf32> to vector<8x128xf32>
    %cst_274 = arith.constant 0.000000e+00 : f32
    %489 = vector.broadcast %cst_274 : f32 to vector<8x128xf32>
    %490 = arith.cmpf ogt, %488, %489 : vector<8x128xf32>
    %c1_275 = arith.constant 1 : index
    %c0_276 = arith.constant 0 : index
    %c0_277 = arith.constant 0 : index
    %491 = vector.load %arg12[%c1_275, %c0_276, %c0_277] : memref<2x128x256xf32, #tpu.memory_space<vmem>>, vector<1x128x256xf32>
    %492 = vector.shape_cast %491 : vector<1x128x256xf32> to vector<128x256xf32>
    %cst_278 = arith.constant dense<0.000000e+00> : vector<8x256xf32>
    %493 = tpu.matmul %443, %492, %cst_278 {dimension_numbers = #tpu.dot_dimension_numbers<[1], [0], [0], [1], [0, 0, 1, 1], [], []>} : vector<8x128xf32>, vector<128x256xf32>, vector<8x256xf32> -> vector<8x256xf32>
    %494 = arith.addf %493, %88 : vector<8x256xf32>
    %495 = vector.extract_strided_slice %486 {offsets = [0, 0], sizes = [8, 128], strides = [1, 1]} : vector<8x256xf32> to vector<8x128xf32>
    %496 = vector.extract_strided_slice %494 {offsets = [0, 0], sizes = [8, 128], strides = [1, 1]} : vector<8x256xf32> to vector<8x128xf32>
    %497 = arith.addf %495, %496 : vector<8x128xf32>
    %498 = arith.negf %497 : vector<8x128xf32>
    %499 = math.exp %498 : vector<8x128xf32>
    %cst_279 = arith.constant 1.000000e+00 : f32
    %500 = vector.broadcast %cst_279 : f32 to vector<8x128xf32>
    %501 = arith.addf %500, %499 : vector<8x128xf32>
    %502 = arith.divf %500, %501 : vector<8x128xf32>
    %c64_i32_280 = arith.constant 64 : i32
    %503 = tpu.dynamic_rotate %502 by %c64_i32_280 dim 1 : vector<8x128xf32>, i32 -> vector<8x128xf32>
    %504 = vector.extract_strided_slice %486 {offsets = [0, 128], sizes = [8, 128], strides = [1, 1]} : vector<8x256xf32> to vector<8x128xf32>
    %505 = vector.extract_strided_slice %494 {offsets = [0, 128], sizes = [8, 128], strides = [1, 1]} : vector<8x256xf32> to vector<8x128xf32>
    %506 = arith.mulf %503, %505 : vector<8x128xf32>
    %507 = arith.addf %504, %506 : vector<8x128xf32>
    %508 = math.tanh %507 : vector<8x128xf32>
    %c64_i32_281 = arith.constant 64 : i32
    %509 = tpu.dynamic_rotate %508 by %c64_i32_281 dim 1 : vector<8x128xf32>, i32 -> vector<8x128xf32>
    %cst_282 = arith.constant 1.000000e+00 : f32
    %510 = vector.broadcast %cst_282 : f32 to vector<8x128xf32>
    %511 = arith.subf %510, %503 : vector<8x128xf32>
    %512 = arith.mulf %511, %509 : vector<8x128xf32>
    %513 = arith.mulf %503, %443 : vector<8x128xf32>
    %514 = arith.addf %512, %513 : vector<8x128xf32>
    %515 = arith.select %490, %514, %443 : vector<8x128xi1>, vector<8x128xf32>
    %cst_283 = arith.constant 0.000000e+00 : f32
    %516 = vector.broadcast %cst_283 : f32 to vector<8x128xf32>
    %517 = arith.select %490, %514, %516 : vector<8x128xi1>, vector<8x128xf32>
    %c1_284 = arith.constant 1 : index
    %c40_285 = arith.constant 40 : index
    %c0_286 = arith.constant 0 : index
    %518 = vector.load %arg20[%c1_284, %c40_285, %c0_286] : memref<2x64x128xf32, #tpu.memory_space<vmem>>, vector<1x8x128xf32>
    %519 = vector.shape_cast %518 : vector<1x8x128xf32> to vector<8x128xf32>
    %520 = vector.shape_cast %517 : vector<8x128xf32> to vector<1x8x128xf32>
    tpu.vector_store %arg20[%c1_284, %c40_285, %c0_286], %520 {strides = array<i32>} : memref<2x64x128xf32, #tpu.memory_space<vmem>>, vector<1x8x128xf32>,
    %c0_287 = arith.constant 0 : index
    %c48 = arith.constant 48 : index
    %c0_288 = arith.constant 0 : index
    %521 = vector.load %arg19[%c0_287, %c48, %c0_288] : memref<2x64x256xf32, #tpu.memory_space<vmem>>, vector<1x8x256xf32>
    %522 = vector.shape_cast %521 : vector<1x8x256xf32> to vector<8x256xf32>
    %c0_289 = arith.constant 0 : index
    %c48_290 = arith.constant 48 : index
    %c0_291 = arith.constant 0 : index
    %523 = vector.load %arg5[%c0_289, %c48_290, %c0_291] : memref<2x64x128xf32, #tpu.memory_space<vmem>>, vector<1x8x128xf32>
    %524 = vector.shape_cast %523 : vector<1x8x128xf32> to vector<8x128xf32>
    %cst_292 = arith.constant 0.000000e+00 : f32
    %525 = vector.broadcast %cst_292 : f32 to vector<8x128xf32>
    %526 = arith.cmpf ogt, %524, %525 : vector<8x128xf32>
    %c0_293 = arith.constant 0 : index
    %c0_294 = arith.constant 0 : index
    %c0_295 = arith.constant 0 : index
    %527 = vector.load %arg12[%c0_293, %c0_294, %c0_295] : memref<2x128x256xf32, #tpu.memory_space<vmem>>, vector<1x128x256xf32>
    %528 = vector.shape_cast %527 : vector<1x128x256xf32> to vector<128x256xf32>
    %cst_296 = arith.constant dense<0.000000e+00> : vector<8x256xf32>
    %529 = tpu.matmul %479, %528, %cst_296 {dimension_numbers = #tpu.dot_dimension_numbers<[1], [0], [0], [1], [0, 0, 1, 1], [], []>} : vector<8x128xf32>, vector<128x256xf32>, vector<8x256xf32> -> vector<8x256xf32>
    %530 = arith.addf %529, %84 : vector<8x256xf32>
    %531 = vector.extract_strided_slice %522 {offsets = [0, 0], sizes = [8, 128], strides = [1, 1]} : vector<8x256xf32> to vector<8x128xf32>
    %532 = vector.extract_strided_slice %530 {offsets = [0, 0], sizes = [8, 128], strides = [1, 1]} : vector<8x256xf32> to vector<8x128xf32>
    %533 = arith.addf %531, %532 : vector<8x128xf32>
    %534 = arith.negf %533 : vector<8x128xf32>
    %535 = math.exp %534 : vector<8x128xf32>
    %cst_297 = arith.constant 1.000000e+00 : f32
    %536 = vector.broadcast %cst_297 : f32 to vector<8x128xf32>
    %537 = arith.addf %536, %535 : vector<8x128xf32>
    %538 = arith.divf %536, %537 : vector<8x128xf32>
    %c64_i32_298 = arith.constant 64 : i32
    %539 = tpu.dynamic_rotate %538 by %c64_i32_298 dim 1 : vector<8x128xf32>, i32 -> vector<8x128xf32>
    %540 = vector.extract_strided_slice %522 {offsets = [0, 128], sizes = [8, 128], strides = [1, 1]} : vector<8x256xf32> to vector<8x128xf32>
    %541 = vector.extract_strided_slice %530 {offsets = [0, 128], sizes = [8, 128], strides = [1, 1]} : vector<8x256xf32> to vector<8x128xf32>
    %542 = arith.mulf %539, %541 : vector<8x128xf32>
    %543 = arith.addf %540, %542 : vector<8x128xf32>
    %544 = math.tanh %543 : vector<8x128xf32>
    %c64_i32_299 = arith.constant 64 : i32
    %545 = tpu.dynamic_rotate %544 by %c64_i32_299 dim 1 : vector<8x128xf32>, i32 -> vector<8x128xf32>
    %cst_300 = arith.constant 1.000000e+00 : f32
    %546 = vector.broadcast %cst_300 : f32 to vector<8x128xf32>
    %547 = arith.subf %546, %539 : vector<8x128xf32>
    %548 = arith.mulf %547, %545 : vector<8x128xf32>
    %549 = arith.mulf %539, %479 : vector<8x128xf32>
    %550 = arith.addf %548, %549 : vector<8x128xf32>
    %551 = arith.select %526, %550, %479 : vector<8x128xi1>, vector<8x128xf32>
    %cst_301 = arith.constant 0.000000e+00 : f32
    %552 = vector.broadcast %cst_301 : f32 to vector<8x128xf32>
    %553 = arith.select %526, %550, %552 : vector<8x128xi1>, vector<8x128xf32>
    %c0_302 = arith.constant 0 : index
    %c48_303 = arith.constant 48 : index
    %c0_304 = arith.constant 0 : index
    %554 = vector.load %arg20[%c0_302, %c48_303, %c0_304] : memref<2x64x128xf32, #tpu.memory_space<vmem>>, vector<1x8x128xf32>
    %555 = vector.shape_cast %554 : vector<1x8x128xf32> to vector<8x128xf32>
    %556 = vector.shape_cast %553 : vector<8x128xf32> to vector<1x8x128xf32>
    tpu.vector_store %arg20[%c0_302, %c48_303, %c0_304], %556 {strides = array<i32>} : memref<2x64x128xf32, #tpu.memory_space<vmem>>, vector<1x8x128xf32>,
    %c1_305 = arith.constant 1 : index
    %c48_306 = arith.constant 48 : index
    %c0_307 = arith.constant 0 : index
    %557 = vector.load %arg19[%c1_305, %c48_306, %c0_307] : memref<2x64x256xf32, #tpu.memory_space<vmem>>, vector<1x8x256xf32>
    %558 = vector.shape_cast %557 : vector<1x8x256xf32> to vector<8x256xf32>
    %c1_308 = arith.constant 1 : index
    %c48_309 = arith.constant 48 : index
    %c0_310 = arith.constant 0 : index
    %559 = vector.load %arg5[%c1_308, %c48_309, %c0_310] : memref<2x64x128xf32, #tpu.memory_space<vmem>>, vector<1x8x128xf32>
    %560 = vector.shape_cast %559 : vector<1x8x128xf32> to vector<8x128xf32>
    %cst_311 = arith.constant 0.000000e+00 : f32
    %561 = vector.broadcast %cst_311 : f32 to vector<8x128xf32>
    %562 = arith.cmpf ogt, %560, %561 : vector<8x128xf32>
    %c1_312 = arith.constant 1 : index
    %c0_313 = arith.constant 0 : index
    %c0_314 = arith.constant 0 : index
    %563 = vector.load %arg12[%c1_312, %c0_313, %c0_314] : memref<2x128x256xf32, #tpu.memory_space<vmem>>, vector<1x128x256xf32>
    %564 = vector.shape_cast %563 : vector<1x128x256xf32> to vector<128x256xf32>
    %cst_315 = arith.constant dense<0.000000e+00> : vector<8x256xf32>
    %565 = tpu.matmul %515, %564, %cst_315 {dimension_numbers = #tpu.dot_dimension_numbers<[1], [0], [0], [1], [0, 0, 1, 1], [], []>} : vector<8x128xf32>, vector<128x256xf32>, vector<8x256xf32> -> vector<8x256xf32>
    %566 = arith.addf %565, %88 : vector<8x256xf32>
    %567 = vector.extract_strided_slice %558 {offsets = [0, 0], sizes = [8, 128], strides = [1, 1]} : vector<8x256xf32> to vector<8x128xf32>
    %568 = vector.extract_strided_slice %566 {offsets = [0, 0], sizes = [8, 128], strides = [1, 1]} : vector<8x256xf32> to vector<8x128xf32>
    %569 = arith.addf %567, %568 : vector<8x128xf32>
    %570 = arith.negf %569 : vector<8x128xf32>
    %571 = math.exp %570 : vector<8x128xf32>
    %cst_316 = arith.constant 1.000000e+00 : f32
    %572 = vector.broadcast %cst_316 : f32 to vector<8x128xf32>
    %573 = arith.addf %572, %571 : vector<8x128xf32>
    %574 = arith.divf %572, %573 : vector<8x128xf32>
    %c64_i32_317 = arith.constant 64 : i32
    %575 = tpu.dynamic_rotate %574 by %c64_i32_317 dim 1 : vector<8x128xf32>, i32 -> vector<8x128xf32>
    %576 = vector.extract_strided_slice %558 {offsets = [0, 128], sizes = [8, 128], strides = [1, 1]} : vector<8x256xf32> to vector<8x128xf32>
    %577 = vector.extract_strided_slice %566 {offsets = [0, 128], sizes = [8, 128], strides = [1, 1]} : vector<8x256xf32> to vector<8x128xf32>
    %578 = arith.mulf %575, %577 : vector<8x128xf32>
    %579 = arith.addf %576, %578 : vector<8x128xf32>
    %580 = math.tanh %579 : vector<8x128xf32>
    %c64_i32_318 = arith.constant 64 : i32
    %581 = tpu.dynamic_rotate %580 by %c64_i32_318 dim 1 : vector<8x128xf32>, i32 -> vector<8x128xf32>
    %cst_319 = arith.constant 1.000000e+00 : f32
    %582 = vector.broadcast %cst_319 : f32 to vector<8x128xf32>
    %583 = arith.subf %582, %575 : vector<8x128xf32>
    %584 = arith.mulf %583, %581 : vector<8x128xf32>
    %585 = arith.mulf %575, %515 : vector<8x128xf32>
    %586 = arith.addf %584, %585 : vector<8x128xf32>
    %587 = arith.select %562, %586, %515 : vector<8x128xi1>, vector<8x128xf32>
    %cst_320 = arith.constant 0.000000e+00 : f32
    %588 = vector.broadcast %cst_320 : f32 to vector<8x128xf32>
    %589 = arith.select %562, %586, %588 : vector<8x128xi1>, vector<8x128xf32>
    %c1_321 = arith.constant 1 : index
    %c48_322 = arith.constant 48 : index
    %c0_323 = arith.constant 0 : index
    %590 = vector.load %arg20[%c1_321, %c48_322, %c0_323] : memref<2x64x128xf32, #tpu.memory_space<vmem>>, vector<1x8x128xf32>
    %591 = vector.shape_cast %590 : vector<1x8x128xf32> to vector<8x128xf32>
    %592 = vector.shape_cast %589 : vector<8x128xf32> to vector<1x8x128xf32>
    tpu.vector_store %arg20[%c1_321, %c48_322, %c0_323], %592 {strides = array<i32>} : memref<2x64x128xf32, #tpu.memory_space<vmem>>, vector<1x8x128xf32>,
    %c0_324 = arith.constant 0 : index
    %c56 = arith.constant 56 : index
    %c0_325 = arith.constant 0 : index
    %593 = vector.load %arg19[%c0_324, %c56, %c0_325] : memref<2x64x256xf32, #tpu.memory_space<vmem>>, vector<1x8x256xf32>
    %594 = vector.shape_cast %593 : vector<1x8x256xf32> to vector<8x256xf32>
    %c0_326 = arith.constant 0 : index
    %c56_327 = arith.constant 56 : index
    %c0_328 = arith.constant 0 : index
    %595 = vector.load %arg5[%c0_326, %c56_327, %c0_328] : memref<2x64x128xf32, #tpu.memory_space<vmem>>, vector<1x8x128xf32>
    %596 = vector.shape_cast %595 : vector<1x8x128xf32> to vector<8x128xf32>
    %cst_329 = arith.constant 0.000000e+00 : f32
    %597 = vector.broadcast %cst_329 : f32 to vector<8x128xf32>
    %598 = arith.cmpf ogt, %596, %597 : vector<8x128xf32>
    %c0_330 = arith.constant 0 : index
    %c0_331 = arith.constant 0 : index
    %c0_332 = arith.constant 0 : index
    %599 = vector.load %arg12[%c0_330, %c0_331, %c0_332] : memref<2x128x256xf32, #tpu.memory_space<vmem>>, vector<1x128x256xf32>
    %600 = vector.shape_cast %599 : vector<1x128x256xf32> to vector<128x256xf32>
    %cst_333 = arith.constant dense<0.000000e+00> : vector<8x256xf32>
    %601 = tpu.matmul %551, %600, %cst_333 {dimension_numbers = #tpu.dot_dimension_numbers<[1], [0], [0], [1], [0, 0, 1, 1], [], []>} : vector<8x128xf32>, vector<128x256xf32>, vector<8x256xf32> -> vector<8x256xf32>
    %602 = arith.addf %601, %84 : vector<8x256xf32>
    %603 = vector.extract_strided_slice %594 {offsets = [0, 0], sizes = [8, 128], strides = [1, 1]} : vector<8x256xf32> to vector<8x128xf32>
    %604 = vector.extract_strided_slice %602 {offsets = [0, 0], sizes = [8, 128], strides = [1, 1]} : vector<8x256xf32> to vector<8x128xf32>
    %605 = arith.addf %603, %604 : vector<8x128xf32>
    %606 = arith.negf %605 : vector<8x128xf32>
    %607 = math.exp %606 : vector<8x128xf32>
    %cst_334 = arith.constant 1.000000e+00 : f32
    %608 = vector.broadcast %cst_334 : f32 to vector<8x128xf32>
    %609 = arith.addf %608, %607 : vector<8x128xf32>
    %610 = arith.divf %608, %609 : vector<8x128xf32>
    %c64_i32_335 = arith.constant 64 : i32
    %611 = tpu.dynamic_rotate %610 by %c64_i32_335 dim 1 : vector<8x128xf32>, i32 -> vector<8x128xf32>
    %612 = vector.extract_strided_slice %594 {offsets = [0, 128], sizes = [8, 128], strides = [1, 1]} : vector<8x256xf32> to vector<8x128xf32>
    %613 = vector.extract_strided_slice %602 {offsets = [0, 128], sizes = [8, 128], strides = [1, 1]} : vector<8x256xf32> to vector<8x128xf32>
    %614 = arith.mulf %611, %613 : vector<8x128xf32>
    %615 = arith.addf %612, %614 : vector<8x128xf32>
    %616 = math.tanh %615 : vector<8x128xf32>
    %c64_i32_336 = arith.constant 64 : i32
    %617 = tpu.dynamic_rotate %616 by %c64_i32_336 dim 1 : vector<8x128xf32>, i32 -> vector<8x128xf32>
    %cst_337 = arith.constant 1.000000e+00 : f32
    %618 = vector.broadcast %cst_337 : f32 to vector<8x128xf32>
    %619 = arith.subf %618, %611 : vector<8x128xf32>
    %620 = arith.mulf %619, %617 : vector<8x128xf32>
    %621 = arith.mulf %611, %551 : vector<8x128xf32>
    %622 = arith.addf %620, %621 : vector<8x128xf32>
    %cst_338 = arith.constant 0.000000e+00 : f32
    %623 = vector.broadcast %cst_338 : f32 to vector<8x128xf32>
    %624 = arith.select %598, %622, %623 : vector<8x128xi1>, vector<8x128xf32>
    %c0_339 = arith.constant 0 : index
    %c56_340 = arith.constant 56 : index
    %c0_341 = arith.constant 0 : index
    %625 = vector.load %arg20[%c0_339, %c56_340, %c0_341] : memref<2x64x128xf32, #tpu.memory_space<vmem>>, vector<1x8x128xf32>
    %626 = vector.shape_cast %625 : vector<1x8x128xf32> to vector<8x128xf32>
    %627 = vector.shape_cast %624 : vector<8x128xf32> to vector<1x8x128xf32>
    tpu.vector_store %arg20[%c0_339, %c56_340, %c0_341], %627 {strides = array<i32>} : memref<2x64x128xf32, #tpu.memory_space<vmem>>, vector<1x8x128xf32>,
    %c1_342 = arith.constant 1 : index
    %c56_343 = arith.constant 56 : index
    %c0_344 = arith.constant 0 : index
    %628 = vector.load %arg19[%c1_342, %c56_343, %c0_344] : memref<2x64x256xf32, #tpu.memory_space<vmem>>, vector<1x8x256xf32>
    %629 = vector.shape_cast %628 : vector<1x8x256xf32> to vector<8x256xf32>
    %c1_345 = arith.constant 1 : index
    %c56_346 = arith.constant 56 : index
    %c0_347 = arith.constant 0 : index
    %630 = vector.load %arg5[%c1_345, %c56_346, %c0_347] : memref<2x64x128xf32, #tpu.memory_space<vmem>>, vector<1x8x128xf32>
    %631 = vector.shape_cast %630 : vector<1x8x128xf32> to vector<8x128xf32>
    %cst_348 = arith.constant 0.000000e+00 : f32
    %632 = vector.broadcast %cst_348 : f32 to vector<8x128xf32>
    %633 = arith.cmpf ogt, %631, %632 : vector<8x128xf32>
    %c1_349 = arith.constant 1 : index
    %c0_350 = arith.constant 0 : index
    %c0_351 = arith.constant 0 : index
    %634 = vector.load %arg12[%c1_349, %c0_350, %c0_351] : memref<2x128x256xf32, #tpu.memory_space<vmem>>, vector<1x128x256xf32>
    %635 = vector.shape_cast %634 : vector<1x128x256xf32> to vector<128x256xf32>
    %cst_352 = arith.constant dense<0.000000e+00> : vector<8x256xf32>
    %636 = tpu.matmul %587, %635, %cst_352 {dimension_numbers = #tpu.dot_dimension_numbers<[1], [0], [0], [1], [0, 0, 1, 1], [], []>} : vector<8x128xf32>, vector<128x256xf32>, vector<8x256xf32> -> vector<8x256xf32>
    %637 = arith.addf %636, %88 : vector<8x256xf32>
    %638 = vector.extract_strided_slice %629 {offsets = [0, 0], sizes = [8, 128], strides = [1, 1]} : vector<8x256xf32> to vector<8x128xf32>
    %639 = vector.extract_strided_slice %637 {offsets = [0, 0], sizes = [8, 128], strides = [1, 1]} : vector<8x256xf32> to vector<8x128xf32>
    %640 = arith.addf %638, %639 : vector<8x128xf32>
    %641 = arith.negf %640 : vector<8x128xf32>
    %642 = math.exp %641 : vector<8x128xf32>
    %cst_353 = arith.constant 1.000000e+00 : f32
    %643 = vector.broadcast %cst_353 : f32 to vector<8x128xf32>
    %644 = arith.addf %643, %642 : vector<8x128xf32>
    %645 = arith.divf %643, %644 : vector<8x128xf32>
    %c64_i32_354 = arith.constant 64 : i32
    %646 = tpu.dynamic_rotate %645 by %c64_i32_354 dim 1 : vector<8x128xf32>, i32 -> vector<8x128xf32>
    %647 = vector.extract_strided_slice %629 {offsets = [0, 128], sizes = [8, 128], strides = [1, 1]} : vector<8x256xf32> to vector<8x128xf32>
    %648 = vector.extract_strided_slice %637 {offsets = [0, 128], sizes = [8, 128], strides = [1, 1]} : vector<8x256xf32> to vector<8x128xf32>
    %649 = arith.mulf %646, %648 : vector<8x128xf32>
    %650 = arith.addf %647, %649 : vector<8x128xf32>
    %651 = math.tanh %650 : vector<8x128xf32>
    %c64_i32_355 = arith.constant 64 : i32
    %652 = tpu.dynamic_rotate %651 by %c64_i32_355 dim 1 : vector<8x128xf32>, i32 -> vector<8x128xf32>
    %cst_356 = arith.constant 1.000000e+00 : f32
    %653 = vector.broadcast %cst_356 : f32 to vector<8x128xf32>
    %654 = arith.subf %653, %646 : vector<8x128xf32>
    %655 = arith.mulf %654, %652 : vector<8x128xf32>
    %656 = arith.mulf %646, %587 : vector<8x128xf32>
    %657 = arith.addf %655, %656 : vector<8x128xf32>
    %cst_357 = arith.constant 0.000000e+00 : f32
    %658 = vector.broadcast %cst_357 : f32 to vector<8x128xf32>
    %659 = arith.select %633, %657, %658 : vector<8x128xi1>, vector<8x128xf32>
    %c1_358 = arith.constant 1 : index
    %c56_359 = arith.constant 56 : index
    %c0_360 = arith.constant 0 : index
    %660 = vector.load %arg20[%c1_358, %c56_359, %c0_360] : memref<2x64x128xf32, #tpu.memory_space<vmem>>, vector<1x8x128xf32>
    %661 = vector.shape_cast %660 : vector<1x8x128xf32> to vector<8x128xf32>
    %662 = vector.shape_cast %659 : vector<8x128xf32> to vector<1x8x128xf32>
    tpu.vector_store %arg20[%c1_358, %c56_359, %c0_360], %662 {strides = array<i32>} : memref<2x64x128xf32, #tpu.memory_space<vmem>>, vector<1x8x128xf32>,
    %c0_361 = arith.constant 0 : index
    %c0_362 = arith.constant 0 : index
    %c0_363 = arith.constant 0 : index
    %663 = vector.load %arg4[%c0_361, %c0_362, %c0_363] : memref<2x64x64xf32, #tpu.memory_space<vmem>>, vector<1x64x64xf32>
    %664 = vector.shape_cast %663 : vector<1x64x64xf32> to vector<64x64xf32>
    %c0_364 = arith.constant 0 : index
    %c0_365 = arith.constant 0 : index
    %c0_366 = arith.constant 0 : index
    %665 = vector.load %arg20[%c0_364, %c0_365, %c0_366] : memref<2x64x128xf32, #tpu.memory_space<vmem>>, vector<1x64x128xf32>
    %666 = vector.shape_cast %665 : vector<1x64x128xf32> to vector<64x128xf32>
    %cst_367 = arith.constant dense<0.000000e+00> : vector<64x128xf32>
    %667 = tpu.matmul %664, %666, %cst_367 {dimension_numbers = #tpu.dot_dimension_numbers<[1], [0], [0], [1], [0, 0, 1, 1], [], []>} : vector<64x64xf32>, vector<64x128xf32>, vector<64x128xf32> -> vector<64x128xf32>
    %c1_368 = arith.constant 1 : index
    %c0_369 = arith.constant 0 : index
    %c0_370 = arith.constant 0 : index
    %668 = vector.load %arg4[%c1_368, %c0_369, %c0_370] : memref<2x64x64xf32, #tpu.memory_space<vmem>>, vector<1x64x64xf32>
    %669 = vector.shape_cast %668 : vector<1x64x64xf32> to vector<64x64xf32>
    %c1_371 = arith.constant 1 : index
    %c0_372 = arith.constant 0 : index
    %c0_373 = arith.constant 0 : index
    %670 = vector.load %arg20[%c1_371, %c0_372, %c0_373] : memref<2x64x128xf32, #tpu.memory_space<vmem>>, vector<1x64x128xf32>
    %671 = vector.shape_cast %670 : vector<1x64x128xf32> to vector<64x128xf32>
    %cst_374 = arith.constant dense<0.000000e+00> : vector<64x128xf32>
    %672 = tpu.matmul %669, %671, %cst_374 {dimension_numbers = #tpu.dot_dimension_numbers<[1], [0], [0], [1], [0, 0, 1, 1], [], []>} : vector<64x64xf32>, vector<64x128xf32>, vector<64x128xf32> -> vector<64x128xf32>
    %c0_375 = arith.constant 0 : index
    %c0_376 = arith.constant 0 : index
    %c0_377 = arith.constant 0 : index
    %673 = vector.load %arg14[%c0_375, %c0_376, %c0_377] : memref<2x128x512xf32, #tpu.memory_space<vmem>>, vector<1x128x512xf32>
    %674 = vector.shape_cast %673 : vector<1x128x512xf32> to vector<128x512xf32>
    %cst_378 = arith.constant dense<0.000000e+00> : vector<64x512xf32>
    %675 = tpu.matmul %667, %674, %cst_378 {dimension_numbers = #tpu.dot_dimension_numbers<[1], [0], [0], [1], [0, 0, 1, 1], [], []>} : vector<64x128xf32>, vector<128x512xf32>, vector<64x512xf32> -> vector<64x512xf32>
    %c1_379 = arith.constant 1 : index
    %c0_380 = arith.constant 0 : index
    %c0_381 = arith.constant 0 : index
    %676 = vector.load %arg14[%c1_379, %c0_380, %c0_381] : memref<2x128x512xf32, #tpu.memory_space<vmem>>, vector<1x128x512xf32>
    %677 = vector.shape_cast %676 : vector<1x128x512xf32> to vector<128x512xf32>
    %cst_382 = arith.constant dense<0.000000e+00> : vector<64x512xf32>
    %678 = tpu.matmul %672, %677, %cst_382 {dimension_numbers = #tpu.dot_dimension_numbers<[1], [0], [0], [1], [0, 0, 1, 1], [], []>} : vector<64x128xf32>, vector<128x512xf32>, vector<64x512xf32> -> vector<64x512xf32>
    %679 = arith.addf %675, %678 : vector<64x512xf32>
    %c0_383 = arith.constant 0 : index
    %c0_384 = arith.constant 0 : index
    %680 = vector.load %arg15[%c0_383, %c0_384] : memref<1x512xf32, #tpu.memory_space<vmem>>, vector<1x512xf32>
    %681 = vector.broadcast %680 : vector<1x512xf32> to vector<64x512xf32>
    %682 = arith.addf %679, %681 : vector<64x512xf32>
    %c0_385 = arith.constant 0 : index
    %c0_386 = arith.constant 0 : index
    %683 = vector.load %arg21[%c0_385, %c0_386] : memref<64x512xf32, #tpu.memory_space<vmem>>, vector<64x512xf32>
    tpu.vector_store %arg21[%c0_385, %c0_386], %682 {strides = array<i32>} : memref<64x512xf32, #tpu.memory_space<vmem>>, vector<64x512xf32>,
    %cst_387 = arith.constant -1.000000e+06 : f32
    %684 = vector.broadcast %cst_387 : f32 to vector<8x128xf32>
    %cst_388 = arith.constant -1.000000e+06 : f32
    %685 = vector.broadcast %cst_388 : f32 to vector<8x128xf32>
    %c0_389 = arith.constant 0 : index
    %c0_390 = arith.constant 0 : index
    %686 = vector.load %arg21[%c0_389, %c0_390] : memref<64x512xf32, #tpu.memory_space<vmem>>, vector<8x256xf32>
    %c0_391 = arith.constant 0 : index
    %c0_392 = arith.constant 0 : index
    %c0_393 = arith.constant 0 : index
    %687 = vector.load %arg6[%c0_391, %c0_392, %c0_393] : memref<2x64x128xf32, #tpu.memory_space<vmem>>, vector<1x8x128xf32>
    %688 = vector.shape_cast %687 : vector<1x8x128xf32> to vector<8x128xf32>
    %cst_394 = arith.constant 0.000000e+00 : f32
    %689 = vector.broadcast %cst_394 : f32 to vector<8x128xf32>
    %690 = arith.cmpf ogt, %688, %689 : vector<8x128xf32>
    %c0_395 = arith.constant 0 : index
    %c0_396 = arith.constant 0 : index
    %c0_397 = arith.constant 0 : index
    %691 = vector.load %arg16[%c0_395, %c0_396, %c0_397] : memref<2x128x256xf32, #tpu.memory_space<vmem>>, vector<1x128x256xf32>
    %692 = vector.shape_cast %691 : vector<1x128x256xf32> to vector<128x256xf32>
    %cst_398 = arith.constant dense<0.000000e+00> : vector<8x256xf32>
    %693 = tpu.matmul %80, %692, %cst_398 {dimension_numbers = #tpu.dot_dimension_numbers<[1], [0], [0], [1], [0, 0, 1, 1], [], []>} : vector<8x128xf32>, vector<128x256xf32>, vector<8x256xf32> -> vector<8x256xf32>
    %694 = arith.addf %686, %693 : vector<8x256xf32>
    %695 = arith.negf %694 : vector<8x256xf32>
    %696 = math.exp %695 : vector<8x256xf32>
    %cst_399 = arith.constant 1.000000e+00 : f32
    %697 = vector.broadcast %cst_399 : f32 to vector<8x256xf32>
    %698 = arith.addf %697, %696 : vector<8x256xf32>
    %699 = arith.divf %697, %698 : vector<8x256xf32>
    %700 = vector.extract_strided_slice %699 {offsets = [0, 0], sizes = [8, 128], strides = [1, 1]} : vector<8x256xf32> to vector<8x128xf32>
    %701 = vector.extract_strided_slice %699 {offsets = [0, 128], sizes = [8, 128], strides = [1, 1]} : vector<8x256xf32> to vector<8x128xf32>
    %cst_400 = arith.constant 2.000000e+00 : f32
    %702 = vector.broadcast %cst_400 : f32 to vector<8x128xf32>
    %703 = arith.mulf %702, %701 : vector<8x128xf32>
    %cst_401 = arith.constant 1.000000e+00 : f32
    %704 = vector.broadcast %cst_401 : f32 to vector<8x128xf32>
    %705 = arith.subf %703, %704 : vector<8x128xf32>
    %c64_i32_402 = arith.constant 64 : i32
    %706 = tpu.dynamic_rotate %700 by %c64_i32_402 dim 1 : vector<8x128xf32>, i32 -> vector<8x128xf32>
    %707 = arith.mulf %700, %80 : vector<8x128xf32>
    %708 = arith.mulf %706, %705 : vector<8x128xf32>
    %709 = arith.addf %707, %708 : vector<8x128xf32>
    %c64_i32_403 = arith.constant 64 : i32
    %710 = tpu.dynamic_rotate %701 by %c64_i32_403 dim 1 : vector<8x128xf32>, i32 -> vector<8x128xf32>
    %711 = math.tanh %709 : vector<8x128xf32>
    %712 = arith.mulf %710, %711 : vector<8x128xf32>
    %713 = arith.select %690, %712, %80 : vector<8x128xi1>, vector<8x128xf32>
    %714 = arith.select %690, %709, %80 : vector<8x128xi1>, vector<8x128xf32>
    %715 = arith.maximumf %684, %712 : vector<8x128xf32>
    %716 = arith.select %690, %715, %684 : vector<8x128xi1>, vector<8x128xf32>
    %c56_404 = arith.constant 56 : index
    %c256 = arith.constant 256 : index
    %717 = vector.load %arg21[%c56_404, %c256] : memref<64x512xf32, #tpu.memory_space<vmem>>, vector<8x256xf32>
    %c1_405 = arith.constant 1 : index
    %c0_406 = arith.constant 0 : index
    %c0_407 = arith.constant 0 : index
    %718 = vector.load %arg6[%c1_405, %c0_406, %c0_407] : memref<2x64x128xf32, #tpu.memory_space<vmem>>, vector<1x8x128xf32>
    %719 = vector.shape_cast %718 : vector<1x8x128xf32> to vector<8x128xf32>
    %cst_408 = arith.constant 0.000000e+00 : f32
    %720 = vector.broadcast %cst_408 : f32 to vector<8x128xf32>
    %721 = arith.cmpf ogt, %719, %720 : vector<8x128xf32>
    %c1_409 = arith.constant 1 : index
    %c0_410 = arith.constant 0 : index
    %c0_411 = arith.constant 0 : index
    %722 = vector.load %arg16[%c1_409, %c0_410, %c0_411] : memref<2x128x256xf32, #tpu.memory_space<vmem>>, vector<1x128x256xf32>
    %723 = vector.shape_cast %722 : vector<1x128x256xf32> to vector<128x256xf32>
    %cst_412 = arith.constant dense<0.000000e+00> : vector<8x256xf32>
    %724 = tpu.matmul %80, %723, %cst_412 {dimension_numbers = #tpu.dot_dimension_numbers<[1], [0], [0], [1], [0, 0, 1, 1], [], []>} : vector<8x128xf32>, vector<128x256xf32>, vector<8x256xf32> -> vector<8x256xf32>
    %725 = arith.addf %717, %724 : vector<8x256xf32>
    %726 = arith.negf %725 : vector<8x256xf32>
    %727 = math.exp %726 : vector<8x256xf32>
    %cst_413 = arith.constant 1.000000e+00 : f32
    %728 = vector.broadcast %cst_413 : f32 to vector<8x256xf32>
    %729 = arith.addf %728, %727 : vector<8x256xf32>
    %730 = arith.divf %728, %729 : vector<8x256xf32>
    %731 = vector.extract_strided_slice %730 {offsets = [0, 0], sizes = [8, 128], strides = [1, 1]} : vector<8x256xf32> to vector<8x128xf32>
    %732 = vector.extract_strided_slice %730 {offsets = [0, 128], sizes = [8, 128], strides = [1, 1]} : vector<8x256xf32> to vector<8x128xf32>
    %cst_414 = arith.constant 2.000000e+00 : f32
    %733 = vector.broadcast %cst_414 : f32 to vector<8x128xf32>
    %734 = arith.mulf %733, %732 : vector<8x128xf32>
    %cst_415 = arith.constant 1.000000e+00 : f32
    %735 = vector.broadcast %cst_415 : f32 to vector<8x128xf32>
    %736 = arith.subf %734, %735 : vector<8x128xf32>
    %c64_i32_416 = arith.constant 64 : i32
    %737 = tpu.dynamic_rotate %731 by %c64_i32_416 dim 1 : vector<8x128xf32>, i32 -> vector<8x128xf32>
    %738 = arith.mulf %731, %80 : vector<8x128xf32>
    %739 = arith.mulf %737, %736 : vector<8x128xf32>
    %740 = arith.addf %738, %739 : vector<8x128xf32>
    %c64_i32_417 = arith.constant 64 : i32
    %741 = tpu.dynamic_rotate %732 by %c64_i32_417 dim 1 : vector<8x128xf32>, i32 -> vector<8x128xf32>
    %742 = math.tanh %740 : vector<8x128xf32>
    %743 = arith.mulf %741, %742 : vector<8x128xf32>
    %744 = arith.select %721, %743, %80 : vector<8x128xi1>, vector<8x128xf32>
    %745 = arith.select %721, %740, %80 : vector<8x128xi1>, vector<8x128xf32>
    %746 = arith.maximumf %685, %743 : vector<8x128xf32>
    %747 = arith.select %721, %746, %685 : vector<8x128xi1>, vector<8x128xf32>
    %c8_418 = arith.constant 8 : index
    %c0_419 = arith.constant 0 : index
    %748 = vector.load %arg21[%c8_418, %c0_419] : memref<64x512xf32, #tpu.memory_space<vmem>>, vector<8x256xf32>
    %c0_420 = arith.constant 0 : index
    %c8_421 = arith.constant 8 : index
    %c0_422 = arith.constant 0 : index
    %749 = vector.load %arg6[%c0_420, %c8_421, %c0_422] : memref<2x64x128xf32, #tpu.memory_space<vmem>>, vector<1x8x128xf32>
    %750 = vector.shape_cast %749 : vector<1x8x128xf32> to vector<8x128xf32>
    %cst_423 = arith.constant 0.000000e+00 : f32
    %751 = vector.broadcast %cst_423 : f32 to vector<8x128xf32>
    %752 = arith.cmpf ogt, %750, %751 : vector<8x128xf32>
    %c0_424 = arith.constant 0 : index
    %c0_425 = arith.constant 0 : index
    %c0_426 = arith.constant 0 : index
    %753 = vector.load %arg16[%c0_424, %c0_425, %c0_426] : memref<2x128x256xf32, #tpu.memory_space<vmem>>, vector<1x128x256xf32>
    %754 = vector.shape_cast %753 : vector<1x128x256xf32> to vector<128x256xf32>
    %cst_427 = arith.constant dense<0.000000e+00> : vector<8x256xf32>
    %755 = tpu.matmul %713, %754, %cst_427 {dimension_numbers = #tpu.dot_dimension_numbers<[1], [0], [0], [1], [0, 0, 1, 1], [], []>} : vector<8x128xf32>, vector<128x256xf32>, vector<8x256xf32> -> vector<8x256xf32>
    %756 = arith.addf %748, %755 : vector<8x256xf32>
    %757 = arith.negf %756 : vector<8x256xf32>
    %758 = math.exp %757 : vector<8x256xf32>
    %cst_428 = arith.constant 1.000000e+00 : f32
    %759 = vector.broadcast %cst_428 : f32 to vector<8x256xf32>
    %760 = arith.addf %759, %758 : vector<8x256xf32>
    %761 = arith.divf %759, %760 : vector<8x256xf32>
    %762 = vector.extract_strided_slice %761 {offsets = [0, 0], sizes = [8, 128], strides = [1, 1]} : vector<8x256xf32> to vector<8x128xf32>
    %763 = vector.extract_strided_slice %761 {offsets = [0, 128], sizes = [8, 128], strides = [1, 1]} : vector<8x256xf32> to vector<8x128xf32>
    %cst_429 = arith.constant 2.000000e+00 : f32
    %764 = vector.broadcast %cst_429 : f32 to vector<8x128xf32>
    %765 = arith.mulf %764, %763 : vector<8x128xf32>
    %cst_430 = arith.constant 1.000000e+00 : f32
    %766 = vector.broadcast %cst_430 : f32 to vector<8x128xf32>
    %767 = arith.subf %765, %766 : vector<8x128xf32>
    %c64_i32_431 = arith.constant 64 : i32
    %768 = tpu.dynamic_rotate %762 by %c64_i32_431 dim 1 : vector<8x128xf32>, i32 -> vector<8x128xf32>
    %769 = arith.mulf %762, %714 : vector<8x128xf32>
    %770 = arith.mulf %768, %767 : vector<8x128xf32>
    %771 = arith.addf %769, %770 : vector<8x128xf32>
    %c64_i32_432 = arith.constant 64 : i32
    %772 = tpu.dynamic_rotate %763 by %c64_i32_432 dim 1 : vector<8x128xf32>, i32 -> vector<8x128xf32>
    %773 = math.tanh %771 : vector<8x128xf32>
    %774 = arith.mulf %772, %773 : vector<8x128xf32>
    %775 = arith.select %752, %774, %713 : vector<8x128xi1>, vector<8x128xf32>
    %776 = arith.select %752, %771, %714 : vector<8x128xi1>, vector<8x128xf32>
    %777 = arith.maximumf %716, %774 : vector<8x128xf32>
    %778 = arith.select %752, %777, %716 : vector<8x128xi1>, vector<8x128xf32>
    %c48_433 = arith.constant 48 : index
    %c256_434 = arith.constant 256 : index
    %779 = vector.load %arg21[%c48_433, %c256_434] : memref<64x512xf32, #tpu.memory_space<vmem>>, vector<8x256xf32>
    %c1_435 = arith.constant 1 : index
    %c8_436 = arith.constant 8 : index
    %c0_437 = arith.constant 0 : index
    %780 = vector.load %arg6[%c1_435, %c8_436, %c0_437] : memref<2x64x128xf32, #tpu.memory_space<vmem>>, vector<1x8x128xf32>
    %781 = vector.shape_cast %780 : vector<1x8x128xf32> to vector<8x128xf32>
    %cst_438 = arith.constant 0.000000e+00 : f32
    %782 = vector.broadcast %cst_438 : f32 to vector<8x128xf32>
    %783 = arith.cmpf ogt, %781, %782 : vector<8x128xf32>
    %c1_439 = arith.constant 1 : index
    %c0_440 = arith.constant 0 : index
    %c0_441 = arith.constant 0 : index
    %784 = vector.load %arg16[%c1_439, %c0_440, %c0_441] : memref<2x128x256xf32, #tpu.memory_space<vmem>>, vector<1x128x256xf32>
    %785 = vector.shape_cast %784 : vector<1x128x256xf32> to vector<128x256xf32>
    %cst_442 = arith.constant dense<0.000000e+00> : vector<8x256xf32>
    %786 = tpu.matmul %744, %785, %cst_442 {dimension_numbers = #tpu.dot_dimension_numbers<[1], [0], [0], [1], [0, 0, 1, 1], [], []>} : vector<8x128xf32>, vector<128x256xf32>, vector<8x256xf32> -> vector<8x256xf32>
    %787 = arith.addf %779, %786 : vector<8x256xf32>
    %788 = arith.negf %787 : vector<8x256xf32>
    %789 = math.exp %788 : vector<8x256xf32>
    %cst_443 = arith.constant 1.000000e+00 : f32
    %790 = vector.broadcast %cst_443 : f32 to vector<8x256xf32>
    %791 = arith.addf %790, %789 : vector<8x256xf32>
    %792 = arith.divf %790, %791 : vector<8x256xf32>
    %793 = vector.extract_strided_slice %792 {offsets = [0, 0], sizes = [8, 128], strides = [1, 1]} : vector<8x256xf32> to vector<8x128xf32>
    %794 = vector.extract_strided_slice %792 {offsets = [0, 128], sizes = [8, 128], strides = [1, 1]} : vector<8x256xf32> to vector<8x128xf32>
    %cst_444 = arith.constant 2.000000e+00 : f32
    %795 = vector.broadcast %cst_444 : f32 to vector<8x128xf32>
    %796 = arith.mulf %795, %794 : vector<8x128xf32>
    %cst_445 = arith.constant 1.000000e+00 : f32
    %797 = vector.broadcast %cst_445 : f32 to vector<8x128xf32>
    %798 = arith.subf %796, %797 : vector<8x128xf32>
    %c64_i32_446 = arith.constant 64 : i32
    %799 = tpu.dynamic_rotate %793 by %c64_i32_446 dim 1 : vector<8x128xf32>, i32 -> vector<8x128xf32>
    %800 = arith.mulf %793, %745 : vector<8x128xf32>
    %801 = arith.mulf %799, %798 : vector<8x128xf32>
    %802 = arith.addf %800, %801 : vector<8x128xf32>
    %c64_i32_447 = arith.constant 64 : i32
    %803 = tpu.dynamic_rotate %794 by %c64_i32_447 dim 1 : vector<8x128xf32>, i32 -> vector<8x128xf32>
    %804 = math.tanh %802 : vector<8x128xf32>
    %805 = arith.mulf %803, %804 : vector<8x128xf32>
    %806 = arith.select %783, %805, %744 : vector<8x128xi1>, vector<8x128xf32>
    %807 = arith.select %783, %802, %745 : vector<8x128xi1>, vector<8x128xf32>
    %808 = arith.maximumf %747, %805 : vector<8x128xf32>
    %809 = arith.select %783, %808, %747 : vector<8x128xi1>, vector<8x128xf32>
    %c16_448 = arith.constant 16 : index
    %c0_449 = arith.constant 0 : index
    %810 = vector.load %arg21[%c16_448, %c0_449] : memref<64x512xf32, #tpu.memory_space<vmem>>, vector<8x256xf32>
    %c0_450 = arith.constant 0 : index
    %c16_451 = arith.constant 16 : index
    %c0_452 = arith.constant 0 : index
    %811 = vector.load %arg6[%c0_450, %c16_451, %c0_452] : memref<2x64x128xf32, #tpu.memory_space<vmem>>, vector<1x8x128xf32>
    %812 = vector.shape_cast %811 : vector<1x8x128xf32> to vector<8x128xf32>
    %cst_453 = arith.constant 0.000000e+00 : f32
    %813 = vector.broadcast %cst_453 : f32 to vector<8x128xf32>
    %814 = arith.cmpf ogt, %812, %813 : vector<8x128xf32>
    %c0_454 = arith.constant 0 : index
    %c0_455 = arith.constant 0 : index
    %c0_456 = arith.constant 0 : index
    %815 = vector.load %arg16[%c0_454, %c0_455, %c0_456] : memref<2x128x256xf32, #tpu.memory_space<vmem>>, vector<1x128x256xf32>
    %816 = vector.shape_cast %815 : vector<1x128x256xf32> to vector<128x256xf32>
    %cst_457 = arith.constant dense<0.000000e+00> : vector<8x256xf32>
    %817 = tpu.matmul %775, %816, %cst_457 {dimension_numbers = #tpu.dot_dimension_numbers<[1], [0], [0], [1], [0, 0, 1, 1], [], []>} : vector<8x128xf32>, vector<128x256xf32>, vector<8x256xf32> -> vector<8x256xf32>
    %818 = arith.addf %810, %817 : vector<8x256xf32>
    %819 = arith.negf %818 : vector<8x256xf32>
    %820 = math.exp %819 : vector<8x256xf32>
    %cst_458 = arith.constant 1.000000e+00 : f32
    %821 = vector.broadcast %cst_458 : f32 to vector<8x256xf32>
    %822 = arith.addf %821, %820 : vector<8x256xf32>
    %823 = arith.divf %821, %822 : vector<8x256xf32>
    %824 = vector.extract_strided_slice %823 {offsets = [0, 0], sizes = [8, 128], strides = [1, 1]} : vector<8x256xf32> to vector<8x128xf32>
    %825 = vector.extract_strided_slice %823 {offsets = [0, 128], sizes = [8, 128], strides = [1, 1]} : vector<8x256xf32> to vector<8x128xf32>
    %cst_459 = arith.constant 2.000000e+00 : f32
    %826 = vector.broadcast %cst_459 : f32 to vector<8x128xf32>
    %827 = arith.mulf %826, %825 : vector<8x128xf32>
    %cst_460 = arith.constant 1.000000e+00 : f32
    %828 = vector.broadcast %cst_460 : f32 to vector<8x128xf32>
    %829 = arith.subf %827, %828 : vector<8x128xf32>
    %c64_i32_461 = arith.constant 64 : i32
    %830 = tpu.dynamic_rotate %824 by %c64_i32_461 dim 1 : vector<8x128xf32>, i32 -> vector<8x128xf32>
    %831 = arith.mulf %824, %776 : vector<8x128xf32>
    %832 = arith.mulf %830, %829 : vector<8x128xf32>
    %833 = arith.addf %831, %832 : vector<8x128xf32>
    %c64_i32_462 = arith.constant 64 : i32
    %834 = tpu.dynamic_rotate %825 by %c64_i32_462 dim 1 : vector<8x128xf32>, i32 -> vector<8x128xf32>
    %835 = math.tanh %833 : vector<8x128xf32>
    %836 = arith.mulf %834, %835 : vector<8x128xf32>
    %837 = arith.select %814, %836, %775 : vector<8x128xi1>, vector<8x128xf32>
    %838 = arith.select %814, %833, %776 : vector<8x128xi1>, vector<8x128xf32>
    %839 = arith.maximumf %778, %836 : vector<8x128xf32>
    %840 = arith.select %814, %839, %778 : vector<8x128xi1>, vector<8x128xf32>
    %c40_463 = arith.constant 40 : index
    %c256_464 = arith.constant 256 : index
    %841 = vector.load %arg21[%c40_463, %c256_464] : memref<64x512xf32, #tpu.memory_space<vmem>>, vector<8x256xf32>
    %c1_465 = arith.constant 1 : index
    %c16_466 = arith.constant 16 : index
    %c0_467 = arith.constant 0 : index
    %842 = vector.load %arg6[%c1_465, %c16_466, %c0_467] : memref<2x64x128xf32, #tpu.memory_space<vmem>>, vector<1x8x128xf32>
    %843 = vector.shape_cast %842 : vector<1x8x128xf32> to vector<8x128xf32>
    %cst_468 = arith.constant 0.000000e+00 : f32
    %844 = vector.broadcast %cst_468 : f32 to vector<8x128xf32>
    %845 = arith.cmpf ogt, %843, %844 : vector<8x128xf32>
    %c1_469 = arith.constant 1 : index
    %c0_470 = arith.constant 0 : index
    %c0_471 = arith.constant 0 : index
    %846 = vector.load %arg16[%c1_469, %c0_470, %c0_471] : memref<2x128x256xf32, #tpu.memory_space<vmem>>, vector<1x128x256xf32>
    %847 = vector.shape_cast %846 : vector<1x128x256xf32> to vector<128x256xf32>
    %cst_472 = arith.constant dense<0.000000e+00> : vector<8x256xf32>
    %848 = tpu.matmul %806, %847, %cst_472 {dimension_numbers = #tpu.dot_dimension_numbers<[1], [0], [0], [1], [0, 0, 1, 1], [], []>} : vector<8x128xf32>, vector<128x256xf32>, vector<8x256xf32> -> vector<8x256xf32>
    %849 = arith.addf %841, %848 : vector<8x256xf32>
    %850 = arith.negf %849 : vector<8x256xf32>
    %851 = math.exp %850 : vector<8x256xf32>
    %cst_473 = arith.constant 1.000000e+00 : f32
    %852 = vector.broadcast %cst_473 : f32 to vector<8x256xf32>
    %853 = arith.addf %852, %851 : vector<8x256xf32>
    %854 = arith.divf %852, %853 : vector<8x256xf32>
    %855 = vector.extract_strided_slice %854 {offsets = [0, 0], sizes = [8, 128], strides = [1, 1]} : vector<8x256xf32> to vector<8x128xf32>
    %856 = vector.extract_strided_slice %854 {offsets = [0, 128], sizes = [8, 128], strides = [1, 1]} : vector<8x256xf32> to vector<8x128xf32>
    %cst_474 = arith.constant 2.000000e+00 : f32
    %857 = vector.broadcast %cst_474 : f32 to vector<8x128xf32>
    %858 = arith.mulf %857, %856 : vector<8x128xf32>
    %cst_475 = arith.constant 1.000000e+00 : f32
    %859 = vector.broadcast %cst_475 : f32 to vector<8x128xf32>
    %860 = arith.subf %858, %859 : vector<8x128xf32>
    %c64_i32_476 = arith.constant 64 : i32
    %861 = tpu.dynamic_rotate %855 by %c64_i32_476 dim 1 : vector<8x128xf32>, i32 -> vector<8x128xf32>
    %862 = arith.mulf %855, %807 : vector<8x128xf32>
    %863 = arith.mulf %861, %860 : vector<8x128xf32>
    %864 = arith.addf %862, %863 : vector<8x128xf32>
    %c64_i32_477 = arith.constant 64 : i32
    %865 = tpu.dynamic_rotate %856 by %c64_i32_477 dim 1 : vector<8x128xf32>, i32 -> vector<8x128xf32>
    %866 = math.tanh %864 : vector<8x128xf32>
    %867 = arith.mulf %865, %866 : vector<8x128xf32>
    %868 = arith.select %845, %867, %806 : vector<8x128xi1>, vector<8x128xf32>
    %869 = arith.select %845, %864, %807 : vector<8x128xi1>, vector<8x128xf32>
    %870 = arith.maximumf %809, %867 : vector<8x128xf32>
    %871 = arith.select %845, %870, %809 : vector<8x128xi1>, vector<8x128xf32>
    %c24_478 = arith.constant 24 : index
    %c0_479 = arith.constant 0 : index
    %872 = vector.load %arg21[%c24_478, %c0_479] : memref<64x512xf32, #tpu.memory_space<vmem>>, vector<8x256xf32>
    %c0_480 = arith.constant 0 : index
    %c24_481 = arith.constant 24 : index
    %c0_482 = arith.constant 0 : index
    %873 = vector.load %arg6[%c0_480, %c24_481, %c0_482] : memref<2x64x128xf32, #tpu.memory_space<vmem>>, vector<1x8x128xf32>
    %874 = vector.shape_cast %873 : vector<1x8x128xf32> to vector<8x128xf32>
    %cst_483 = arith.constant 0.000000e+00 : f32
    %875 = vector.broadcast %cst_483 : f32 to vector<8x128xf32>
    %876 = arith.cmpf ogt, %874, %875 : vector<8x128xf32>
    %c0_484 = arith.constant 0 : index
    %c0_485 = arith.constant 0 : index
    %c0_486 = arith.constant 0 : index
    %877 = vector.load %arg16[%c0_484, %c0_485, %c0_486] : memref<2x128x256xf32, #tpu.memory_space<vmem>>, vector<1x128x256xf32>
    %878 = vector.shape_cast %877 : vector<1x128x256xf32> to vector<128x256xf32>
    %cst_487 = arith.constant dense<0.000000e+00> : vector<8x256xf32>
    %879 = tpu.matmul %837, %878, %cst_487 {dimension_numbers = #tpu.dot_dimension_numbers<[1], [0], [0], [1], [0, 0, 1, 1], [], []>} : vector<8x128xf32>, vector<128x256xf32>, vector<8x256xf32> -> vector<8x256xf32>
    %880 = arith.addf %872, %879 : vector<8x256xf32>
    %881 = arith.negf %880 : vector<8x256xf32>
    %882 = math.exp %881 : vector<8x256xf32>
    %cst_488 = arith.constant 1.000000e+00 : f32
    %883 = vector.broadcast %cst_488 : f32 to vector<8x256xf32>
    %884 = arith.addf %883, %882 : vector<8x256xf32>
    %885 = arith.divf %883, %884 : vector<8x256xf32>
    %886 = vector.extract_strided_slice %885 {offsets = [0, 0], sizes = [8, 128], strides = [1, 1]} : vector<8x256xf32> to vector<8x128xf32>
    %887 = vector.extract_strided_slice %885 {offsets = [0, 128], sizes = [8, 128], strides = [1, 1]} : vector<8x256xf32> to vector<8x128xf32>
    %cst_489 = arith.constant 2.000000e+00 : f32
    %888 = vector.broadcast %cst_489 : f32 to vector<8x128xf32>
    %889 = arith.mulf %888, %887 : vector<8x128xf32>
    %cst_490 = arith.constant 1.000000e+00 : f32
    %890 = vector.broadcast %cst_490 : f32 to vector<8x128xf32>
    %891 = arith.subf %889, %890 : vector<8x128xf32>
    %c64_i32_491 = arith.constant 64 : i32
    %892 = tpu.dynamic_rotate %886 by %c64_i32_491 dim 1 : vector<8x128xf32>, i32 -> vector<8x128xf32>
    %893 = arith.mulf %886, %838 : vector<8x128xf32>
    %894 = arith.mulf %892, %891 : vector<8x128xf32>
    %895 = arith.addf %893, %894 : vector<8x128xf32>
    %c64_i32_492 = arith.constant 64 : i32
    %896 = tpu.dynamic_rotate %887 by %c64_i32_492 dim 1 : vector<8x128xf32>, i32 -> vector<8x128xf32>
    %897 = math.tanh %895 : vector<8x128xf32>
    %898 = arith.mulf %896, %897 : vector<8x128xf32>
    %899 = arith.select %876, %898, %837 : vector<8x128xi1>, vector<8x128xf32>
    %900 = arith.select %876, %895, %838 : vector<8x128xi1>, vector<8x128xf32>
    %901 = arith.maximumf %840, %898 : vector<8x128xf32>
    %902 = arith.select %876, %901, %840 : vector<8x128xi1>, vector<8x128xf32>
    %c32_493 = arith.constant 32 : index
    %c256_494 = arith.constant 256 : index
    %903 = vector.load %arg21[%c32_493, %c256_494] : memref<64x512xf32, #tpu.memory_space<vmem>>, vector<8x256xf32>
    %c1_495 = arith.constant 1 : index
    %c24_496 = arith.constant 24 : index
    %c0_497 = arith.constant 0 : index
    %904 = vector.load %arg6[%c1_495, %c24_496, %c0_497] : memref<2x64x128xf32, #tpu.memory_space<vmem>>, vector<1x8x128xf32>
    %905 = vector.shape_cast %904 : vector<1x8x128xf32> to vector<8x128xf32>
    %cst_498 = arith.constant 0.000000e+00 : f32
    %906 = vector.broadcast %cst_498 : f32 to vector<8x128xf32>
    %907 = arith.cmpf ogt, %905, %906 : vector<8x128xf32>
    %c1_499 = arith.constant 1 : index
    %c0_500 = arith.constant 0 : index
    %c0_501 = arith.constant 0 : index
    %908 = vector.load %arg16[%c1_499, %c0_500, %c0_501] : memref<2x128x256xf32, #tpu.memory_space<vmem>>, vector<1x128x256xf32>
    %909 = vector.shape_cast %908 : vector<1x128x256xf32> to vector<128x256xf32>
    %cst_502 = arith.constant dense<0.000000e+00> : vector<8x256xf32>
    %910 = tpu.matmul %868, %909, %cst_502 {dimension_numbers = #tpu.dot_dimension_numbers<[1], [0], [0], [1], [0, 0, 1, 1], [], []>} : vector<8x128xf32>, vector<128x256xf32>, vector<8x256xf32> -> vector<8x256xf32>
    %911 = arith.addf %903, %910 : vector<8x256xf32>
    %912 = arith.negf %911 : vector<8x256xf32>
    %913 = math.exp %912 : vector<8x256xf32>
    %cst_503 = arith.constant 1.000000e+00 : f32
    %914 = vector.broadcast %cst_503 : f32 to vector<8x256xf32>
    %915 = arith.addf %914, %913 : vector<8x256xf32>
    %916 = arith.divf %914, %915 : vector<8x256xf32>
    %917 = vector.extract_strided_slice %916 {offsets = [0, 0], sizes = [8, 128], strides = [1, 1]} : vector<8x256xf32> to vector<8x128xf32>
    %918 = vector.extract_strided_slice %916 {offsets = [0, 128], sizes = [8, 128], strides = [1, 1]} : vector<8x256xf32> to vector<8x128xf32>
    %cst_504 = arith.constant 2.000000e+00 : f32
    %919 = vector.broadcast %cst_504 : f32 to vector<8x128xf32>
    %920 = arith.mulf %919, %918 : vector<8x128xf32>
    %cst_505 = arith.constant 1.000000e+00 : f32
    %921 = vector.broadcast %cst_505 : f32 to vector<8x128xf32>
    %922 = arith.subf %920, %921 : vector<8x128xf32>
    %c64_i32_506 = arith.constant 64 : i32
    %923 = tpu.dynamic_rotate %917 by %c64_i32_506 dim 1 : vector<8x128xf32>, i32 -> vector<8x128xf32>
    %924 = arith.mulf %917, %869 : vector<8x128xf32>
    %925 = arith.mulf %923, %922 : vector<8x128xf32>
    %926 = arith.addf %924, %925 : vector<8x128xf32>
    %c64_i32_507 = arith.constant 64 : i32
    %927 = tpu.dynamic_rotate %918 by %c64_i32_507 dim 1 : vector<8x128xf32>, i32 -> vector<8x128xf32>
    %928 = math.tanh %926 : vector<8x128xf32>
    %929 = arith.mulf %927, %928 : vector<8x128xf32>
    %930 = arith.select %907, %929, %868 : vector<8x128xi1>, vector<8x128xf32>
    %931 = arith.select %907, %926, %869 : vector<8x128xi1>, vector<8x128xf32>
    %932 = arith.maximumf %871, %929 : vector<8x128xf32>
    %933 = arith.select %907, %932, %871 : vector<8x128xi1>, vector<8x128xf32>
    %c32_508 = arith.constant 32 : index
    %c0_509 = arith.constant 0 : index
    %934 = vector.load %arg21[%c32_508, %c0_509] : memref<64x512xf32, #tpu.memory_space<vmem>>, vector<8x256xf32>
    %c0_510 = arith.constant 0 : index
    %c32_511 = arith.constant 32 : index
    %c0_512 = arith.constant 0 : index
    %935 = vector.load %arg6[%c0_510, %c32_511, %c0_512] : memref<2x64x128xf32, #tpu.memory_space<vmem>>, vector<1x8x128xf32>
    %936 = vector.shape_cast %935 : vector<1x8x128xf32> to vector<8x128xf32>
    %cst_513 = arith.constant 0.000000e+00 : f32
    %937 = vector.broadcast %cst_513 : f32 to vector<8x128xf32>
    %938 = arith.cmpf ogt, %936, %937 : vector<8x128xf32>
    %c0_514 = arith.constant 0 : index
    %c0_515 = arith.constant 0 : index
    %c0_516 = arith.constant 0 : index
    %939 = vector.load %arg16[%c0_514, %c0_515, %c0_516] : memref<2x128x256xf32, #tpu.memory_space<vmem>>, vector<1x128x256xf32>
    %940 = vector.shape_cast %939 : vector<1x128x256xf32> to vector<128x256xf32>
    %cst_517 = arith.constant dense<0.000000e+00> : vector<8x256xf32>
    %941 = tpu.matmul %899, %940, %cst_517 {dimension_numbers = #tpu.dot_dimension_numbers<[1], [0], [0], [1], [0, 0, 1, 1], [], []>} : vector<8x128xf32>, vector<128x256xf32>, vector<8x256xf32> -> vector<8x256xf32>
    %942 = arith.addf %934, %941 : vector<8x256xf32>
    %943 = arith.negf %942 : vector<8x256xf32>
    %944 = math.exp %943 : vector<8x256xf32>
    %cst_518 = arith.constant 1.000000e+00 : f32
    %945 = vector.broadcast %cst_518 : f32 to vector<8x256xf32>
    %946 = arith.addf %945, %944 : vector<8x256xf32>
    %947 = arith.divf %945, %946 : vector<8x256xf32>
    %948 = vector.extract_strided_slice %947 {offsets = [0, 0], sizes = [8, 128], strides = [1, 1]} : vector<8x256xf32> to vector<8x128xf32>
    %949 = vector.extract_strided_slice %947 {offsets = [0, 128], sizes = [8, 128], strides = [1, 1]} : vector<8x256xf32> to vector<8x128xf32>
    %cst_519 = arith.constant 2.000000e+00 : f32
    %950 = vector.broadcast %cst_519 : f32 to vector<8x128xf32>
    %951 = arith.mulf %950, %949 : vector<8x128xf32>
    %cst_520 = arith.constant 1.000000e+00 : f32
    %952 = vector.broadcast %cst_520 : f32 to vector<8x128xf32>
    %953 = arith.subf %951, %952 : vector<8x128xf32>
    %c64_i32_521 = arith.constant 64 : i32
    %954 = tpu.dynamic_rotate %948 by %c64_i32_521 dim 1 : vector<8x128xf32>, i32 -> vector<8x128xf32>
    %955 = arith.mulf %948, %900 : vector<8x128xf32>
    %956 = arith.mulf %954, %953 : vector<8x128xf32>
    %957 = arith.addf %955, %956 : vector<8x128xf32>
    %c64_i32_522 = arith.constant 64 : i32
    %958 = tpu.dynamic_rotate %949 by %c64_i32_522 dim 1 : vector<8x128xf32>, i32 -> vector<8x128xf32>
    %959 = math.tanh %957 : vector<8x128xf32>
    %960 = arith.mulf %958, %959 : vector<8x128xf32>
    %961 = arith.select %938, %960, %899 : vector<8x128xi1>, vector<8x128xf32>
    %962 = arith.select %938, %957, %900 : vector<8x128xi1>, vector<8x128xf32>
    %963 = arith.maximumf %902, %960 : vector<8x128xf32>
    %964 = arith.select %938, %963, %902 : vector<8x128xi1>, vector<8x128xf32>
    %c24_523 = arith.constant 24 : index
    %c256_524 = arith.constant 256 : index
    %965 = vector.load %arg21[%c24_523, %c256_524] : memref<64x512xf32, #tpu.memory_space<vmem>>, vector<8x256xf32>
    %c1_525 = arith.constant 1 : index
    %c32_526 = arith.constant 32 : index
    %c0_527 = arith.constant 0 : index
    %966 = vector.load %arg6[%c1_525, %c32_526, %c0_527] : memref<2x64x128xf32, #tpu.memory_space<vmem>>, vector<1x8x128xf32>
    %967 = vector.shape_cast %966 : vector<1x8x128xf32> to vector<8x128xf32>
    %cst_528 = arith.constant 0.000000e+00 : f32
    %968 = vector.broadcast %cst_528 : f32 to vector<8x128xf32>
    %969 = arith.cmpf ogt, %967, %968 : vector<8x128xf32>
    %c1_529 = arith.constant 1 : index
    %c0_530 = arith.constant 0 : index
    %c0_531 = arith.constant 0 : index
    %970 = vector.load %arg16[%c1_529, %c0_530, %c0_531] : memref<2x128x256xf32, #tpu.memory_space<vmem>>, vector<1x128x256xf32>
    %971 = vector.shape_cast %970 : vector<1x128x256xf32> to vector<128x256xf32>
    %cst_532 = arith.constant dense<0.000000e+00> : vector<8x256xf32>
    %972 = tpu.matmul %930, %971, %cst_532 {dimension_numbers = #tpu.dot_dimension_numbers<[1], [0], [0], [1], [0, 0, 1, 1], [], []>} : vector<8x128xf32>, vector<128x256xf32>, vector<8x256xf32> -> vector<8x256xf32>
    %973 = arith.addf %965, %972 : vector<8x256xf32>
    %974 = arith.negf %973 : vector<8x256xf32>
    %975 = math.exp %974 : vector<8x256xf32>
    %cst_533 = arith.constant 1.000000e+00 : f32
    %976 = vector.broadcast %cst_533 : f32 to vector<8x256xf32>
    %977 = arith.addf %976, %975 : vector<8x256xf32>
    %978 = arith.divf %976, %977 : vector<8x256xf32>
    %979 = vector.extract_strided_slice %978 {offsets = [0, 0], sizes = [8, 128], strides = [1, 1]} : vector<8x256xf32> to vector<8x128xf32>
    %980 = vector.extract_strided_slice %978 {offsets = [0, 128], sizes = [8, 128], strides = [1, 1]} : vector<8x256xf32> to vector<8x128xf32>
    %cst_534 = arith.constant 2.000000e+00 : f32
    %981 = vector.broadcast %cst_534 : f32 to vector<8x128xf32>
    %982 = arith.mulf %981, %980 : vector<8x128xf32>
    %cst_535 = arith.constant 1.000000e+00 : f32
    %983 = vector.broadcast %cst_535 : f32 to vector<8x128xf32>
    %984 = arith.subf %982, %983 : vector<8x128xf32>
    %c64_i32_536 = arith.constant 64 : i32
    %985 = tpu.dynamic_rotate %979 by %c64_i32_536 dim 1 : vector<8x128xf32>, i32 -> vector<8x128xf32>
    %986 = arith.mulf %979, %931 : vector<8x128xf32>
    %987 = arith.mulf %985, %984 : vector<8x128xf32>
    %988 = arith.addf %986, %987 : vector<8x128xf32>
    %c64_i32_537 = arith.constant 64 : i32
    %989 = tpu.dynamic_rotate %980 by %c64_i32_537 dim 1 : vector<8x128xf32>, i32 -> vector<8x128xf32>
    %990 = math.tanh %988 : vector<8x128xf32>
    %991 = arith.mulf %989, %990 : vector<8x128xf32>
    %992 = arith.select %969, %991, %930 : vector<8x128xi1>, vector<8x128xf32>
    %993 = arith.select %969, %988, %931 : vector<8x128xi1>, vector<8x128xf32>
    %994 = arith.maximumf %933, %991 : vector<8x128xf32>
    %995 = arith.select %969, %994, %933 : vector<8x128xi1>, vector<8x128xf32>
    %c40_538 = arith.constant 40 : index
    %c0_539 = arith.constant 0 : index
    %996 = vector.load %arg21[%c40_538, %c0_539] : memref<64x512xf32, #tpu.memory_space<vmem>>, vector<8x256xf32>
    %c0_540 = arith.constant 0 : index
    %c40_541 = arith.constant 40 : index
    %c0_542 = arith.constant 0 : index
    %997 = vector.load %arg6[%c0_540, %c40_541, %c0_542] : memref<2x64x128xf32, #tpu.memory_space<vmem>>, vector<1x8x128xf32>
    %998 = vector.shape_cast %997 : vector<1x8x128xf32> to vector<8x128xf32>
    %cst_543 = arith.constant 0.000000e+00 : f32
    %999 = vector.broadcast %cst_543 : f32 to vector<8x128xf32>
    %1000 = arith.cmpf ogt, %998, %999 : vector<8x128xf32>
    %c0_544 = arith.constant 0 : index
    %c0_545 = arith.constant 0 : index
    %c0_546 = arith.constant 0 : index
    %1001 = vector.load %arg16[%c0_544, %c0_545, %c0_546] : memref<2x128x256xf32, #tpu.memory_space<vmem>>, vector<1x128x256xf32>
    %1002 = vector.shape_cast %1001 : vector<1x128x256xf32> to vector<128x256xf32>
    %cst_547 = arith.constant dense<0.000000e+00> : vector<8x256xf32>
    %1003 = tpu.matmul %961, %1002, %cst_547 {dimension_numbers = #tpu.dot_dimension_numbers<[1], [0], [0], [1], [0, 0, 1, 1], [], []>} : vector<8x128xf32>, vector<128x256xf32>, vector<8x256xf32> -> vector<8x256xf32>
    %1004 = arith.addf %996, %1003 : vector<8x256xf32>
    %1005 = arith.negf %1004 : vector<8x256xf32>
    %1006 = math.exp %1005 : vector<8x256xf32>
    %cst_548 = arith.constant 1.000000e+00 : f32
    %1007 = vector.broadcast %cst_548 : f32 to vector<8x256xf32>
    %1008 = arith.addf %1007, %1006 : vector<8x256xf32>
    %1009 = arith.divf %1007, %1008 : vector<8x256xf32>
    %1010 = vector.extract_strided_slice %1009 {offsets = [0, 0], sizes = [8, 128], strides = [1, 1]} : vector<8x256xf32> to vector<8x128xf32>
    %1011 = vector.extract_strided_slice %1009 {offsets = [0, 128], sizes = [8, 128], strides = [1, 1]} : vector<8x256xf32> to vector<8x128xf32>
    %cst_549 = arith.constant 2.000000e+00 : f32
    %1012 = vector.broadcast %cst_549 : f32 to vector<8x128xf32>
    %1013 = arith.mulf %1012, %1011 : vector<8x128xf32>
    %cst_550 = arith.constant 1.000000e+00 : f32
    %1014 = vector.broadcast %cst_550 : f32 to vector<8x128xf32>
    %1015 = arith.subf %1013, %1014 : vector<8x128xf32>
    %c64_i32_551 = arith.constant 64 : i32
    %1016 = tpu.dynamic_rotate %1010 by %c64_i32_551 dim 1 : vector<8x128xf32>, i32 -> vector<8x128xf32>
    %1017 = arith.mulf %1010, %962 : vector<8x128xf32>
    %1018 = arith.mulf %1016, %1015 : vector<8x128xf32>
    %1019 = arith.addf %1017, %1018 : vector<8x128xf32>
    %c64_i32_552 = arith.constant 64 : i32
    %1020 = tpu.dynamic_rotate %1011 by %c64_i32_552 dim 1 : vector<8x128xf32>, i32 -> vector<8x128xf32>
    %1021 = math.tanh %1019 : vector<8x128xf32>
    %1022 = arith.mulf %1020, %1021 : vector<8x128xf32>
    %1023 = arith.select %1000, %1022, %961 : vector<8x128xi1>, vector<8x128xf32>
    %1024 = arith.select %1000, %1019, %962 : vector<8x128xi1>, vector<8x128xf32>
    %1025 = arith.maximumf %964, %1022 : vector<8x128xf32>
    %1026 = arith.select %1000, %1025, %964 : vector<8x128xi1>, vector<8x128xf32>
    %c16_553 = arith.constant 16 : index
    %c256_554 = arith.constant 256 : index
    %1027 = vector.load %arg21[%c16_553, %c256_554] : memref<64x512xf32, #tpu.memory_space<vmem>>, vector<8x256xf32>
    %c1_555 = arith.constant 1 : index
    %c40_556 = arith.constant 40 : index
    %c0_557 = arith.constant 0 : index
    %1028 = vector.load %arg6[%c1_555, %c40_556, %c0_557] : memref<2x64x128xf32, #tpu.memory_space<vmem>>, vector<1x8x128xf32>
    %1029 = vector.shape_cast %1028 : vector<1x8x128xf32> to vector<8x128xf32>
    %cst_558 = arith.constant 0.000000e+00 : f32
    %1030 = vector.broadcast %cst_558 : f32 to vector<8x128xf32>
    %1031 = arith.cmpf ogt, %1029, %1030 : vector<8x128xf32>
    %c1_559 = arith.constant 1 : index
    %c0_560 = arith.constant 0 : index
    %c0_561 = arith.constant 0 : index
    %1032 = vector.load %arg16[%c1_559, %c0_560, %c0_561] : memref<2x128x256xf32, #tpu.memory_space<vmem>>, vector<1x128x256xf32>
    %1033 = vector.shape_cast %1032 : vector<1x128x256xf32> to vector<128x256xf32>
    %cst_562 = arith.constant dense<0.000000e+00> : vector<8x256xf32>
    %1034 = tpu.matmul %992, %1033, %cst_562 {dimension_numbers = #tpu.dot_dimension_numbers<[1], [0], [0], [1], [0, 0, 1, 1], [], []>} : vector<8x128xf32>, vector<128x256xf32>, vector<8x256xf32> -> vector<8x256xf32>
    %1035 = arith.addf %1027, %1034 : vector<8x256xf32>
    %1036 = arith.negf %1035 : vector<8x256xf32>
    %1037 = math.exp %1036 : vector<8x256xf32>
    %cst_563 = arith.constant 1.000000e+00 : f32
    %1038 = vector.broadcast %cst_563 : f32 to vector<8x256xf32>
    %1039 = arith.addf %1038, %1037 : vector<8x256xf32>
    %1040 = arith.divf %1038, %1039 : vector<8x256xf32>
    %1041 = vector.extract_strided_slice %1040 {offsets = [0, 0], sizes = [8, 128], strides = [1, 1]} : vector<8x256xf32> to vector<8x128xf32>
    %1042 = vector.extract_strided_slice %1040 {offsets = [0, 128], sizes = [8, 128], strides = [1, 1]} : vector<8x256xf32> to vector<8x128xf32>
    %cst_564 = arith.constant 2.000000e+00 : f32
    %1043 = vector.broadcast %cst_564 : f32 to vector<8x128xf32>
    %1044 = arith.mulf %1043, %1042 : vector<8x128xf32>
    %cst_565 = arith.constant 1.000000e+00 : f32
    %1045 = vector.broadcast %cst_565 : f32 to vector<8x128xf32>
    %1046 = arith.subf %1044, %1045 : vector<8x128xf32>
    %c64_i32_566 = arith.constant 64 : i32
    %1047 = tpu.dynamic_rotate %1041 by %c64_i32_566 dim 1 : vector<8x128xf32>, i32 -> vector<8x128xf32>
    %1048 = arith.mulf %1041, %993 : vector<8x128xf32>
    %1049 = arith.mulf %1047, %1046 : vector<8x128xf32>
    %1050 = arith.addf %1048, %1049 : vector<8x128xf32>
    %c64_i32_567 = arith.constant 64 : i32
    %1051 = tpu.dynamic_rotate %1042 by %c64_i32_567 dim 1 : vector<8x128xf32>, i32 -> vector<8x128xf32>
    %1052 = math.tanh %1050 : vector<8x128xf32>
    %1053 = arith.mulf %1051, %1052 : vector<8x128xf32>
    %1054 = arith.select %1031, %1053, %992 : vector<8x128xi1>, vector<8x128xf32>
    %1055 = arith.select %1031, %1050, %993 : vector<8x128xi1>, vector<8x128xf32>
    %1056 = arith.maximumf %995, %1053 : vector<8x128xf32>
    %1057 = arith.select %1031, %1056, %995 : vector<8x128xi1>, vector<8x128xf32>
    %c48_568 = arith.constant 48 : index
    %c0_569 = arith.constant 0 : index
    %1058 = vector.load %arg21[%c48_568, %c0_569] : memref<64x512xf32, #tpu.memory_space<vmem>>, vector<8x256xf32>
    %c0_570 = arith.constant 0 : index
    %c48_571 = arith.constant 48 : index
    %c0_572 = arith.constant 0 : index
    %1059 = vector.load %arg6[%c0_570, %c48_571, %c0_572] : memref<2x64x128xf32, #tpu.memory_space<vmem>>, vector<1x8x128xf32>
    %1060 = vector.shape_cast %1059 : vector<1x8x128xf32> to vector<8x128xf32>
    %cst_573 = arith.constant 0.000000e+00 : f32
    %1061 = vector.broadcast %cst_573 : f32 to vector<8x128xf32>
    %1062 = arith.cmpf ogt, %1060, %1061 : vector<8x128xf32>
    %c0_574 = arith.constant 0 : index
    %c0_575 = arith.constant 0 : index
    %c0_576 = arith.constant 0 : index
    %1063 = vector.load %arg16[%c0_574, %c0_575, %c0_576] : memref<2x128x256xf32, #tpu.memory_space<vmem>>, vector<1x128x256xf32>
    %1064 = vector.shape_cast %1063 : vector<1x128x256xf32> to vector<128x256xf32>
    %cst_577 = arith.constant dense<0.000000e+00> : vector<8x256xf32>
    %1065 = tpu.matmul %1023, %1064, %cst_577 {dimension_numbers = #tpu.dot_dimension_numbers<[1], [0], [0], [1], [0, 0, 1, 1], [], []>} : vector<8x128xf32>, vector<128x256xf32>, vector<8x256xf32> -> vector<8x256xf32>
    %1066 = arith.addf %1058, %1065 : vector<8x256xf32>
    %1067 = arith.negf %1066 : vector<8x256xf32>
    %1068 = math.exp %1067 : vector<8x256xf32>
    %cst_578 = arith.constant 1.000000e+00 : f32
    %1069 = vector.broadcast %cst_578 : f32 to vector<8x256xf32>
    %1070 = arith.addf %1069, %1068 : vector<8x256xf32>
    %1071 = arith.divf %1069, %1070 : vector<8x256xf32>
    %1072 = vector.extract_strided_slice %1071 {offsets = [0, 0], sizes = [8, 128], strides = [1, 1]} : vector<8x256xf32> to vector<8x128xf32>
    %1073 = vector.extract_strided_slice %1071 {offsets = [0, 128], sizes = [8, 128], strides = [1, 1]} : vector<8x256xf32> to vector<8x128xf32>
    %cst_579 = arith.constant 2.000000e+00 : f32
    %1074 = vector.broadcast %cst_579 : f32 to vector<8x128xf32>
    %1075 = arith.mulf %1074, %1073 : vector<8x128xf32>
    %cst_580 = arith.constant 1.000000e+00 : f32
    %1076 = vector.broadcast %cst_580 : f32 to vector<8x128xf32>
    %1077 = arith.subf %1075, %1076 : vector<8x128xf32>
    %c64_i32_581 = arith.constant 64 : i32
    %1078 = tpu.dynamic_rotate %1072 by %c64_i32_581 dim 1 : vector<8x128xf32>, i32 -> vector<8x128xf32>
    %1079 = arith.mulf %1072, %1024 : vector<8x128xf32>
    %1080 = arith.mulf %1078, %1077 : vector<8x128xf32>
    %1081 = arith.addf %1079, %1080 : vector<8x128xf32>
    %c64_i32_582 = arith.constant 64 : i32
    %1082 = tpu.dynamic_rotate %1073 by %c64_i32_582 dim 1 : vector<8x128xf32>, i32 -> vector<8x128xf32>
    %1083 = math.tanh %1081 : vector<8x128xf32>
    %1084 = arith.mulf %1082, %1083 : vector<8x128xf32>
    %1085 = arith.select %1062, %1084, %1023 : vector<8x128xi1>, vector<8x128xf32>
    %1086 = arith.select %1062, %1081, %1024 : vector<8x128xi1>, vector<8x128xf32>
    %1087 = arith.maximumf %1026, %1084 : vector<8x128xf32>
    %1088 = arith.select %1062, %1087, %1026 : vector<8x128xi1>, vector<8x128xf32>
    %c8_583 = arith.constant 8 : index
    %c256_584 = arith.constant 256 : index
    %1089 = vector.load %arg21[%c8_583, %c256_584] : memref<64x512xf32, #tpu.memory_space<vmem>>, vector<8x256xf32>
    %c1_585 = arith.constant 1 : index
    %c48_586 = arith.constant 48 : index
    %c0_587 = arith.constant 0 : index
    %1090 = vector.load %arg6[%c1_585, %c48_586, %c0_587] : memref<2x64x128xf32, #tpu.memory_space<vmem>>, vector<1x8x128xf32>
    %1091 = vector.shape_cast %1090 : vector<1x8x128xf32> to vector<8x128xf32>
    %cst_588 = arith.constant 0.000000e+00 : f32
    %1092 = vector.broadcast %cst_588 : f32 to vector<8x128xf32>
    %1093 = arith.cmpf ogt, %1091, %1092 : vector<8x128xf32>
    %c1_589 = arith.constant 1 : index
    %c0_590 = arith.constant 0 : index
    %c0_591 = arith.constant 0 : index
    %1094 = vector.load %arg16[%c1_589, %c0_590, %c0_591] : memref<2x128x256xf32, #tpu.memory_space<vmem>>, vector<1x128x256xf32>
    %1095 = vector.shape_cast %1094 : vector<1x128x256xf32> to vector<128x256xf32>
    %cst_592 = arith.constant dense<0.000000e+00> : vector<8x256xf32>
    %1096 = tpu.matmul %1054, %1095, %cst_592 {dimension_numbers = #tpu.dot_dimension_numbers<[1], [0], [0], [1], [0, 0, 1, 1], [], []>} : vector<8x128xf32>, vector<128x256xf32>, vector<8x256xf32> -> vector<8x256xf32>
    %1097 = arith.addf %1089, %1096 : vector<8x256xf32>
    %1098 = arith.negf %1097 : vector<8x256xf32>
    %1099 = math.exp %1098 : vector<8x256xf32>
    %cst_593 = arith.constant 1.000000e+00 : f32
    %1100 = vector.broadcast %cst_593 : f32 to vector<8x256xf32>
    %1101 = arith.addf %1100, %1099 : vector<8x256xf32>
    %1102 = arith.divf %1100, %1101 : vector<8x256xf32>
    %1103 = vector.extract_strided_slice %1102 {offsets = [0, 0], sizes = [8, 128], strides = [1, 1]} : vector<8x256xf32> to vector<8x128xf32>
    %1104 = vector.extract_strided_slice %1102 {offsets = [0, 128], sizes = [8, 128], strides = [1, 1]} : vector<8x256xf32> to vector<8x128xf32>
    %cst_594 = arith.constant 2.000000e+00 : f32
    %1105 = vector.broadcast %cst_594 : f32 to vector<8x128xf32>
    %1106 = arith.mulf %1105, %1104 : vector<8x128xf32>
    %cst_595 = arith.constant 1.000000e+00 : f32
    %1107 = vector.broadcast %cst_595 : f32 to vector<8x128xf32>
    %1108 = arith.subf %1106, %1107 : vector<8x128xf32>
    %c64_i32_596 = arith.constant 64 : i32
    %1109 = tpu.dynamic_rotate %1103 by %c64_i32_596 dim 1 : vector<8x128xf32>, i32 -> vector<8x128xf32>
    %1110 = arith.mulf %1103, %1055 : vector<8x128xf32>
    %1111 = arith.mulf %1109, %1108 : vector<8x128xf32>
    %1112 = arith.addf %1110, %1111 : vector<8x128xf32>
    %c64_i32_597 = arith.constant 64 : i32
    %1113 = tpu.dynamic_rotate %1104 by %c64_i32_597 dim 1 : vector<8x128xf32>, i32 -> vector<8x128xf32>
    %1114 = math.tanh %1112 : vector<8x128xf32>
    %1115 = arith.mulf %1113, %1114 : vector<8x128xf32>
    %1116 = arith.select %1093, %1115, %1054 : vector<8x128xi1>, vector<8x128xf32>
    %1117 = arith.select %1093, %1112, %1055 : vector<8x128xi1>, vector<8x128xf32>
    %1118 = arith.maximumf %1057, %1115 : vector<8x128xf32>
    %1119 = arith.select %1093, %1118, %1057 : vector<8x128xi1>, vector<8x128xf32>
    %c56_598 = arith.constant 56 : index
    %c0_599 = arith.constant 0 : index
    %1120 = vector.load %arg21[%c56_598, %c0_599] : memref<64x512xf32, #tpu.memory_space<vmem>>, vector<8x256xf32>
    %c0_600 = arith.constant 0 : index
    %c56_601 = arith.constant 56 : index
    %c0_602 = arith.constant 0 : index
    %1121 = vector.load %arg6[%c0_600, %c56_601, %c0_602] : memref<2x64x128xf32, #tpu.memory_space<vmem>>, vector<1x8x128xf32>
    %1122 = vector.shape_cast %1121 : vector<1x8x128xf32> to vector<8x128xf32>
    %cst_603 = arith.constant 0.000000e+00 : f32
    %1123 = vector.broadcast %cst_603 : f32 to vector<8x128xf32>
    %1124 = arith.cmpf ogt, %1122, %1123 : vector<8x128xf32>
    %c0_604 = arith.constant 0 : index
    %c0_605 = arith.constant 0 : index
    %c0_606 = arith.constant 0 : index
    %1125 = vector.load %arg16[%c0_604, %c0_605, %c0_606] : memref<2x128x256xf32, #tpu.memory_space<vmem>>, vector<1x128x256xf32>
    %1126 = vector.shape_cast %1125 : vector<1x128x256xf32> to vector<128x256xf32>
    %cst_607 = arith.constant dense<0.000000e+00> : vector<8x256xf32>
    %1127 = tpu.matmul %1085, %1126, %cst_607 {dimension_numbers = #tpu.dot_dimension_numbers<[1], [0], [0], [1], [0, 0, 1, 1], [], []>} : vector<8x128xf32>, vector<128x256xf32>, vector<8x256xf32> -> vector<8x256xf32>
    %1128 = arith.addf %1120, %1127 : vector<8x256xf32>
    %1129 = arith.negf %1128 : vector<8x256xf32>
    %1130 = math.exp %1129 : vector<8x256xf32>
    %cst_608 = arith.constant 1.000000e+00 : f32
    %1131 = vector.broadcast %cst_608 : f32 to vector<8x256xf32>
    %1132 = arith.addf %1131, %1130 : vector<8x256xf32>
    %1133 = arith.divf %1131, %1132 : vector<8x256xf32>
    %1134 = vector.extract_strided_slice %1133 {offsets = [0, 0], sizes = [8, 128], strides = [1, 1]} : vector<8x256xf32> to vector<8x128xf32>
    %1135 = vector.extract_strided_slice %1133 {offsets = [0, 128], sizes = [8, 128], strides = [1, 1]} : vector<8x256xf32> to vector<8x128xf32>
    %cst_609 = arith.constant 2.000000e+00 : f32
    %1136 = vector.broadcast %cst_609 : f32 to vector<8x128xf32>
    %1137 = arith.mulf %1136, %1135 : vector<8x128xf32>
    %cst_610 = arith.constant 1.000000e+00 : f32
    %1138 = vector.broadcast %cst_610 : f32 to vector<8x128xf32>
    %1139 = arith.subf %1137, %1138 : vector<8x128xf32>
    %c64_i32_611 = arith.constant 64 : i32
    %1140 = tpu.dynamic_rotate %1134 by %c64_i32_611 dim 1 : vector<8x128xf32>, i32 -> vector<8x128xf32>
    %1141 = arith.mulf %1134, %1086 : vector<8x128xf32>
    %1142 = arith.mulf %1140, %1139 : vector<8x128xf32>
    %1143 = arith.addf %1141, %1142 : vector<8x128xf32>
    %c64_i32_612 = arith.constant 64 : i32
    %1144 = tpu.dynamic_rotate %1135 by %c64_i32_612 dim 1 : vector<8x128xf32>, i32 -> vector<8x128xf32>
    %1145 = math.tanh %1143 : vector<8x128xf32>
    %1146 = arith.mulf %1144, %1145 : vector<8x128xf32>
    %1147 = arith.maximumf %1088, %1146 : vector<8x128xf32>
    %1148 = arith.select %1124, %1147, %1088 : vector<8x128xi1>, vector<8x128xf32>
    %c0_613 = arith.constant 0 : index
    %c256_614 = arith.constant 256 : index
    %1149 = vector.load %arg21[%c0_613, %c256_614] : memref<64x512xf32, #tpu.memory_space<vmem>>, vector<8x256xf32>
    %c1_615 = arith.constant 1 : index
    %c56_616 = arith.constant 56 : index
    %c0_617 = arith.constant 0 : index
    %1150 = vector.load %arg6[%c1_615, %c56_616, %c0_617] : memref<2x64x128xf32, #tpu.memory_space<vmem>>, vector<1x8x128xf32>
    %1151 = vector.shape_cast %1150 : vector<1x8x128xf32> to vector<8x128xf32>
    %cst_618 = arith.constant 0.000000e+00 : f32
    %1152 = vector.broadcast %cst_618 : f32 to vector<8x128xf32>
    %1153 = arith.cmpf ogt, %1151, %1152 : vector<8x128xf32>
    %c1_619 = arith.constant 1 : index
    %c0_620 = arith.constant 0 : index
    %c0_621 = arith.constant 0 : index
    %1154 = vector.load %arg16[%c1_619, %c0_620, %c0_621] : memref<2x128x256xf32, #tpu.memory_space<vmem>>, vector<1x128x256xf32>
    %1155 = vector.shape_cast %1154 : vector<1x128x256xf32> to vector<128x256xf32>
    %cst_622 = arith.constant dense<0.000000e+00> : vector<8x256xf32>
    %1156 = tpu.matmul %1116, %1155, %cst_622 {dimension_numbers = #tpu.dot_dimension_numbers<[1], [0], [0], [1], [0, 0, 1, 1], [], []>} : vector<8x128xf32>, vector<128x256xf32>, vector<8x256xf32> -> vector<8x256xf32>
    %1157 = arith.addf %1149, %1156 : vector<8x256xf32>
    %1158 = arith.negf %1157 : vector<8x256xf32>
    %1159 = math.exp %1158 : vector<8x256xf32>
    %cst_623 = arith.constant 1.000000e+00 : f32
    %1160 = vector.broadcast %cst_623 : f32 to vector<8x256xf32>
    %1161 = arith.addf %1160, %1159 : vector<8x256xf32>
    %1162 = arith.divf %1160, %1161 : vector<8x256xf32>
    %1163 = vector.extract_strided_slice %1162 {offsets = [0, 0], sizes = [8, 128], strides = [1, 1]} : vector<8x256xf32> to vector<8x128xf32>
    %1164 = vector.extract_strided_slice %1162 {offsets = [0, 128], sizes = [8, 128], strides = [1, 1]} : vector<8x256xf32> to vector<8x128xf32>
    %cst_624 = arith.constant 2.000000e+00 : f32
    %1165 = vector.broadcast %cst_624 : f32 to vector<8x128xf32>
    %1166 = arith.mulf %1165, %1164 : vector<8x128xf32>
    %cst_625 = arith.constant 1.000000e+00 : f32
    %1167 = vector.broadcast %cst_625 : f32 to vector<8x128xf32>
    %1168 = arith.subf %1166, %1167 : vector<8x128xf32>
    %c64_i32_626 = arith.constant 64 : i32
    %1169 = tpu.dynamic_rotate %1163 by %c64_i32_626 dim 1 : vector<8x128xf32>, i32 -> vector<8x128xf32>
    %1170 = arith.mulf %1163, %1117 : vector<8x128xf32>
    %1171 = arith.mulf %1169, %1168 : vector<8x128xf32>
    %1172 = arith.addf %1170, %1171 : vector<8x128xf32>
    %c64_i32_627 = arith.constant 64 : i32
    %1173 = tpu.dynamic_rotate %1164 by %c64_i32_627 dim 1 : vector<8x128xf32>, i32 -> vector<8x128xf32>
    %1174 = math.tanh %1172 : vector<8x128xf32>
    %1175 = arith.mulf %1173, %1174 : vector<8x128xf32>
    %1176 = arith.maximumf %1119, %1175 : vector<8x128xf32>
    %1177 = arith.select %1153, %1176, %1119 : vector<8x128xi1>, vector<8x128xf32>
    %c0_628 = arith.constant 0 : index
    %c0_629 = arith.constant 0 : index
    %c0_630 = arith.constant 0 : index
    %1178 = vector.load %arg17[%c0_628, %c0_629, %c0_630] : memref<2x128x128xf32, #tpu.memory_space<vmem>>, vector<1x128x128xf32>
    %1179 = vector.shape_cast %1178 : vector<1x128x128xf32> to vector<128x128xf32>
    %cst_631 = arith.constant dense<0.000000e+00> : vector<8x128xf32>
    %1180 = tpu.matmul %1148, %1179, %cst_631 {dimension_numbers = #tpu.dot_dimension_numbers<[1], [0], [0], [1], [0, 0, 1, 1], [], []>} : vector<8x128xf32>, vector<128x128xf32>, vector<8x128xf32> -> vector<8x128xf32>
    %c1_632 = arith.constant 1 : index
    %c0_633 = arith.constant 0 : index
    %c0_634 = arith.constant 0 : index
    %1181 = vector.load %arg17[%c1_632, %c0_633, %c0_634] : memref<2x128x128xf32, #tpu.memory_space<vmem>>, vector<1x128x128xf32>
    %1182 = vector.shape_cast %1181 : vector<1x128x128xf32> to vector<128x128xf32>
    %cst_635 = arith.constant dense<0.000000e+00> : vector<8x128xf32>
    %1183 = tpu.matmul %1177, %1182, %cst_635 {dimension_numbers = #tpu.dot_dimension_numbers<[1], [0], [0], [1], [0, 0, 1, 1], [], []>} : vector<8x128xf32>, vector<128x128xf32>, vector<8x128xf32> -> vector<8x128xf32>
    %1184 = arith.addf %1180, %1183 : vector<8x128xf32>
    %c0_636 = arith.constant 0 : index
    %c0_637 = arith.constant 0 : index
    %1185 = vector.load %arg18[%c0_636, %c0_637] : memref<8x128xf32, #tpu.memory_space<vmem>>, vector<8x128xf32>
    tpu.vector_store %arg18[%c0_636, %c0_637], %1184 {strides = array<i32>} : memref<8x128xf32, #tpu.memory_space<vmem>>, vector<8x128xf32>,
    return
  }
  func.func @transform_0(%arg0: i32) -> (i32, i32, i32) {
    %c0_i32 = arith.constant 0 : i32
    %c0_i32_0 = arith.constant 0 : i32
    %c0_i32_1 = arith.constant 0 : i32
    %c0_i32_2 = arith.constant 0 : i32
    return %c0_i32, %c0_i32_0, %c0_i32_1 : i32, i32, i32
  }
  func.func @transform_1(%arg0: i32) -> (i32, i32) {
    %c0_i32 = arith.constant 0 : i32
    %c0_i32_0 = arith.constant 0 : i32
    %c0_i32_1 = arith.constant 0 : i32
    return %c0_i32, %c0_i32_0 : i32, i32
  }
  func.func @transform_2(%arg0: i32) -> (i32, i32, i32) {
    %c0_i32 = arith.constant 0 : i32
    %c0_i32_0 = arith.constant 0 : i32
    %c0_i32_1 = arith.constant 0 : i32
    %c0_i32_2 = arith.constant 0 : i32
    return %c0_i32, %c0_i32_0, %c0_i32_1 : i32, i32, i32
  }
  func.func @transform_3(%arg0: i32) -> (i32, i32, i32) {
    %c0_i32 = arith.constant 0 : i32
    %c0_i32_0 = arith.constant 0 : i32
    %c0_i32_1 = arith.constant 0 : i32
    %c0_i32_2 = arith.constant 0 : i32
    return %c0_i32, %c0_i32_0, %c0_i32_1 : i32, i32, i32
  }
  func.func @transform_4(%arg0: i32) -> (i32, i32, i32) {
    %c0_i32 = arith.constant 0 : i32
    %c0_i32_0 = arith.constant 0 : i32
    %c0_i32_1 = arith.constant 0 : i32
    %c0_i32_2 = arith.constant 0 : i32
    return %c0_i32, %c0_i32_0, %c0_i32_1 : i32, i32, i32
  }
  func.func @transform_5(%arg0: i32) -> (i32, i32, i32) {
    %c0_i32 = arith.constant 0 : i32
    %c0_i32_0 = arith.constant 0 : i32
    %c0_i32_1 = arith.constant 0 : i32
    %c0_i32_2 = arith.constant 0 : i32
    return %c0_i32, %c0_i32_0, %c0_i32_1 : i32, i32, i32
  }
  func.func @transform_6(%arg0: i32) -> (i32, i32, i32) {
    %c0_i32 = arith.constant 0 : i32
    %c0_i32_0 = arith.constant 0 : i32
    %c0_i32_1 = arith.constant 0 : i32
    %c0_i32_2 = arith.constant 0 : i32
    return %c0_i32, %c0_i32_0, %c0_i32_1 : i32, i32, i32
  }
  func.func @transform_7(%arg0: i32) -> (i32, i32, i32) {
    %c0_i32 = arith.constant 0 : i32
    %c0_i32_0 = arith.constant 0 : i32
    %c0_i32_1 = arith.constant 0 : i32
    %c0_i32_2 = arith.constant 0 : i32
    return %c0_i32, %c0_i32_0, %c0_i32_1 : i32, i32, i32
  }
  func.func @transform_8(%arg0: i32) -> (i32, i32, i32) {
    %c0_i32 = arith.constant 0 : i32
    %c0_i32_0 = arith.constant 0 : i32
    %c0_i32_1 = arith.constant 0 : i32
    %c0_i32_2 = arith.constant 0 : i32
    return %c0_i32, %c0_i32_0, %c0_i32_1 : i32, i32, i32
  }
  func.func @transform_9(%arg0: i32) -> (i32, i32, i32) {
    %c0_i32 = arith.constant 0 : i32
    %c0_i32_0 = arith.constant 0 : i32
    %c0_i32_1 = arith.constant 0 : i32
    %c0_i32_2 = arith.constant 0 : i32
    return %c0_i32, %c0_i32_0, %c0_i32_1 : i32, i32, i32
  }
  func.func @transform_10(%arg0: i32) -> (i32, i32) {
    %c0_i32 = arith.constant 0 : i32
    %c0_i32_0 = arith.constant 0 : i32
    %c0_i32_1 = arith.constant 0 : i32
    return %c0_i32, %c0_i32_0 : i32, i32
  }
  func.func @transform_11(%arg0: i32) -> (i32, i32, i32) {
    %c0_i32 = arith.constant 0 : i32
    %c0_i32_0 = arith.constant 0 : i32
    %c0_i32_1 = arith.constant 0 : i32
    %c0_i32_2 = arith.constant 0 : i32
    return %c0_i32, %c0_i32_0, %c0_i32_1 : i32, i32, i32
  }
  func.func @transform_12(%arg0: i32) -> (i32, i32, i32) {
    %c0_i32 = arith.constant 0 : i32
    %c0_i32_0 = arith.constant 0 : i32
    %c0_i32_1 = arith.constant 0 : i32
    %c0_i32_2 = arith.constant 0 : i32
    return %c0_i32, %c0_i32_0, %c0_i32_1 : i32, i32, i32
  }
  func.func @transform_13(%arg0: i32) -> (i32, i32, i32) {
    %c0_i32 = arith.constant 0 : i32
    %c0_i32_0 = arith.constant 0 : i32
    %c0_i32_1 = arith.constant 0 : i32
    %c0_i32_2 = arith.constant 0 : i32
    return %c0_i32, %c0_i32_0, %c0_i32_1 : i32, i32, i32
  }
  func.func @transform_14(%arg0: i32) -> (i32, i32) {
    %c0_i32 = arith.constant 0 : i32
    %c0_i32_0 = arith.constant 0 : i32
    %c0_i32_1 = arith.constant 0 : i32
    return %c0_i32, %c0_i32_0 : i32, i32
  }
  func.func @transform_15(%arg0: i32) -> (i32, i32, i32) {
    %c0_i32 = arith.constant 0 : i32
    %c0_i32_0 = arith.constant 0 : i32
    %c0_i32_1 = arith.constant 0 : i32
    %c0_i32_2 = arith.constant 0 : i32
    return %c0_i32, %c0_i32_0, %c0_i32_1 : i32, i32, i32
  }
  func.func @transform_16(%arg0: i32) -> (i32, i32, i32) {
    %c0_i32 = arith.constant 0 : i32
    %c0_i32_0 = arith.constant 0 : i32
    %c0_i32_1 = arith.constant 0 : i32
    %c0_i32_2 = arith.constant 0 : i32
    return %c0_i32, %c0_i32_0, %c0_i32_1 : i32, i32, i32
  }
  func.func @transform_17(%arg0: i32) -> (i32, i32) {
    %c0_i32 = arith.constant 0 : i32
    %c0_i32_0 = arith.constant 0 : i32
    %c0_i32_1 = arith.constant 0 : i32
    return %c0_i32, %c0_i32_0 : i32, i32
  }
}

</mosaic_0001>

<bundles_post_ra>
// kernel: tpu_custom_call.1
= control target key start
LH: loop header
LB: loop body
LE: loop exit
PB: predicated region body
PF: predicated region fallthrough
CT: control target
= control target key end

     0   :  { %s10483_s0 = inlined_call_operand.vmem [shape: f32[2,16,32], index: 0, kind: input, shape index: {}]   ;;  %s10484_s1 = inlined_call_operand.hbm [shape: f32[16,32], index: 1, kind: input, shape index: {}]   ;;  %s10485_s2 = inlined_call_operand.vmem [shape: f32[2,64,16], index: 2, kind: input, shape index: {}]   ;;  %s10486_s3 = inlined_call_operand.vmem [shape: f32[2,64,64], index: 3, kind: input, shape index: {}]   ;;  %s10487_s4 = inlined_call_operand.hbm [shape: f32[2,64,128], index: 4, kind: input, shape index: {}]   ;;  %s10488_s5 = inlined_call_operand.hbm [shape: f32[2,64,128], index: 5, kind: input, shape index: {}]   ;;  %s10489_s6 = inlined_call_operand.hbm [shape: f32[2,32,32], index: 6, kind: input, shape index: {}]   ;;  %s10490_s7 = inlined_call_operand.vmem [shape: f32[2,1,32], index: 7, kind: input, shape index: {}]   ;;  %s10491_s8 = inlined_call_operand.vmem [shape: f32[2,1,1], index: 8, kind: input, shape index: {}]   ;;  %s10492_s9 = inlined_call_operand.hbm [shape: f32[2,32,512], index: 9, kind: input, shape index: {}]   ;;  %s10493_s10 = inlined_call_operand.vmem [shape: f32[1,512], index: 10, kind: input, shape index: {}]   ;;  %s10494_s11 = inlined_call_operand.hbm [shape: f32[2,128,256], index: 11, kind: input, shape index: {}]   ;;  %s10495_s12 = inlined_call_operand.vmem [shape: f32[2,1,256], index: 12, kind: input, shape index: {}]   ;;  %s10496_s13 = inlined_call_operand.hbm [shape: f32[2,128,512], index: 13, kind: input, shape index: {}]   ;;  %s10497_s14 = inlined_call_operand.vmem [shape: f32[1,512], index: 14, kind: input, shape index: {}]   ;;  %s10498_s15 = inlined_call_operand.hbm [shape: f32[2,128,256], index: 15, kind: input, shape index: {}]   ;;  %s10499_s16 = inlined_call_operand.hbm [shape: f32[2,128,128], index: 16, kind: input, shape index: {}]   ;;  %s10500_s17 = inlined_call_operand.hbm [shape: f32[8,128], index: 17, kind: output, shape index: {}]  }
   0x1   :  { %10523 = sst [smem:[#allocation50_spill]] %s10483_s0 }
   0x2   :  { %10524 = sst [smem:[#allocation51_spill]] %s10484_s1 }
   0x3   :  { %22 = vsyncpa [#allocation6], 0 }
   0x4   :  { %23 = vsyncpa [#allocation9], 0 }
   0x5   :  { %24 = vsyncpa [#allocation12], 0 }
   0x6   :  { %25 = vsyncpa [#allocation15], 0 }
   0x7   :  { %26 = vsyncpa [#allocation18], 0 }
   0x8   :  { %27 = vsyncpa [#allocation7], 0  ;;  %s8403_s24 = smov [#allocation8]   ;;  %s8404_s26 = smov [#allocation11]  }
   0x9   :  { %s51_s25 = sshll.u32 %s8403_s24, 4  ;;  %s75_s27 = sshll.u32 %s8404_s26, 4  ;;  %s52_s25 = int_to_ptr.vmem [resolvable:$true] %s51_s25  ;;  %s8514_s27 = int_to_ptr.vmem [resolvable:$true] %s75_s27 }
   0xa   :  { %s8171_s0 = scalar_lea.hbm %s10487_s4, 2048 }
   0xb   :  { %p8172_p0 = scmp.ne.s32.totalorder %s10487_s4, %s8171_s0  ;;  %p8175_p1 = scmp.lt.u32.totalorder %s8171_s0, %s10487_s4 }
   0xd   :  { %p8177_p2 = pnand %p8175_p1, %p8172_p0 }
   0xf   :  { %8180 = shalt.err (!%p8177_p2)
}
  0x10   :  { %s8181_s20 = scalar_lea.vmem %s52_s25, 2048  ;;  %p8186_p4 = scmp.lt.s32.totalorder %s52_s25, %s52_s25 }
  0x11   :  { %p8182_p3 = scmp.ne.s32.totalorder %s52_s25, %s8181_s20  ;;  %p8187_p5 = scmp.lt.s32.totalorder %s8181_s20, %s8181_s20 }
  0x13   :  { %p8188_p6 = por %p8187_p5, %p8186_p4 }
  0x15   :  { %p8189_p7 = pnand %p8188_p6, %p8182_p3 }
  0x17   :  { %8192 = shalt.err (!%p8189_p7)
}
  0x18   :  { %s10503_s21 = smov 128   ;;  %s8406_s22 = smov 8  }
  0x19   :  { %57 = dma.hbm_to_vmem [thread:$0]  %s10487_s4, 2048, %s52_s25, [#allocation9], %s10503_s21, %s10503_s21, %s8406_s22  }
  0x1a   :  { %s8193_s29 = scalar_lea.hbm %s10489_s6, 1024 }
  0x1b   :  { %p8194_p8 = scmp.ne.s32.totalorder %s10489_s6, %s8193_s29  ;;  %p8197_p9 = scmp.lt.u32.totalorder %s8193_s29, %s10489_s6 }
  0x1d   :  { %p8199_p10 = pnand %p8197_p9, %p8194_p8 }
  0x1f   :  { %8202 = shalt.err (!%p8199_p10)
}
  0x20   :  { %s8203_s1 = scalar_lea.vmem %s8514_s27, 1024  ;;  %p8208_p12 = scmp.lt.s32.totalorder %s8514_s27, %s8514_s27 }
  0x21   :  { %p8204_p11 = scmp.ne.s32.totalorder %s8514_s27, %s8203_s1  ;;  %p8209_p13 = scmp.lt.s32.totalorder %s8203_s1, %s8203_s1 }
  0x23   :  { %p8210_p0 = por %p8209_p13, %p8208_p12 }
  0x25   :  { %p8211_p1 = pnand %p8210_p0, %p8204_p11 }
  0x27   :  { %8214 = shalt.err (!%p8211_p1)
}
  0x28   :  { %81 = dma.hbm_to_vmem [thread:$0]  %s10489_s6, 1024, %s8514_s27, [#allocation12], %s10503_s21, %s10503_s21, %s8406_s22  }
  0x29   :  { %s8407_s20 = smov [#allocation14]   ;;  %s8215_s28 = scalar_lea.hbm %s10494_s11, 8192 }
  0x2a   :  { %s105_s23 = sshll.u32 %s8407_s20, 4  ;;  %p8216_p2 = scmp.ne.s32.totalorder %s10494_s11, %s8215_s28  ;;  %s106_s23 = int_to_ptr.vmem [resolvable:$true] %s105_s23 }
  0x2b   :  { %p8219_p3 = scmp.lt.u32.totalorder %s8215_s28, %s10494_s11 }
  0x2d   :  { %p8221_p4 = pnand %p8219_p3, %p8216_p2 }
  0x2f   :  { %8224 = shalt.err (!%p8221_p4)
}
  0x30   :  { %s8225_s19 = scalar_lea.vmem %s106_s23, 8192  ;;  %p8230_p6 = scmp.lt.s32.totalorder %s106_s23, %s106_s23 }
  0x31   :  { %p8226_p5 = scmp.ne.s32.totalorder %s106_s23, %s8225_s19  ;;  %p8231_p7 = scmp.lt.s32.totalorder %s8225_s19, %s8225_s19 }
  0x33   :  { %p8232_p8 = por %p8231_p7, %p8230_p6 }
  0x35   :  { %p8233_p9 = pnand %p8232_p8, %p8226_p5 }
  0x37   :  { %8236 = shalt.err (!%p8233_p9)
}
  0x38   :  { %s8408_s6 = smov 256   ;;  %s8409_s27 = smov 16  }
  0x39   :  { %111 = dma.hbm_to_vmem [thread:$0]  %s10494_s11, 8192, %s106_s23, [#allocation15], %s8408_s6, %s8408_s6, %s8409_s27  }
  0x3a   :  { %s8410_s25 = smov [#allocation17]   ;;  %s8411_s24 = smov [#allocation5]  }
  0x3b   :  { %s133_s20 = sshll.u32 %s8410_s25, 4  ;;  %s35_s26 = sshll.u32 %s8411_s24, 4  ;;  %s134_s20 = int_to_ptr.vmem [resolvable:$true] %s133_s20  ;;  %s36_s26 = int_to_ptr.vmem [resolvable:$true] %s35_s26 }
  0x3c   :  { %s8237_s0 = scalar_lea.hbm %s10498_s15, 8192 }
  0x3d   :  { %p8238_p10 = scmp.ne.s32.totalorder %s10498_s15, %s8237_s0  ;;  %p8241_p11 = scmp.lt.u32.totalorder %s8237_s0, %s10498_s15 }
  0x3f   :  { %p8243_p12 = pnand %p8241_p11, %p8238_p10 }
  0x41   :  { %8246 = shalt.err (!%p8243_p12)
}
  0x42   :  { %s8247_s11 = scalar_lea.vmem %s134_s20, 8192  ;;  %p8252_p0 = scmp.lt.s32.totalorder %s134_s20, %s134_s20 }
  0x43   :  { %p8248_p13 = scmp.ne.s32.totalorder %s134_s20, %s8247_s11  ;;  %p8253_p1 = scmp.lt.s32.totalorder %s8247_s11, %s8247_s11 }
  0x45   :  { %p8254_p2 = por %p8253_p1, %p8252_p0 }
  0x47   :  { %p8255_p3 = pnand %p8254_p2, %p8248_p13 }
  0x49   :  { %8258 = shalt.err (!%p8255_p3)
}
  0x4a   :  { %139 = dma.hbm_to_vmem [thread:$0]  %s10498_s15, 8192, %s134_s20, [#allocation18], %s8408_s6, %s8408_s6, %s8409_s27  }
  0x4b   :  { %s10525_s24 = sld [smem:[#allocation51_spill]] }
  0x51   :  { %s8259_s28 = scalar_lea.hbm %s10525_s24, 256 }
  0x52   :  { %p8260_p4 = scmp.ne.s32.totalorder %s10525_s24, %s8259_s28  ;;  %p8263_p5 = scmp.lt.u32.totalorder %s8259_s28, %s10525_s24 }
  0x54   :  { %p8265_p6 = pnand %p8263_p5, %p8260_p4 }
  0x56   :  { %8268 = shalt.err (!%p8265_p6)
}
  0x57   :  { %s8269_s18 = scalar_lea.vmem %s36_s26, 256  ;;  %p8274_p8 = scmp.lt.s32.totalorder %s36_s26, %s36_s26 }
  0x58   :  { %p8270_p7 = scmp.ne.s32.totalorder %s36_s26, %s8269_s18  ;;  %p8275_p9 = scmp.lt.s32.totalorder %s8269_s18, %s8269_s18 }
  0x5a   :  { %p8276_p10 = por %p8275_p9, %p8274_p8 }
  0x5c   :  { %p8277_p11 = pnand %p8276_p10, %p8270_p7 }
  0x5e   :  { %8280 = shalt.err (!%p8277_p11)
}
  0x5f   :  { %s10526_s15 = smov 128   ;;  %s8412_s20 = smov [#allocation10]  }
  0x60   :  { %41 = dma.hbm_to_vmem [thread:$0]  %s10525_s24, 256, %s36_s26, [#allocation6], %s10526_s15, %s10526_s15, %s8406_s22  }
  0x61   :  { %s63_s19 = sshll.u32 %s8412_s20, 4  ;;  %s8413_s11 = smov [#allocation13]   ;;  %s64_s19 = int_to_ptr.vmem [resolvable:$true] %s63_s19 }
  0x62   :  { %s91_s23 = sshll.u32 %s8413_s11, 4  ;;  %s8281_s25 = scalar_lea.hbm %s10488_s5, 2048  ;;  %s92_s23 = int_to_ptr.vmem [resolvable:$true] %s91_s23 }
  0x63   :  { %p8282_p12 = scmp.ne.s32.totalorder %s10488_s5, %s8281_s25  ;;  %p8285_p13 = scmp.lt.u32.totalorder %s8281_s25, %s10488_s5 }
  0x65   :  { %p8287_p0 = pnand %p8285_p13, %p8282_p12 }
  0x67   :  { %8290 = shalt.err (!%p8287_p0)
}
  0x68   :  { %s8291_s26 = scalar_lea.vmem %s64_s19, 2048  ;;  %p8296_p2 = scmp.lt.s32.totalorder %s64_s19, %s64_s19 }
  0x69   :  { %p8292_p1 = scmp.ne.s32.totalorder %s64_s19, %s8291_s26  ;;  %p8297_p3 = scmp.lt.s32.totalorder %s8291_s26, %s8291_s26 }
  0x6b   :  { %p8298_p4 = por %p8297_p3, %p8296_p2 }
  0x6d   :  { %p8299_p5 = pnand %p8298_p4, %p8292_p1 }
  0x6f   :  { %8302 = shalt.err (!%p8299_p5)
}
  0x70   :  { %69 = dma.hbm_to_vmem [thread:$0]  %s10488_s5, 2048, %s64_s19, [#allocation9], %s10526_s15, %s10526_s15, %s8406_s22  }
  0x71   :  { %s8303_s27 = scalar_lea.hbm %s10492_s9, 4096 }
  0x72   :  { %p8304_p6 = scmp.ne.s32.totalorder %s10492_s9, %s8303_s27  ;;  %p8307_p7 = scmp.lt.u32.totalorder %s8303_s27, %s10492_s9 }
  0x74   :  { %p8309_p8 = pnand %p8307_p7, %p8304_p6 }
  0x76   :  { %8312 = shalt.err (!%p8309_p8)
}
  0x77   :  { %s8313_s25 = scalar_lea.vmem %s92_s23, 4096  ;;  %p8318_p10 = scmp.lt.s32.totalorder %s92_s23, %s92_s23 }
  0x78   :  { %p8314_p9 = scmp.ne.s32.totalorder %s92_s23, %s8313_s25  ;;  %p8319_p11 = scmp.lt.s32.totalorder %s8313_s25, %s8313_s25 }
  0x7a   :  { %p8320_p12 = por %p8319_p11, %p8318_p10 }
  0x7c   :  { %p8321_p13 = pnand %p8320_p12, %p8314_p9 }
  0x7e   :  { %8324 = shalt.err (!%p8321_p13)
}
  0x7f   :  { %s8414_s5 = smov 512   ;;  %s8415_s19 = smov 32  }
  0x80   :  { %97 = dma.hbm_to_vmem [thread:$0]  %s10492_s9, 4096, %s92_s23, [#allocation12], %s8414_s5, %s8414_s5, %s8415_s19  }
  0x81   :  { %s8416_s29 = smov [#allocation16]   ;;  %s8417_s26 = smov [#allocation19]  }
  0x82   :  { %s119_s0 = sshll.u32 %s8416_s29, 4  ;;  %s145_s24 = sshll.u32 %s8417_s26, 4  ;;  %s120_s0 = int_to_ptr.vmem [resolvable:$true] %s119_s0  ;;  %s146_s24 = int_to_ptr.vmem [resolvable:$true] %s145_s24 }
  0x83   :  { %s8325_s6 = scalar_lea.hbm %s10496_s13, 16384 }
  0x84   :  { %p8326_p0 = scmp.ne.s32.totalorder %s10496_s13, %s8325_s6  ;;  %p8329_p1 = scmp.lt.u32.totalorder %s8325_s6, %s10496_s13 }
  0x86   :  { %p8331_p2 = pnand %p8329_p1, %p8326_p0 }
  0x88   :  { %8334 = shalt.err (!%p8331_p2)
}
  0x89   :  { %s8335_s9 = scalar_lea.vmem %s120_s0, 16384  ;;  %p8340_p4 = scmp.lt.s32.totalorder %s120_s0, %s120_s0 }
  0x8a   :  { %p8336_p3 = scmp.ne.s32.totalorder %s120_s0, %s8335_s9  ;;  %p8341_p5 = scmp.lt.s32.totalorder %s8335_s9, %s8335_s9 }
  0x8c   :  { %p8342_p6 = por %p8341_p5, %p8340_p4 }
  0x8e   :  { %p8343_p7 = pnand %p8342_p6, %p8336_p3 }
  0x90   :  { %8346 = shalt.err (!%p8343_p7)
}
  0x91   :  { %125 = dma.hbm_to_vmem [thread:$0]  %s10496_s13, 16384, %s120_s0, [#allocation15], %s8414_s5, %s8414_s5, %s8415_s19  }
  0x92   :  { %s8347_s21 = scalar_lea.hbm %s10499_s16, 4096 }
  0x93   :  { %p8348_p8 = scmp.ne.s32.totalorder %s10499_s16, %s8347_s21  ;;  %p8351_p9 = scmp.lt.u32.totalorder %s8347_s21, %s10499_s16 }
  0x95   :  { %p8353_p10 = pnand %p8351_p9, %p8348_p8 }
  0x97   :  { %8356 = shalt.err (!%p8353_p10)
}
  0x98   :  { %s8357_s6 = scalar_lea.vmem %s146_s24, 4096  ;;  %p8362_p12 = scmp.lt.s32.totalorder %s146_s24, %s146_s24 }
  0x99   :  { %p8358_p11 = scmp.ne.s32.totalorder %s146_s24, %s8357_s6  ;;  %p8363_p13 = scmp.lt.s32.totalorder %s8357_s6, %s8357_s6 }
  0x9b   :  { %p8364_p0 = por %p8363_p13, %p8362_p12 }
  0x9d   :  { %p8365_p1 = pnand %p8364_p0, %p8358_p11 }
  0x9f   :  { %8368 = shalt.err (!%p8365_p1)
}
  0xa0   :  { %151 = dma.hbm_to_vmem [thread:$0]  %s10499_s16, 4096, %s146_s24, [#allocation18], %s10526_s15, %s10526_s15, %s8406_s22  }
  0xa1   :  { %8391 = dma.done.wait [#allocation6], 256  }
  0xa2   :  { %8392 = vsyncadd [#allocation6], 4294967040 }
  0xa3   :  { %8393 = dma.done.wait [#allocation9], 4096  }
  0xa4   :  { %8394 = vsyncadd [#allocation9], 4294963200 }
  0xa5   :  { %8395 = dma.done.wait [#allocation12], 5120  }
  0xa6   :  { %8396 = vsyncadd [#allocation12], 4294962176 }
  0xa7   :  { %8397 = dma.done.wait [#allocation15], 24576  }
  0xa8   :  { %8398 = vsyncadd [#allocation15], 4294942720 }
  0xa9   :  { %8399 = dma.done.wait [#allocation18], 12288  }
  0xaa   :  { %8400 = vsyncadd [#allocation18], 4294955008  ;;  %v8418_v0 = vmov 0   ;;  %v181_v1 = vld [vmem:[#allocation11] sm:$0xff]  ;;  %v182_v2 = vld [vmem:[#allocation11 + $0x8] sm:$0xff]  ;;  %vm192_vm0 = vcmask 261120  }
  0xab   :  { %7906 = vset.pattern.permute.xlu0 %v8418_v0  ;;  %v310_v3 = vld [vmem:[#allocation11 + $0x20] sm:$0xff]  ;;  %v6475_v4 = vpack.c.bf16 %v182_v2, %v181_v1  ;;  %v311_v5 = vld [vmem:[#allocation11 + $0x28] sm:$0xff]  ;;  %v183_v6 = vld [vmem:[#allocation11 + $0x10] sm:$0xff]  ;;  %s10527_s15 = sld [smem:[#allocation50_spill]]  ;;  %v10507_v43 = vmov 0.0   ;;  %vm829_vm1 = vcmask 130048  }
  0xac   :  { %v184_v7 = vld [vmem:[#allocation11 + $0x18] sm:$0xff]  ;;  %v6483_v8 = vpack.c.bf16 %v311_v5, %v310_v3  ;;  %v312_v10 = vld [vmem:[#allocation11 + $0x30] sm:$0xff]  ;;  %v456_v19 = vld [vmem:[#allocation13 + $0x88] sm:$0xff]  ;;  %s8420_s25 = smov 64  }
  0xad   :  { %v6479_v9 = vpack.c.bf16 %v184_v7, %v183_v6  ;;  %v313_v11 = vld [vmem:[#allocation11 + $0x38] sm:$0xff]  ;;  %6476 = vmatprep.subr.bf16.mxu0 %v6475_v4  ;;  %v6099_v15 = vld [vmem:[%s10491_s8] ss:$0 sm:$0xff]  ;;  %v6107_v17 = vld [vmem:[%s10491_s8 + $0x1] ss:$0 sm:$0xff] }
  0xae   :  { %v6487_v13 = vpack.c.bf16 %v313_v11, %v312_v10  ;;  %6484 = vmatprep.subr.bf16.mxu1 %v6483_v8  ;;  %6478 = vmatpush3.bf16.msra.mxu0 %v6475_v4  ;;  %v460_v20 = vld [vmem:[#allocation13 + $0xa8] sm:$0xff]  ;;  %v458_v21 = vld [vmem:[#allocation13 + $0x98] sm:$0xff]  ;;  %v455_v24 = vld [vmem:[#allocation13 + $0x80] sm:$0xff] }
  0xaf   :  { %6486 = vmatpush3.bf16.msra.mxu1 %v6483_v8  ;;  %6480 = vmatprep.subr.bf16.mxu0 %v6479_v9  ;;  %v6491_v22 = vpack.c.bf16 %v460_v20, %v456_v19  ;;  %v462_v23 = vld [vmem:[#allocation13 + $0xb8] sm:$0xff]  ;;  %v459_v25 = vld [vmem:[#allocation13 + $0xa0] sm:$0xff]  ;;  %v457_v28 = vld [vmem:[#allocation13 + $0x90] sm:$0xff] }
  0xb0   :  { %6488 = vmatprep.subr.bf16.mxu1 %v6487_v13  ;;  %299 = vperm.xlu0 %7906, %v6099_v15   ;;  %v6499_v26 = vpack.c.bf16 %v462_v23, %v458_v21  ;;  %v6493_v27 = vpack.c.bf16 %v459_v25, %v455_v24  ;;  %v461_v29 = vld [vmem:[#allocation13 + $0xb0] sm:$0xff]  ;;  %v464_v31 = vld [vmem:[#allocation13 + $0xc8] sm:$0xff]  ;;  %v466_v33 = vld [vmem:[#allocation13 + $0xd8] sm:$0xff] }
  0xb1   :  { %v179_v12 = vld [vmem:[%s10527_s15] sm:$0xff]  ;;  %v6100_v14 = vld [vmem:[%s10527_s15 + $0x10] sm:$0xff]  ;;  %v180_v16 = vld [vmem:[%s10527_s15 + $0x8] sm:$0xff]  ;;  %v6501_v30 = vpack.c.bf16 %v461_v29, %v457_v28 }
  0xb2   :  { %6335 = vmatprep.mubr.msk.f32.mxu0 %vm192_vm0, %v179_v12  ;;  %6346 = vmatprep.mubr.msk.f32.mxu1 %vm192_vm0, %v6100_v14  ;;  %v6101_v18 = vld [vmem:[%s10527_s15 + $0x18] sm:$0xff]  ;;  %v470_v35 = vld [vmem:[#allocation13 + $0xf8] sm:$0xff]  ;;  %v463_v36 = vld [vmem:[#allocation13 + $0xc0] sm:$0xff] }
  0xb3   :  { %6482 = vmatpush3.bf16.msra.mxu0 %v6479_v9  ;;  %6490 = vmatpush3.bf16.msra.mxu1 %v6487_v13  ;;  %v468_v32 = vld [vmem:[#allocation13 + $0xe8] sm:$0xff]  ;;  %v467_v37 = vld [vmem:[#allocation13 + $0xe0] sm:$0xff]  ;;  %v6503_v38 = vpack.c.bf16 %v470_v35, %v466_v33  ;;  %v465_v40 = vld [vmem:[#allocation13 + $0xd0] sm:$0xff] }
  0xb4   :  { %429 = vperm.xlu0 %7906, %v6107_v17   ;;  %6492 = vmatprep.subr.bf16.mxu0 %v6491_v22  ;;  %v6495_v34 = vpack.c.bf16 %v468_v32, %v464_v31  ;;  %v6497_v39 = vpack.c.bf16 %v467_v37, %v463_v36  ;;  %v469_v41 = vld [vmem:[#allocation13 + $0xf0] sm:$0xff]  ;;  %v437_v44 = vld [vmem:[#allocation13 + $0x8] sm:$0xff]  ;;  %v439_v46 = vld [vmem:[#allocation13 + $0x18] sm:$0xff] }
  0xb5   :  { %6500 = vmatprep.subr.bf16.mxu1 %v6499_v26  ;;  %v6505_v42 = vpack.c.bf16 %v469_v41, %v465_v40  ;;  %v441_v45 = vld [vmem:[#allocation13 + $0x28] sm:$0xff]  ;;  %v443_v48 = vld [vmem:[#allocation13 + $0x38] sm:$0xff]  ;;  %v436_v49 = vld [vmem:[#allocation13] sm:$0xff] }
  0xb6   :  { %6336 = vmatmul.mubr.msk.f32.vlgmr.msra.gmra.mrb[0].mxu0 %vm192_vm0, %v180_v16  ;;  %6347 = vmatmul.mubr.msk.f32.vlgmr.msra.gmra.mrb[0].mxu1 %vm192_vm0, %v6101_v18  ;;  %v6507_v47 = vpack.c.bf16 %v441_v45, %v437_v44  ;;  %v440_v50 = vld [vmem:[#allocation13 + $0x20] sm:$0xff]  ;;  %v452_v51 = vld [vmem:[#allocation5] sm:$0xff]  ;;  %v6515_v52 = vpack.c.bf16 %v443_v48, %v439_v46  ;;  %v445_v57 = vld [vmem:[#allocation13 + $0x48] sm:$0xff] }
  0xb7   :  { %6494 = vmatpush1.bf16.msra.mxu0 %v6493_v27  ;;  %6502 = vmatpush1.bf16.msra.mxu1 %v6501_v30  ;;  %v6509_v53 = vpack.c.bf16 %v440_v50, %v436_v49  ;;  %v438_v54 = vld [vmem:[#allocation13 + $0x10] sm:$0xff]  ;;  %v449_v58 = vld [vmem:[#allocation13 + $0x68] sm:$0xff]  ;;  %v447_v59 = vld [vmem:[#allocation13 + $0x58] sm:$0xff] }
  0xb8   :  { %6496 = vmatprep.subr.bf16.mxu0 %v6495_v34  ;;  %6504 = vmatprep.subr.bf16.mxu1 %v6503_v38  ;;  %v442_v55 = vld [vmem:[#allocation13 + $0x30] sm:$0xff]  ;;  %v6511_v60 = vpack.c.bf16 %v449_v58, %v445_v57  ;;  %v451_v61 = vld [vmem:[#allocation13 + $0x78] sm:$0xff]  ;;  %v444_v62 = vld [vmem:[#allocation13 + $0x40] sm:$0xff] }
  0xb9   :  { %618 = vmatprep.mubr.f32.mxu1 %v10507_v43  ;;  %541 = vmatprep.mubr.f32.mxu0 %v10507_v43  ;;  %v6517_v56 = vpack.c.bf16 %v442_v55, %v438_v54  ;;  %v448_v63 = vld [vmem:[#allocation13 + $0x60] sm:$0xff]  ;;  %v453_v0 = vld [vmem:[#allocation5 + $0x8] sm:$0xff]  ;;  %v6519_v1 = vpack.c.bf16 %v451_v61, %v447_v59  ;;  %v446_v3 = vld [vmem:[#allocation13 + $0x50] sm:$0xff]  ;;  %v793_v61 = vlaneseq }
  0xba   :  { %v6513_v2 = vpack.c.bf16 %v448_v63, %v444_v62  ;;  %v450_v4 = vld [vmem:[#allocation13 + $0x70] sm:$0xff] }
  0xbb   :  { %6498 = vmatpush1.bf16.msra.mxu0 %v6497_v39  ;;  %6506 = vmatpush1.bf16.msra.mxu1 %v6505_v42  ;;  %v6521_v5 = vpack.c.bf16 %v450_v4, %v446_v3  ;;  %v6096_v6 = vld [vmem:[%s10490_s7] ss:$0 sm:$0xff]  ;;  %v6103_v7 = vld [vmem:[%s10490_s7 + $0x1] ss:$0 sm:$0xff]  ;;  %v8690_v62 = vshrl.u32 %v793_v61, 7  ;;  %v1194_v61 = vld [vmem:[#allocation14 + $0x98] sm:$0xff] }
  0xbc   :  { %6508 = vmatprep.subr.bf16.mxu0 %v6507_v47  ;;  %6516 = vmatprep.subr.bf16.mxu1 %v6515_v52  ;;  %v8695_v63 = vld [vmem:[%s10495_s12] sm:$0x3] }
  0xbd   :  { %10528 = vst [vmem:[#allocation27_spill] sm:$0xff] %v8690_v62  ;;  %v8714_v4 = vsub.s32 0, %v8690_v62 }
  0xbe   :  { %6108 = vmatmul.mubr.msk.f32.vlgmr.msra.gmra.mrb[2].mxu0 %vm192_vm0, %v452_v51  ;;  %6110 = vmatmul.mubr.msk.f32.vlgmr.msra.gmra.mrb[2].mxu1 %vm192_vm0, %v452_v51 }
  0xbf   :  { %6510 = vmatpush1.bf16.msra.mxu0 %v6509_v53  ;;  %6518 = vmatpush1.bf16.msra.mxu1 %v6517_v56  ;;  %10530 = vst [vmem:[#allocation29_spill] sm:$0xff] %v8714_v4 }
  0xc0   :  { %547 = vmatprep.mubr.f32.mxu0 %v10507_v43  ;;  %624 = vmatprep.mubr.f32.mxu1 %v10507_v43 }
  0xc1   :  { %6512 = vmatprep.subr.bf16.mxu0 %v6511_v60  ;;  %6520 = vmatprep.subr.bf16.mxu1 %v6519_v1  ;;  %v8703_v1 = vsub.s32 1, %v8690_v62 }
  0xc2   :  { %6109 = vmatmul.mubr.msk.f32.gmra.mrb[4].mxu0 %vm192_vm0, %v453_v0  ;;  %6111 = vmatmul.mubr.msk.f32.gmra.mrb[4].mxu1 %vm192_vm0, %v453_v0  ;;  %v8700_v0 = vld [vmem:[%s10495_s12 + $0x2] sm:$0x3] }
  0xc3   :  { %6514 = vmatpush1.bf16.msra.mxu0 %v6513_v2  ;;  %6522 = vmatpush1.bf16.msra.mxu1 %v6521_v5  ;;  %10529 = vst [vmem:[#allocation28_spill] sm:$0xff] %v8703_v1  ;;  %v8707_v2 = vrot.slane %v8695_v63, %v8703_v1  ;;  %v8711_v3 = vrot.slane %v8700_v0, %v8703_v1  ;;  %v10506_v5 = vsub.s32 2, %v8690_v62 }
  0xc4   :  { %701 = vmatprep.mubr.f32.mxu0 %v10507_v43  ;;  %778 = vmatprep.mubr.f32.mxu1 %v10507_v43 }
 0x12f   :  { %v300_v40 = vpop.permute.xlu0 %299 }
 0x133   :  { %v430_v56 = vpop.permute.xlu0 %429 }
 0x189   :  { %v6337_v8 = vpop.f32.mrb[0].mxu0  ;;  %v6348_v10 = vpop.f32.mrb[0].mxu1 }
 0x18a   :  { %v271_v9 = vadd.f32 %v6337_v8, %v6096_v6  ;;  %v265_v11 = vpop.f32.mrb[1].mxu0  ;;  %v400_v12 = vadd.f32 %v6348_v10, %v6103_v7  ;;  %v394_v14 = vpop.f32.mrb[1].mxu1 }
 0x18b   :  { %v266_v13 = vadd.f32 %v6096_v6, %v265_v11  ;;  %v395_v16 = vadd.f32 %v6103_v7, %v394_v14  ;;  %v791_v6 = vld [vmem:[%s10493_s10] sm:$0xf]  ;;  %v10505_v7 = vsub.s32 3, %v8690_v62 }
 0x18c   :  { %v276_v15 = vmul.f32 %v271_v9, %v271_v9  ;;  %v406_v17 = vmul.f32 %v400_v12, %v400_v12  ;;  %v796_v10 = vrot.slane %v791_v6, %v8714_v4  ;;  %v804_v11 = vrot.slane %v791_v6, %v10506_v5 }
 0x18d   :  { %v275_v18 = vmul.f32 %v266_v13, %v266_v13  ;;  %v405_v20 = vmul.f32 %v395_v16, %v395_v16  ;;  %v800_v14 = vrot.slane %v791_v6, %v8703_v1 }
 0x18e   :  { %v278_v19 = vmul.f32 %v276_v15, %v271_v9  ;;  %v408_v21 = vmul.f32 %v406_v17, %v400_v12  ;;  %v808_v15 = vrot.slane %v791_v6, %v10505_v7  ;;  %v6127_v6 = vld [vmem:[%s10485_s2 + $0x58] sm:$0xff] }
 0x18f   :  { %v277_v22 = vmul.f32 %v275_v18, %v266_v13  ;;  %v407_v24 = vmul.f32 %v405_v20, %v395_v16 }
 0x190   :  { %v280_v23 = vmul.f32 0.044715, %v278_v19  ;;  %v410_v25 = vmul.f32 0.044715, %v408_v21 }
 0x191   :  { %v279_v26 = vmul.f32 0.044715, %v277_v22  ;;  %v409_v28 = vmul.f32 0.044715, %v407_v24  ;;  %v1176_v24 = vld [vmem:[#allocation14 + $0x8] sm:$0xff] }
 0x192   :  { %v282_v27 = vadd.f32 %v280_v23, %v271_v9  ;;  %v412_v29 = vadd.f32 %v410_v25, %v400_v12  ;;  %v1178_v25 = vld [vmem:[#allocation14 + $0x18] sm:$0xff] }
 0x193   :  { %v281_v30 = vadd.f32 %v279_v26, %v266_v13  ;;  %v411_v32 = vadd.f32 %v409_v28, %v395_v16 }
 0x194   :  { %v284_v31 = vmul.f32 0.7978846, %v282_v27  ;;  %v414_v33 = vmul.f32 0.7978846, %v412_v29 }
 0x195   :  { %v283_v34 = vmul.f32 0.7978846, %v281_v30  ;;  %v413_v35 = vmul.f32 0.7978846, %v411_v32 }
 0x196   :  { %7907 = vtanh.f32 %v284_v31 }
 0x197   :  { %7909 = vtanh.f32 %v283_v34  ;;  %v8727_v34 = vpack.c.bf16 %v1178_v25, %v1176_v24  ;;  %v1199_v24 = vld [vmem:[#allocation14 + $0xc0] sm:$0xff]  ;;  %v1201_v25 = vld [vmem:[#allocation14 + $0xd0] sm:$0xff] }
 0x198   :  { %7911 = vtanh.f32 %v413_v35  ;;  %v1175_v35 = vld [vmem:[#allocation14] sm:$0xff] }
 0x199   :  { %7913 = vtanh.f32 %v414_v33 }
 0x1a0   :  { %v7908_v36 = vpop.eup %7907 }
 0x1a1   :  { %v7910_v37 = vpop.eup %7909  ;;  %v288_v38 = vadd.f32 1.0, %v7908_v36  ;;  %v1177_v36 = vld [vmem:[#allocation14 + $0x10] sm:$0xff] }
 0x1a2   :  { %v7912_v39 = vpop.eup %7911  ;;  %v287_v41 = vadd.f32 1.0, %v7910_v37  ;;  %v1180_v37 = vld [vmem:[#allocation14 + $0x28] sm:$0xff] }
 0x1a3   :  { %v7914_v42 = vpop.eup %7913  ;;  %v290_v44 = vmul.f32 0.5, %v288_v38  ;;  %v417_v45 = vadd.f32 1.0, %v7912_v39  ;;  %v1182_v38 = vld [vmem:[#allocation14 + $0x38] sm:$0xff]  ;;  %v6124_v39 = vld [vmem:[%s10485_s2 + $0x40] sm:$0xff] }
 0x1a4   :  { %v289_v46 = vmul.f32 0.5, %v287_v41  ;;  %v418_v47 = vadd.f32 1.0, %v7914_v42  ;;  %v821_v41 = vld [vmem:[%s10485_s2] sm:$0xff]  ;;  %v8738_v42 = vpack.c.bf16 %v1182_v38, %v1180_v37 }
 0x1a5   :  { %v292_v48 = vmul.f32 %v290_v44, %v271_v9  ;;  %v419_v49 = vmul.f32 0.5, %v417_v45  ;;  %v1179_v44 = vld [vmem:[#allocation14 + $0x20] sm:$0xff]  ;;  %v1181_v45 = vld [vmem:[#allocation14 + $0x30] sm:$0xff] }
 0x1a6   :  { %v291_v50 = vmul.f32 %v289_v46, %v266_v13  ;;  %v420_v51 = vmul.f32 0.5, %v418_v47  ;;  %v1184_v46 = vld [vmem:[#allocation14 + $0x48] sm:$0xff]  ;;  %v1186_v47 = vld [vmem:[#allocation14 + $0x58] sm:$0xff] }
 0x1a7   :  { %v421_v52 = vmul.f32 %v419_v49, %v395_v16  ;;  %v303_v54 = vmul.f32 %v300_v40, %v292_v48  ;;  %v6125_v48 = vld [vmem:[%s10485_s2 + $0x48] sm:$0xff]  ;;  %v8748_v49 = vpack.c.bf16 %v1181_v45, %v1179_v44  ;;  %v1309_v44 = vld [vmem:[#allocation14 + $0x128] sm:$0xff] }
 0x1a8   :  { %v302_v53 = vmul.f32 %v300_v40, %v291_v50  ;;  %v422_v55 = vmul.f32 %v420_v51, %v400_v12  ;;  %v8732_v40 = vpack.c.bf16 %v1177_v36, %v1175_v35  ;;  %v8751_v50 = vpack.c.bf16 %v1186_v47, %v1184_v46  ;;  %v1183_v51 = vld [vmem:[#allocation14 + $0x40] sm:$0xff]  ;;  %v1307_v35 = vld [vmem:[#allocation14 + $0x118] sm:$0xff]  ;;  %v6131_v36 = vld [vmem:[%s10485_s2 + $0x78] sm:$0xff] }
 0x1a9   :  { %v432_v57 = vmul.f32 %v430_v56, %v421_v52  ;;  %v1185_v52 = vld [vmem:[#allocation14 + $0x50] sm:$0xff]  ;;  %v1311_v45 = vld [vmem:[#allocation14 + $0x138] sm:$0xff] }
 0x1aa   :  { %v433_v58 = vmul.f32 %v430_v56, %v422_v55  ;;  %v6126_v55 = vld [vmem:[%s10485_s2 + $0x50] sm:$0xff]  ;;  %v8762_v56 = vpack.c.bf16 %v1185_v52, %v1183_v51  ;;  %v8840_v47 = vpack.c.bf16 %v1311_v45, %v1309_v44  ;;  %v1310_v51 = vld [vmem:[#allocation14 + $0x130] sm:$0xff]  ;;  %v1313_v52 = vld [vmem:[#allocation14 + $0x148] sm:$0xff] }
 0x1ab   :  { %v434_v59 = vadd.f32 %v432_v57, %v302_v53  ;;  %v1188_v53 = vld [vmem:[#allocation14 + $0x68] sm:$0xff] }
 0x1ac   :  { %v435_v60 = vadd.f32 %v433_v58, %v303_v54  ;;  %v1190_v54 = vld [vmem:[#allocation14 + $0x78] sm:$0xff]  ;;  %v1187_v58 = vld [vmem:[#allocation14 + $0x60] sm:$0xff] }
 0x1ad   :  { %6112 = vmatmul.mubr.msk.f32.vlgmr.msra.gmra.mrb[2].mxu0 %vm192_vm0, %v434_v59  ;;  %6114 = vmatmul.mubr.msk.f32.vlgmr.msra.gmra.mrb[2].mxu1 %vm192_vm0, %v434_v59  ;;  %v8765_v57 = vpack.c.bf16 %v1190_v54, %v1188_v53  ;;  %v1189_v59 = vld [vmem:[#allocation14 + $0x70] sm:$0xff]  ;;  %v1315_v53 = vld [vmem:[#allocation14 + $0x158] sm:$0xff] }
 0x1ae   :  { %707 = vmatprep.mubr.f32.mxu0 %v10507_v43  ;;  %784 = vmatprep.mubr.f32.mxu1 %v10507_v43 }
 0x1b1   :  { %6113 = vmatmul.mubr.msk.f32.gmra.mrb[4].mxu0 %vm192_vm0, %v435_v60  ;;  %6115 = vmatmul.mubr.msk.f32.gmra.mrb[4].mxu1 %vm192_vm0, %v435_v60  ;;  %v1192_v60 = vld [vmem:[#allocation14 + $0x88] sm:$0xff] }
 0x1b2   :  { %1080 = vmatprep.mubr.f32.mxu1 %v10507_v43  ;;  %918 = vmatprep.mubr.f32.mxu0 %v10507_v43 }
 0x280   :  { %v703_v8 = vpop.f32.mrb[2].mxu0  ;;  %v780_v9 = vpop.f32.mrb[2].mxu1 }
 0x281   :  { %v705_v12 = vpop.f32.mrb[3].mxu0  ;;  %v782_v13 = vpop.f32.mrb[3].mxu1  ;;  %v813_v18 = vadd.f32 %v796_v10, %v703_v8  ;;  %v815_v19 = vadd.f32 %v804_v11, %v780_v9  ;;  %v8775_v8 = vpack.c.bf16 %v1189_v59, %v1187_v58  ;;  %v8778_v9 = vpack.c.bf16 %v1194_v61, %v1192_v60  ;;  %v1312_v58 = vld [vmem:[#allocation14 + $0x140] sm:$0xff]  ;;  %v1314_v59 = vld [vmem:[#allocation14 + $0x150] sm:$0xff]  ;;  %v1317_v60 = vld [vmem:[#allocation14 + $0x168] sm:$0xff] }
 0x282   :  { %v814_v26 = vadd.f32 %v800_v14, %v705_v12  ;;  %v816_v27 = vadd.f32 %v808_v15, %v782_v13  ;;  %v1196_v12 = vld [vmem:[#allocation14 + $0xa8] sm:$0xff]  ;;  %v1198_v13 = vld [vmem:[#allocation14 + $0xb8] sm:$0xff] }
 0x283   :  { %v1319_v61 = vld [vmem:[#allocation14 + $0x178] sm:$0xff] }
 0x284   :  { %v709_v16 = vpop.f32.mrb[4].mxu0  ;;  %v786_v17 = vpop.f32.mrb[4].mxu1 }
 0x285   :  { %v817_v20 = vadd.f32 %v796_v10, %v709_v16  ;;  %v819_v21 = vadd.f32 %v804_v11, %v786_v17  ;;  %v711_v22 = vpop.f32.mrb[5].mxu0  ;;  %v788_v23 = vpop.f32.mrb[5].mxu1  ;;  %v1191_v10 = vld [vmem:[#allocation14 + $0x80] sm:$0xff]  ;;  %v1193_v11 = vld [vmem:[#allocation14 + $0x90] sm:$0xff]  ;;  %v8791_v16 = vpack.c.bf16 %v1198_v13, %v1196_v12  ;;  %v1321_v12 = vld [vmem:[#allocation14 + $0x188] sm:$0xff] }
 0x286   :  { %v818_v28 = vadd.f32 %v800_v14, %v711_v22  ;;  %v820_v29 = vadd.f32 %v808_v15, %v788_v23  ;;  %v6128_v14 = vld [vmem:[%s10485_s2 + $0x60] sm:$0xff]  ;;  %v8788_v15 = vpack.c.bf16 %v1193_v11, %v1191_v10  ;;  %v1195_v17 = vld [vmem:[#allocation14 + $0xa0] sm:$0xff]  ;;  %v1323_v13 = vld [vmem:[#allocation14 + $0x198] sm:$0xff] }
 0x287   :  { %v6525_v30 = vpack.c.bf16 %v817_v20, %v813_v18  ;;  %v6529_v31 = vpack.c.bf16 %v819_v21, %v815_v19  ;;  %v1197_v18 = vld [vmem:[#allocation14 + $0xb0] sm:$0xff]  ;;  %v1200_v19 = vld [vmem:[#allocation14 + $0xc8] sm:$0xff]  ;;  %v1202_v20 = vld [vmem:[#allocation14 + $0xd8] sm:$0xff] }
 0x288   :  { %v6523_v32 = vpack.c.bf16 %v818_v28, %v814_v26  ;;  %v6527_v33 = vpack.c.bf16 %v820_v29, %v816_v27  ;;  %v6129_v21 = vld [vmem:[%s10485_s2 + $0x68] sm:$0xff]  ;;  %v8801_v22 = vpack.c.bf16 %v1197_v18, %v1195_v17  ;;  %v8804_v23 = vpack.c.bf16 %v1202_v20, %v1200_v19  ;;  %v1204_v26 = vld [vmem:[#allocation14 + $0xe8] sm:$0xff]  ;;  %v6130_v28 = vld [vmem:[%s10485_s2 + $0x70] sm:$0xff] }
 0x289   :  { %v1206_v27 = vld [vmem:[#allocation14 + $0xf8] sm:$0xff]  ;;  %v8814_v29 = vpack.c.bf16 %v1201_v25, %v1199_v24  ;;  %v1316_v10 = vld [vmem:[#allocation14 + $0x160] sm:$0xff]  ;;  %v1318_v11 = vld [vmem:[#allocation14 + $0x170] sm:$0xff]  ;;  %v8862_v17 = vpack.c.bf16 %v1323_v13, %v1321_v12 }
 0x28a   :  { %6524 = vmatprep.subr.bf16.mxu0 %v6523_v32  ;;  %6528 = vmatprep.subr.bf16.mxu1 %v6527_v33  ;;  %v1205_v32 = vld [vmem:[#allocation14 + $0xf0] sm:$0xff]  ;;  %v1305_v33 = vld [vmem:[#allocation14 + $0x108] sm:$0xff]  ;;  %v1320_v18 = vld [vmem:[#allocation14 + $0x180] sm:$0xff] }
 0x28b   :  { %6526 = vmatpush1.bf16.msra.mxu0 %v6525_v30  ;;  %6530 = vmatpush1.bf16.msra.mxu1 %v6529_v31  ;;  %v8817_v30 = vpack.c.bf16 %v1206_v27, %v1204_v26  ;;  %v1203_v31 = vld [vmem:[#allocation14 + $0xe0] sm:$0xff]  ;;  %v8830_v38 = vpack.c.bf16 %v1307_v35, %v1305_v33  ;;  %v1322_v19 = vld [vmem:[#allocation14 + $0x190] sm:$0xff]  ;;  %v1325_v20 = vld [vmem:[#allocation14 + $0x1a8] sm:$0xff] }
 0x28c   :  { %6532 = vmatprep.subr.bf16.mxu1 %v8727_v34  ;;  %6596 = vmatprep.subr.bf16.mxu0 %v8727_v34  ;;  %v8827_v37 = vpack.c.bf16 %v1205_v32, %v1203_v31  ;;  %v8865_v24 = vpack.c.bf16 %v1322_v19, %v1320_v18  ;;  %v1324_v26 = vld [vmem:[#allocation14 + $0x1a0] sm:$0xff]  ;;  %v1326_v27 = vld [vmem:[#allocation14 + $0x1b0] sm:$0xff]  ;;  %v1331_v31 = vld [vmem:[#allocation14 + $0x1d8] sm:$0xff] }
 0x28d   :  { %v8871_v32 = vpack.c.bf16 %v1326_v27, %v1324_v26  ;;  %v1328_v35 = vld [vmem:[#allocation14 + $0x1c0] sm:$0xff] }
 0x28e   :  { %6132 = vmatmul.mubr.msk.f32.vlgmr.msra.gmra.mrb[6].mxu1 %vm829_vm1, %v6124_v39  ;;  %6116 = vmatmul.mubr.msk.f32.vlgmr.msra.gmra.mrb[6].mxu0 %vm829_vm1, %v821_v41  ;;  %v1304_v39 = vld [vmem:[#allocation14 + $0x100] sm:$0xff]  ;;  %v1306_v41 = vld [vmem:[#allocation14 + $0x110] sm:$0xff] }
 0x28f   :  { %6534 = vmatpush1.bf16.msra.mxu1 %v8732_v40  ;;  %1086 = vmatprep.mubr.f32.mxu1 %v10507_v43  ;;  %v8837_v46 = vpack.c.bf16 %v1306_v41, %v1304_v39  ;;  %v1333_v39 = vld [vmem:[#allocation14 + $0x1e8] sm:$0xff]  ;;  %v1335_v41 = vld [vmem:[#allocation14 + $0x1f8] sm:$0xff] }
 0x290   :  { %6536 = vmatprep.subr.bf16.mxu1 %v8738_v42  ;;  %6598 = vmatpush1.bf16.msra.mxu0 %v8732_v40  ;;  %v8880_v45 = vpack.c.bf16 %v1335_v41, %v1333_v39 }
 0x291   :  { %924 = vmatprep.mubr.f32.mxu0 %v10507_v43  ;;  %6600 = vmatprep.subr.bf16.mxu0 %v8738_v42 }
 0x292   :  { %6133 = vmatmul.mubr.msk.f32.gmra.mrb[8].mxu1 %vm829_vm1, %v6125_v48  ;;  %v1308_v48 = vld [vmem:[#allocation14 + $0x120] sm:$0xff] }
 0x293   :  { %6538 = vmatpush1.bf16.msra.mxu1 %v8748_v49  ;;  %1092 = vmatprep.mubr.f32.mxu1 %v10507_v43  ;;  %v8846_v54 = vpack.c.bf16 %v1310_v51, %v1308_v48  ;;  %v1332_v48 = vld [vmem:[#allocation14 + $0x1e0] sm:$0xff]  ;;  %v1334_v51 = vld [vmem:[#allocation14 + $0x1f0] sm:$0xff] }
 0x294   :  { %6540 = vmatprep.subr.bf16.mxu1 %v8751_v50  ;;  %6602 = vmatpush1.bf16.msra.mxu0 %v8748_v49 }
 0x295   :  { %6604 = vmatprep.subr.bf16.mxu0 %v8751_v50 }
 0x296   :  { %6134 = vmatmul.mubr.msk.f32.gmra.mrb[10].mxu1 %vm829_vm1, %v6126_v55  ;;  %v8850_v55 = vpack.c.bf16 %v1315_v53, %v1313_v52  ;;  %v8883_v52 = vpack.c.bf16 %v1334_v51, %v1332_v48  ;;  %v8943_v51 = vrot.slane %v8700_v0, %v8714_v4 }
 0x297   :  { %6542 = vmatpush1.bf16.msra.mxu1 %v8762_v56  ;;  %1098 = vmatprep.mubr.f32.mxu1 %v10507_v43 }
 0x298   :  { %6544 = vmatprep.subr.bf16.mxu1 %v8765_v57  ;;  %6606 = vmatpush1.bf16.msra.mxu0 %v8762_v56 }
 0x299   :  { %6608 = vmatprep.subr.bf16.mxu0 %v8765_v57 }
 0x29a   :  { %6135 = vmatmul.mubr.msk.f32.gmra.mrb[12].mxu1 %vm829_vm1, %v6127_v6  ;;  %v8853_v6 = vpack.c.bf16 %v1314_v59, %v1312_v58 }
 0x29b   :  { %6546 = vmatpush1.bf16.msra.mxu1 %v8775_v8  ;;  %1104 = vmatprep.mubr.f32.mxu1 %v10507_v43 }
 0x29c   :  { %6548 = vmatprep.subr.bf16.mxu1 %v8778_v9  ;;  %6610 = vmatpush1.bf16.msra.mxu0 %v8775_v8 }
 0x29d   :  { %6612 = vmatprep.subr.bf16.mxu0 %v8778_v9 }
 0x29e   :  { %6136 = vmatmul.mubr.msk.f32.gmra.mrb[14].mxu1 %vm829_vm1, %v6128_v14  ;;  %v8859_v14 = vpack.c.bf16 %v1318_v11, %v1316_v10 }
 0x29f   :  { %6550 = vmatpush1.bf16.msra.mxu1 %v8788_v15  ;;  %1110 = vmatprep.mubr.f32.mxu1 %v10507_v43 }
 0x2a0   :  { %6552 = vmatprep.subr.bf16.mxu1 %v8791_v16  ;;  %6614 = vmatpush1.bf16.msra.mxu0 %v8788_v15 }
 0x2a1   :  { %6616 = vmatprep.subr.bf16.mxu0 %v8791_v16 }
 0x2a2   :  { %6137 = vmatmul.mubr.msk.f32.gmra.mrb[16].mxu1 %vm829_vm1, %v6129_v21  ;;  %v1327_v21 = vld [vmem:[#allocation14 + $0x1b8] sm:$0xff] }
 0x2a3   :  { %6554 = vmatpush1.bf16.msra.mxu1 %v8801_v22  ;;  %1116 = vmatprep.mubr.f32.mxu1 %v10507_v43  ;;  %v8868_v25 = vpack.c.bf16 %v1327_v21, %v1325_v20 }
 0x2a4   :  { %6556 = vmatprep.subr.bf16.mxu1 %v8804_v23  ;;  %6618 = vmatpush1.bf16.msra.mxu0 %v8801_v22 }
 0x2a5   :  { %6620 = vmatprep.subr.bf16.mxu0 %v8804_v23 }
 0x2a6   :  { %6138 = vmatmul.mubr.msk.f32.gmra.mrb[18].mxu1 %vm829_vm1, %v6130_v28  ;;  %v1329_v28 = vld [vmem:[#allocation14 + $0x1c8] sm:$0xff] }
 0x2a7   :  { %6558 = vmatpush1.bf16.msra.mxu1 %v8814_v29  ;;  %1122 = vmatprep.mubr.f32.mxu1 %v10507_v43  ;;  %v8874_v33 = vpack.c.bf16 %v1331_v31, %v1329_v28  ;;  %v8936_v31 = vrot.slane %v8695_v63, %v8714_v4 }
 0x2a8   :  { %6560 = vmatprep.subr.bf16.mxu1 %v8817_v30  ;;  %6622 = vmatpush1.bf16.msra.mxu0 %v8814_v29 }
 0x2a9   :  { %6624 = vmatprep.subr.bf16.mxu0 %v8817_v30 }
 0x2aa   :  { %6139 = vmatmul.mubr.msk.f32.gmra.mrb[20].mxu1 %vm829_vm1, %v6131_v36  ;;  %v1330_v36 = vld [vmem:[#allocation14 + $0x1d0] sm:$0xff] }
 0x2ab   :  { %6562 = vmatpush1.bf16.msra.mxu1 %v8827_v37  ;;  %1271 = vmatprep.mubr.f32.mxu1 %v10507_v43  ;;  %v8877_v44 = vpack.c.bf16 %v1330_v36, %v1328_v35 }
 0x2ac   :  { %6564 = vmatprep.subr.bf16.mxu1 %v8830_v38  ;;  %6626 = vmatpush1.bf16.msra.mxu0 %v8827_v37 }
 0x2ad   :  { %6660 = vmatprep.subr.bf16.mxu0 %v8727_v34  ;;  %v8856_v34 = vpack.c.bf16 %v1319_v61, %v1317_v60 }
 0x2ae   :  { %1272 = vmatmul.mubr.f32.vlgmr.msra.gmra.mrb[22].mxu1 %v10507_v43 }
 0x2af   :  { %6566 = vmatpush1.bf16.msra.mxu1 %v8837_v46  ;;  %1400 = vmatprep.mubr.f32.mxu1 %v10507_v43 }
 0x2b0   :  { %6568 = vmatprep.subr.bf16.mxu1 %v8840_v47 }
 0x2b3   :  { %6570 = vmatpush1.bf16.msra.mxu1 %v8846_v54 }
 0x2b4   :  { %6572 = vmatprep.subr.bf16.mxu1 %v8850_v55 }
 0x2b7   :  { %6574 = vmatpush1.bf16.msra.mxu1 %v8853_v6 }
 0x2b8   :  { %6576 = vmatprep.subr.bf16.mxu1 %v8856_v34 }
 0x2bb   :  { %6578 = vmatpush1.bf16.msra.mxu1 %v8859_v14 }
 0x2bc   :  { %6580 = vmatprep.subr.bf16.mxu1 %v8862_v17 }
 0x2bf   :  { %6582 = vmatpush1.bf16.msra.mxu1 %v8865_v24 }
 0x2c0   :  { %6584 = vmatprep.subr.bf16.mxu1 %v8868_v25 }
 0x2c3   :  { %6586 = vmatpush1.bf16.msra.mxu1 %v8871_v32 }
 0x2c4   :  { %6588 = vmatprep.subr.bf16.mxu1 %v8874_v33 }
 0x2c7   :  { %6590 = vmatpush1.bf16.msra.mxu1 %v8877_v44 }
 0x2c8   :  { %6592 = vmatprep.subr.bf16.mxu1 %v8880_v45 }
 0x2cb   :  { %6594 = vmatpush1.bf16.msra.mxu1 %v8883_v52 }
 0x2cc   :  { %6628 = vmatprep.subr.bf16.mxu1 %v8830_v38 }
 0x2ce   :  { %1401 = vmatmul.mubr.f32.vlgmr.msra.gmra.mrb[24].mxu1 %v10507_v43 }
 0x2cf   :  { %6630 = vmatpush1.bf16.msra.mxu1 %v8837_v46  ;;  %1656 = vmatprep.mubr.f32.mxu1 %v10507_v43 }
 0x2d0   :  { %6632 = vmatprep.subr.bf16.mxu1 %v8840_v47 }
 0x2d3   :  { %6634 = vmatpush1.bf16.msra.mxu1 %v8846_v54 }
 0x2d4   :  { %6636 = vmatprep.subr.bf16.mxu1 %v8850_v55 }
 0x2d7   :  { %6638 = vmatpush1.bf16.msra.mxu1 %v8853_v6 }
 0x2d8   :  { %6640 = vmatprep.subr.bf16.mxu1 %v8856_v34 }
 0x2db   :  { %6642 = vmatpush1.bf16.msra.mxu1 %v8859_v14 }
 0x2dc   :  { %6644 = vmatprep.subr.bf16.mxu1 %v8862_v17 }
 0x2df   :  { %6646 = vmatpush1.bf16.msra.mxu1 %v8865_v24 }
 0x2e0   :  { %6648 = vmatprep.subr.bf16.mxu1 %v8868_v25 }
 0x2e3   :  { %6650 = vmatpush1.bf16.msra.mxu1 %v8871_v32 }
 0x2e4   :  { %6652 = vmatprep.subr.bf16.mxu1 %v8874_v33 }
 0x2e7   :  { %6654 = vmatpush1.bf16.msra.mxu1 %v8877_v44 }
 0x2e8   :  { %6656 = vmatprep.subr.bf16.mxu1 %v8880_v45 }
 0x2eb   :  { %6658 = vmatpush1.bf16.msra.mxu1 %v8883_v52 }
 0x2ec   :  { %6692 = vmatprep.subr.bf16.mxu1 %v8830_v38 }
 0x361   :  { %v1082_v53 = vpop.f32.mrb[6].mxu1  ;;  %v920_v58 = vpop.f32.mrb[6].mxu0 }
 0x362   :  { %v1084_v59 = vpop.f32.mrb[7].mxu1  ;;  %v8906_v60 = vpop.f32.mrb[7].mxu0 }
 0x365   :  { %v8908_v61 = vpop.f32.mrb[8].mxu1 }
 0x366   :  { %v8910_v10 = vpop.f32.mrb[9].mxu1 }
 0x369   :  { %v8912_v11 = vpop.f32.mrb[10].mxu1 }
 0x36a   :  { %v8914_v12 = vpop.f32.mrb[11].mxu1 }
 0x36d   :  { %v8916_v13 = vpop.f32.mrb[12].mxu1 }
 0x36e   :  { %v8918_v18 = vpop.f32.mrb[13].mxu1 }
 0x371   :  { %v8920_v19 = vpop.f32.mrb[14].mxu1 }
 0x372   :  { %v8922_v38 = vpop.f32.mrb[15].mxu1 }
 0x373   :  { %10531 = vst [vmem:[#allocation30_spill] sm:$0xff] %v8922_v38 }
 0x375   :  { %v8924_v20 = vpop.f32.mrb[16].mxu1 }
 0x376   :  { %10532 = vst [vmem:[#allocation31_spill] sm:$0xff] %v8924_v20  ;;  %v8926_v21 = vpop.f32.mrb[17].mxu1 }
 0x377   :  { %10533 = vst [vmem:[#allocation32_spill] sm:$0xff] %v8926_v21  ;;  %v9013_v21 = vld [vmem:[#allocation8] sm:$0xff] }
 0x378   :  { %10540 = vst [vmem:[#allocation38_spill] sm:$0xff] %v9013_v21  ;;  %vm1174_vm3 = vcmp.gt.f32.partialorder %v9013_v21, 0.0 }
 0x379   :  { %v8928_v26 = vpop.f32.mrb[18].mxu1 }
 0x37a   :  { %10534 = vst [vmem:[#allocation33_spill] sm:$0xff] %v8928_v26  ;;  %v8930_v27 = vpop.f32.mrb[19].mxu1 }
 0x37b   :  { %10535 = vst [vmem:[#allocation34_spill] sm:$0xff] %v8930_v27 }
 0x37d   :  { %v8932_v28 = vpop.f32.mrb[20].mxu1 }
 0x37e   :  { %10536 = vst [vmem:[#allocation35_spill] sm:$0xff] %v8932_v28  ;;  %v8938_v35 = vpop.f32.mrb[21].mxu1 }
 0x37f   :  { %10537 = vst [vmem:[#allocation36_spill] sm:$0xff] %v8938_v35 }
 0x381   :  { %v1273_v36 = vpop.f32.mrb[22].mxu1 }
 0x382   :  { %v1274_v39 = vadd.f32 %v1273_v36, %v8936_v31  ;;  %v1275_v41 = vpop.f32.mrb[23].mxu1 }
 0x383   :  { %v1276_v36 = vadd.f32 %v1275_v41, %v8707_v2 }
 0x384   :  { %v1278_v48 = vadd.f32 %v1274_v39, %v920_v58 }
 0x386   :  { %v6141_v62 = vmul.f32 -1.442695, %v1278_v48 }
 0x388   :  { %7915 = vpow2.f32 %v6141_v62  ;;  %v10538_v62 = vmov 0.0  }
 0x392   :  { %v7916_v63 = vpop.eup %7915 }
 0x393   :  { %v1282_v26 = vadd.f32 1.0, %v7916_v63  ;;  %v827_v63 = vld [vmem:[%s10485_s2 + $0x30] sm:$0xff] }
 0x3a1   :  { %v1402_v7 = vpop.f32.mrb[24].mxu1 }
 0x3a2   :  { %v1403_v5 = vadd.f32 %v1402_v7, %v8943_v51  ;;  %v1404_v43 = vpop.f32.mrb[25].mxu1  ;;  %v824_v7 = vld [vmem:[%s10485_s2 + $0x18] sm:$0xff] }
 0x3a4   :  { %v1407_v1 = vadd.f32 %v1403_v5, %v1082_v53  ;;  %v822_v5 = vld [vmem:[%s10485_s2 + $0x8] sm:$0xff]  ;;  %v825_v53 = vld [vmem:[%s10485_s2 + $0x20] sm:$0xff] }
 0x3a5   :  { %6117 = vmatmul.mubr.msk.f32.gmra.mrb[8].mxu0 %vm829_vm1, %v822_v5 }
 0x3a6   :  { %v6142_v28 = vmul.f32 -1.442695, %v1407_v1  ;;  %930 = vmatprep.mubr.f32.mxu0 %v10538_v62  ;;  %v823_v1 = vld [vmem:[%s10485_s2 + $0x10] sm:$0xff] }
 0x3a8   :  { %7917 = vpow2.f32 %v6142_v28 }
 0x3a9   :  { %6118 = vmatmul.mubr.msk.f32.gmra.mrb[10].mxu0 %vm829_vm1, %v823_v1 }
 0x3aa   :  { %936 = vmatprep.mubr.f32.mxu0 %v10538_v62 }
 0x3ad   :  { %6119 = vmatmul.mubr.msk.f32.gmra.mrb[12].mxu0 %vm829_vm1, %v824_v7 }
 0x3ae   :  { %942 = vmatprep.mubr.f32.mxu0 %v10538_v62 }
 0x3b1   :  { %6120 = vmatmul.mubr.msk.f32.gmra.mrb[14].mxu0 %vm829_vm1, %v825_v53 }
 0x3b2   :  { %v7918_v35 = vpop.eup %7917  ;;  %948 = vmatprep.mubr.f32.mxu0 %v10538_v62 }
 0x3b3   :  { %v1411_v27 = vadd.f32 1.0, %v7918_v35 }
 0x3b5   :  { %7919 = vrcp.f32 %v1411_v27  ;;  %v1405_v27 = vadd.f32 %v1404_v43, %v8711_v3  ;;  %v828_v43 = vld [vmem:[%s10485_s2 + $0x38] sm:$0xff] }
 0x3b6   :  { %7921 = vrcp.f32 %v1282_v26  ;;  %v826_v26 = vld [vmem:[%s10485_s2 + $0x28] sm:$0xff] }
 0x3b7   :  { %6121 = vmatmul.mubr.msk.f32.gmra.mrb[16].mxu0 %vm829_vm1, %v826_v26 }
 0x3b8   :  { %954 = vmatprep.mubr.f32.mxu0 %v10538_v62 }
 0x3bb   :  { %6122 = vmatmul.mubr.msk.f32.gmra.mrb[18].mxu0 %vm829_vm1, %v827_v63 }
 0x3bc   :  { %960 = vmatprep.mubr.f32.mxu0 %v10538_v62 }
 0x3bf   :  { %v7920_v58 = vpop.eup %7919  ;;  %6123 = vmatmul.mubr.msk.f32.gmra.mrb[20].mxu0 %vm829_vm1, %v828_v43 }
 0x3c0   :  { %1414 = vrot.lane.b32.xlu1 %v7920_v58, %s8420_s25  ;;  %v7922_v0 = vpop.eup %7921  ;;  %1528 = vmatprep.mubr.f32.mxu0 %v10538_v62 }
 0x3c4   :  { %1285 = vrot.lane.b32.xlu1 %v7922_v0, %s8420_s25 }
 0x432   :  { %v1415_v28 = vpop.permute.xlu1 %1414 }
 0x433   :  { %v1416_v35 = vmul.f32 %v1415_v28, %v1405_v27  ;;  %v1421_v63 = vsub.f32 1.0, %v1415_v28  ;;  %v1423_v43 = vmul.f32 0.0, %v1415_v28 }
 0x435   :  { %v1417_v39 = vadd.f32 %v1416_v35, %v1084_v59 }
 0x436   :  { %v1286_v48 = vpop.permute.xlu1 %1285 }
 0x437   :  { %7923 = vtanh.f32 %v1417_v39  ;;  %v1287_v58 = vmul.f32 %v1286_v48, %v1276_v36  ;;  %v1292_v4 = vsub.f32 1.0, %v1286_v48  ;;  %v1294_v38 = vmul.f32 0.0, %v1286_v48 }
 0x439   :  { %v1288_v0 = vadd.f32 %v1287_v58, %v8906_v60  ;;  %v9008_v58 = vld [vmem:[#allocation8 + $0x40] sm:$0xff] }
 0x43a   :  { %vm1302_vm2 = vcmp.gt.f32.partialorder %v9008_v58, 0.0 }
 0x43b   :  { %7925 = vtanh.f32 %v1288_v0 }
 0x441   :  { %v7924_v59 = vpop.eup %7923 }
 0x442   :  { %1419 = vrot.lane.b32.xlu0 %v7924_v59, %s8420_s25 }
 0x445   :  { %v7926_v41 = vpop.eup %7925 }
 0x446   :  { %1290 = vrot.lane.b32.xlu1 %v7926_v41, %s8420_s25 }
 0x478   :  { %v8988_v5 = vpop.f32.mrb[8].mxu0 }
 0x479   :  { %v8990_v1 = vpop.f32.mrb[9].mxu0 }
 0x47c   :  { %v8992_v60 = vpop.f32.mrb[10].mxu0 }
 0x47d   :  { %v8994_v7 = vpop.f32.mrb[11].mxu0 }
 0x480   :  { %v8996_v53 = vpop.f32.mrb[12].mxu0 }
 0x481   :  { %v8998_v26 = vpop.f32.mrb[13].mxu0 }
 0x484   :  { %v9000_v27 = vpop.f32.mrb[14].mxu0 }
 0x485   :  { %v9002_v35 = vpop.f32.mrb[15].mxu0 }
 0x486   :  { %10539 = vst [vmem:[#allocation37_spill] sm:$0xff] %v9002_v35 }
 0x48a   :  { %v9004_v36 = vpop.f32.mrb[16].mxu0 }
 0x48b   :  { %v9006_v39 = vpop.f32.mrb[17].mxu0 }
 0x4b4   :  { %v1420_v0 = vpop.permute.xlu0 %1419 }
 0x4b5   :  { %v1422_v59 = vmul.f32 %v1421_v63, %v1420_v0 }
 0x4b7   :  { %v9011_v41 = vadd.f32 %v1423_v43, %v1422_v59 }
 0x4b8   :  { %v1291_v20 = vpop.permute.xlu1 %1290 }
 0x4b9   :  { %v1293_v35 = vmul.f32 %v1292_v4, %v1291_v20  ;;  %6145 = vmatmul.mubr.msk.f32.vlgmr.msra.gmra.mrb[26].mxu1 %vm1302_vm2, %v9011_v41  ;;  %v9056_v4 = vpop.f32.mrb[18].mxu0 }
 0x4ba   :  { %6694 = vmatpush1.bf16.msra.mxu1 %v8837_v46  ;;  %1912 = vmatprep.mubr.f32.mxu1 %v10538_v62  ;;  %10542 = vst [vmem:[#allocation40_spill] sm:$0xff] %v9056_v4  ;;  %v2103_v4 = vld [vmem:[#allocation14 + $0x1f8] sm:$0xff] }
 0x4bb   :  { %v9021_v28 = vadd.f32 %v1294_v38, %v1293_v35  ;;  %6696 = vmatprep.subr.bf16.mxu1 %v8840_v47  ;;  %v1425_v38 = vsel %vm1302_vm2, %v9011_v41, 0.0  ;;  %v9084_v35 = vld [vmem:[#allocation8 + $0x8] sm:$0xff] }
 0x4bc   :  { %10547 = vst [vmem:[#allocation45_spill] sm:$0xff] %v9084_v35  ;;  %vm1431_vm5 = vcmp.gt.f32.partialorder %v9084_v35, 0.0 }
 0x4bd   :  { %10541 = vst [vmem:[#allocation39_spill] sm:$0xff] %v9021_v28  ;;  %6143 = vmatmul.mubr.msk.f32.vlgmr.msra.gmra.mrb[22].mxu0 %vm1174_vm3, %v9021_v28  ;;  %v1296_v63 = vsel %vm1174_vm3, %v9021_v28, 0.0  ;;  %v1970_v28 = vld [vmem:[#allocation14 + $0xd0] sm:$0xff]  ;;  %vm9584_vm15 = vmpackc.low %vm1431_vm5, %vm1174_vm3 }
 0x4be   :  { %6662 = vmatpush1.bf16.msra.mxu0 %v8732_v40  ;;  %6698 = vmatpush1.bf16.msra.mxu1 %v8846_v54  ;;  %v9058_v40 = vpop.f32.mrb[19].mxu0 }
 0x4bf   :  { %6664 = vmatprep.subr.bf16.mxu0 %v8738_v42  ;;  %6700 = vmatprep.subr.bf16.mxu1 %v8850_v55  ;;  %10543 = vst [vmem:[#allocation41_spill] sm:$0xff] %v9058_v40  ;;  %v9060_v42 = vpop.f32.mrb[20].mxu0  ;;  %v2098_v40 = vld [vmem:[#allocation14 + $0x1d0] sm:$0xff] }
 0x4c0   :  { %1784 = vmatprep.mubr.f32.mxu0 %v10538_v62  ;;  %10544 = vst [vmem:[#allocation42_spill] sm:$0xff] %v9060_v42 }
 0x4c2   :  { %6666 = vmatpush1.bf16.msra.mxu0 %v8748_v49  ;;  %6702 = vmatpush1.bf16.msra.mxu1 %v8853_v6  ;;  %v9062_v49 = vpop.f32.mrb[21].mxu0 }
 0x4c3   :  { %6668 = vmatprep.subr.bf16.mxu0 %v8751_v50  ;;  %6704 = vmatprep.subr.bf16.mxu1 %v8856_v34  ;;  %10545 = vst [vmem:[#allocation43_spill] sm:$0xff] %v9062_v49 }
 0x4c6   :  { %6670 = vmatpush1.bf16.msra.mxu0 %v8762_v56  ;;  %6706 = vmatpush1.bf16.msra.mxu1 %v8859_v14 }
 0x4c7   :  { %6672 = vmatprep.subr.bf16.mxu0 %v8765_v57  ;;  %6708 = vmatprep.subr.bf16.mxu1 %v8862_v17 }
 0x4ca   :  { %6674 = vmatpush1.bf16.msra.mxu0 %v8775_v8  ;;  %6710 = vmatpush1.bf16.msra.mxu1 %v8865_v24 }
 0x4cb   :  { %6676 = vmatprep.subr.bf16.mxu0 %v8778_v9  ;;  %6712 = vmatprep.subr.bf16.mxu1 %v8868_v25 }
 0x4ce   :  { %6678 = vmatpush1.bf16.msra.mxu0 %v8788_v15  ;;  %6714 = vmatpush1.bf16.msra.mxu1 %v8871_v32 }
 0x4cf   :  { %6680 = vmatprep.subr.bf16.mxu0 %v8791_v16  ;;  %6716 = vmatprep.subr.bf16.mxu1 %v8874_v33 }
 0x4d2   :  { %6682 = vmatpush1.bf16.msra.mxu0 %v8801_v22  ;;  %6718 = vmatpush1.bf16.msra.mxu1 %v8877_v44 }
 0x4d3   :  { %6684 = vmatprep.subr.bf16.mxu0 %v8804_v23  ;;  %6720 = vmatprep.subr.bf16.mxu1 %v8880_v45 }
 0x4d6   :  { %6686 = vmatpush1.bf16.msra.mxu0 %v8814_v29  ;;  %6722 = vmatpush1.bf16.msra.mxu1 %v8883_v52 }
 0x4d7   :  { %6688 = vmatprep.subr.bf16.mxu0 %v8817_v30 }
 0x4da   :  { %6690 = vmatpush1.bf16.msra.mxu0 %v8827_v37 }
 0x58c   :  { %v1658_v50 = vpop.f32.mrb[26].mxu1 }
 0x58d   :  { %v1659_v56 = vadd.f32 %v1658_v50, %v8943_v51  ;;  %v1660_v57 = vpop.f32.mrb[27].mxu1 }
 0x58e   :  { %v1661_v6 = vadd.f32 %v1660_v57, %v8711_v3 }
 0x58f   :  { %v1663_v8 = vadd.f32 %v1659_v56, %v8908_v61  ;;  %v9076_v61 = vld [vmem:[#allocation8 + $0x48] sm:$0xff] }
 0x590   :  { %v1530_v9 = vpop.f32.mrb[22].mxu0  ;;  %vm1559_vm4 = vcmp.gt.f32.partialorder %v9076_v61, 0.0 }
 0x591   :  { %v6146_v15 = vmul.f32 -1.442695, %v1663_v8  ;;  %v1531_v16 = vadd.f32 %v1530_v9, %v8936_v31  ;;  %v1532_v22 = vpop.f32.mrb[23].mxu0  ;;  %vm9566_vm14 = vmpackc.low %vm1559_vm4, %vm1302_vm2 }
 0x592   :  { %v1533_v17 = vadd.f32 %v1532_v22, %v8707_v2 }
 0x593   :  { %7927 = vpow2.f32 %v6146_v15  ;;  %v1535_v23 = vadd.f32 %v1531_v16, %v8988_v5 }
 0x595   :  { %v6144_v29 = vmul.f32 -1.442695, %v1535_v23 }
 0x597   :  { %7929 = vpow2.f32 %v6144_v29 }
 0x59d   :  { %v7928_v30 = vpop.eup %7927 }
 0x59e   :  { %v1667_v37 = vadd.f32 1.0, %v7928_v30 }
 0x5a0   :  { %7931 = vrcp.f32 %v1667_v37 }
 0x5a1   :  { %v7930_v46 = vpop.eup %7929 }
 0x5a2   :  { %v1539_v47 = vadd.f32 1.0, %v7930_v46 }
 0x5a4   :  { %7933 = vrcp.f32 %v1539_v47 }
 0x5aa   :  { %v7932_v54 = vpop.eup %7931 }
 0x5ab   :  { %1670 = vrot.lane.b32.xlu0 %v7932_v54, %s8420_s25 }
 0x5ae   :  { %v7934_v55 = vpop.eup %7933 }
 0x5af   :  { %1542 = vrot.lane.b32.xlu1 %v7934_v55, %s8420_s25 }
 0x61d   :  { %v1671_v34 = vpop.permute.xlu0 %1670 }
 0x61e   :  { %v1672_v14 = vmul.f32 %v1671_v34, %v1661_v6  ;;  %v1677_v52 = vsub.f32 1.0, %v1671_v34  ;;  %v1679_v20 = vmul.f32 %v1671_v34, %v1425_v38 }
 0x620   :  { %v1673_v24 = vadd.f32 %v1672_v14, %v8910_v10  ;;  %v2073_v14 = vld [vmem:[#allocation14 + $0x108] sm:$0xff] }
 0x621   :  { %v1543_v25 = vpop.permute.xlu1 %1542 }
 0x622   :  { %7935 = vtanh.f32 %v1673_v24  ;;  %v1544_v32 = vmul.f32 %v1543_v25, %v1533_v17  ;;  %v1551_v43 = vmul.f32 %v1543_v25, %v1296_v63  ;;  %v2075_v17 = vld [vmem:[#allocation14 + $0x118] sm:$0xff]  ;;  %v2072_v24 = vld [vmem:[#allocation14 + $0x100] sm:$0xff] }
 0x624   :  { %v1545_v33 = vadd.f32 %v1544_v32, %v8990_v1  ;;  %v1549_v1 = vsub.f32 1.0, %v1543_v25  ;;  %v9116_v25 = vpack.c.bf16 %v2075_v17, %v2073_v14  ;;  %v1945_v32 = vld [vmem:[#allocation14 + $0x8] sm:$0xff] }
 0x626   :  { %7937 = vtanh.f32 %v1545_v33  ;;  %v1947_v33 = vld [vmem:[#allocation14 + $0x18] sm:$0xff]  ;;  %6756 = vmatprep.subr.bf16.mxu1 %v9116_v25 }
 0x62c   :  { %v7936_v44 = vpop.eup %7935 }
 0x62d   :  { %1675 = vrot.lane.b32.xlu0 %v7936_v44, %s8420_s25 }
 0x630   :  { %v7938_v45 = vpop.eup %7937 }
 0x631   :  { %1547 = vrot.lane.b32.xlu1 %v7938_v45, %s8420_s25  ;;  %v9120_v45 = vpack.c.bf16 %v1947_v33, %v1945_v32  ;;  %v2084_v32 = vld [vmem:[#allocation14 + $0x160] sm:$0xff] }
 0x633   :  { %6724 = vmatprep.subr.bf16.mxu0 %v9120_v45 }
 0x69f   :  { %v1676_v10 = vpop.permute.xlu0 %1675 }
 0x6a0   :  { %v1678_v48 = vmul.f32 %v1677_v52, %v1676_v10  ;;  %v2077_v52 = vld [vmem:[#allocation14 + $0x128] sm:$0xff]  ;;  %v1944_v10 = vld [vmem:[#allocation14] sm:$0xff] }
 0x6a2   :  { %v9082_v5 = vadd.f32 %v1679_v20, %v1678_v48  ;;  %v1946_v48 = vld [vmem:[#allocation14 + $0x10] sm:$0xff] }
 0x6a3   :  { %v1548_v0 = vpop.permute.xlu1 %1547 }
 0x6a4   :  { %10546 = vst [vmem:[#allocation44_spill] sm:$0xff] %v9082_v5  ;;  %v1550_v59 = vmul.f32 %v1549_v1, %v1548_v0  ;;  %v9092_v50 = vsel %vm1559_vm4, %v9082_v5, %v1425_v38  ;;  %v2079_v38 = vld [vmem:[#allocation14 + $0x138] sm:$0xff]  ;;  %v2076_v1 = vld [vmem:[#allocation14 + $0x120] sm:$0xff]  ;;  %v9127_v0 = vpack.c.bf16 %v1946_v48, %v1944_v10 }
 0x6a5   :  { %1913 = vmatmul.mubr.f32.vlgmr.msra.gmra.mrb[28].mxu1 %v9092_v50  ;;  %v9123_v20 = vpack.c.bf16 %v2079_v38, %v2077_v52  ;;  %v2086_v52 = vld [vmem:[#allocation14 + $0x170] sm:$0xff]  ;;  %v1957_v38 = vld [vmem:[#allocation14 + $0x68] sm:$0xff]  ;;  %v1959_v10 = vld [vmem:[#allocation14 + $0x78] sm:$0xff] }
 0x6a6   :  { %v9096_v56 = vadd.f32 %v1551_v43, %v1550_v59  ;;  %2168 = vmatprep.mubr.f32.mxu1 %v10538_v62  ;;  %v1949_v59 = vld [vmem:[#allocation14 + $0x28] sm:$0xff] }
 0x6a8   :  { %10548 = vst [vmem:[#allocation46_spill] sm:$0xff] %v9096_v56  ;;  %v9102_v57 = vsel %vm1431_vm5, %v9096_v56, %v1296_v63  ;;  %v2078_v63 = vld [vmem:[#allocation14 + $0x130] sm:$0xff]  ;;  %v1968_v56 = vld [vmem:[#allocation14 + $0xc0] sm:$0xff] }
 0x6a9   :  { %1785 = vmatmul.mubr.f32.vlgmr.msra.gmra.mrb[24].mxu0 %v9102_v57  ;;  %v9129_v43 = vpack.c.bf16 %v2078_v63, %v2076_v1  ;;  %v2089_v1 = vld [vmem:[#allocation14 + $0x188] sm:$0xff]  ;;  %v2091_v63 = vld [vmem:[#allocation14 + $0x198] sm:$0xff] }
 0x6aa   :  { %2040 = vmatprep.mubr.f32.mxu0 %v10538_v62  ;;  %6726 = vmatpush1.bf16.msra.mxu0 %v9127_v0 }
 0x778   :  { %v1914_v8 = vpop.f32.mrb[28].mxu1 }
 0x779   :  { %v1915_v9 = vadd.f32 %v1914_v8, %v8943_v51  ;;  %v9107_v15 = vpop.f32.mrb[29].mxu1  ;;  %v1951_v8 = vld [vmem:[#allocation14 + $0x38] sm:$0xff] }
 0x77b   :  { %v1919_v16 = vadd.f32 %v1915_v9, %v8912_v11  ;;  %v2081_v9 = vld [vmem:[#allocation14 + $0x148] sm:$0xff] }
 0x77c   :  { %v1786_v22 = vpop.f32.mrb[24].mxu0 }
 0x77d   :  { %v6148_v23 = vmul.f32 -1.442695, %v1919_v16  ;;  %v1787_v29 = vadd.f32 %v1786_v22, %v8936_v31  ;;  %v9111_v30 = vpop.f32.mrb[25].mxu0  ;;  %v9132_v16 = vpack.c.bf16 %v1951_v8, %v1949_v59  ;;  %v2083_v22 = vld [vmem:[#allocation14 + $0x158] sm:$0xff]  ;;  %v9152_v59 = vpack.c.bf16 %v1959_v10, %v1957_v38  ;;  %v1956_v8 = vld [vmem:[#allocation14 + $0x60] sm:$0xff]  ;;  %v1965_v38 = vld [vmem:[#allocation14 + $0xa8] sm:$0xff] }
 0x77e   :  { %v1967_v10 = vld [vmem:[#allocation14 + $0xb8] sm:$0xff] }
 0x77f   :  { %7939 = vpow2.f32 %v6148_v23  ;;  %v1791_v37 = vadd.f32 %v1787_v29, %v8992_v60  ;;  %v2074_v60 = vld [vmem:[#allocation14 + $0x110] sm:$0xff]  ;;  %v1948_v23 = vld [vmem:[#allocation14 + $0x20] sm:$0xff]  ;;  %6728 = vmatprep.subr.bf16.mxu0 %v9132_v16  ;;  %v9176_v49 = vpack.c.bf16 %v1967_v10, %v1965_v38  ;;  %v1917_v38 = vadd.f32 %v9107_v15, %v8711_v3 }
 0x780   :  { %v9118_v44 = vpack.c.bf16 %v2074_v60, %v2072_v24  ;;  %v1950_v29 = vld [vmem:[#allocation14 + $0x30] sm:$0xff]  ;;  %v1952_v24 = vld [vmem:[#allocation14 + $0x40] sm:$0xff] }
 0x781   :  { %v6147_v46 = vmul.f32 -1.442695, %v1791_v37  ;;  %v9135_v37 = vpack.c.bf16 %v2083_v22, %v2081_v9  ;;  %v1954_v60 = vld [vmem:[#allocation14 + $0x50] sm:$0xff]  ;;  %v9155_v22 = vpack.c.bf16 %v2086_v52, %v2084_v32  ;;  %v2100_v15 = vld [vmem:[#allocation14 + $0x1e0] sm:$0xff] }
 0x782   :  { %6758 = vmatpush1.bf16.msra.mxu1 %v9118_v44  ;;  %v9149_v48 = vpack.c.bf16 %v1954_v60, %v1952_v24  ;;  %v1958_v9 = vld [vmem:[#allocation14 + $0x70] sm:$0xff]  ;;  %v1960_v60 = vld [vmem:[#allocation14 + $0x80] sm:$0xff] }
 0x783   :  { %7941 = vpow2.f32 %v6147_v46  ;;  %6760 = vmatprep.subr.bf16.mxu1 %v9123_v20  ;;  %v9137_v46 = vpack.c.bf16 %v1950_v29, %v1948_v23  ;;  %v1961_v23 = vld [vmem:[#allocation14 + $0x88] sm:$0xff]  ;;  %v1963_v29 = vld [vmem:[#allocation14 + $0x98] sm:$0xff]  ;;  %v1962_v32 = vld [vmem:[#allocation14 + $0x90] sm:$0xff] }
 0x784   :  { %v9164_v24 = vpack.c.bf16 %v1963_v29, %v1961_v23  ;;  %v2097_v23 = vld [vmem:[#allocation14 + $0x1c8] sm:$0xff]  ;;  %v2099_v29 = vld [vmem:[#allocation14 + $0x1d8] sm:$0xff] }
 0x785   :  { %6730 = vmatpush1.bf16.msra.mxu0 %v9137_v46 }
 0x786   :  { %6762 = vmatpush1.bf16.msra.mxu1 %v9129_v43 }
 0x787   :  { %6764 = vmatprep.subr.bf16.mxu1 %v9135_v37 }
 0x789   :  { %v7940_v47 = vpop.eup %7939 }
 0x78a   :  { %v1923_v54 = vadd.f32 1.0, %v7940_v47  ;;  %v2080_v47 = vld [vmem:[#allocation14 + $0x140] sm:$0xff] }
 0x78c   :  { %7943 = vrcp.f32 %v1923_v54  ;;  %v2082_v54 = vld [vmem:[#allocation14 + $0x150] sm:$0xff] }
 0x78d   :  { %v7942_v55 = vpop.eup %7941  ;;  %v9141_v14 = vpack.c.bf16 %v2082_v54, %v2080_v47  ;;  %v9158_v47 = vpack.c.bf16 %v2091_v63, %v2089_v1  ;;  %v2088_v54 = vld [vmem:[#allocation14 + $0x180] sm:$0xff] }
 0x78e   :  { %v1795_v6 = vadd.f32 1.0, %v7942_v55  ;;  %v1953_v55 = vld [vmem:[#allocation14 + $0x48] sm:$0xff]  ;;  %v2092_v63 = vld [vmem:[#allocation14 + $0x1a0] sm:$0xff] }
 0x78f   :  { %6766 = vmatpush1.bf16.msra.mxu1 %v9141_v14 }
 0x790   :  { %7945 = vrcp.f32 %v1795_v6  ;;  %v1955_v6 = vld [vmem:[#allocation14 + $0x58] sm:$0xff] }
 0x791   :  { %v9143_v17 = vpack.c.bf16 %v1955_v6, %v1953_v55  ;;  %v2090_v55 = vld [vmem:[#allocation14 + $0x190] sm:$0xff]  ;;  %v9161_v6 = vpack.c.bf16 %v1958_v9, %v1956_v8  ;;  %v9173_v9 = vpack.c.bf16 %v1962_v32, %v1960_v60 }
 0x792   :  { %v9167_v52 = vpack.c.bf16 %v2090_v55, %v2088_v54  ;;  %v2094_v8 = vld [vmem:[#allocation14 + $0x1b0] sm:$0xff]  ;;  %v1964_v54 = vld [vmem:[#allocation14 + $0xa0] sm:$0xff] }
 0x793   :  { %6732 = vmatprep.subr.bf16.mxu0 %v9143_v17  ;;  %v1966_v55 = vld [vmem:[#allocation14 + $0xb0] sm:$0xff]  ;;  %v9179_v42 = vpack.c.bf16 %v2094_v8, %v2092_v63  ;;  %v1789_v8 = vadd.f32 %v9111_v30, %v8707_v2  ;;  %v9204_v30 = vpack.c.bf16 %v1970_v28, %v1968_v56 }
 0x794   :  { %6734 = vmatpush1.bf16.msra.mxu0 %v9149_v48  ;;  %v9185_v60 = vpack.c.bf16 %v1966_v55, %v1964_v54  ;;  %v1971_v54 = vld [vmem:[#allocation14 + $0xd8] sm:$0xff]  ;;  %v9222_v56 = vld [vmem:[#allocation8 + $0x50] sm:$0xff] }
 0x795   :  { %6736 = vmatprep.subr.bf16.mxu0 %v9152_v59  ;;  %vm1815_vm6 = vcmp.gt.f32.partialorder %v9222_v56, 0.0 }
 0x796   :  { %v7944_v34 = vpop.eup %7943 }
 0x797   :  { %1926 = vrot.lane.b32.xlu0 %v7944_v34, %s8420_s25  ;;  %v2085_v34 = vld [vmem:[#allocation14 + $0x168] sm:$0xff] }
 0x798   :  { %6738 = vmatpush1.bf16.msra.mxu0 %v9161_v6 }
 0x799   :  { %6740 = vmatprep.subr.bf16.mxu0 %v9164_v24 }
 0x79a   :  { %v7946_v11 = vpop.eup %7945 }
 0x79b   :  { %1798 = vrot.lane.b32.xlu1 %v7946_v11, %s8420_s25  ;;  %v2087_v11 = vld [vmem:[#allocation14 + $0x178] sm:$0xff] }
 0x79c   :  { %v9146_v33 = vpack.c.bf16 %v2087_v11, %v2085_v34  ;;  %v2093_v34 = vld [vmem:[#allocation14 + $0x1a8] sm:$0xff]  ;;  %v2095_v11 = vld [vmem:[#allocation14 + $0x1b8] sm:$0xff]  ;;  %6742 = vmatpush1.bf16.msra.mxu0 %v9173_v9 }
 0x79d   :  { %v9170_v1 = vpack.c.bf16 %v2095_v11, %v2093_v34  ;;  %v9182_v34 = vpack.c.bf16 %v2099_v29, %v2097_v23  ;;  %v2096_v11 = vld [vmem:[#allocation14 + $0x1c0] sm:$0xff]  ;;  %6744 = vmatprep.subr.bf16.mxu0 %v9176_v49  ;;  %v1969_v29 = vld [vmem:[#allocation14 + $0xc8] sm:$0xff] }
 0x79e   :  { %6768 = vmatprep.subr.bf16.mxu1 %v9146_v33  ;;  %v9189_v32 = vpack.c.bf16 %v2098_v40, %v2096_v11  ;;  %v2101_v40 = vld [vmem:[#allocation14 + $0x1e8] sm:$0xff]  ;;  %v9199_v11 = vpack.c.bf16 %v1971_v54, %v1969_v29  ;;  %v1975_v54 = vld [vmem:[#allocation14 + $0xf8] sm:$0xff] }
 0x79f   :  { %6770 = vmatpush1.bf16.msra.mxu1 %v9155_v22  ;;  %v9201_v21 = vpack.c.bf16 %v2103_v4, %v2101_v40  ;;  %v1973_v29 = vld [vmem:[#allocation14 + $0xe8] sm:$0xff] }
 0x7a0   :  { %6772 = vmatprep.subr.bf16.mxu1 %v9158_v47  ;;  %6746 = vmatpush1.bf16.msra.mxu0 %v9185_v60  ;;  %v9212_v4 = vpack.c.bf16 %v1975_v54, %v1973_v29 }
 0x7a1   :  { %6748 = vmatprep.subr.bf16.mxu0 %v9199_v11 }
 0x7a3   :  { %6774 = vmatpush1.bf16.msra.mxu1 %v9167_v52 }
 0x7a4   :  { %6776 = vmatprep.subr.bf16.mxu1 %v9170_v1  ;;  %6750 = vmatpush1.bf16.msra.mxu0 %v9204_v30 }
 0x7a5   :  { %6752 = vmatprep.subr.bf16.mxu0 %v9212_v4 }
 0x7a7   :  { %6778 = vmatpush1.bf16.msra.mxu1 %v9179_v42 }
 0x7a8   :  { %6780 = vmatprep.subr.bf16.mxu1 %v9182_v34 }
 0x7ab   :  { %6782 = vmatpush1.bf16.msra.mxu1 %v9189_v32 }
 0x7ac   :  { %6784 = vmatprep.subr.bf16.mxu1 %v9201_v21 }
 0x809   :  { %v1927_v10 = vpop.permute.xlu0 %1926 }
 0x80a   :  { %v1928_v63 = vmul.f32 %v1927_v10, %v1917_v38  ;;  %v2102_v38 = vld [vmem:[#allocation14 + $0x1f0] sm:$0xff] }
 0x80c   :  { %v1929_v23 = vadd.f32 %v1928_v63, %v8914_v12  ;;  %v9206_v12 = vpack.c.bf16 %v2102_v38, %v2100_v15  ;;  %v1935_v38 = vmul.f32 %v1927_v10, %v9092_v50 }
 0x80d   :  { %v1799_v55 = vpop.permute.xlu1 %1798 }
 0x80e   :  { %7947 = vtanh.f32 %v1929_v23  ;;  %v1800_v35 = vmul.f32 %v1799_v55, %v1789_v8  ;;  %6786 = vmatpush1.bf16.msra.mxu1 %v9206_v12  ;;  %v1972_v8 = vld [vmem:[#allocation14 + $0xe0] sm:$0xff]  ;;  %v1974_v23 = vld [vmem:[#allocation14 + $0xf0] sm:$0xff]  ;;  %v1805_v54 = vsub.f32 1.0, %v1799_v55 }
 0x80f   :  { %v9214_v40 = vpack.c.bf16 %v1974_v23, %v1972_v8  ;;  %6820 = vmatprep.subr.bf16.mxu1 %v9116_v25  ;;  %v9228_v8 = vld [vmem:[#allocation8 + $0x10] sm:$0xff] }
 0x810   :  { %v1801_v63 = vadd.f32 %v1800_v35, %v8994_v7  ;;  %v1933_v35 = vsub.f32 1.0, %v1927_v10  ;;  %10549 = vst [vmem:[#allocation47_spill] sm:$0xff] %v9228_v8  ;;  %vm1687_vm7 = vcmp.gt.f32.partialorder %v9228_v8, 0.0 }
 0x811   :  { %6754 = vmatpush1.bf16.msra.mxu0 %v9214_v40 }
 0x812   :  { %7949 = vtanh.f32 %v1801_v63  ;;  %6788 = vmatprep.subr.bf16.mxu0 %v9120_v45 }
 0x818   :  { %v7948_v7 = vpop.eup %7947 }
 0x819   :  { %1931 = vrot.lane.b32.xlu0 %v7948_v7, %s8420_s25  ;;  %v1807_v7 = vmul.f32 %v1799_v55, %v9102_v57 }
 0x81c   :  { %v7950_v28 = vpop.eup %7949 }
 0x81d   :  { %1803 = vrot.lane.b32.xlu1 %v7950_v28, %s8420_s25 }
 0x88b   :  { %v1932_v15 = vpop.permute.xlu0 %1931 }
 0x88c   :  { %v1934_v63 = vmul.f32 %v1933_v35, %v1932_v15 }
 0x88e   :  { %v9226_v29 = vadd.f32 %v1935_v38, %v1934_v63 }
 0x88f   :  { %v1804_v23 = vpop.permute.xlu1 %1803 }
 0x890   :  { %v1806_v5 = vmul.f32 %v1805_v54, %v1804_v23  ;;  %v9235_v28 = vsel %vm1815_vm6, %v9226_v29, %v9092_v50 }
 0x891   :  { %2169 = vmatmul.mubr.f32.vlgmr.msra.gmra.mrb[30].mxu1 %v9235_v28 }
 0x892   :  { %v9239_v10 = vadd.f32 %v1807_v7, %v1806_v5  ;;  %6822 = vmatpush1.bf16.msra.mxu1 %v9118_v44  ;;  %2424 = vmatprep.mubr.f32.mxu1 %v10538_v62 }
 0x893   :  { %6824 = vmatprep.subr.bf16.mxu1 %v9123_v20 }
 0x894   :  { %10550 = vst [vmem:[#allocation48_spill] sm:$0xff] %v9239_v10  ;;  %v9248_v55 = vsel %vm1687_vm7, %v9239_v10, %v9102_v57 }
 0x895   :  { %2041 = vmatmul.mubr.f32.vlgmr.msra.gmra.mrb[26].mxu0 %v9248_v55 }
 0x896   :  { %6790 = vmatpush1.bf16.msra.mxu0 %v9127_v0  ;;  %6826 = vmatpush1.bf16.msra.mxu1 %v9129_v43 }
 0x897   :  { %6792 = vmatprep.subr.bf16.mxu0 %v9132_v16  ;;  %6828 = vmatprep.subr.bf16.mxu1 %v9135_v37 }
 0x898   :  { %2296 = vmatprep.mubr.f32.mxu0 %v10538_v62 }
 0x89a   :  { %6794 = vmatpush1.bf16.msra.mxu0 %v9137_v46  ;;  %6830 = vmatpush1.bf16.msra.mxu1 %v9141_v14 }
 0x89b   :  { %6796 = vmatprep.subr.bf16.mxu0 %v9143_v17  ;;  %6832 = vmatprep.subr.bf16.mxu1 %v9146_v33 }
 0x89e   :  { %6798 = vmatpush1.bf16.msra.mxu0 %v9149_v48  ;;  %6834 = vmatpush1.bf16.msra.mxu1 %v9155_v22 }
 0x89f   :  { %6800 = vmatprep.subr.bf16.mxu0 %v9152_v59  ;;  %6836 = vmatprep.subr.bf16.mxu1 %v9158_v47 }
 0x8a2   :  { %6802 = vmatpush1.bf16.msra.mxu0 %v9161_v6  ;;  %6838 = vmatpush1.bf16.msra.mxu1 %v9167_v52 }
 0x8a3   :  { %6804 = vmatprep.subr.bf16.mxu0 %v9164_v24  ;;  %6840 = vmatprep.subr.bf16.mxu1 %v9170_v1 }
 0x8a6   :  { %6806 = vmatpush1.bf16.msra.mxu0 %v9173_v9  ;;  %6842 = vmatpush1.bf16.msra.mxu1 %v9179_v42 }
 0x8a7   :  { %6808 = vmatprep.subr.bf16.mxu0 %v9176_v49  ;;  %6844 = vmatprep.subr.bf16.mxu1 %v9182_v34 }
 0x8aa   :  { %6810 = vmatpush1.bf16.msra.mxu0 %v9185_v60  ;;  %6846 = vmatpush1.bf16.msra.mxu1 %v9189_v32 }
 0x8ab   :  { %6812 = vmatprep.subr.bf16.mxu0 %v9199_v11  ;;  %6848 = vmatprep.subr.bf16.mxu1 %v9201_v21 }
 0x8ae   :  { %6814 = vmatpush1.bf16.msra.mxu0 %v9204_v30  ;;  %6850 = vmatpush1.bf16.msra.mxu1 %v9206_v12 }
 0x8af   :  { %6816 = vmatprep.subr.bf16.mxu0 %v9212_v4  ;;  %6884 = vmatprep.subr.bf16.mxu1 %v9116_v25 }
 0x8b2   :  { %6818 = vmatpush1.bf16.msra.mxu0 %v9214_v40 }
 0x8b3   :  { %6852 = vmatprep.subr.bf16.mxu0 %v9120_v45 }
 0x964   :  { %v2170_v5 = vpop.f32.mrb[30].mxu1 }
 0x965   :  { %v2171_v50 = vadd.f32 %v2170_v5, %v8943_v51  ;;  %v2172_v57 = vpop.f32.mrb[31].mxu1 }
 0x967   :  { %v2175_v35 = vadd.f32 %v2171_v50, %v8916_v13  ;;  %v2173_v50 = vadd.f32 %v2172_v57, %v8711_v3  ;;  %v9294_v57 = vld [vmem:[#allocation8 + $0x58] sm:$0xff] }
 0x968   :  { %v2042_v15 = vpop.f32.mrb[26].mxu0  ;;  %vm2071_vm8 = vcmp.gt.f32.partialorder %v9294_v57, 0.0 }
 0x969   :  { %v6150_v38 = vmul.f32 -1.442695, %v2175_v35  ;;  %v2043_v63 = vadd.f32 %v2042_v15, %v8936_v31  ;;  %v2044_v54 = vpop.f32.mrb[27].mxu0  ;;  %vm7074_vm1 = vmpackc.low %vm2071_vm8, %vm1815_vm6  ;;  %vm3234_vm6 = vcmask 523264  }
 0x96b   :  { %7951 = vpow2.f32 %v6150_v38  ;;  %v2047_v23 = vadd.f32 %v2043_v63, %v8996_v53  ;;  %v2045_v53 = vadd.f32 %v2044_v54, %v8707_v2 }
 0x96d   :  { %v6149_v7 = vmul.f32 -1.442695, %v2047_v23 }
 0x96f   :  { %7953 = vpow2.f32 %v6149_v7 }
 0x975   :  { %v7952_v25 = vpop.eup %7951 }
 0x976   :  { %v2179_v10 = vadd.f32 1.0, %v7952_v25 }
 0x978   :  { %7955 = vrcp.f32 %v2179_v10 }
 0x979   :  { %v7954_v45 = vpop.eup %7953 }
 0x97a   :  { %v2051_v8 = vadd.f32 1.0, %v7954_v45 }
 0x97c   :  { %7957 = vrcp.f32 %v2051_v8 }
 0x982   :  { %v7956_v5 = vpop.eup %7955 }
 0x983   :  { %2182 = vrot.lane.b32.xlu0 %v7956_v5, %s8420_s25 }
 0x986   :  { %v7958_v13 = vpop.eup %7957 }
 0x987   :  { %2054 = vrot.lane.b32.xlu1 %v7958_v13, %s8420_s25 }
 0x9f5   :  { %v2183_v35 = vpop.permute.xlu0 %2182 }
 0x9f6   :  { %v2184_v15 = vmul.f32 %v2183_v35, %v2173_v50  ;;  %v2189_v25 = vsub.f32 1.0, %v2183_v35  ;;  %v2191_v54 = vmul.f32 %v2183_v35, %v9235_v28 }
 0x9f8   :  { %v2185_v38 = vadd.f32 %v2184_v15, %v8918_v18 }
 0x9f9   :  { %v2055_v63 = vpop.permute.xlu1 %2054 }
 0x9fa   :  { %7959 = vtanh.f32 %v2185_v38  ;;  %v2056_v10 = vmul.f32 %v2055_v63, %v2045_v53  ;;  %v2061_v13 = vsub.f32 1.0, %v2055_v63  ;;  %v2063_v15 = vmul.f32 %v2055_v63, %v9248_v55 }
 0x9fc   :  { %v2057_v23 = vadd.f32 %v2056_v10, %v8998_v26  ;;  %v9300_v26 = vld [vmem:[#allocation8 + $0x18] sm:$0xff] }
 0x9fd   :  { %vm1943_vm9 = vcmp.gt.f32.partialorder %v9300_v26, 0.0 }
 0x9fe   :  { %7961 = vtanh.f32 %v2057_v23  ;;  %v9370_v23 = vld [vmem:[#allocation8 + $0x20] sm:$0xff]  ;;  %vm7050_vm3 = vmpackc.low %vm1943_vm9, %vm1687_vm7 }
 0x9ff   :  { %vm2199_vm11 = vcmp.gt.f32.partialorder %v9370_v23, 0.0 }
 0xa04   :  { %v7960_v8 = vpop.eup %7959 }
 0xa05   :  { %2187 = vrot.lane.b32.xlu0 %v7960_v8, %s8420_s25 }
 0xa08   :  { %v7962_v7 = vpop.eup %7961 }
 0xa09   :  { %2059 = vrot.lane.b32.xlu1 %v7962_v7, %s8420_s25 }
 0xa77   :  { %v2188_v45 = vpop.permute.xlu0 %2187 }
 0xa78   :  { %v2190_v5 = vmul.f32 %v2189_v25, %v2188_v45 }
 0xa7a   :  { %v9298_v18 = vadd.f32 %v2191_v54, %v2190_v5 }
 0xa7b   :  { %v2060_v50 = vpop.permute.xlu1 %2059 }
 0xa7c   :  { %v2062_v53 = vmul.f32 %v2061_v13, %v2060_v50  ;;  %v9307_v38 = vsel %vm2071_vm8, %v9298_v18, %v9235_v28 }
 0xa7d   :  { %2425 = vmatmul.mubr.f32.vlgmr.msra.gmra.mrb[32].mxu1 %v9307_v38 }
 0xa7e   :  { %v9311_v35 = vadd.f32 %v2063_v15, %v2062_v53  ;;  %6886 = vmatpush1.bf16.msra.mxu1 %v9118_v44  ;;  %2680 = vmatprep.mubr.f32.mxu1 %v10538_v62  ;;  %v10556_v53 = vld [vmem:[#allocation31_spill] sm:$0xff] }
 0xa7f   :  { %6888 = vmatprep.subr.bf16.mxu1 %v9123_v20 }
 0xa80   :  { %v9320_v63 = vsel %vm1943_vm9, %v9311_v35, %v9248_v55 }
 0xa81   :  { %2297 = vmatmul.mubr.f32.vlgmr.msra.gmra.mrb[28].mxu0 %v9320_v63 }
 0xa82   :  { %6854 = vmatpush1.bf16.msra.mxu0 %v9127_v0  ;;  %6890 = vmatpush1.bf16.msra.mxu1 %v9129_v43 }
 0xa83   :  { %6856 = vmatprep.subr.bf16.mxu0 %v9132_v16  ;;  %6892 = vmatprep.subr.bf16.mxu1 %v9135_v37 }
 0xa84   :  { %2552 = vmatprep.mubr.f32.mxu0 %v10538_v62 }
 0xa86   :  { %6858 = vmatpush1.bf16.msra.mxu0 %v9137_v46  ;;  %6894 = vmatpush1.bf16.msra.mxu1 %v9141_v14 }
 0xa87   :  { %6860 = vmatprep.subr.bf16.mxu0 %v9143_v17  ;;  %6896 = vmatprep.subr.bf16.mxu1 %v9146_v33 }
 0xa8a   :  { %6862 = vmatpush1.bf16.msra.mxu0 %v9149_v48  ;;  %6898 = vmatpush1.bf16.msra.mxu1 %v9155_v22 }
 0xa8b   :  { %6864 = vmatprep.subr.bf16.mxu0 %v9152_v59  ;;  %6900 = vmatprep.subr.bf16.mxu1 %v9158_v47 }
 0xa8e   :  { %6866 = vmatpush1.bf16.msra.mxu0 %v9161_v6  ;;  %6902 = vmatpush1.bf16.msra.mxu1 %v9167_v52 }
 0xa8f   :  { %6868 = vmatprep.subr.bf16.mxu0 %v9164_v24  ;;  %6904 = vmatprep.subr.bf16.mxu1 %v9170_v1  ;;  %v10551_v24 = vld [vmem:[#allocation30_spill] sm:$0xff] }
 0xa92   :  { %6870 = vmatpush1.bf16.msra.mxu0 %v9173_v9  ;;  %6906 = vmatpush1.bf16.msra.mxu1 %v9179_v42 }
 0xa93   :  { %6872 = vmatprep.subr.bf16.mxu0 %v9176_v49  ;;  %6908 = vmatprep.subr.bf16.mxu1 %v9182_v34  ;;  %v10552_v34 = vld [vmem:[#allocation37_spill] sm:$0xff] }
 0xa94   :  { %10554 = vst [vmem:[#allocation37_spill] sm:$0xff] %v9370_v23 }
 0xa96   :  { %6874 = vmatpush1.bf16.msra.mxu0 %v9185_v60  ;;  %6910 = vmatpush1.bf16.msra.mxu1 %v9189_v32 }
 0xa97   :  { %6876 = vmatprep.subr.bf16.mxu0 %v9199_v11  ;;  %6912 = vmatprep.subr.bf16.mxu1 %v9201_v21 }
 0xa9a   :  { %6878 = vmatpush1.bf16.msra.mxu0 %v9204_v30  ;;  %6914 = vmatpush1.bf16.msra.mxu1 %v9206_v12  ;;  %v9364_v12 = vld [vmem:[#allocation8 + $0x60] sm:$0xff] }
 0xa9b   :  { %6880 = vmatprep.subr.bf16.mxu0 %v9212_v4  ;;  %vm2327_vm10 = vcmp.gt.f32.partialorder %v9364_v12, 0.0 }
 0xa9e   :  { %6882 = vmatpush1.bf16.msra.mxu0 %v9214_v40 }
 0xb50   :  { %v2426_v42 = vpop.f32.mrb[32].mxu1 }
 0xb51   :  { %v2427_v49 = vadd.f32 %v2426_v42, %v8943_v51  ;;  %v2428_v44 = vpop.f32.mrb[33].mxu1 }
 0xb52   :  { %v2429_v22 = vadd.f32 %v2428_v44, %v8711_v3 }
 0xb53   :  { %v2431_v20 = vadd.f32 %v2427_v49, %v8920_v19 }
 0xb54   :  { %v2298_v0 = vpop.f32.mrb[28].mxu0 }
 0xb55   :  { %v6152_v43 = vmul.f32 -1.442695, %v2431_v20  ;;  %v2299_v16 = vadd.f32 %v2298_v0, %v8936_v31  ;;  %v2300_v37 = vpop.f32.mrb[29].mxu0 }
 0xb57   :  { %7963 = vpow2.f32 %v6152_v43  ;;  %v2303_v21 = vadd.f32 %v2299_v16, %v9000_v27  ;;  %v2301_v27 = vadd.f32 %v2300_v37, %v8707_v2 }
 0xb59   :  { %v6151_v46 = vmul.f32 -1.442695, %v2303_v21 }
 0xb5b   :  { %7965 = vpow2.f32 %v6151_v46 }
 0xb61   :  { %v7964_v14 = vpop.eup %7963 }
 0xb62   :  { %v2435_v17 = vadd.f32 1.0, %v7964_v14 }
 0xb64   :  { %7967 = vrcp.f32 %v2435_v17  ;;  %v2841_v17 = vld [vmem:[#allocation14 + $0x108] sm:$0xff] }
 0xb65   :  { %v7966_v33 = vpop.eup %7965 }
 0xb66   :  { %v2307_v48 = vadd.f32 1.0, %v7966_v33  ;;  %v2843_v33 = vld [vmem:[#allocation14 + $0x118] sm:$0xff] }
 0xb68   :  { %7969 = vrcp.f32 %v2307_v48  ;;  %v2840_v48 = vld [vmem:[#allocation14 + $0x100] sm:$0xff] }
 0xb6e   :  { %v7968_v59 = vpop.eup %7967 }
 0xb6f   :  { %2438 = vrot.lane.b32.xlu0 %v7968_v59, %s8420_s25  ;;  %v9402_v59 = vpack.c.bf16 %v2843_v33, %v2841_v17  ;;  %v2727_v17 = vld [vmem:[#allocation14 + $0x78] sm:$0xff] }
 0xb71   :  { %6948 = vmatprep.subr.bf16.mxu1 %v9402_v59 }
 0xb72   :  { %v7970_v19 = vpop.eup %7969 }
 0xb73   :  { %2310 = vrot.lane.b32.xlu1 %v7970_v19, %s8420_s25  ;;  %v2713_v19 = vld [vmem:[#allocation14 + $0x8] sm:$0xff] }
 0xbe1   :  { %v2439_v47 = vpop.permute.xlu0 %2438 }
 0xbe2   :  { %v2440_v6 = vmul.f32 %v2439_v47, %v2429_v22  ;;  %v2445_v30 = vsub.f32 1.0, %v2439_v47  ;;  %v2447_v40 = vmul.f32 %v2439_v47, %v9307_v38  ;;  %v2715_v22 = vld [vmem:[#allocation14 + $0x18] sm:$0xff] }
 0xbe4   :  { %v2441_v52 = vadd.f32 %v2440_v6, %v10551_v24  ;;  %v9406_v6 = vpack.c.bf16 %v2715_v22, %v2713_v19  ;;  %v2847_v24 = vld [vmem:[#allocation14 + $0x138] sm:$0xff]  ;;  %v2724_v22 = vld [vmem:[#allocation14 + $0x60] sm:$0xff] }
 0xbe5   :  { %v2311_v1 = vpop.permute.xlu1 %2310 }
 0xbe6   :  { %7971 = vtanh.f32 %v2441_v52  ;;  %v2312_v9 = vmul.f32 %v2311_v1, %v2301_v27  ;;  %v2317_v10 = vsub.f32 1.0, %v2311_v1  ;;  %v2319_v7 = vmul.f32 %v2311_v1, %v9320_v63  ;;  %v2845_v27 = vld [vmem:[#allocation14 + $0x128] sm:$0xff]  ;;  %v2712_v52 = vld [vmem:[#allocation14] sm:$0xff]  ;;  %6916 = vmatprep.subr.bf16.mxu0 %v9406_v6 }
 0xbe7   :  { %v9409_v1 = vpack.c.bf16 %v2847_v24, %v2845_v27  ;;  %v2726_v27 = vld [vmem:[#allocation14 + $0x70] sm:$0xff] }
 0xbe8   :  { %v2313_v60 = vadd.f32 %v2312_v9, %v10552_v34  ;;  %v2714_v9 = vld [vmem:[#allocation14 + $0x10] sm:$0xff]  ;;  %v2844_v34 = vld [vmem:[#allocation14 + $0x120] sm:$0xff] }
 0xbea   :  { %7973 = vtanh.f32 %v2313_v60  ;;  %v2846_v60 = vld [vmem:[#allocation14 + $0x130] sm:$0xff] }
 0xbf0   :  { %v7972_v32 = vpop.eup %7971 }
 0xbf1   :  { %2443 = vrot.lane.b32.xlu0 %v7972_v32, %s8420_s25  ;;  %v9413_v32 = vpack.c.bf16 %v2714_v9, %v2712_v52  ;;  %v2729_v52 = vld [vmem:[#allocation14 + $0x88] sm:$0xff]  ;;  %v2731_v9 = vld [vmem:[#allocation14 + $0x98] sm:$0xff] }
 0xbf4   :  { %v7974_v11 = vpop.eup %7973 }
 0xbf5   :  { %2315 = vrot.lane.b32.xlu1 %v7974_v11, %s8420_s25  ;;  %v9415_v11 = vpack.c.bf16 %v2846_v60, %v2844_v34  ;;  %v2856_v60 = vld [vmem:[#allocation14 + $0x180] sm:$0xff] }
 0xc63   :  { %v2444_v4 = vpop.permute.xlu0 %2443 }
 0xc64   :  { %v2446_v28 = vmul.f32 %v2445_v30, %v2444_v4  ;;  %v2717_v30 = vld [vmem:[#allocation14 + $0x28] sm:$0xff]  ;;  %v2719_v4 = vld [vmem:[#allocation14 + $0x38] sm:$0xff] }
 0xc66   :  { %v9368_v55 = vadd.f32 %v2447_v40, %v2446_v28  ;;  %v2849_v40 = vld [vmem:[#allocation14 + $0x148] sm:$0xff]  ;;  %v9418_v28 = vpack.c.bf16 %v2719_v4, %v2717_v30  ;;  %v2858_v30 = vld [vmem:[#allocation14 + $0x190] sm:$0xff]  ;;  %v9447_v4 = vpack.c.bf16 %v2726_v27, %v2724_v22  ;;  %v2864_v27 = vld [vmem:[#allocation14 + $0x1c0] sm:$0xff] }
 0xc67   :  { %v2316_v8 = vpop.permute.xlu1 %2315 }
 0xc68   :  { %10553 = vst [vmem:[#allocation30_spill] sm:$0xff] %v9368_v55  ;;  %v2318_v25 = vmul.f32 %v2317_v10, %v2316_v8  ;;  %v9377_v45 = vsel %vm2327_vm10, %v9368_v55, %v9307_v38  ;;  %v2851_v10 = vld [vmem:[#allocation14 + $0x158] sm:$0xff]  ;;  %v2716_v8 = vld [vmem:[#allocation14 + $0x20] sm:$0xff] }
 0xc69   :  { %2681 = vmatmul.mubr.f32.vlgmr.msra.gmra.mrb[34].mxu1 %v9377_v45 }
 0xc6a   :  { %v9381_v54 = vadd.f32 %v2319_v7, %v2318_v25  ;;  %2936 = vmatprep.mubr.f32.mxu1 %v10538_v62  ;;  %v2718_v7 = vld [vmem:[#allocation14 + $0x30] sm:$0xff]  ;;  %v9421_v25 = vpack.c.bf16 %v2851_v10, %v2849_v40  ;;  %v2861_v40 = vld [vmem:[#allocation14 + $0x1a8] sm:$0xff]  ;;  %v2863_v10 = vld [vmem:[#allocation14 + $0x1b8] sm:$0xff] }
 0xc6c   :  { %10555 = vst [vmem:[#allocation49_spill] sm:$0xff] %v9381_v54  ;;  %v9388_v5 = vsel %vm2199_vm11, %v9381_v54, %v9320_v63 }
 0xc6d   :  { %2553 = vmatmul.mubr.f32.vlgmr.msra.gmra.mrb[30].mxu0 %v9388_v5 }
 0xc6e   :  { %2808 = vmatprep.mubr.f32.mxu0 %v10538_v62  ;;  %6918 = vmatpush1.bf16.msra.mxu0 %v9413_v32 }
 0xc6f   :  { %6920 = vmatprep.subr.bf16.mxu0 %v9418_v28 }
 0xc73   :  { %v10575_v12 = vld [vmem:[#allocation49_spill] sm:$0xff] }
 0xd3c   :  { %v2682_v13 = vpop.f32.mrb[34].mxu1 }
 0xd3d   :  { %v2683_v50 = vadd.f32 %v2682_v13, %v8943_v51  ;;  %v9393_v15 = vpop.f32.mrb[35].mxu1  ;;  %v9423_v13 = vpack.c.bf16 %v2718_v7, %v2716_v8  ;;  %v9450_v8 = vpack.c.bf16 %v2731_v9, %v2729_v52  ;;  %v2728_v7 = vld [vmem:[#allocation14 + $0x80] sm:$0xff]  ;;  %v2866_v52 = vld [vmem:[#allocation14 + $0x1d0] sm:$0xff] }
 0xd3f   :  { %v2687_v38 = vadd.f32 %v2683_v50, %v10556_v53  ;;  %v2848_v50 = vld [vmem:[#allocation14 + $0x140] sm:$0xff]  ;;  %v2850_v53 = vld [vmem:[#allocation14 + $0x150] sm:$0xff]  ;;  %6922 = vmatpush1.bf16.msra.mxu0 %v9423_v13 }
 0xd40   :  { %v2554_v42 = vpop.f32.mrb[30].mxu0 }
 0xd41   :  { %v6154_v49 = vmul.f32 -1.442695, %v2687_v38  ;;  %v2555_v44 = vadd.f32 %v2554_v42, %v8936_v31  ;;  %v9397_v20 = vpop.f32.mrb[31].mxu0  ;;  %v2721_v38 = vld [vmem:[#allocation14 + $0x48] sm:$0xff]  ;;  %v2723_v42 = vld [vmem:[#allocation14 + $0x58] sm:$0xff] }
 0xd43   :  { %7975 = vpow2.f32 %v6154_v49  ;;  %v2559_v63 = vadd.f32 %v2555_v44, %v9004_v36  ;;  %v2842_v36 = vld [vmem:[#allocation14 + $0x110] sm:$0xff]  ;;  %v2853_v49 = vld [vmem:[#allocation14 + $0x168] sm:$0xff]  ;;  %v2855_v44 = vld [vmem:[#allocation14 + $0x178] sm:$0xff] }
 0xd44   :  { %v9404_v47 = vpack.c.bf16 %v2842_v36, %v2840_v48  ;;  %v2857_v48 = vld [vmem:[#allocation14 + $0x188] sm:$0xff]  ;;  %v2859_v36 = vld [vmem:[#allocation14 + $0x198] sm:$0xff] }
 0xd45   :  { %v6153_v0 = vmul.f32 -1.442695, %v2559_v63  ;;  %v9427_v63 = vpack.c.bf16 %v2850_v53, %v2848_v50  ;;  %v9444_v34 = vpack.c.bf16 %v2859_v36, %v2857_v48  ;;  %v2730_v50 = vld [vmem:[#allocation14 + $0x90] sm:$0xff]  ;;  %v9453_v53 = vpack.c.bf16 %v2858_v30, %v2856_v60 }
 0xd46   :  { %6950 = vmatpush1.bf16.msra.mxu1 %v9404_v47  ;;  %v2734_v48 = vld [vmem:[#allocation14 + $0xb0] sm:$0xff]  ;;  %v9475_v60 = vpack.c.bf16 %v2866_v52, %v2864_v27  ;;  %v2685_v30 = vadd.f32 %v9393_v15, %v8711_v3  ;;  %v2868_v15 = vld [vmem:[#allocation14 + $0x1e0] sm:$0xff] }
 0xd47   :  { %7977 = vpow2.f32 %v6153_v0  ;;  %6952 = vmatprep.subr.bf16.mxu1 %v9409_v1  ;;  %v9429_v0 = vpack.c.bf16 %v2723_v42, %v2721_v38  ;;  %v2733_v38 = vld [vmem:[#allocation14 + $0xa8] sm:$0xff]  ;;  %v2735_v42 = vld [vmem:[#allocation14 + $0xb8] sm:$0xff] }
 0xd49   :  { %6924 = vmatprep.subr.bf16.mxu0 %v9429_v0 }
 0xd4a   :  { %6954 = vmatpush1.bf16.msra.mxu1 %v9415_v11 }
 0xd4b   :  { %6956 = vmatprep.subr.bf16.mxu1 %v9421_v25 }
 0xd4d   :  { %v7976_v43 = vpop.eup %7975 }
 0xd4e   :  { %v2691_v16 = vadd.f32 1.0, %v7976_v43  ;;  %v2720_v43 = vld [vmem:[#allocation14 + $0x40] sm:$0xff]  ;;  %6958 = vmatpush1.bf16.msra.mxu1 %v9427_v63 }
 0xd50   :  { %7979 = vrcp.f32 %v2691_v16  ;;  %v2722_v16 = vld [vmem:[#allocation14 + $0x50] sm:$0xff] }
 0xd51   :  { %v7978_v37 = vpop.eup %7977  ;;  %v9435_v33 = vpack.c.bf16 %v2722_v16, %v2720_v43  ;;  %v2862_v43 = vld [vmem:[#allocation14 + $0x1b0] sm:$0xff]  ;;  %v9459_v16 = vpack.c.bf16 %v2730_v50, %v2728_v7  ;;  %v2737_v7 = vld [vmem:[#allocation14 + $0xc8] sm:$0xff]  ;;  %v2739_v50 = vld [vmem:[#allocation14 + $0xd8] sm:$0xff] }
 0xd52   :  { %v2563_v21 = vadd.f32 1.0, %v7978_v37  ;;  %v2852_v37 = vld [vmem:[#allocation14 + $0x160] sm:$0xff] }
 0xd53   :  { %6926 = vmatpush1.bf16.msra.mxu0 %v9435_v33 }
 0xd54   :  { %7981 = vrcp.f32 %v2563_v21  ;;  %v9432_v21 = vpack.c.bf16 %v2855_v44, %v2853_v49  ;;  %v9456_v49 = vpack.c.bf16 %v2863_v10, %v2861_v40  ;;  %v2860_v44 = vld [vmem:[#allocation14 + $0x1a0] sm:$0xff] }
 0xd55   :  { %v9465_v36 = vpack.c.bf16 %v2862_v43, %v2860_v44  ;;  %v10557_v44 = vld [vmem:[#allocation32_spill] sm:$0xff] }
 0xd56   :  { %6960 = vmatprep.subr.bf16.mxu1 %v9432_v21 }
 0xd5a   :  { %v7980_v46 = vpop.eup %7979 }
 0xd5b   :  { %2694 = vrot.lane.b32.xlu0 %v7980_v46, %s8420_s25  ;;  %v2854_v46 = vld [vmem:[#allocation14 + $0x170] sm:$0xff] }
 0xd5c   :  { %v9441_v24 = vpack.c.bf16 %v2854_v46, %v2852_v37  ;;  %v2865_v37 = vld [vmem:[#allocation14 + $0x1c8] sm:$0xff]  ;;  %v2867_v46 = vld [vmem:[#allocation14 + $0x1d8] sm:$0xff] }
 0xd5d   :  { %v9468_v22 = vpack.c.bf16 %v2867_v46, %v2865_v37  ;;  %v9485_v37 = vpack.c.bf16 %v2739_v50, %v2737_v7  ;;  %v2871_v46 = vld [vmem:[#allocation14 + $0x1f8] sm:$0xff] }
 0xd5e   :  { %v7982_v14 = vpop.eup %7981  ;;  %6962 = vmatpush1.bf16.msra.mxu1 %v9441_v24 }
 0xd5f   :  { %2566 = vrot.lane.b32.xlu1 %v7982_v14, %s8420_s25  ;;  %v2725_v14 = vld [vmem:[#allocation14 + $0x68] sm:$0xff]  ;;  %6964 = vmatprep.subr.bf16.mxu1 %v9444_v34 }
 0xd60   :  { %v9438_v19 = vpack.c.bf16 %v2727_v17, %v2725_v14  ;;  %v9462_v14 = vpack.c.bf16 %v2735_v42, %v2733_v38  ;;  %v2732_v17 = vld [vmem:[#allocation14 + $0xa0] sm:$0xff]  ;;  %v2869_v38 = vld [vmem:[#allocation14 + $0x1e8] sm:$0xff]  ;;  %v2557_v42 = vadd.f32 %v9397_v20, %v8707_v2 }
 0xd61   :  { %v9471_v9 = vpack.c.bf16 %v2734_v48, %v2732_v17  ;;  %v2736_v17 = vld [vmem:[#allocation14 + $0xc0] sm:$0xff]  ;;  %v2738_v48 = vld [vmem:[#allocation14 + $0xd0] sm:$0xff]  ;;  %v9487_v52 = vpack.c.bf16 %v2871_v46, %v2869_v38  ;;  %v2741_v20 = vld [vmem:[#allocation14 + $0xe8] sm:$0xff] }
 0xd62   :  { %6928 = vmatprep.subr.bf16.mxu0 %v9438_v19  ;;  %6966 = vmatpush1.bf16.msra.mxu1 %v9453_v53  ;;  %v9489_v54 = vpack.c.bf16 %v2738_v48, %v2736_v17  ;;  %v2740_v38 = vld [vmem:[#allocation14 + $0xe0] sm:$0xff]  ;;  %v9508_v46 = vld [vmem:[#allocation8 + $0x68] sm:$0xff] }
 0xd63   :  { %6930 = vmatpush1.bf16.msra.mxu0 %v9447_v4  ;;  %6968 = vmatprep.subr.bf16.mxu1 %v9456_v49  ;;  %vm2583_vm12 = vcmp.gt.f32.partialorder %v9508_v46, 0.0 }
 0xd64   :  { %6932 = vmatprep.subr.bf16.mxu0 %v9450_v8  ;;  %vm7080_vm4 = vmpackc.low %vm2583_vm12, %vm2327_vm10 }
 0xd66   :  { %6970 = vmatpush1.bf16.msra.mxu1 %v9465_v36 }
 0xd67   :  { %6934 = vmatpush1.bf16.msra.mxu0 %v9459_v16  ;;  %6972 = vmatprep.subr.bf16.mxu1 %v9468_v22 }
 0xd68   :  { %6936 = vmatprep.subr.bf16.mxu0 %v9462_v14 }
 0xd6a   :  { %6974 = vmatpush1.bf16.msra.mxu1 %v9475_v60 }
 0xd6b   :  { %6938 = vmatpush1.bf16.msra.mxu0 %v9471_v9  ;;  %6976 = vmatprep.subr.bf16.mxu1 %v9487_v52 }
 0xd6c   :  { %6940 = vmatprep.subr.bf16.mxu0 %v9485_v37 }
 0xd6f   :  { %6942 = vmatpush1.bf16.msra.mxu0 %v9489_v54 }
 0xdcd   :  { %v2695_v40 = vpop.permute.xlu0 %2694 }
 0xdce   :  { %v2696_v10 = vmul.f32 %v2695_v40, %v2685_v30  ;;  %v2870_v30 = vld [vmem:[#allocation14 + $0x1f0] sm:$0xff] }
 0xdcf   :  { %v9492_v55 = vpack.c.bf16 %v2870_v30, %v2868_v15 }
 0xdd0   :  { %v2697_v43 = vadd.f32 %v2696_v10, %v10557_v44  ;;  %v2743_v10 = vld [vmem:[#allocation14 + $0xf8] sm:$0xff]  ;;  %v2742_v44 = vld [vmem:[#allocation14 + $0xf0] sm:$0xff] }
 0xdd1   :  { %v2567_v27 = vpop.permute.xlu1 %2566  ;;  %6978 = vmatpush1.bf16.msra.mxu1 %v9492_v55  ;;  %v9498_v50 = vpack.c.bf16 %v2743_v10, %v2741_v20  ;;  %v9514_v20 = vld [vmem:[#allocation8 + $0x28] sm:$0xff] }
 0xdd2   :  { %7983 = vtanh.f32 %v2697_v43  ;;  %v2568_v23 = vmul.f32 %v2567_v27, %v2557_v42  ;;  %7012 = vmatprep.subr.bf16.mxu1 %v9402_v59  ;;  %v9501_v42 = vpack.c.bf16 %v2742_v44, %v2740_v38  ;;  %v2703_v59 = vmul.f32 %v2695_v40, %v9377_v45 }
 0xdd3   :  { %6944 = vmatprep.subr.bf16.mxu0 %v9498_v50  ;;  %v2573_v30 = vsub.f32 1.0, %v2567_v27  ;;  %v2575_v10 = vmul.f32 %v2567_v27, %v9388_v5  ;;  %vm2455_vm13 = vcmp.gt.f32.partialorder %v9514_v20, 0.0  ;;  %v10577_v20 = vld [vmem:[#allocation42_spill] sm:$0xff] }
 0xdd4   :  { %v2569_v7 = vadd.f32 %v2568_v23, %v9006_v39  ;;  %6946 = vmatpush1.bf16.msra.mxu0 %v9501_v42  ;;  %v2701_v23 = vsub.f32 1.0, %v2695_v40  ;;  %vm7056_vm5 = vmpackc.low %vm2455_vm13, %vm2199_vm11 }
 0xdd5   :  { %6980 = vmatprep.subr.bf16.mxu0 %v9406_v6 }
 0xdd6   :  { %7985 = vtanh.f32 %v2569_v7 }
 0xddc   :  { %v7984_v43 = vpop.eup %7983 }
 0xddd   :  { %2699 = vrot.lane.b32.xlu0 %v7984_v43, %s8420_s25 }
 0xde0   :  { %v7986_v39 = vpop.eup %7985 }
 0xde1   :  { %2571 = vrot.lane.b32.xlu1 %v7986_v39, %s8420_s25 }
 0xe4f   :  { %v2700_v17 = vpop.permute.xlu0 %2699 }
 0xe50   :  { %v2702_v48 = vmul.f32 %v2701_v23, %v2700_v17 }
 0xe52   :  { %v9512_v15 = vadd.f32 %v2703_v59, %v2702_v48  ;;  %v9608_v59 = vld [vmem:[#allocation8 + $0x70] sm:$0xff] }
 0xe53   :  { %v2572_v6 = vpop.permute.xlu1 %2571  ;;  %vm2839_vm0 = vcmp.gt.f32.partialorder %v9608_v59, 0.0  ;;  %v6168_v59 = vld [vmem:[%s10486_s3 + $0x48] sm:$0xff] }
 0xe54   :  { %v2574_v7 = vmul.f32 %v2573_v30, %v2572_v6  ;;  %v9521_v38 = vsel %vm2583_vm12, %v9512_v15, %v9377_v45 }
 0xe55   :  { %2937 = vmatmul.mubr.f32.vlgmr.msra.gmra.mrb[36].mxu1 %v9521_v38 }
 0xe56   :  { %v9525_v40 = vadd.f32 %v2575_v10, %v2574_v7  ;;  %7014 = vmatpush1.bf16.msra.mxu1 %v9404_v47  ;;  %3191 = vmatprep.mubr.f32.mxu1 %v10538_v62 }
 0xe57   :  { %7016 = vmatprep.subr.bf16.mxu1 %v9409_v1 }
 0xe58   :  { %v9534_v27 = vsel %vm2455_vm13, %v9525_v40, %v9388_v5  ;;  %v10560_v5 = vld [vmem:[#allocation44_spill] sm:$0xff] }
 0xe59   :  { %2809 = vmatmul.mubr.f32.vlgmr.msra.gmra.mrb[32].mxu0 %v9534_v27  ;;  %v9572_v47 = vpack.c.bf16 %v10560_v5, %v9011_v41  ;;  %v10565_v41 = vld [vmem:[#allocation39_spill] sm:$0xff]  ;;  %v9614_v5 = vld [vmem:[#allocation8 + $0x30] sm:$0xff] }
 0xe5a   :  { %6982 = vmatpush1.bf16.msra.mxu0 %v9413_v32  ;;  %7018 = vmatpush1.bf16.msra.mxu1 %v9415_v11  ;;  %v10566_v32 = vld [vmem:[#allocation46_spill] sm:$0xff]  ;;  %vm2711_vm2 = vcmp.gt.f32.partialorder %v9614_v5, 0.0  ;;  %v3584_v5 = vld [vmem:[#allocation16 + $0x248] sm:$0xff] }
 0xe5b   :  { %6984 = vmatprep.subr.bf16.mxu0 %v9418_v28  ;;  %7020 = vmatprep.subr.bf16.mxu1 %v9421_v25  ;;  %v9590_v11 = vpack.c.bf16 %v10566_v32, %v10565_v41  ;;  %v10567_v25 = vld [vmem:[#allocation33_spill] sm:$0xff] }
 0xe5c   :  { %3064 = vmatprep.mubr.f32.mxu0 %v10538_v62 }
 0xe5e   :  { %6986 = vmatpush1.bf16.msra.mxu0 %v9423_v13  ;;  %7022 = vmatpush1.bf16.msra.mxu1 %v9427_v63 }
 0xe5f   :  { %6988 = vmatprep.subr.bf16.mxu0 %v9429_v0  ;;  %7024 = vmatprep.subr.bf16.mxu1 %v9432_v21 }
 0xe62   :  { %6990 = vmatpush1.bf16.msra.mxu0 %v9435_v33  ;;  %7026 = vmatpush1.bf16.msra.mxu1 %v9441_v24 }
 0xe63   :  { %6992 = vmatprep.subr.bf16.mxu0 %v9438_v19  ;;  %7028 = vmatprep.subr.bf16.mxu1 %v9444_v34  ;;  %v10568_v19 = vld [vmem:[#allocation40_spill] sm:$0xff] }
 0xe66   :  { %6994 = vmatpush1.bf16.msra.mxu0 %v9447_v4  ;;  %7030 = vmatpush1.bf16.msra.mxu1 %v9453_v53 }
 0xe67   :  { %6996 = vmatprep.subr.bf16.mxu0 %v9450_v8  ;;  %7032 = vmatprep.subr.bf16.mxu1 %v9456_v49 }
 0xe6a   :  { %6998 = vmatpush1.bf16.msra.mxu0 %v9459_v16  ;;  %7034 = vmatpush1.bf16.msra.mxu1 %v9465_v36 }
 0xe6b   :  { %7000 = vmatprep.subr.bf16.mxu0 %v9462_v14  ;;  %7036 = vmatprep.subr.bf16.mxu1 %v9468_v22 }
 0xe6e   :  { %7002 = vmatpush1.bf16.msra.mxu0 %v9471_v9  ;;  %7038 = vmatpush1.bf16.msra.mxu1 %v9475_v60 }
 0xe6f   :  { %7004 = vmatprep.subr.bf16.mxu0 %v9485_v37  ;;  %7040 = vmatprep.subr.bf16.mxu1 %v9487_v52  ;;  %v10569_v37 = vld [vmem:[#allocation34_spill] sm:$0xff] }
 0xe72   :  { %7006 = vmatpush1.bf16.msra.mxu0 %v9489_v54  ;;  %7042 = vmatpush1.bf16.msra.mxu1 %v9492_v55 }
 0xe73   :  { %7069 = vmatprep.subr.msk.bf16.mxu1 %vm9566_vm14, %v9572_v47  ;;  %7008 = vmatprep.subr.bf16.mxu0 %v9498_v50 }
 0xe76   :  { %7010 = vmatpush1.bf16.msra.mxu0 %v9501_v42  ;;  %v10570_v42 = vld [vmem:[#allocation41_spill] sm:$0xff] }
 0xe77   :  { %7045 = vmatprep.subr.msk.bf16.mxu0 %vm9584_vm15, %v9590_v11 }
 0xf28   :  { %v2938_v55 = vpop.f32.mrb[36].mxu1 }
 0xf29   :  { %v2939_v54 = vadd.f32 %v2938_v55, %v8943_v51  ;;  %v2940_v28 = vpop.f32.mrb[37].mxu1  ;;  %v7073_v55 = vpack.c.bf16 %v9298_v18, %v9226_v29  ;;  %v10572_v29 = vld [vmem:[#allocation48_spill] sm:$0xff]  ;;  %v10573_v18 = vld [vmem:[#allocation30_spill] sm:$0xff] }
 0xf2a   :  { %v2941_v36 = vadd.f32 %v2940_v28, %v8711_v3  ;;  %v7049_v57 = vpack.c.bf16 %v9311_v35, %v10572_v29  ;;  %v7079_v45 = vpack.c.bf16 %v9512_v15, %v10573_v18  ;;  %v7055_v35 = vpack.c.bf16 %v9525_v40, %v10575_v12  ;;  %v3590_v18 = vld [vmem:[#allocation16 + $0x278] sm:$0xff]  ;;  %v3575_v12 = vld [vmem:[#allocation16 + $0x200] sm:$0xff] }
 0xf2b   :  { %v2943_v13 = vadd.f32 %v2939_v54, %v10567_v25 }
 0xf2c   :  { %v2810_v63 = vpop.f32.mrb[32].mxu0 }
 0xf2d   :  { %v6156_v0 = vmul.f32 -1.442695, %v2943_v13  ;;  %v2811_v21 = vadd.f32 %v2810_v63, %v8936_v31  ;;  %v2812_v33 = vpop.f32.mrb[33].mxu0 }
 0xf2e   :  { %v2813_v60 = vadd.f32 %v2812_v33, %v8707_v2 }
 0xf2f   :  { %7987 = vpow2.f32 %v6156_v0  ;;  %v2815_v24 = vadd.f32 %v2811_v21, %v10568_v19 }
 0xf31   :  { %v6155_v34 = vmul.f32 -1.442695, %v2815_v24 }
 0xf33   :  { %7989 = vpow2.f32 %v6155_v34 }
 0xf39   :  { %v7988_v4 = vpop.eup %7987 }
 0xf3a   :  { %v2947_v8 = vadd.f32 1.0, %v7988_v4 }
 0xf3c   :  { %7991 = vrcp.f32 %v2947_v8 }
 0xf3d   :  { %v7990_v53 = vpop.eup %7989 }
 0xf3e   :  { %v2819_v49 = vadd.f32 1.0, %v7990_v53  ;;  %v10578_v53 = vld [vmem:[#allocation36_spill] sm:$0xff] }
 0xf40   :  { %7993 = vrcp.f32 %v2819_v49 }
 0xf46   :  { %v7992_v16 = vpop.eup %7991 }
 0xf47   :  { %2950 = vrot.lane.b32.xlu0 %v7992_v16, %s8420_s25 }
 0xf4a   :  { %v7994_v14 = vpop.eup %7993 }
 0xf4b   :  { %2822 = vrot.lane.b32.xlu1 %v7994_v14, %s8420_s25 }
 0xfb9   :  { %v2951_v22 = vpop.permute.xlu0 %2950 }
 0xfba   :  { %v2952_v9 = vmul.f32 %v2951_v22, %v2941_v36  ;;  %v2957_v17 = vsub.f32 1.0, %v2951_v22  ;;  %v2959_v30 = vmul.f32 %v2951_v22, %v9521_v38  ;;  %v10579_v36 = vld [vmem:[#allocation43_spill] sm:$0xff] }
 0xfbc   :  { %v2953_v52 = vadd.f32 %v2952_v9, %v10569_v37  ;;  %v6167_v9 = vld [vmem:[%s10486_s3 + $0x40] sm:$0xff]  ;;  %v3093_v37 = vld [vmem:[#allocation8 + $0x78] sm:$0xff] }
 0xfbd   :  { %v2823_v50 = vpop.permute.xlu1 %2822  ;;  %vm3094_vm7 = vcmp.gt.f32.partialorder %v3093_v37, 0.0 }
 0xfbe   :  { %7995 = vtanh.f32 %v2953_v52  ;;  %v2824_v44 = vmul.f32 %v2823_v50, %v2813_v60  ;;  %v2829_v7 = vsub.f32 1.0, %v2823_v50  ;;  %v2831_v61 = vmul.f32 %v2823_v50, %v9534_v27  ;;  %vm7086_vm8 = vmpackc.low %vm3094_vm7, %vm2839_vm0 }
 0xfc0   :  { %v2825_v43 = vadd.f32 %v2824_v44, %v10570_v42 }
 0xfc2   :  { %7997 = vtanh.f32 %v2825_v43  ;;  %v2966_v43 = vld [vmem:[#allocation8 + $0x38] sm:$0xff] }
 0xfc3   :  { %vm2967_vm9 = vcmp.gt.f32.partialorder %v2966_v43, 0.0  ;;  %v3614_v43 = vld [vmem:[#allocation16 + $0x338] sm:$0xff] }
 0xfc4   :  { %vm9691_vm10 = vmpackc.low %vm2967_vm9, %vm2711_vm2  ;;  %vm8422_vm9 = vmmov 0  }
 0xfc8   :  { %v7996_v39 = vpop.eup %7995 }
 0xfc9   :  { %2955 = vrot.lane.b32.xlu0 %v7996_v39, %s8420_s25  ;;  %v3578_v39 = vld [vmem:[#allocation16 + $0x218] sm:$0xff] }
 0xfcc   :  { %v7998_v23 = vpop.eup %7997 }
 0xfcd   :  { %2827 = vrot.lane.b32.xlu1 %v7998_v23, %s8420_s25  ;;  %v3582_v23 = vld [vmem:[#allocation16 + $0x238] sm:$0xff] }
0x103b   :  { %v2956_v48 = vpop.permute.xlu0 %2955 }
0x103c   :  { %v2958_v6 = vmul.f32 %v2957_v17, %v2956_v48 }
0x103e   :  { %v9612_v10 = vadd.f32 %v2959_v30, %v2958_v6 }
0x103f   :  { %v2828_v58 = vpop.permute.xlu1 %2827 }
0x1040   :  { %v2830_v41 = vmul.f32 %v2829_v7, %v2828_v58  ;;  %v9621_v32 = vsel %vm2839_vm0, %v9612_v10, %v9521_v38  ;;  %v3581_v38 = vld [vmem:[#allocation16 + $0x230] sm:$0xff] }
0x1041   :  { %3192 = vmatmul.mubr.f32.vlgmr.msra.gmra.mrb[38].mxu1 %v9621_v32 }
0x1042   :  { %v9631_v54 = vadd.f32 %v2831_v61, %v2830_v41  ;;  %7072 = vmatpush3.bf16.msk.msra.mxu1 %vm9566_vm14, %v9572_v47  ;;  %v10576_v47 = vld [vmem:[#allocation35_spill] sm:$0xff]  ;;  %6393 = vmatprep.mubr.msk.f32.mxu1 %vm3234_vm6, %v6167_v9  ;;  %v7123_v41 = vpack.c.bf16 %v3582_v23, %v3578_v39  ;;  %v3595_v9 = vld [vmem:[#allocation16 + $0x2a0] sm:$0xff]  ;;  %v3223_v23 = vld [vmem:[%s10486_s3 + $0x28] sm:$0xff] }
0x1043   :  { %7075 = vmatprep.subr.msk.bf16.mxu1 %vm7074_vm1, %v7073_v55  ;;  %v3576_v61 = vld [vmem:[#allocation16 + $0x208] sm:$0xff] }
0x1044   :  { %v9644_v56 = vsel %vm2711_vm2, %v9631_v54, %v9534_v27  ;;  %v6174_v39 = vld [vmem:[%s10486_s3 + $0x78] sm:$0xff] }
0x1045   :  { %3065 = vmatmul.mubr.f32.vlgmr.msra.gmra.mrb[34].mxu0 %v9644_v56 }
0x1046   :  { %7048 = vmatpush3.bf16.msk.msra.mxu0 %vm9584_vm15, %v9590_v11  ;;  %7078 = vmatpush3.bf16.msk.msra.mxu1 %vm7074_vm1, %v7073_v55  ;;  %v3577_v55 = vld [vmem:[#allocation16 + $0x210] sm:$0xff] }
0x1047   :  { %7051 = vmatprep.subr.msk.bf16.mxu0 %vm7050_vm3, %v7049_v57  ;;  %7081 = vmatprep.subr.msk.bf16.mxu1 %vm7080_vm4, %v7079_v45 }
0x104a   :  { %7054 = vmatpush3.bf16.msk.msra.mxu0 %vm7050_vm3, %v7049_v57  ;;  %7084 = vmatpush3.bf16.msk.msra.mxu1 %vm7080_vm4, %v7079_v45  ;;  %v3586_v57 = vld [vmem:[#allocation16 + $0x258] sm:$0xff]  ;;  %v6169_v45 = vld [vmem:[%s10486_s3 + $0x50] sm:$0xff] }
0x104b   :  { %7057 = vmatprep.subr.msk.bf16.mxu0 %vm7056_vm5, %v7055_v35 }
0x104e   :  { %7060 = vmatpush3.bf16.msk.msra.mxu0 %vm7056_vm5, %v7055_v35  ;;  %v3579_v35 = vld [vmem:[#allocation16 + $0x220] sm:$0xff] }
0x1114   :  { %v3193_v46 = vpop.f32.mrb[38].mxu1 }
0x1115   :  { %v3194_v15 = vadd.f32 %v3193_v46, %v8943_v51  ;;  %v3195_v27 = vpop.f32.mrb[39].mxu1  ;;  %v7125_v46 = vpack.c.bf16 %v3581_v38, %v3577_v55  ;;  %v3613_v55 = vld [vmem:[#allocation16 + $0x330] sm:$0xff]  ;;  %v3612_v38 = vld [vmem:[#allocation16 + $0x328] sm:$0xff] }
0x1117   :  { %v3198_v1 = vadd.f32 %v3194_v15, %v10576_v47  ;;  %v7127_v15 = vpack.c.bf16 %v3590_v18, %v3586_v57  ;;  %v3589_v47 = vld [vmem:[#allocation16 + $0x270] sm:$0xff]  ;;  %v3622_v57 = vld [vmem:[#allocation16 + $0x378] sm:$0xff]  ;;  %v3225_v18 = vld [vmem:[%s10486_s3 + $0x38] sm:$0xff] }
0x1118   :  { %v3066_v11 = vpop.f32.mrb[34].mxu0 }
0x1119   :  { %v6158_v28 = vmul.f32 -1.442695, %v3198_v1  ;;  %v3067_v25 = vadd.f32 %v3066_v11, %v8936_v31  ;;  %v3068_v13 = vpop.f32.mrb[35].mxu0  ;;  %v3196_v31 = vadd.f32 %v3195_v27, %v8711_v3  ;;  %v3585_v27 = vld [vmem:[#allocation16 + $0x250] sm:$0xff]  ;;  %v3588_v1 = vld [vmem:[#allocation16 + $0x268] sm:$0xff]  ;;  %v3598_v11 = vld [vmem:[#allocation16 + $0x2b8] sm:$0xff] }
0x111a   :  { %v3069_v8 = vadd.f32 %v3068_v13, %v8707_v2  ;;  %v3218_v2 = vld [vmem:[%s10486_s3] sm:$0xff]  ;;  %v3219_v13 = vld [vmem:[%s10486_s3 + $0x8] sm:$0xff] }
0x111b   :  { %7999 = vpow2.f32 %v6158_v28  ;;  %v3071_v63 = vadd.f32 %v3067_v25, %v10577_v20  ;;  %6365 = vmatprep.mubr.msk.f32.mxu0 %vm3234_vm6, %v3218_v2  ;;  %v6170_v28 = vld [vmem:[%s10486_s3 + $0x58] sm:$0xff]  ;;  %v6171_v25 = vld [vmem:[%s10486_s3 + $0x60] sm:$0xff]  ;;  %v3220_v20 = vld [vmem:[%s10486_s3 + $0x10] sm:$0xff] }
0x111c   :  { %v3600_v2 = vld [vmem:[#allocation16 + $0x2c8] sm:$0xff] }
0x111d   :  { %v6157_v0 = vmul.f32 -1.442695, %v3071_v63  ;;  %v7093_v63 = vpack.c.bf16 %v3579_v35, %v3575_v12  ;;  %v3616_v12 = vld [vmem:[#allocation16 + $0x348] sm:$0xff] }
0x111f   :  { %8001 = vpow2.f32 %v6157_v0  ;;  %v3583_v0 = vld [vmem:[#allocation16 + $0x240] sm:$0xff] }
0x1125   :  { %v8000_v40 = vpop.eup %7999 }
0x1126   :  { %v3202_v21 = vadd.f32 1.0, %v8000_v40  ;;  %v3587_v40 = vld [vmem:[#allocation16 + $0x260] sm:$0xff] }
0x1128   :  { %8003 = vrcp.f32 %v3202_v21  ;;  %v7129_v21 = vpack.c.bf16 %v3589_v47, %v3585_v27  ;;  %v3626_v27 = vld [vmem:[#allocation16 + $0x398] sm:$0xff] }
0x1129   :  { %v8002_v33 = vpop.eup %8001  ;;  %v3630_v47 = vld [vmem:[#allocation16 + $0x3b8] sm:$0xff] }
0x112a   :  { %v3075_v19 = vadd.f32 1.0, %v8002_v33  ;;  %v7095_v33 = vpack.c.bf16 %v3588_v1, %v3584_v5  ;;  %v3621_v5 = vld [vmem:[#allocation16 + $0x370] sm:$0xff] }
0x112c   :  { %8005 = vrcp.f32 %v3075_v19  ;;  %v3592_v19 = vld [vmem:[#allocation16 + $0x288] sm:$0xff] }
0x1132   :  { %v8004_v51 = vpop.eup %8003 }
0x1133   :  { %3205 = vrot.lane.b32.xlu0 %v8004_v51, %s8420_s25 }
0x1136   :  { %v8006_v24 = vpop.eup %8005 }
0x1137   :  { %3078 = vrot.lane.b32.xlu1 %v8006_v24, %s8420_s25  ;;  %v3593_v24 = vld [vmem:[#allocation16 + $0x290] sm:$0xff] }
0x11a5   :  { %v3206_v34 = vpop.permute.xlu0 %3205 }
0x11a6   :  { %v3207_v4 = vmul.f32 %v3206_v34, %v3196_v31  ;;  %v3212_v52 = vsub.f32 1.0, %v3206_v34  ;;  %v3214_v44 = vmul.f32 %v3206_v34, %v9621_v32  ;;  %v3580_v32 = vld [vmem:[#allocation16 + $0x228] sm:$0xff]  ;;  %v3597_v31 = vld [vmem:[#allocation16 + $0x2b0] sm:$0xff] }
0x11a7   :  { %v7091_v26 = vpack.c.bf16 %v3580_v32, %v3576_v61  ;;  %v3596_v34 = vld [vmem:[#allocation16 + $0x2a8] sm:$0xff]  ;;  %v3609_v32 = vld [vmem:[#allocation16 + $0x310] sm:$0xff] }
0x11a8   :  { %v3208_v49 = vadd.f32 %v3207_v4, %v10578_v53  ;;  %v3602_v4 = vld [vmem:[#allocation16 + $0x2d8] sm:$0xff]  ;;  %v3608_v61 = vld [vmem:[#allocation16 + $0x308] sm:$0xff] }
0x11a9   :  { %v3079_v16 = vpop.permute.xlu1 %3078  ;;  %v6172_v53 = vld [vmem:[%s10486_s3 + $0x68] sm:$0xff] }
0x11aa   :  { %8007 = vtanh.f32 %v3208_v49  ;;  %v3080_v14 = vmul.f32 %v3079_v16, %v3069_v8  ;;  %v3085_v48 = vsub.f32 1.0, %v3079_v16  ;;  %v3087_v30 = vmul.f32 %v3079_v16, %v9644_v56  ;;  %v3606_v8 = vld [vmem:[#allocation16 + $0x2f8] sm:$0xff]  ;;  %v6173_v49 = vld [vmem:[%s10486_s3 + $0x70] sm:$0xff]  ;;  %v3221_v16 = vld [vmem:[%s10486_s3 + $0x18] sm:$0xff] }
0x11ab   :  { %v7135_v37 = vpack.c.bf16 %v3606_v8, %v3602_v4  ;;  %v3633_v8 = vld [vmem:[#allocation16 + $0x3d0] sm:$0xff] }
0x11ac   :  { %v3081_v22 = vadd.f32 %v3080_v14, %v10579_v36  ;;  %v3222_v14 = vld [vmem:[%s10486_s3 + $0x20] sm:$0xff]  ;;  %v7097_v36 = vpack.c.bf16 %v3587_v40, %v3583_v0  ;;  %v3628_v40 = vld [vmem:[#allocation16 + $0x3a8] sm:$0xff] }
0x11ad   :  { %v3629_v0 = vld [vmem:[#allocation16 + $0x3b0] sm:$0xff] }
0x11ae   :  { %8009 = vtanh.f32 %v3081_v22  ;;  %v3591_v22 = vld [vmem:[#allocation16 + $0x280] sm:$0xff] }
0x11b4   :  { %v8008_v3 = vpop.eup %8007 }
0x11b5   :  { %3210 = vrot.lane.b32.xlu0 %v8008_v3, %s8420_s25  ;;  %v7133_v3 = vpack.c.bf16 %v3597_v31, %v3593_v24 }
0x11b8   :  { %v8010_v60 = vpop.eup %8009 }
0x11b9   :  { %3083 = vrot.lane.b32.xlu1 %v8010_v60, %s8420_s25  ;;  %v7099_v60 = vpack.c.bf16 %v3596_v34, %v3592_v19  ;;  %v3627_v34 = vld [vmem:[#allocation16 + $0x3a0] sm:$0xff] }
0x1227   :  { %v3211_v50 = vpop.permute.xlu0 %3210 }
0x1228   :  { %v3213_v42 = vmul.f32 %v3212_v52, %v3211_v50  ;;  %v3601_v52 = vld [vmem:[#allocation16 + $0x2d0] sm:$0xff] }
0x1229   :  { %v3605_v50 = vld [vmem:[#allocation16 + $0x2f0] sm:$0xff] }
0x122a   :  { %v3215_v17 = vadd.f32 %v3214_v44, %v3213_v42  ;;  %v3604_v44 = vld [vmem:[#allocation16 + $0x2e8] sm:$0xff]  ;;  %v3610_v42 = vld [vmem:[#allocation16 + $0x318] sm:$0xff] }
0x122b   :  { %v3084_v6 = vpop.permute.xlu1 %3083 }
0x122c   :  { %v7085_v7 = vpack.c.bf16 %v3215_v17, %v9612_v10  ;;  %v3086_v58 = vmul.f32 %v3085_v48, %v3084_v6  ;;  %v3224_v17 = vld [vmem:[%s10486_s3 + $0x30] sm:$0xff]  ;;  %v7101_v48 = vpack.c.bf16 %v3595_v9, %v3591_v22 }
0x122d   :  { %v3603_v6 = vld [vmem:[#allocation16 + $0x2e0] sm:$0xff] }
0x122e   :  { %v3088_v29 = vadd.f32 %v3087_v30, %v3086_v58  ;;  %7087 = vmatprep.subr.msk.bf16.mxu1 %vm7086_vm8, %v7085_v7  ;;  %v3599_v30 = vld [vmem:[#allocation16 + $0x2c0] sm:$0xff]  ;;  %v7103_v58 = vpack.c.bf16 %v3604_v44, %v3600_v2  ;;  %v3511_v2 = vld [vmem:[#allocation16 + $0x8] sm:$0xff]  ;;  %v3517_v44 = vld [vmem:[#allocation16 + $0x38] sm:$0xff] }
0x122f   :  { %7090 = vmatpush3.bf16.msk.msra.mxu1 %vm7086_vm8, %v7085_v7  ;;  %v7137_v7 = vpack.c.bf16 %v3605_v50, %v3601_v52  ;;  %v7105_v56 = vpack.c.bf16 %v3603_v6, %v3599_v30  ;;  %v3631_v9 = vld [vmem:[#allocation16 + $0x3c0] sm:$0xff]  ;;  %v3513_v52 = vld [vmem:[#allocation16 + $0x18] sm:$0xff]  ;;  %v3523_v30 = vld [vmem:[#allocation16 + $0x68] sm:$0xff] }
0x1230   :  { %v7061_v10 = vpack.c.bf16 %v3088_v29, %v9631_v54  ;;  %7124 = vmatprep.subr.bf16.mxu1 %v7123_v41  ;;  %v3594_v54 = vld [vmem:[#allocation16 + $0x298] sm:$0xff]  ;;  %v7139_v41 = vpack.c.bf16 %v3614_v43, %v3610_v42  ;;  %v7187_v42 = vpack.c.bf16 %v3517_v44, %v3513_v52  ;;  %v3510_v43 = vld [vmem:[#allocation16] sm:$0xff]  ;;  %v3548_v52 = vld [vmem:[#allocation16 + $0x130] sm:$0xff] }
0x1231   :  { %v7131_v51 = vpack.c.bf16 %v3598_v11, %v3594_v54  ;;  %v3618_v29 = vld [vmem:[#allocation16 + $0x358] sm:$0xff]  ;;  %v3615_v54 = vld [vmem:[#allocation16 + $0x340] sm:$0xff] }
0x1232   :  { %7063 = vmatprep.subr.msk.bf16.mxu0 %vm9691_vm10, %v7061_v10  ;;  %6394 = vmatmul.mubr.msk.f32.vlgmr.msra.gmra.mrb[40].mxu1 %vm3234_vm6, %v6168_v59  ;;  %v3607_v59 = vld [vmem:[#allocation16 + $0x300] sm:$0xff]  ;;  %v7143_v35 = vpack.c.bf16 %v3622_v57, %v3618_v29  ;;  %v3521_v6 = vld [vmem:[#allocation16 + $0x58] sm:$0xff]  ;;  %v3524_v29 = vld [vmem:[#allocation16 + $0x70] sm:$0xff] }
0x1233   :  { %7066 = vmatpush3.bf16.msk.msra.mxu0 %vm9691_vm10, %v7061_v10  ;;  %6396 = vmatprep.mubr.msk.f32.mxu1 %vm3234_vm6, %v6169_v45  ;;  %v3611_v10 = vld [vmem:[#allocation16 + $0x320] sm:$0xff]  ;;  %v7141_v45 = vpack.c.bf16 %v3613_v55, %v3609_v32 }
0x1234   :  { %7092 = vmatprep.subr.bf16.mxu0 %v7091_v26  ;;  %7126 = vmatpush1.bf16.msra.mxu1 %v7125_v46  ;;  %v7107_v26 = vpack.c.bf16 %v3612_v38, %v3608_v61  ;;  %v3617_v46 = vld [vmem:[#allocation16 + $0x350] sm:$0xff]  ;;  %v7109_v1 = vpack.c.bf16 %v3611_v10, %v3607_v59  ;;  %v3619_v11 = vld [vmem:[#allocation16 + $0x360] sm:$0xff]  ;;  %v3527_v59 = vld [vmem:[#allocation16 + $0x88] sm:$0xff] }
0x1235   :  { %7128 = vmatprep.subr.bf16.mxu1 %v7127_v15  ;;  %v3620_v15 = vld [vmem:[#allocation16 + $0x368] sm:$0xff]  ;;  %v7113_v19 = vpack.c.bf16 %v3619_v11, %v3615_v54  ;;  %v3522_v55 = vld [vmem:[#allocation16 + $0x60] sm:$0xff]  ;;  %v3520_v38 = vld [vmem:[#allocation16 + $0x50] sm:$0xff] }
0x1236   :  { %6397 = vmatmul.mubr.msk.f32.gmra.mrb[42].mxu1 %vm3234_vm6, %v6170_v28  ;;  %6366 = vmatmul.mubr.msk.f32.vlgmr.msra.gmra.mrb[36].mxu0 %vm3234_vm6, %v3219_v13  ;;  %v7145_v28 = vpack.c.bf16 %v3621_v5, %v3617_v46  ;;  %v3624_v13 = vld [vmem:[#allocation16 + $0x388] sm:$0xff]  ;;  %v3526_v46 = vld [vmem:[#allocation16 + $0x80] sm:$0xff] }
0x1237   :  { %6399 = vmatprep.mubr.msk.f32.mxu1 %vm3234_vm6, %v6171_v25  ;;  %6368 = vmatprep.mubr.msk.f32.mxu0 %vm3234_vm6, %v3220_v20  ;;  %v7111_v25 = vpack.c.bf16 %v3620_v15, %v3616_v12  ;;  %v7147_v20 = vpack.c.bf16 %v3630_v47, %v3626_v27  ;;  %v7115_v31 = vpack.c.bf16 %v3628_v40, %v3624_v13  ;;  %v3531_v10 = vld [vmem:[#allocation16 + $0xa8] sm:$0xff]  ;;  %v3530_v15 = vld [vmem:[#allocation16 + $0xa0] sm:$0xff]  ;;  %v3528_v27 = vld [vmem:[#allocation16 + $0x90] sm:$0xff] }
0x1238   :  { %7094 = vmatpush1.bf16.msra.mxu0 %v7093_v63  ;;  %7130 = vmatpush1.bf16.msra.mxu1 %v7129_v21  ;;  %v3625_v63 = vld [vmem:[#allocation16 + $0x390] sm:$0xff]  ;;  %v3634_v21 = vld [vmem:[#allocation16 + $0x3d8] sm:$0xff]  ;;  %v7163_v11 = vpack.c.bf16 %v3531_v10, %v3527_v59  ;;  %v7165_v40 = vpack.c.bf16 %v3530_v15, %v3526_v46  ;;  %v3563_v59 = vld [vmem:[#allocation16 + $0x1a8] sm:$0xff] }
0x1239   :  { %7096 = vmatprep.subr.bf16.mxu0 %v7095_v33  ;;  %7132 = vmatprep.subr.bf16.mxu1 %v7131_v51  ;;  %v3638_v33 = vld [vmem:[#allocation16 + $0x3f8] sm:$0xff]  ;;  %v3623_v51 = vld [vmem:[#allocation16 + $0x380] sm:$0xff]  ;;  %v7149_v24 = vpack.c.bf16 %v3629_v0, %v3625_v63  ;;  %v3532_v47 = vld [vmem:[#allocation16 + $0xb0] sm:$0xff] }
0x123a   :  { %6400 = vmatmul.mubr.msk.f32.gmra.mrb[44].mxu1 %vm3234_vm6, %v6172_v53  ;;  %6369 = vmatmul.mubr.msk.f32.gmra.mrb[38].mxu0 %vm3234_vm6, %v3221_v16  ;;  %v7151_v4 = vpack.c.bf16 %v3638_v33, %v3634_v21  ;;  %v3637_v53 = vld [vmem:[#allocation16 + $0x3f0] sm:$0xff]  ;;  %v3636_v16 = vld [vmem:[#allocation16 + $0x3e8] sm:$0xff]  ;;  %v3537_v63 = vld [vmem:[#allocation16 + $0xd8] sm:$0xff]  ;;  %v7197_v21 = vpack.c.bf16 %v3532_v47, %v3528_v27 }
0x123b   :  { %6402 = vmatprep.mubr.msk.f32.mxu1 %vm3234_vm6, %v6173_v49  ;;  %6371 = vmatprep.mubr.msk.f32.mxu0 %vm3234_vm6, %v3222_v14  ;;  %v3632_v49 = vld [vmem:[#allocation16 + $0x3c8] sm:$0xff]  ;;  %v7117_v14 = vpack.c.bf16 %v3627_v34, %v3623_v51  ;;  %v3541_v0 = vld [vmem:[#allocation16 + $0xf8] sm:$0xff]  ;;  %v3534_v33 = vld [vmem:[#allocation16 + $0xc0] sm:$0xff] }
0x123c   :  { %7098 = vmatpush1.bf16.msra.mxu0 %v7097_v36  ;;  %7134 = vmatpush1.bf16.msra.mxu1 %v7133_v3  ;;  %v7153_v36 = vpack.c.bf16 %v3637_v53, %v3633_v8  ;;  %v7119_v22 = vpack.c.bf16 %v3636_v16, %v3632_v49  ;;  %v3635_v3 = vld [vmem:[#allocation16 + $0x3e0] sm:$0xff]  ;;  %v3536_v51 = vld [vmem:[#allocation16 + $0xd0] sm:$0xff]  ;;  %v7199_v8 = vpack.c.bf16 %v3541_v0, %v3537_v63  ;;  %v3543_v49 = vld [vmem:[#allocation16 + $0x108] sm:$0xff] }
0x123d   :  { %7100 = vmatprep.subr.bf16.mxu0 %v7099_v60  ;;  %7136 = vmatprep.subr.bf16.mxu1 %v7135_v37  ;;  %v7121_v60 = vpack.c.bf16 %v3635_v3, %v3631_v9  ;;  %v3515_v37 = vld [vmem:[#allocation16 + $0x28] sm:$0xff]  ;;  %v3561_v10 = vld [vmem:[#allocation16 + $0x198] sm:$0xff]  ;;  %v3562_v46 = vld [vmem:[#allocation16 + $0x1a0] sm:$0xff] }
0x123e   :  { %6403 = vmatmul.mubr.msk.f32.gmra.mrb[46].mxu1 %vm3234_vm6, %v6174_v39  ;;  %6372 = vmatmul.mubr.msk.f32.gmra.mrb[40].mxu0 %vm3234_vm6, %v3223_v23  ;;  %v7155_v50 = vpack.c.bf16 %v3515_v37, %v3511_v2  ;;  %v3514_v39 = vld [vmem:[#allocation16 + $0x20] sm:$0xff]  ;;  %v3512_v23 = vld [vmem:[#allocation16 + $0x10] sm:$0xff] }
0x123f   :  { %6374 = vmatprep.mubr.msk.f32.mxu0 %vm3234_vm6, %v3224_v17  ;;  %3816 = vmatprep.mubr.f32.mxu1 %v10538_v62  ;;  %v3516_v17 = vld [vmem:[#allocation16 + $0x30] sm:$0xff]  ;;  %v3546_v2 = vld [vmem:[#allocation16 + $0x120] sm:$0xff] }
0x1240   :  { %7102 = vmatpush1.bf16.msra.mxu0 %v7101_v48  ;;  %7138 = vmatpush1.bf16.msra.mxu1 %v7137_v7  ;;  %v3519_v48 = vld [vmem:[#allocation16 + $0x48] sm:$0xff]  ;;  %v3525_v7 = vld [vmem:[#allocation16 + $0x78] sm:$0xff]  ;;  %v7189_v61 = vpack.c.bf16 %v3516_v17, %v3512_v23  ;;  %v3544_v37 = vld [vmem:[#allocation16 + $0x110] sm:$0xff] }
0x1241   :  { %7104 = vmatprep.subr.bf16.mxu0 %v7103_v58  ;;  %7140 = vmatprep.subr.bf16.mxu1 %v7139_v41  ;;  %v7157_v58 = vpack.c.bf16 %v3514_v39, %v3510_v43  ;;  %v3518_v41 = vld [vmem:[#allocation16 + $0x40] sm:$0xff]  ;;  %v3551_v39 = vld [vmem:[#allocation16 + $0x148] sm:$0xff]  ;;  %v3564_v15 = vld [vmem:[#allocation16 + $0x1b0] sm:$0xff] }
0x1242   :  { %6375 = vmatmul.mubr.msk.f32.gmra.mrb[42].mxu0 %vm3234_vm6, %v3225_v18  ;;  %v7159_v18 = vpack.c.bf16 %v3523_v30, %v3519_v48  ;;  %v7161_v12 = vpack.c.bf16 %v3522_v55, %v3518_v41  ;;  %v3555_v48 = vld [vmem:[#allocation16 + $0x168] sm:$0xff]  ;;  %v3553_v30 = vld [vmem:[#allocation16 + $0x158] sm:$0xff]  ;;  %v3554_v41 = vld [vmem:[#allocation16 + $0x160] sm:$0xff] }
0x1243   :  { %3703 = vmatprep.mubr.f32.mxu0 %v10538_v62  ;;  %v3556_v55 = vld [vmem:[#allocation16 + $0x170] sm:$0xff]  ;;  %v3566_v0 = vld [vmem:[#allocation16 + $0x1c0] sm:$0xff] }
0x1244   :  { %7106 = vmatpush1.bf16.msra.mxu0 %v7105_v56  ;;  %7142 = vmatpush1.bf16.msra.mxu1 %v7141_v45  ;;  %v7191_v56 = vpack.c.bf16 %v3525_v7, %v3521_v6  ;;  %v3529_v45 = vld [vmem:[#allocation16 + $0x98] sm:$0xff] }
0x1245   :  { %7108 = vmatprep.subr.bf16.mxu0 %v7107_v26  ;;  %7144 = vmatprep.subr.bf16.mxu1 %v7143_v35  ;;  %v3533_v26 = vld [vmem:[#allocation16 + $0xb8] sm:$0xff]  ;;  %v7193_v35 = vpack.c.bf16 %v3524_v29, %v3520_v38  ;;  %v7175_v29 = vpack.c.bf16 %v3555_v48, %v3551_v39  ;;  %v4187_v39 = vld [vmem:[#allocation17 + $0x30] sm:$0xff] }
0x1246   :  { %v3557_v6 = vld [vmem:[#allocation16 + $0x178] sm:$0xff] }
0x1247   :  { %v4192_v48 = vld [vmem:[#allocation17 + $0x58] sm:$0xff] }
0x1248   :  { %7110 = vmatpush1.bf16.msra.mxu0 %v7109_v1  ;;  %7146 = vmatpush1.bf16.msra.mxu1 %v7145_v28  ;;  %v7195_v28 = vpack.c.bf16 %v3533_v26, %v3529_v45  ;;  %v3565_v45 = vld [vmem:[#allocation16 + $0x1b8] sm:$0xff] }
0x1249   :  { %7112 = vmatprep.subr.bf16.mxu0 %v7111_v25  ;;  %7148 = vmatprep.subr.bf16.mxu1 %v7147_v20  ;;  %v3535_v25 = vld [vmem:[#allocation16 + $0xc8] sm:$0xff]  ;;  %v7211_v47 = vpack.c.bf16 %v3565_v45, %v3561_v10 }
0x124a   :  { %v3539_v20 = vld [vmem:[#allocation16 + $0xe8] sm:$0xff] }
0x124c   :  { %7114 = vmatpush1.bf16.msra.mxu0 %v7113_v19  ;;  %7150 = vmatpush1.bf16.msra.mxu1 %v7149_v24  ;;  %v3538_v19 = vld [vmem:[#allocation16 + $0xe0] sm:$0xff]  ;;  %v3540_v24 = vld [vmem:[#allocation16 + $0xf0] sm:$0xff] }
0x124d   :  { %7116 = vmatprep.subr.bf16.mxu0 %v7115_v31  ;;  %7152 = vmatprep.subr.bf16.mxu1 %v7151_v4  ;;  %v7167_v4 = vpack.c.bf16 %v3539_v20, %v3535_v25  ;;  %v7169_v9 = vpack.c.bf16 %v3538_v19, %v3534_v33  ;;  %v7201_v3 = vpack.c.bf16 %v3540_v24, %v3536_v51  ;;  %v3573_v25 = vld [vmem:[#allocation16 + $0x1f8] sm:$0xff]  ;;  %v3572_v33 = vld [vmem:[#allocation16 + $0x1f0] sm:$0xff]  ;;  %v4182_v24 = vld [vmem:[#allocation17 + $0x8] sm:$0xff] }
0x1250   :  { %7118 = vmatpush1.bf16.msra.mxu0 %v7117_v14  ;;  %7154 = vmatpush1.bf16.msra.mxu1 %v7153_v36  ;;  %v3547_v14 = vld [vmem:[#allocation16 + $0x128] sm:$0xff]  ;;  %v3545_v36 = vld [vmem:[#allocation16 + $0x118] sm:$0xff] }
0x1251   :  { %7120 = vmatprep.subr.bf16.mxu0 %v7119_v22  ;;  %7188 = vmatprep.subr.bf16.mxu1 %v7187_v42  ;;  %v3549_v22 = vld [vmem:[#allocation16 + $0x138] sm:$0xff]  ;;  %v7171_v42 = vpack.c.bf16 %v3547_v14, %v3543_v49  ;;  %v4181_v14 = vld [vmem:[#allocation17] sm:$0xff] }
0x1252   :  { %v7203_v43 = vpack.c.bf16 %v3549_v22, %v3545_v36  ;;  %v4183_v36 = vld [vmem:[#allocation17 + $0x10] sm:$0xff] }
0x1254   :  { %7122 = vmatpush1.bf16.msra.mxu0 %v7121_v60  ;;  %v3542_v60 = vld [vmem:[#allocation16 + $0x100] sm:$0xff] }
0x1255   :  { %7156 = vmatprep.subr.bf16.mxu0 %v7155_v50  ;;  %v7173_v7 = vpack.c.bf16 %v3546_v2, %v3542_v60  ;;  %v4188_v60 = vld [vmem:[#allocation17 + $0x38] sm:$0xff]  ;;  %v4319_v2 = vld [vmem:[#allocation17 + $0x100] sm:$0xff] }
0x1305   :  { %v6395_v32 = vpop.f32.mrb[40].mxu1 }
0x1306   :  { %v3471_v57 = vpop.f32.mrb[41].mxu1 }
0x1307   :  { %3704 = vmatmul.mubr.f32.vlgmr.msra.gmra.mrb[44].mxu0 %v3471_v57  ;;  %3817 = vmatmul.mubr.f32.vlgmr.msra.gmra.mrb[48].mxu1 %v3471_v57  ;;  %v7207_v57 = vpack.c.bf16 %v3557_v6, %v3553_v30  ;;  %v4324_v30 = vld [vmem:[#allocation17 + $0x128] sm:$0xff]  ;;  %v4326_v6 = vld [vmem:[#allocation17 + $0x138] sm:$0xff] }
0x1308   :  { %7158 = vmatpush1.bf16.msra.mxu0 %v7157_v58  ;;  %7190 = vmatpush1.bf16.msra.mxu1 %v7189_v61  ;;  %v7205_v58 = vpack.c.bf16 %v3548_v52, %v3544_v37  ;;  %v3550_v61 = vld [vmem:[#allocation16 + $0x140] sm:$0xff]  ;;  %v4321_v37 = vld [vmem:[#allocation17 + $0x110] sm:$0xff]  ;;  %v9804_v52 = vpack.c.bf16 %v4183_v36, %v4181_v14  ;;  %v4206_v36 = vld [vmem:[#allocation17 + $0xc8] sm:$0xff] }
0x1309   :  { %3709 = vmatprep.mubr.f32.mxu0 %v10538_v62  ;;  %3822 = vmatprep.mubr.f32.mxu1 %v10538_v62  ;;  %v6398_v5 = vpop.f32.mrb[42].mxu1  ;;  %v9760_v1 = vpop.f32.mrb[36].mxu0  ;;  %v7177_v26 = vpack.c.bf16 %v3554_v41, %v3550_v61  ;;  %v4191_v41 = vld [vmem:[#allocation17 + $0x50] sm:$0xff] }
0x130a   :  { %7160 = vmatprep.subr.bf16.mxu0 %v7159_v18  ;;  %7192 = vmatprep.subr.bf16.mxu1 %v7191_v56  ;;  %v3481_v54 = vpop.f32.mrb[43].mxu1  ;;  %v9762_v13 = vpop.f32.mrb[37].mxu0  ;;  %v3559_v18 = vld [vmem:[#allocation16 + $0x188] sm:$0xff] }
0x130b   :  { %3710 = vmatmul.mubr.f32.gmra.mrb[46].mxu0 %v6395_v32  ;;  %3823 = vmatmul.mubr.f32.gmra.mrb[50].mxu1 %v6395_v32  ;;  %v3552_v32 = vld [vmem:[#allocation16 + $0x150] sm:$0xff]  ;;  %v7179_v27 = vpack.c.bf16 %v3563_v59, %v3559_v18  ;;  %v4328_v18 = vld [vmem:[#allocation17 + $0x148] sm:$0xff]  ;;  %v4330_v59 = vld [vmem:[#allocation17 + $0x158] sm:$0xff] }
0x130c   :  { %7162 = vmatpush1.bf16.msra.mxu0 %v7161_v12  ;;  %7194 = vmatpush1.bf16.msra.mxu1 %v7193_v35  ;;  %v7209_v12 = vpack.c.bf16 %v3556_v55, %v3552_v32  ;;  %v3558_v35 = vld [vmem:[#allocation16 + $0x180] sm:$0xff]  ;;  %v4325_v55 = vld [vmem:[#allocation17 + $0x130] sm:$0xff] }
0x130d   :  { %3715 = vmatprep.mubr.f32.mxu0 %v10538_v62  ;;  %3828 = vmatprep.mubr.f32.mxu1 %v10538_v62  ;;  %v9766_v31 = vpop.f32.mrb[44].mxu1  ;;  %v9768_v34 = vpop.f32.mrb[38].mxu0  ;;  %v7181_v20 = vpack.c.bf16 %v3562_v46, %v3558_v35  ;;  %v4323_v32 = vld [vmem:[#allocation17 + $0x120] sm:$0xff]  ;;  %v4329_v46 = vld [vmem:[#allocation17 + $0x150] sm:$0xff] }
0x130e   :  { %7164 = vmatprep.subr.bf16.mxu0 %v7163_v11  ;;  %7196 = vmatprep.subr.bf16.mxu1 %v7195_v28  ;;  %v3491_v53 = vpop.f32.mrb[45].mxu1  ;;  %v9770_v16 = vpop.f32.mrb[39].mxu0  ;;  %v3571_v11 = vld [vmem:[#allocation16 + $0x1e8] sm:$0xff]  ;;  %v3569_v28 = vld [vmem:[#allocation16 + $0x1d8] sm:$0xff]  ;;  %v9833_v45 = vpack.c.bf16 %v4325_v55, %v4323_v32  ;;  %v4327_v35 = vld [vmem:[#allocation17 + $0x140] sm:$0xff] }
0x130f   :  { %3716 = vmatmul.mubr.f32.gmra.mrb[48].mxu0 %v3481_v54  ;;  %3829 = vmatmul.mubr.f32.gmra.mrb[52].mxu1 %v3481_v54  ;;  %v3567_v54 = vld [vmem:[#allocation16 + $0x1c8] sm:$0xff]  ;;  %v7215_v51 = vpack.c.bf16 %v3573_v25, %v3569_v28  ;;  %v9848_v28 = vpack.c.bf16 %v4329_v46, %v4327_v35  ;;  %v4197_v25 = vld [vmem:[#allocation17 + $0x80] sm:$0xff]  ;;  %v4346_v55 = vld [vmem:[#allocation17 + $0x1d8] sm:$0xff] }
0x1310   :  { %7166 = vmatpush1.bf16.msra.mxu0 %v7165_v40  ;;  %7198 = vmatpush1.bf16.msra.mxu1 %v7197_v21  ;;  %v3570_v40 = vld [vmem:[#allocation16 + $0x1e0] sm:$0xff]  ;;  %v3568_v21 = vld [vmem:[#allocation16 + $0x1d0] sm:$0xff]  ;;  %v7183_v19 = vpack.c.bf16 %v3571_v11, %v3567_v54  ;;  %v4334_v54 = vld [vmem:[#allocation17 + $0x178] sm:$0xff] }
0x1311   :  { %3721 = vmatprep.mubr.f32.mxu0 %v10538_v62  ;;  %3834 = vmatprep.mubr.f32.mxu1 %v10538_v62  ;;  %v9774_v50 = vpop.f32.mrb[46].mxu1  ;;  %v9776_v44 = vpop.f32.mrb[40].mxu0  ;;  %v7217_v49 = vpack.c.bf16 %v3572_v33, %v3568_v21  ;;  %v4202_v21 = vld [vmem:[#allocation17 + $0xa8] sm:$0xff]  ;;  %v4204_v33 = vld [vmem:[#allocation17 + $0xb8] sm:$0xff] }
0x1312   :  { %7168 = vmatprep.subr.bf16.mxu0 %v7167_v4  ;;  %7200 = vmatprep.subr.bf16.mxu1 %v7199_v8  ;;  %v9778_v23 = vpop.f32.mrb[47].mxu1  ;;  %v9780_v17 = vpop.f32.mrb[41].mxu0  ;;  %v4320_v4 = vld [vmem:[#allocation17 + $0x108] sm:$0xff]  ;;  %v4322_v8 = vld [vmem:[#allocation17 + $0x118] sm:$0xff] }
0x1313   :  { %3722 = vmatmul.mubr.f32.gmra.mrb[50].mxu0 %v6398_v5  ;;  %3835 = vmatmul.mubr.f32.gmra.mrb[54].mxu1 %v6398_v5  ;;  %v3560_v5 = vld [vmem:[#allocation16 + $0x190] sm:$0xff]  ;;  %v4344_v32 = vld [vmem:[#allocation17 + $0x1c8] sm:$0xff] }
0x1314   :  { %7170 = vmatpush1.bf16.msra.mxu0 %v7169_v9  ;;  %7202 = vmatpush1.bf16.msra.mxu1 %v7201_v3  ;;  %v7213_v63 = vpack.c.bf16 %v3564_v15, %v3560_v5  ;;  %v9800_v9 = vpack.c.bf16 %v4322_v8, %v4320_v4  ;;  %v4186_v3 = vld [vmem:[#allocation17 + $0x28] sm:$0xff]  ;;  %v9840_v5 = vpack.c.bf16 %v4330_v59, %v4328_v18  ;;  %v4201_v4 = vld [vmem:[#allocation17 + $0xa0] sm:$0xff]  ;;  %v4203_v8 = vld [vmem:[#allocation17 + $0xb0] sm:$0xff] }
0x1315   :  { %3727 = vmatprep.mubr.f32.mxu0 %v10538_v62  ;;  %3840 = vmatprep.mubr.f32.mxu1 %v10538_v62  ;;  %v9784_v38 = vpop.f32.mrb[42].mxu0  ;;  %v4198_v15 = vld [vmem:[#allocation17 + $0x88] sm:$0xff]  ;;  %v4209_v18 = vld [vmem:[#allocation17 + $0xe0] sm:$0xff]  ;;  %v4211_v59 = vld [vmem:[#allocation17 + $0xf0] sm:$0xff]  ;;  %v9904_v35 = vpack.c.bf16 %v4346_v55, %v4344_v32 }
0x1316   :  { %7172 = vmatprep.subr.bf16.mxu0 %v7171_v42  ;;  %7204 = vmatprep.subr.bf16.mxu1 %v7203_v43  ;;  %v9786_v56 = vpop.f32.mrb[43].mxu0  ;;  %v9808_v42 = vpack.c.bf16 %v4188_v60, %v4186_v3  ;;  %v4185_v43 = vld [vmem:[#allocation17 + $0x20] sm:$0xff]  ;;  %v4208_v3 = vld [vmem:[#allocation17 + $0xd8] sm:$0xff]  ;;  %v4340_v60 = vld [vmem:[#allocation17 + $0x1a8] sm:$0xff] }
0x1317   :  { %3728 = vmatmul.mubr.f32.gmra.mrb[52].mxu0 %v3491_v53  ;;  %3841 = vmatmul.mubr.f32.gmra.mrb[56].mxu1 %v3491_v53  ;;  %v7185_v53 = vpack.c.bf16 %v3570_v40, %v3566_v0  ;;  %v4333_v0 = vld [vmem:[#allocation17 + $0x170] sm:$0xff]  ;;  %v4348_v46 = vld [vmem:[#allocation17 + $0x1e8] sm:$0xff] }
0x1318   :  { %7174 = vmatpush1.bf16.msra.mxu0 %v7173_v7  ;;  %7206 = vmatpush1.bf16.msra.mxu1 %v7205_v58  ;;  %v9818_v7 = vpack.c.bf16 %v4187_v39, %v4185_v43  ;;  %v4189_v58 = vld [vmem:[#allocation17 + $0x40] sm:$0xff] }
0x1319   :  { %3733 = vmatprep.mubr.f32.mxu0 %v10538_v62  ;;  %3846 = vmatprep.mubr.f32.mxu1 %v10538_v62  ;;  %v9831_v10 = vpack.c.bf16 %v4191_v41, %v4189_v58  ;;  %v4205_v39 = vld [vmem:[#allocation17 + $0xc0] sm:$0xff]  ;;  %v4210_v58 = vld [vmem:[#allocation17 + $0xe8] sm:$0xff]  ;;  %v4212_v41 = vld [vmem:[#allocation17 + $0xf8] sm:$0xff] }
0x131a   :  { %7176 = vmatprep.subr.bf16.mxu0 %v7175_v29  ;;  %7208 = vmatprep.subr.bf16.mxu1 %v7207_v57  ;;  %v4194_v29 = vld [vmem:[#allocation17 + $0x68] sm:$0xff]  ;;  %v4196_v57 = vld [vmem:[#allocation17 + $0x78] sm:$0xff] }
0x131b   :  { %3734 = vmatmul.mubr.f32.gmra.mrb[54].mxu0 %v9766_v31  ;;  %3847 = vmatmul.mubr.f32.gmra.mrb[58].mxu1 %v9766_v31  ;;  %v4184_v31 = vld [vmem:[#allocation17 + $0x18] sm:$0xff] }
0x131c   :  { %7178 = vmatpush1.bf16.msra.mxu0 %v7177_v26  ;;  %7210 = vmatpush1.bf16.msra.mxu1 %v7209_v12  ;;  %v9798_v22 = vpack.c.bf16 %v4184_v31, %v4182_v24  ;;  %v4193_v26 = vld [vmem:[#allocation17 + $0x60] sm:$0xff]  ;;  %v4195_v12 = vld [vmem:[#allocation17 + $0x70] sm:$0xff] }
0x131d   :  { %3739 = vmatprep.mubr.f32.mxu0 %v10538_v62  ;;  %3852 = vmatprep.mubr.f32.mxu1 %v10538_v62  ;;  %v9846_v11 = vpack.c.bf16 %v4195_v12, %v4193_v26  ;;  %v4343_v26 = vld [vmem:[#allocation17 + $0x1c0] sm:$0xff]  ;;  %v4345_v12 = vld [vmem:[#allocation17 + $0x1d0] sm:$0xff] }
0x131e   :  { %7180 = vmatprep.subr.bf16.mxu0 %v7179_v27  ;;  %7212 = vmatprep.subr.bf16.mxu1 %v7211_v47  ;;  %v4200_v27 = vld [vmem:[#allocation17 + $0x98] sm:$0xff]  ;;  %v4332_v47 = vld [vmem:[#allocation17 + $0x168] sm:$0xff] }
0x131f   :  { %3740 = vmatmul.mubr.f32.gmra.mrb[56].mxu0 %v9778_v23  ;;  %3853 = vmatmul.mubr.f32.gmra.mrb[60].mxu1 %v9778_v23  ;;  %v9812_v23 = vpack.c.bf16 %v4321_v37, %v4319_v2  ;;  %v9856_v40 = vpack.c.bf16 %v4334_v54, %v4332_v47  ;;  %v4342_v2 = vld [vmem:[#allocation17 + $0x1b8] sm:$0xff]  ;;  %v9878_v37 = vpack.c.bf16 %v4203_v8, %v4201_v4 }
0x1320   :  { %7182 = vmatpush1.bf16.msra.mxu0 %v7181_v20  ;;  %7214 = vmatpush1.bf16.msra.mxu1 %v7213_v63  ;;  %v4199_v20 = vld [vmem:[#allocation17 + $0x90] sm:$0xff]  ;;  %v4331_v63 = vld [vmem:[#allocation17 + $0x160] sm:$0xff]  ;;  %v9912_v47 = vpack.c.bf16 %v4345_v12, %v4343_v26 }
0x1321   :  { %3745 = vmatprep.mubr.f32.mxu0 %v10538_v62  ;;  %3858 = vmatprep.mubr.f32.mxu1 %v10538_v62  ;;  %v9862_v24 = vpack.c.bf16 %v4199_v20, %v4197_v25  ;;  %v9864_v31 = vpack.c.bf16 %v4333_v0, %v4331_v63  ;;  %v4347_v25 = vld [vmem:[#allocation17 + $0x1e0] sm:$0xff]  ;;  %v4349_v20 = vld [vmem:[#allocation17 + $0x1f0] sm:$0xff]  ;;  %v10582_v63 = vld [vmem:[#allocation29_spill] sm:$0xff] }
0x1322   :  { %7184 = vmatprep.subr.bf16.mxu0 %v7183_v19  ;;  %7216 = vmatprep.subr.bf16.mxu1 %v7215_v51  ;;  %v4336_v19 = vld [vmem:[#allocation17 + $0x188] sm:$0xff]  ;;  %v4338_v51 = vld [vmem:[#allocation17 + $0x198] sm:$0xff] }
0x1323   :  { %3746 = vmatmul.mubr.f32.gmra.mrb[58].mxu0 %v9774_v50  ;;  %3859 = vmatmul.mubr.f32.gmra.mrb[62].mxu1 %v9774_v50  ;;  %v4190_v50 = vld [vmem:[#allocation17 + $0x48] sm:$0xff]  ;;  %v9872_v14 = vpack.c.bf16 %v4338_v51, %v4336_v19 }
0x1324   :  { %7186 = vmatpush1.bf16.msra.mxu0 %v7185_v53  ;;  %7218 = vmatpush1.bf16.msra.mxu1 %v7217_v49  ;;  %v9822_v61 = vpack.c.bf16 %v4192_v48, %v4190_v50  ;;  %v4335_v53 = vld [vmem:[#allocation17 + $0x180] sm:$0xff]  ;;  %v4337_v49 = vld [vmem:[#allocation17 + $0x190] sm:$0xff]  ;;  %v10584_v51 = vld [vmem:[#allocation27_spill] sm:$0xff] }
0x1325   :  { %3929 = vmatprep.mubr.f32.mxu0 %v10538_v62  ;;  %4042 = vmatprep.mubr.f32.mxu1 %v10538_v62  ;;  %v9880_v43 = vpack.c.bf16 %v4337_v49, %v4335_v53  ;;  %v4207_v50 = vld [vmem:[#allocation17 + $0xd0] sm:$0xff]  ;;  %v4339_v48 = vld [vmem:[#allocation17 + $0x1a0] sm:$0xff]  ;;  %v10585_v4 = vsub.s32 2, %v10584_v51 }
0x1326   :  { %7220 = vmatprep.subr.bf16.mxu0 %v9798_v22  ;;  %7252 = vmatprep.subr.bf16.mxu1 %v9800_v9 }
0x1327   :  { %3930 = vmatmul.mubr.f32.vlgmr.msra.gmra.mrb[44].mxu0 %v9762_v13  ;;  %4043 = vmatmul.mubr.f32.vlgmr.msra.gmra.mrb[48].mxu1 %v9762_v13  ;;  %v9825_v13 = vpack.c.bf16 %v4326_v6, %v4324_v30  ;;  %v4341_v30 = vld [vmem:[#allocation17 + $0x1b0] sm:$0xff]  ;;  %v9888_v6 = vpack.c.bf16 %v4342_v2, %v4340_v60 }
0x1328   :  { %7222 = vmatpush1.bf16.msra.mxu0 %v9804_v52  ;;  %3935 = vmatprep.mubr.f32.mxu0 %v10538_v62 }
0x1329   :  { %4048 = vmatprep.mubr.f32.mxu1 %v10538_v62  ;;  %7224 = vmatprep.subr.bf16.mxu0 %v9808_v42 }
0x132a   :  { %7254 = vmatpush1.bf16.msra.mxu1 %v9812_v23 }
0x132b   :  { %3936 = vmatmul.mubr.f32.gmra.mrb[46].mxu0 %v9760_v1  ;;  %4049 = vmatmul.mubr.f32.gmra.mrb[50].mxu1 %v9760_v1  ;;  %v9838_v1 = vpack.c.bf16 %v4196_v57, %v4194_v29  ;;  %v9894_v29 = vpack.c.bf16 %v4207_v50, %v4205_v39  ;;  %v9896_v57 = vpack.c.bf16 %v4341_v30, %v4339_v48 }
0x132c   :  { %7226 = vmatpush1.bf16.msra.mxu0 %v9818_v7  ;;  %3941 = vmatprep.mubr.f32.mxu0 %v10538_v62 }
0x132d   :  { %4054 = vmatprep.mubr.f32.mxu1 %v10538_v62  ;;  %7228 = vmatprep.subr.bf16.mxu0 %v9822_v61 }
0x132e   :  { %7256 = vmatprep.subr.bf16.mxu1 %v9825_v13 }
0x132f   :  { %3942 = vmatmul.mubr.f32.gmra.mrb[48].mxu0 %v9770_v16  ;;  %4055 = vmatmul.mubr.f32.gmra.mrb[52].mxu1 %v9770_v16  ;;  %v9854_v16 = vpack.c.bf16 %v4200_v27, %v4198_v15  ;;  %v4350_v15 = vld [vmem:[#allocation17 + $0x1f8] sm:$0xff]  ;;  %v9910_v27 = vpack.c.bf16 %v4211_v59, %v4209_v18 }
0x1330   :  { %7230 = vmatpush1.bf16.msra.mxu0 %v9831_v10  ;;  %7258 = vmatpush1.bf16.msra.mxu1 %v9833_v45  ;;  %v9916_v54 = vpack.c.bf16 %v4350_v15, %v4348_v46 }
0x1331   :  { %3947 = vmatprep.mubr.f32.mxu0 %v10538_v62  ;;  %4060 = vmatprep.mubr.f32.mxu1 %v10538_v62 }
0x1332   :  { %7232 = vmatprep.subr.bf16.mxu0 %v9838_v1  ;;  %7260 = vmatprep.subr.bf16.mxu1 %v9840_v5 }
0x1333   :  { %3948 = vmatmul.mubr.f32.gmra.mrb[50].mxu0 %v9768_v34  ;;  %4061 = vmatmul.mubr.f32.gmra.mrb[54].mxu1 %v9768_v34  ;;  %v9870_v34 = vpack.c.bf16 %v4204_v33, %v4202_v21  ;;  %v10583_v21 = vld [vmem:[#allocation28_spill] sm:$0xff] }
0x1334   :  { %7234 = vmatpush1.bf16.msra.mxu0 %v9846_v11  ;;  %7262 = vmatpush1.bf16.msra.mxu1 %v9848_v28 }
0x1335   :  { %3953 = vmatprep.mubr.f32.mxu0 %v10538_v62  ;;  %4066 = vmatprep.mubr.f32.mxu1 %v10538_v62 }
0x1336   :  { %7236 = vmatprep.subr.bf16.mxu0 %v9854_v16  ;;  %7264 = vmatprep.subr.bf16.mxu1 %v9856_v40 }
0x1337   :  { %3954 = vmatmul.mubr.f32.gmra.mrb[52].mxu0 %v9780_v17  ;;  %4067 = vmatmul.mubr.f32.gmra.mrb[56].mxu1 %v9780_v17  ;;  %v9886_v17 = vpack.c.bf16 %v4208_v3, %v4206_v36  ;;  %v10586_v36 = vsub.s32 3, %v10584_v51  ;;  %v4316_v51 = vld [vmem:[#allocation10 + $0x40] sm:$0xff] }
0x1338   :  { %7238 = vmatpush1.bf16.msra.mxu0 %v9862_v24  ;;  %7266 = vmatpush1.bf16.msra.mxu1 %v9864_v31  ;;  %vm4317_vm11 = vcmp.gt.f32.partialorder %v4316_v51, 0.0 }
0x1339   :  { %3959 = vmatprep.mubr.f32.mxu0 %v10538_v62  ;;  %4072 = vmatprep.mubr.f32.mxu1 %v10538_v62 }
0x133a   :  { %7240 = vmatprep.subr.bf16.mxu0 %v9870_v34  ;;  %7268 = vmatprep.subr.bf16.mxu1 %v9872_v14 }
0x133b   :  { %3960 = vmatmul.mubr.f32.gmra.mrb[54].mxu0 %v9776_v44  ;;  %4073 = vmatmul.mubr.f32.gmra.mrb[58].mxu1 %v9776_v44  ;;  %v9902_v44 = vpack.c.bf16 %v4212_v41, %v4210_v58 }
0x133c   :  { %7242 = vmatpush1.bf16.msra.mxu0 %v9878_v37  ;;  %7270 = vmatpush1.bf16.msra.mxu1 %v9880_v43 }
0x133d   :  { %3965 = vmatprep.mubr.f32.mxu0 %v10538_v62  ;;  %4078 = vmatprep.mubr.f32.mxu1 %v10538_v62 }
0x133e   :  { %7244 = vmatprep.subr.bf16.mxu0 %v9886_v17  ;;  %7272 = vmatprep.subr.bf16.mxu1 %v9888_v6 }
0x133f   :  { %3966 = vmatmul.mubr.f32.gmra.mrb[56].mxu0 %v9786_v56  ;;  %4079 = vmatmul.mubr.f32.gmra.mrb[60].mxu1 %v9786_v56  ;;  %v9924_v56 = vpack.c.bf16 %v4349_v20, %v4347_v25 }
0x1340   :  { %7246 = vmatpush1.bf16.msra.mxu0 %v9894_v29  ;;  %7274 = vmatpush1.bf16.msra.mxu1 %v9896_v57 }
0x1341   :  { %3971 = vmatprep.mubr.f32.mxu0 %v10538_v62  ;;  %4084 = vmatprep.mubr.f32.mxu1 %v10538_v62 }
0x1342   :  { %7248 = vmatprep.subr.bf16.mxu0 %v9902_v44  ;;  %7276 = vmatprep.subr.bf16.mxu1 %v9904_v35 }
0x1343   :  { %3972 = vmatmul.mubr.f32.gmra.mrb[58].mxu0 %v9784_v38  ;;  %4085 = vmatmul.mubr.f32.gmra.mrb[62].mxu1 %v9784_v38  ;;  %v4091_v38 = vld [vmem:[%s10497_s14] sm:$0xf]  ;;  %s8423_s14 = smov [#allocation20]  }
0x1344   :  { %7250 = vmatpush1.bf16.msra.mxu0 %v9910_v27  ;;  %7278 = vmatpush1.bf16.msra.mxu1 %v9912_v47  ;;  %v9972_v0 = vrot.slane %v4091_v38, %v10582_v63  ;;  %v9975_v33 = vrot.slane %v4091_v38, %v10583_v21  ;;  %v9979_v8 = vrot.slane %v4091_v38, %v10585_v4 }
0x1345   :  { %4277 = vmatprep.mubr.f32.mxu0 %v10538_v62  ;;  %7280 = vmatprep.subr.bf16.mxu1 %v9916_v54  ;;  %v9984_v3 = vrot.slane %v4091_v38, %v10586_v36 }
0x1346   :  { %4415 = vmatprep.mubr.f32.mxu1 %v10538_v62  ;;  %7284 = vmatprep.subr.bf16.mxu0 %v9798_v22 }
0x1347   :  { %4278 = vmatmul.mubr.f32.vlgmr.msra.gmra.mrb[44].mxu0 %v10538_v62 }
0x1348   :  { %7282 = vmatpush1.bf16.msra.mxu1 %v9924_v56  ;;  %7286 = vmatpush1.bf16.msra.mxu0 %v9804_v52 }
0x1349   :  { %7316 = vmatprep.subr.bf16.mxu1 %v9800_v9  ;;  %7288 = vmatprep.subr.bf16.mxu0 %v9808_v42 }
0x134a   :  { %4519 = vmatprep.mubr.f32.mxu0 %v10538_v62 }
0x134b   :  { %4416 = vmatmul.mubr.f32.vlgmr.msra.gmra.mrb[62].mxu1 %v10538_v62 }
0x134c   :  { %7318 = vmatpush1.bf16.msra.mxu1 %v9812_v23  ;;  %7290 = vmatpush1.bf16.msra.mxu0 %v9818_v7 }
0x134d   :  { %7320 = vmatprep.subr.bf16.mxu1 %v9825_v13  ;;  %7292 = vmatprep.subr.bf16.mxu0 %v9822_v61 }
0x134e   :  { %4623 = vmatprep.mubr.f32.mxu1 %v10538_v62 }
0x1350   :  { %7322 = vmatpush1.bf16.msra.mxu1 %v9833_v45  ;;  %7294 = vmatpush1.bf16.msra.mxu0 %v9831_v10 }
0x1351   :  { %7324 = vmatprep.subr.bf16.mxu1 %v9840_v5  ;;  %7296 = vmatprep.subr.bf16.mxu0 %v9838_v1 }
0x1354   :  { %7326 = vmatpush1.bf16.msra.mxu1 %v9848_v28  ;;  %7298 = vmatpush1.bf16.msra.mxu0 %v9846_v11 }
0x1355   :  { %7328 = vmatprep.subr.bf16.mxu1 %v9856_v40  ;;  %7300 = vmatprep.subr.bf16.mxu0 %v9854_v16 }
0x1358   :  { %7330 = vmatpush1.bf16.msra.mxu1 %v9864_v31  ;;  %7302 = vmatpush1.bf16.msra.mxu0 %v9862_v24 }
0x1359   :  { %7332 = vmatprep.subr.bf16.mxu1 %v9872_v14  ;;  %7304 = vmatprep.subr.bf16.mxu0 %v9870_v34 }
0x135c   :  { %7334 = vmatpush1.bf16.msra.mxu1 %v9880_v43  ;;  %7306 = vmatpush1.bf16.msra.mxu0 %v9878_v37 }
0x135d   :  { %7336 = vmatprep.subr.bf16.mxu1 %v9888_v6  ;;  %7308 = vmatprep.subr.bf16.mxu0 %v9886_v17 }
0x1360   :  { %7338 = vmatpush1.bf16.msra.mxu1 %v9896_v57  ;;  %7310 = vmatpush1.bf16.msra.mxu0 %v9894_v29 }
0x1361   :  { %7340 = vmatprep.subr.bf16.mxu1 %v9904_v35  ;;  %7312 = vmatprep.subr.bf16.mxu0 %v9902_v44 }
0x1364   :  { %7342 = vmatpush1.bf16.msra.mxu1 %v9912_v47  ;;  %7314 = vmatpush1.bf16.msra.mxu0 %v9910_v27 }
0x1365   :  { %7344 = vmatprep.subr.bf16.mxu1 %v9916_v54  ;;  %7348 = vmatprep.subr.bf16.mxu0 %v9798_v22 }
0x1368   :  { %7346 = vmatpush1.bf16.msra.mxu1 %v9924_v56 }
0x1369   :  { %7380 = vmatprep.subr.bf16.mxu1 %v9800_v9 }
0x141a   :  { %v4279_v19 = vpop.f32.mrb[44].mxu0 }
0x141b   :  { %v7779_v53 = vadd.f32 %v4279_v19, %v9972_v0  ;;  %v4281_v49 = vpop.f32.mrb[45].mxu0 }
0x141c   :  { %v7780_v60 = vadd.f32 %v4281_v49, %v9975_v33 }
0x141d   :  { %v6183_v2 = vmul.f32 -1.442695, %v7779_v53 }
0x141e   :  { %v6184_v39 = vmul.f32 -1.442695, %v7780_v60  ;;  %v4417_v50 = vpop.f32.mrb[62].mxu1 }
0x141f   :  { %v7809_v48 = vadd.f32 %v4417_v50, %v9979_v8  ;;  %v4419_v30 = vpop.f32.mrb[63].mxu1  ;;  %8011 = vpow2.f32 %v6183_v2 }
0x1420   :  { %v7810_v58 = vadd.f32 %v4419_v30, %v9984_v3  ;;  %8013 = vpow2.f32 %v6184_v39  ;;  %v4179_v39 = vld [vmem:[#allocation10] sm:$0xff] }
0x1421   :  { %v6186_v41 = vmul.f32 -1.442695, %v7809_v48  ;;  %vm4180_vm12 = vcmp.gt.f32.partialorder %v4179_v39, 0.0 }
0x1422   :  { %v6187_v32 = vmul.f32 -1.442695, %v7810_v58 }
0x1423   :  { %8015 = vpow2.f32 %v6186_v41 }
0x1424   :  { %8017 = vpow2.f32 %v6187_v32 }
0x1429   :  { %v8012_v55 = vpop.eup %8011 }
0x142a   :  { %v8014_v18 = vpop.eup %8013  ;;  %v4292_v15 = vadd.f32 1.0, %v8012_v55 }
0x142b   :  { %v4293_v25 = vadd.f32 1.0, %v8014_v18 }
0x142d   :  { %v8016_v59 = vpop.eup %8015 }
0x142e   :  { %v8018_v26 = vpop.eup %8017  ;;  %v4430_v12 = vadd.f32 1.0, %v8016_v59 }
0x142f   :  { %v4431_v46 = vadd.f32 1.0, %v8018_v26 }
0x1430   :  { %8019 = vrcp.f32 %v4430_v12 }
0x1431   :  { %8021 = vrcp.f32 %v4431_v46 }
0x1432   :  { %8023 = vrcp.f32 %v4292_v15 }
0x1433   :  { %8025 = vrcp.f32 %v4293_v25 }
0x143a   :  { %v8020_v20 = vpop.eup %8019 }
0x143b   :  { %v8022_v38 = vpop.eup %8021  ;;  %4438 = vrot.lane.b32.xlu0 %v8020_v20, %s8420_s25  ;;  %v4440_v36 = vmul.f32 0.0, %v8020_v20 }
0x143c   :  { %4443 = vrot.lane.b32.xlu1 %v8022_v38, %s8420_s25  ;;  %v8024_v63 = vpop.eup %8023  ;;  %v4436_v19 = vmul.f32 2.0, %v8022_v38 }
0x143d   :  { %v8026_v21 = vpop.eup %8025  ;;  %v4302_v58 = vmul.f32 0.0, %v8024_v63 }
0x143e   :  { %v6188_v4 = vadd.f32 -1.0, %v4436_v19  ;;  %v4298_v53 = vmul.f32 2.0, %v8026_v21 }
0x143f   :  { %4300 = vrot.lane.b32.xlu0 %v8024_v63, %s8420_s25 }
0x1440   :  { %4305 = vrot.lane.b32.xlu1 %v8026_v21, %s8420_s25  ;;  %v6185_v50 = vadd.f32 -1.0, %v4298_v53 }
0x14ad   :  { %v4439_v49 = vpop.permute.xlu0 %4438 }
0x14ae   :  { %v4441_v60 = vmul.f32 %v6188_v4, %v4439_v49  ;;  %v4444_v18 = vpop.permute.xlu1 %4443 }
0x14b0   :  { %v4442_v2 = vadd.f32 %v4441_v60, %v4440_v36 }
0x14b1   :  { %v4301_v48 = vpop.permute.xlu0 %4300 }
0x14b2   :  { %8027 = vtanh.f32 %v4442_v2  ;;  %v9994_v30 = vsel %vm4317_vm11, %v4442_v2, 0.0  ;;  %v4303_v41 = vmul.f32 %v6185_v50, %v4301_v48  ;;  %v4306_v25 = vpop.permute.xlu1 %4305 }
0x14b4   :  { %v4304_v32 = vadd.f32 %v4303_v41, %v4302_v58 }
0x14b6   :  { %8029 = vtanh.f32 %v4304_v32  ;;  %v9997_v55 = vsel %vm4180_vm12, %v4304_v32, 0.0 }
0x14bc   :  { %v8028_v59 = vpop.eup %8027 }
0x14bd   :  { %v4446_v26 = vmul.f32 %v8028_v59, %v4444_v18 }
0x14bf   :  { %v10000_v12 = vsel %vm4317_vm11, %v4446_v26, 0.0  ;;  %v4449_v46 = vmax.f32 %v4446_v26, -1000000.0  ;;  %6193 = vmatmul.mubr.msk.f32.vlgmr.msra.gmra.mrb[60].mxu1 %vm4317_vm11, %v4446_v26 }
0x14c0   :  { %v8030_v15 = vpop.eup %8029  ;;  %7382 = vmatpush1.bf16.msra.mxu1 %v9812_v23  ;;  %4831 = vmatprep.mubr.f32.mxu1 %v10538_v62 }
0x14c1   :  { %v4308_v20 = vmul.f32 %v8030_v15, %v4306_v25  ;;  %7384 = vmatprep.subr.bf16.mxu1 %v9825_v13  ;;  %v10007_v38 = vsel %vm4317_vm11, %v4449_v46, -1000000.0 }
0x14c3   :  { %v10010_v63 = vsel %vm4180_vm12, %v4308_v20, 0.0  ;;  %v4311_v21 = vmax.f32 %v4308_v20, -1000000.0  ;;  %6189 = vmatmul.mubr.msk.f32.vlgmr.msra.gmra.mrb[46].mxu0 %vm4180_vm12, %v4308_v20 }
0x14c4   :  { %7350 = vmatpush1.bf16.msra.mxu0 %v9804_v52  ;;  %7386 = vmatpush1.bf16.msra.mxu1 %v9833_v45 }
0x14c5   :  { %7352 = vmatprep.subr.bf16.mxu0 %v9808_v42  ;;  %7388 = vmatprep.subr.bf16.mxu1 %v9840_v5  ;;  %v10018_v19 = vsel %vm4180_vm12, %v4311_v21, -1000000.0 }
0x14c6   :  { %4727 = vmatprep.mubr.f32.mxu0 %v10538_v62 }
0x14c8   :  { %7354 = vmatpush1.bf16.msra.mxu0 %v9818_v7  ;;  %7390 = vmatpush1.bf16.msra.mxu1 %v9848_v28 }
0x14c9   :  { %7356 = vmatprep.subr.bf16.mxu0 %v9822_v61  ;;  %7392 = vmatprep.subr.bf16.mxu1 %v9856_v40 }
0x14cc   :  { %7394 = vmatpush1.bf16.msra.mxu1 %v9864_v31  ;;  %7358 = vmatpush1.bf16.msra.mxu0 %v9831_v10 }
0x14cd   :  { %7360 = vmatprep.subr.bf16.mxu0 %v9838_v1  ;;  %7396 = vmatprep.subr.bf16.mxu1 %v9872_v14 }
0x14d0   :  { %7362 = vmatpush1.bf16.msra.mxu0 %v9846_v11  ;;  %7398 = vmatpush1.bf16.msra.mxu1 %v9880_v43 }
0x14d1   :  { %7364 = vmatprep.subr.bf16.mxu0 %v9854_v16  ;;  %7400 = vmatprep.subr.bf16.mxu1 %v9888_v6 }
0x14d4   :  { %7366 = vmatpush1.bf16.msra.mxu0 %v9862_v24  ;;  %7402 = vmatpush1.bf16.msra.mxu1 %v9896_v57 }
0x14d5   :  { %7368 = vmatprep.subr.bf16.mxu0 %v9870_v34  ;;  %7404 = vmatprep.subr.bf16.mxu1 %v9904_v35 }
0x14d8   :  { %7370 = vmatpush1.bf16.msra.mxu0 %v9878_v37  ;;  %7406 = vmatpush1.bf16.msra.mxu1 %v9912_v47 }
0x14d9   :  { %7372 = vmatprep.subr.bf16.mxu0 %v9886_v17  ;;  %7408 = vmatprep.subr.bf16.mxu1 %v9916_v54 }
0x14dc   :  { %7374 = vmatpush1.bf16.msra.mxu0 %v9894_v29  ;;  %7410 = vmatpush1.bf16.msra.mxu1 %v9924_v56 }
0x14dd   :  { %7376 = vmatprep.subr.bf16.mxu0 %v9902_v44  ;;  %7444 = vmatprep.subr.bf16.mxu1 %v9800_v9 }
0x14e0   :  { %7378 = vmatpush1.bf16.msra.mxu0 %v9910_v27 }
0x14e1   :  { %7412 = vmatprep.subr.bf16.mxu0 %v9798_v22 }
0x1592   :  { %v4625_v51 = vpop.f32.mrb[60].mxu1 }
0x1593   :  { %v7807_v4 = vadd.f32 %v4625_v51, %v9979_v8  ;;  %v4627_v53 = vpop.f32.mrb[61].mxu1 }
0x1594   :  { %v7808_v49 = vadd.f32 %v4627_v53, %v9984_v3 }
0x1595   :  { %v6194_v36 = vmul.f32 -1.442695, %v7807_v4 }
0x1596   :  { %v6195_v60 = vmul.f32 -1.442695, %v7808_v49  ;;  %v4521_v2 = vpop.f32.mrb[46].mxu0 }
0x1597   :  { %8031 = vpow2.f32 %v6194_v36  ;;  %v7781_v39 = vadd.f32 %v4521_v2, %v9972_v0  ;;  %v4523_v50 = vpop.f32.mrb[47].mxu0  ;;  %v4557_v2 = vld [vmem:[#allocation10 + $0x48] sm:$0xff] }
0x1598   :  { %8033 = vpow2.f32 %v6195_v60  ;;  %v7782_v48 = vadd.f32 %v4523_v50, %v9975_v33  ;;  %vm4558_vm13 = vcmp.gt.f32.partialorder %v4557_v2, 0.0 }
0x1599   :  { %v6190_v58 = vmul.f32 -1.442695, %v7781_v39 }
0x159a   :  { %v6191_v41 = vmul.f32 -1.442695, %v7782_v48 }
0x159b   :  { %8035 = vpow2.f32 %v6190_v58 }
0x159c   :  { %8037 = vpow2.f32 %v6191_v41 }
0x15a1   :  { %v8032_v32 = vpop.eup %8031 }
0x15a2   :  { %v8034_v18 = vpop.eup %8033  ;;  %v4638_v59 = vadd.f32 1.0, %v8032_v32  ;;  %v4453_v32 = vld [vmem:[#allocation10 + $0x8] sm:$0xff] }
0x15a3   :  { %v4639_v26 = vadd.f32 1.0, %v8034_v18  ;;  %vm4454_vm14 = vcmp.gt.f32.partialorder %v4453_v32, 0.0 }
0x15a4   :  { %8039 = vrcp.f32 %v4638_v59 }
0x15a5   :  { %v8036_v46 = vpop.eup %8035  ;;  %8041 = vrcp.f32 %v4639_v26 }
0x15a6   :  { %v8038_v15 = vpop.eup %8037  ;;  %v4534_v25 = vadd.f32 1.0, %v8036_v46 }
0x15a7   :  { %v4535_v20 = vadd.f32 1.0, %v8038_v15 }
0x15a8   :  { %8043 = vrcp.f32 %v4534_v25 }
0x15a9   :  { %8045 = vrcp.f32 %v4535_v20 }
0x15ae   :  { %v8040_v21 = vpop.eup %8039 }
0x15af   :  { %v8042_v51 = vpop.eup %8041  ;;  %4646 = vrot.lane.b32.xlu0 %v8040_v21, %s8420_s25  ;;  %v4648_v50 = vmul.f32 %v8040_v21, %v9994_v30 }
0x15b0   :  { %4651 = vrot.lane.b32.xlu1 %v8042_v51, %s8420_s25  ;;  %v4644_v49 = vmul.f32 2.0, %v8042_v51 }
0x15b2   :  { %v8044_v4 = vpop.eup %8043  ;;  %v6196_v36 = vadd.f32 -1.0, %v4644_v49 }
0x15b3   :  { %v8046_v53 = vpop.eup %8045  ;;  %4542 = vrot.lane.b32.xlu0 %v8044_v4, %s8420_s25  ;;  %v4544_v59 = vmul.f32 %v8044_v4, %v9997_v55 }
0x15b4   :  { %4547 = vrot.lane.b32.xlu1 %v8046_v53, %s8420_s25  ;;  %v4540_v60 = vmul.f32 2.0, %v8046_v53 }
0x15b6   :  { %v6192_v41 = vadd.f32 -1.0, %v4540_v60 }
0x1621   :  { %v4647_v39 = vpop.permute.xlu0 %4646 }
0x1622   :  { %v4649_v48 = vmul.f32 %v6196_v36, %v4647_v39  ;;  %v4652_v20 = vpop.permute.xlu1 %4651 }
0x1624   :  { %v4650_v58 = vadd.f32 %v4649_v48, %v4648_v50 }
0x1625   :  { %v4543_v18 = vpop.permute.xlu0 %4542 }
0x1626   :  { %8047 = vtanh.f32 %v4650_v58  ;;  %v4545_v26 = vmul.f32 %v6192_v41, %v4543_v18  ;;  %v10059_v46 = vsel %vm4558_vm13, %v4650_v58, %v9994_v30  ;;  %v4548_v36 = vpop.permute.xlu1 %4547 }
0x1628   :  { %v4546_v15 = vadd.f32 %v4545_v26, %v4544_v59 }
0x162a   :  { %8049 = vtanh.f32 %v4546_v15  ;;  %v10063_v25 = vsel %vm4454_vm14, %v4546_v15, %v9997_v55 }
0x1630   :  { %v8048_v21 = vpop.eup %8047 }
0x1631   :  { %v4654_v51 = vmul.f32 %v8048_v21, %v4652_v20 }
0x1633   :  { %v4657_v53 = vmax.f32 %v10007_v38, %v4654_v51  ;;  %v10068_v4 = vsel %vm4558_vm13, %v4654_v51, %v10000_v12 }
0x1634   :  { %v8050_v49 = vpop.eup %8049  ;;  %4832 = vmatmul.mubr.f32.vlgmr.msra.gmra.mrb[58].mxu1 %v10068_v4 }
0x1635   :  { %v4550_v30 = vmul.f32 %v8050_v49, %v4548_v36  ;;  %7446 = vmatpush1.bf16.msra.mxu1 %v9812_v23  ;;  %v10074_v55 = vsel %vm4558_vm13, %v4657_v53, %v10007_v38  ;;  %5039 = vmatprep.mubr.f32.mxu1 %v10538_v62 }
0x1636   :  { %7448 = vmatprep.subr.bf16.mxu1 %v9825_v13 }
0x1637   :  { %v4553_v60 = vmax.f32 %v10018_v19, %v4550_v30  ;;  %v10081_v12 = vsel %vm4454_vm14, %v4550_v30, %v10010_v63 }
0x1638   :  { %4728 = vmatmul.mubr.f32.vlgmr.msra.gmra.mrb[48].mxu0 %v10081_v12 }
0x1639   :  { %7414 = vmatpush1.bf16.msra.mxu0 %v9804_v52  ;;  %7450 = vmatpush1.bf16.msra.mxu1 %v9833_v45  ;;  %v10088_v38 = vsel %vm4454_vm14, %v4553_v60, %v10018_v19 }
0x163a   :  { %7416 = vmatprep.subr.bf16.mxu0 %v9808_v42  ;;  %7452 = vmatprep.subr.bf16.mxu1 %v9840_v5 }
0x163b   :  { %4935 = vmatprep.mubr.f32.mxu0 %v10538_v62 }
0x163d   :  { %7418 = vmatpush1.bf16.msra.mxu0 %v9818_v7  ;;  %7454 = vmatpush1.bf16.msra.mxu1 %v9848_v28 }
0x163e   :  { %7420 = vmatprep.subr.bf16.mxu0 %v9822_v61  ;;  %7456 = vmatprep.subr.bf16.mxu1 %v9856_v40 }
0x1641   :  { %7458 = vmatpush1.bf16.msra.mxu1 %v9864_v31  ;;  %7422 = vmatpush1.bf16.msra.mxu0 %v9831_v10 }
0x1642   :  { %7424 = vmatprep.subr.bf16.mxu0 %v9838_v1  ;;  %7460 = vmatprep.subr.bf16.mxu1 %v9872_v14 }
0x1645   :  { %7426 = vmatpush1.bf16.msra.mxu0 %v9846_v11  ;;  %7462 = vmatpush1.bf16.msra.mxu1 %v9880_v43 }
0x1646   :  { %7428 = vmatprep.subr.bf16.mxu0 %v9854_v16  ;;  %7464 = vmatprep.subr.bf16.mxu1 %v9888_v6 }
0x1649   :  { %7430 = vmatpush1.bf16.msra.mxu0 %v9862_v24  ;;  %7466 = vmatpush1.bf16.msra.mxu1 %v9896_v57 }
0x164a   :  { %7432 = vmatprep.subr.bf16.mxu0 %v9870_v34  ;;  %7468 = vmatprep.subr.bf16.mxu1 %v9904_v35 }
0x164d   :  { %7434 = vmatpush1.bf16.msra.mxu0 %v9878_v37  ;;  %7470 = vmatpush1.bf16.msra.mxu1 %v9912_v47 }
0x164e   :  { %7436 = vmatprep.subr.bf16.mxu0 %v9886_v17  ;;  %7472 = vmatprep.subr.bf16.mxu1 %v9916_v54 }
0x1651   :  { %7438 = vmatpush1.bf16.msra.mxu0 %v9894_v29  ;;  %7474 = vmatpush1.bf16.msra.mxu1 %v9924_v56 }
0x1652   :  { %7440 = vmatprep.subr.bf16.mxu0 %v9902_v44  ;;  %7508 = vmatprep.subr.bf16.mxu1 %v9800_v9 }
0x1655   :  { %7442 = vmatpush1.bf16.msra.mxu0 %v9910_v27 }
0x1656   :  { %7476 = vmatprep.subr.bf16.mxu0 %v9798_v22 }
0x1707   :  { %v4833_v63 = vpop.f32.mrb[58].mxu1 }
0x1708   :  { %v7805_v19 = vadd.f32 %v4833_v63, %v9979_v8  ;;  %v4835_v2 = vpop.f32.mrb[59].mxu1 }
0x1709   :  { %v7806_v39 = vadd.f32 %v4835_v2, %v9984_v3 }
0x170a   :  { %v6200_v50 = vmul.f32 -1.442695, %v7805_v19 }
0x170b   :  { %v6201_v48 = vmul.f32 -1.442695, %v7806_v39  ;;  %v4729_v58 = vpop.f32.mrb[48].mxu0 }
0x170c   :  { %8051 = vpow2.f32 %v6200_v50  ;;  %v7783_v41 = vadd.f32 %v4729_v58, %v9972_v0  ;;  %v4731_v32 = vpop.f32.mrb[49].mxu0  ;;  %v4765_v58 = vld [vmem:[#allocation10 + $0x50] sm:$0xff] }
0x170d   :  { %8053 = vpow2.f32 %v6201_v48  ;;  %v7784_v18 = vadd.f32 %v4731_v32, %v9975_v33  ;;  %vm4766_vm15 = vcmp.gt.f32.partialorder %v4765_v58, 0.0 }
0x170e   :  { %v6197_v59 = vmul.f32 -1.442695, %v7783_v41 }
0x170f   :  { %v6198_v26 = vmul.f32 -1.442695, %v7784_v18 }
0x1710   :  { %8055 = vpow2.f32 %v6197_v59 }
0x1711   :  { %8057 = vpow2.f32 %v6198_v26 }
0x1716   :  { %v8052_v15 = vpop.eup %8051 }
0x1717   :  { %v8054_v20 = vpop.eup %8053  ;;  %v4846_v21 = vadd.f32 1.0, %v8052_v15  ;;  %v4661_v15 = vld [vmem:[#allocation10 + $0x10] sm:$0xff] }
0x1718   :  { %v4847_v51 = vadd.f32 1.0, %v8054_v20  ;;  %vm4662_vm0 = vcmp.gt.f32.partialorder %v4661_v15, 0.0 }
0x1719   :  { %8059 = vrcp.f32 %v4846_v21 }
0x171a   :  { %v8056_v53 = vpop.eup %8055  ;;  %8061 = vrcp.f32 %v4847_v51 }
0x171b   :  { %v8058_v49 = vpop.eup %8057  ;;  %v4742_v36 = vadd.f32 1.0, %v8056_v53 }
0x171c   :  { %v4743_v30 = vadd.f32 1.0, %v8058_v49 }
0x171d   :  { %8063 = vrcp.f32 %v4742_v36 }
0x171e   :  { %8065 = vrcp.f32 %v4743_v30 }
0x1723   :  { %v8060_v60 = vpop.eup %8059 }
0x1724   :  { %v8062_v63 = vpop.eup %8061  ;;  %4854 = vrot.lane.b32.xlu0 %v8060_v60, %s8420_s25  ;;  %v4856_v32 = vmul.f32 %v8060_v60, %v10059_v46 }
0x1725   :  { %4859 = vrot.lane.b32.xlu1 %v8062_v63, %s8420_s25  ;;  %v4852_v39 = vmul.f32 2.0, %v8062_v63 }
0x1727   :  { %v8064_v19 = vpop.eup %8063  ;;  %v6202_v50 = vadd.f32 -1.0, %v4852_v39 }
0x1728   :  { %v8066_v2 = vpop.eup %8065  ;;  %4750 = vrot.lane.b32.xlu0 %v8064_v19, %s8420_s25  ;;  %v4752_v21 = vmul.f32 %v8064_v19, %v10063_v25 }
0x1729   :  { %4755 = vrot.lane.b32.xlu1 %v8066_v2, %s8420_s25  ;;  %v4748_v48 = vmul.f32 2.0, %v8066_v2 }
0x172b   :  { %v6199_v26 = vadd.f32 -1.0, %v4748_v48 }
0x1796   :  { %v4855_v41 = vpop.permute.xlu0 %4854 }
0x1797   :  { %v4857_v18 = vmul.f32 %v6202_v50, %v4855_v41  ;;  %v4860_v30 = vpop.permute.xlu1 %4859 }
0x1799   :  { %v4858_v59 = vadd.f32 %v4857_v18, %v4856_v32 }
0x179a   :  { %v4751_v20 = vpop.permute.xlu0 %4750 }
0x179b   :  { %8067 = vtanh.f32 %v4858_v59  ;;  %v4753_v51 = vmul.f32 %v6199_v26, %v4751_v20  ;;  %v10131_v53 = vsel %vm4766_vm15, %v4858_v59, %v10059_v46  ;;  %v4756_v50 = vpop.permute.xlu1 %4755 }
0x179d   :  { %v4754_v49 = vadd.f32 %v4753_v51, %v4752_v21 }
0x179f   :  { %8069 = vtanh.f32 %v4754_v49  ;;  %v10135_v36 = vsel %vm4662_vm0, %v4754_v49, %v10063_v25 }
0x17a5   :  { %v8068_v60 = vpop.eup %8067 }
0x17a6   :  { %v4862_v63 = vmul.f32 %v8068_v60, %v4860_v30 }
0x17a8   :  { %v4865_v2 = vmax.f32 %v10074_v55, %v4862_v63  ;;  %v10140_v19 = vsel %vm4766_vm15, %v4862_v63, %v10068_v4 }
0x17a9   :  { %v8070_v39 = vpop.eup %8069  ;;  %5040 = vmatmul.mubr.f32.vlgmr.msra.gmra.mrb[56].mxu1 %v10140_v19 }
0x17aa   :  { %v4758_v46 = vmul.f32 %v8070_v39, %v4756_v50  ;;  %7510 = vmatpush1.bf16.msra.mxu1 %v9812_v23  ;;  %v10146_v25 = vsel %vm4766_vm15, %v4865_v2, %v10074_v55  ;;  %5247 = vmatprep.mubr.f32.mxu1 %v10538_v62 }
0x17ab   :  { %7512 = vmatprep.subr.bf16.mxu1 %v9825_v13 }
0x17ac   :  { %v4761_v48 = vmax.f32 %v10088_v38, %v4758_v46  ;;  %v10153_v4 = vsel %vm4662_vm0, %v4758_v46, %v10081_v12 }
0x17ad   :  { %4936 = vmatmul.mubr.f32.vlgmr.msra.gmra.mrb[50].mxu0 %v10153_v4 }
0x17ae   :  { %7478 = vmatpush1.bf16.msra.mxu0 %v9804_v52  ;;  %7514 = vmatpush1.bf16.msra.mxu1 %v9833_v45  ;;  %v10160_v55 = vsel %vm4662_vm0, %v4761_v48, %v10088_v38 }
0x17af   :  { %7480 = vmatprep.subr.bf16.mxu0 %v9808_v42  ;;  %7516 = vmatprep.subr.bf16.mxu1 %v9840_v5 }
0x17b0   :  { %5143 = vmatprep.mubr.f32.mxu0 %v10538_v62 }
0x17b2   :  { %7482 = vmatpush1.bf16.msra.mxu0 %v9818_v7  ;;  %7518 = vmatpush1.bf16.msra.mxu1 %v9848_v28 }
0x17b3   :  { %7484 = vmatprep.subr.bf16.mxu0 %v9822_v61  ;;  %7520 = vmatprep.subr.bf16.mxu1 %v9856_v40 }
0x17b6   :  { %7522 = vmatpush1.bf16.msra.mxu1 %v9864_v31  ;;  %7486 = vmatpush1.bf16.msra.mxu0 %v9831_v10 }
0x17b7   :  { %7488 = vmatprep.subr.bf16.mxu0 %v9838_v1  ;;  %7524 = vmatprep.subr.bf16.mxu1 %v9872_v14 }
0x17ba   :  { %7490 = vmatpush1.bf16.msra.mxu0 %v9846_v11  ;;  %7526 = vmatpush1.bf16.msra.mxu1 %v9880_v43 }
0x17bb   :  { %7492 = vmatprep.subr.bf16.mxu0 %v9854_v16  ;;  %7528 = vmatprep.subr.bf16.mxu1 %v9888_v6 }
0x17be   :  { %7494 = vmatpush1.bf16.msra.mxu0 %v9862_v24  ;;  %7530 = vmatpush1.bf16.msra.mxu1 %v9896_v57 }
0x17bf   :  { %7496 = vmatprep.subr.bf16.mxu0 %v9870_v34  ;;  %7532 = vmatprep.subr.bf16.mxu1 %v9904_v35 }
0x17c2   :  { %7498 = vmatpush1.bf16.msra.mxu0 %v9878_v37  ;;  %7534 = vmatpush1.bf16.msra.mxu1 %v9912_v47 }
0x17c3   :  { %7500 = vmatprep.subr.bf16.mxu0 %v9886_v17  ;;  %7536 = vmatprep.subr.bf16.mxu1 %v9916_v54 }
0x17c6   :  { %7502 = vmatpush1.bf16.msra.mxu0 %v9894_v29  ;;  %7538 = vmatpush1.bf16.msra.mxu1 %v9924_v56 }
0x17c7   :  { %7504 = vmatprep.subr.bf16.mxu0 %v9902_v44  ;;  %7572 = vmatprep.subr.bf16.mxu1 %v9800_v9 }
0x17ca   :  { %7506 = vmatpush1.bf16.msra.mxu0 %v9910_v27 }
0x17cb   :  { %7540 = vmatprep.subr.bf16.mxu0 %v9798_v22 }
0x187c   :  { %v5041_v12 = vpop.f32.mrb[56].mxu1 }
0x187d   :  { %v7803_v38 = vadd.f32 %v5041_v12, %v9979_v8  ;;  %v5043_v58 = vpop.f32.mrb[57].mxu1 }
0x187e   :  { %v7804_v41 = vadd.f32 %v5043_v58, %v9984_v3 }
0x187f   :  { %v6206_v32 = vmul.f32 -1.442695, %v7803_v38 }
0x1880   :  { %v6207_v18 = vmul.f32 -1.442695, %v7804_v41  ;;  %v4937_v59 = vpop.f32.mrb[50].mxu0 }
0x1881   :  { %8071 = vpow2.f32 %v6206_v32  ;;  %v7785_v26 = vadd.f32 %v4937_v59, %v9972_v0  ;;  %v4939_v15 = vpop.f32.mrb[51].mxu0  ;;  %v4973_v59 = vld [vmem:[#allocation10 + $0x58] sm:$0xff] }
0x1882   :  { %8073 = vpow2.f32 %v6207_v18  ;;  %v7786_v20 = vadd.f32 %v4939_v15, %v9975_v33  ;;  %vm4974_vm1 = vcmp.gt.f32.partialorder %v4973_v59, 0.0 }
0x1883   :  { %v6203_v21 = vmul.f32 -1.442695, %v7785_v26 }
0x1884   :  { %v6204_v51 = vmul.f32 -1.442695, %v7786_v20 }
0x1885   :  { %8075 = vpow2.f32 %v6203_v21 }
0x1886   :  { %8077 = vpow2.f32 %v6204_v51 }
0x188b   :  { %v8072_v49 = vpop.eup %8071 }
0x188c   :  { %v8074_v30 = vpop.eup %8073  ;;  %v5054_v60 = vadd.f32 1.0, %v8072_v49  ;;  %v4869_v49 = vld [vmem:[#allocation10 + $0x18] sm:$0xff] }
0x188d   :  { %v5055_v63 = vadd.f32 1.0, %v8074_v30  ;;  %vm4870_vm2 = vcmp.gt.f32.partialorder %v4869_v49, 0.0 }
0x188e   :  { %8079 = vrcp.f32 %v5054_v60 }
0x188f   :  { %v8076_v2 = vpop.eup %8075  ;;  %8081 = vrcp.f32 %v5055_v63 }
0x1890   :  { %v8078_v39 = vpop.eup %8077  ;;  %v4950_v50 = vadd.f32 1.0, %v8076_v2 }
0x1891   :  { %v4951_v46 = vadd.f32 1.0, %v8078_v39 }
0x1892   :  { %8083 = vrcp.f32 %v4950_v50 }
0x1893   :  { %8085 = vrcp.f32 %v4951_v46 }
0x1898   :  { %v8080_v48 = vpop.eup %8079 }
0x1899   :  { %v8082_v12 = vpop.eup %8081  ;;  %5062 = vrot.lane.b32.xlu0 %v8080_v48, %s8420_s25  ;;  %v5064_v15 = vmul.f32 %v8080_v48, %v10131_v53 }
0x189a   :  { %5067 = vrot.lane.b32.xlu1 %v8082_v12, %s8420_s25  ;;  %v5060_v41 = vmul.f32 2.0, %v8082_v12 }
0x189c   :  { %v8084_v38 = vpop.eup %8083  ;;  %v6208_v32 = vadd.f32 -1.0, %v5060_v41 }
0x189d   :  { %v8086_v58 = vpop.eup %8085  ;;  %4958 = vrot.lane.b32.xlu0 %v8084_v38, %s8420_s25  ;;  %v4960_v60 = vmul.f32 %v8084_v38, %v10135_v36 }
0x189e   :  { %4963 = vrot.lane.b32.xlu1 %v8086_v58, %s8420_s25  ;;  %v4956_v18 = vmul.f32 2.0, %v8086_v58 }
0x18a0   :  { %v6205_v51 = vadd.f32 -1.0, %v4956_v18 }
0x190b   :  { %v5063_v26 = vpop.permute.xlu0 %5062 }
0x190c   :  { %v5065_v20 = vmul.f32 %v6208_v32, %v5063_v26  ;;  %v5068_v46 = vpop.permute.xlu1 %5067 }
0x190e   :  { %v5066_v21 = vadd.f32 %v5065_v20, %v5064_v15 }
0x190f   :  { %v4959_v30 = vpop.permute.xlu0 %4958 }
0x1910   :  { %8087 = vtanh.f32 %v5066_v21  ;;  %v4961_v63 = vmul.f32 %v6205_v51, %v4959_v30  ;;  %v10203_v2 = vsel %vm4974_vm1, %v5066_v21, %v10131_v53  ;;  %v4964_v32 = vpop.permute.xlu1 %4963 }
0x1912   :  { %v4962_v39 = vadd.f32 %v4961_v63, %v4960_v60 }
0x1914   :  { %8089 = vtanh.f32 %v4962_v39  ;;  %v10207_v50 = vsel %vm4870_vm2, %v4962_v39, %v10135_v36 }
0x191a   :  { %v8088_v48 = vpop.eup %8087 }
0x191b   :  { %v5070_v12 = vmul.f32 %v8088_v48, %v5068_v46 }
0x191d   :  { %v5073_v58 = vmax.f32 %v10146_v25, %v5070_v12  ;;  %v10212_v38 = vsel %vm4974_vm1, %v5070_v12, %v10140_v19 }
0x191e   :  { %v8090_v41 = vpop.eup %8089  ;;  %5248 = vmatmul.mubr.f32.vlgmr.msra.gmra.mrb[54].mxu1 %v10212_v38 }
0x191f   :  { %v4966_v53 = vmul.f32 %v8090_v41, %v4964_v32  ;;  %7574 = vmatpush1.bf16.msra.mxu1 %v9812_v23  ;;  %v10218_v36 = vsel %vm4974_vm1, %v5073_v58, %v10146_v25  ;;  %5455 = vmatprep.mubr.f32.mxu1 %v10538_v62 }
0x1920   :  { %7576 = vmatprep.subr.bf16.mxu1 %v9825_v13 }
0x1921   :  { %v4969_v18 = vmax.f32 %v10160_v55, %v4966_v53  ;;  %v10225_v19 = vsel %vm4870_vm2, %v4966_v53, %v10153_v4 }
0x1922   :  { %5144 = vmatmul.mubr.f32.vlgmr.msra.gmra.mrb[52].mxu0 %v10225_v19 }
0x1923   :  { %7542 = vmatpush1.bf16.msra.mxu0 %v9804_v52  ;;  %7578 = vmatpush1.bf16.msra.mxu1 %v9833_v45  ;;  %v10232_v25 = vsel %vm4870_vm2, %v4969_v18, %v10160_v55 }
0x1924   :  { %7544 = vmatprep.subr.bf16.mxu0 %v9808_v42  ;;  %7580 = vmatprep.subr.bf16.mxu1 %v9840_v5 }
0x1925   :  { %5351 = vmatprep.mubr.f32.mxu0 %v10538_v62 }
0x1927   :  { %7546 = vmatpush1.bf16.msra.mxu0 %v9818_v7  ;;  %7582 = vmatpush1.bf16.msra.mxu1 %v9848_v28 }
0x1928   :  { %7548 = vmatprep.subr.bf16.mxu0 %v9822_v61  ;;  %7584 = vmatprep.subr.bf16.mxu1 %v9856_v40 }
0x192b   :  { %7586 = vmatpush1.bf16.msra.mxu1 %v9864_v31  ;;  %7550 = vmatpush1.bf16.msra.mxu0 %v9831_v10 }
0x192c   :  { %7552 = vmatprep.subr.bf16.mxu0 %v9838_v1  ;;  %7588 = vmatprep.subr.bf16.mxu1 %v9872_v14 }
0x192f   :  { %7554 = vmatpush1.bf16.msra.mxu0 %v9846_v11  ;;  %7590 = vmatpush1.bf16.msra.mxu1 %v9880_v43 }
0x1930   :  { %7556 = vmatprep.subr.bf16.mxu0 %v9854_v16  ;;  %7592 = vmatprep.subr.bf16.mxu1 %v9888_v6 }
0x1933   :  { %7558 = vmatpush1.bf16.msra.mxu0 %v9862_v24  ;;  %7594 = vmatpush1.bf16.msra.mxu1 %v9896_v57 }
0x1934   :  { %7560 = vmatprep.subr.bf16.mxu0 %v9870_v34  ;;  %7596 = vmatprep.subr.bf16.mxu1 %v9904_v35 }
0x1937   :  { %7562 = vmatpush1.bf16.msra.mxu0 %v9878_v37  ;;  %7598 = vmatpush1.bf16.msra.mxu1 %v9912_v47 }
0x1938   :  { %7564 = vmatprep.subr.bf16.mxu0 %v9886_v17  ;;  %7600 = vmatprep.subr.bf16.mxu1 %v9916_v54 }
0x193b   :  { %7566 = vmatpush1.bf16.msra.mxu0 %v9894_v29  ;;  %7602 = vmatpush1.bf16.msra.mxu1 %v9924_v56 }
0x193c   :  { %7568 = vmatprep.subr.bf16.mxu0 %v9902_v44  ;;  %7636 = vmatprep.subr.bf16.mxu1 %v9800_v9 }
0x193f   :  { %7570 = vmatpush1.bf16.msra.mxu0 %v9910_v27 }
0x1940   :  { %7604 = vmatprep.subr.bf16.mxu0 %v9798_v22 }
0x19f1   :  { %v5249_v4 = vpop.f32.mrb[54].mxu1 }
0x19f2   :  { %v7801_v55 = vadd.f32 %v5249_v4, %v9979_v8  ;;  %v5251_v59 = vpop.f32.mrb[55].mxu1 }
0x19f3   :  { %v7802_v26 = vadd.f32 %v5251_v59, %v9984_v3 }
0x19f4   :  { %v6212_v15 = vmul.f32 -1.442695, %v7801_v55 }
0x19f5   :  { %v6213_v20 = vmul.f32 -1.442695, %v7802_v26  ;;  %v5145_v21 = vpop.f32.mrb[52].mxu0 }
0x19f6   :  { %8091 = vpow2.f32 %v6212_v15  ;;  %v7787_v51 = vadd.f32 %v5145_v21, %v9972_v0  ;;  %v5147_v49 = vpop.f32.mrb[53].mxu0  ;;  %v5181_v21 = vld [vmem:[#allocation10 + $0x60] sm:$0xff] }
0x19f7   :  { %8093 = vpow2.f32 %v6213_v20  ;;  %v7788_v30 = vadd.f32 %v5147_v49, %v9975_v33  ;;  %vm5182_vm3 = vcmp.gt.f32.partialorder %v5181_v21, 0.0 }
0x19f8   :  { %v6209_v60 = vmul.f32 -1.442695, %v7787_v51 }
0x19f9   :  { %v6210_v63 = vmul.f32 -1.442695, %v7788_v30 }
0x19fa   :  { %8095 = vpow2.f32 %v6209_v60 }
0x19fb   :  { %8097 = vpow2.f32 %v6210_v63 }
0x1a00   :  { %v8092_v39 = vpop.eup %8091 }
0x1a01   :  { %v8094_v46 = vpop.eup %8093  ;;  %v5262_v48 = vadd.f32 1.0, %v8092_v39  ;;  %v5077_v39 = vld [vmem:[#allocation10 + $0x20] sm:$0xff] }
0x1a02   :  { %v5263_v12 = vadd.f32 1.0, %v8094_v46  ;;  %vm5078_vm4 = vcmp.gt.f32.partialorder %v5077_v39, 0.0 }
0x1a03   :  { %8099 = vrcp.f32 %v5262_v48 }
0x1a04   :  { %v8096_v58 = vpop.eup %8095  ;;  %8101 = vrcp.f32 %v5263_v12 }
0x1a05   :  { %v8098_v41 = vpop.eup %8097  ;;  %v5158_v32 = vadd.f32 1.0, %v8096_v58 }
0x1a06   :  { %v5159_v53 = vadd.f32 1.0, %v8098_v41 }
0x1a07   :  { %8103 = vrcp.f32 %v5158_v32 }
0x1a08   :  { %8105 = vrcp.f32 %v5159_v53 }
0x1a0d   :  { %v8100_v18 = vpop.eup %8099 }
0x1a0e   :  { %v8102_v4 = vpop.eup %8101  ;;  %5270 = vrot.lane.b32.xlu0 %v8100_v18, %s8420_s25  ;;  %v5272_v49 = vmul.f32 %v8100_v18, %v10203_v2 }
0x1a0f   :  { %5275 = vrot.lane.b32.xlu1 %v8102_v4, %s8420_s25  ;;  %v5268_v26 = vmul.f32 2.0, %v8102_v4 }
0x1a11   :  { %v8104_v55 = vpop.eup %8103  ;;  %v6214_v15 = vadd.f32 -1.0, %v5268_v26 }
0x1a12   :  { %v8106_v59 = vpop.eup %8105  ;;  %5166 = vrot.lane.b32.xlu0 %v8104_v55, %s8420_s25  ;;  %v5168_v48 = vmul.f32 %v8104_v55, %v10207_v50 }
0x1a13   :  { %5171 = vrot.lane.b32.xlu1 %v8106_v59, %s8420_s25  ;;  %v5164_v20 = vmul.f32 2.0, %v8106_v59 }
0x1a15   :  { %v6211_v63 = vadd.f32 -1.0, %v5164_v20 }
0x1a80   :  { %v5271_v51 = vpop.permute.xlu0 %5270 }
0x1a81   :  { %v5273_v30 = vmul.f32 %v6214_v15, %v5271_v51  ;;  %v5276_v53 = vpop.permute.xlu1 %5275 }
0x1a83   :  { %v5274_v60 = vadd.f32 %v5273_v30, %v5272_v49 }
0x1a84   :  { %v5167_v46 = vpop.permute.xlu0 %5166 }
0x1a85   :  { %8107 = vtanh.f32 %v5274_v60  ;;  %v5169_v12 = vmul.f32 %v6211_v63, %v5167_v46  ;;  %v10275_v58 = vsel %vm5182_vm3, %v5274_v60, %v10203_v2  ;;  %v5172_v15 = vpop.permute.xlu1 %5171 }
0x1a87   :  { %v5170_v41 = vadd.f32 %v5169_v12, %v5168_v48 }
0x1a89   :  { %8109 = vtanh.f32 %v5170_v41  ;;  %v10279_v32 = vsel %vm5078_vm4, %v5170_v41, %v10207_v50 }
0x1a8f   :  { %v8108_v18 = vpop.eup %8107 }
0x1a90   :  { %v5278_v4 = vmul.f32 %v8108_v18, %v5276_v53 }
0x1a92   :  { %v5281_v59 = vmax.f32 %v10218_v36, %v5278_v4  ;;  %v10284_v55 = vsel %vm5182_vm3, %v5278_v4, %v10212_v38 }
0x1a93   :  { %v8110_v26 = vpop.eup %8109  ;;  %5456 = vmatmul.mubr.f32.vlgmr.msra.gmra.mrb[52].mxu1 %v10284_v55 }
0x1a94   :  { %v5174_v2 = vmul.f32 %v8110_v26, %v5172_v15  ;;  %7638 = vmatpush1.bf16.msra.mxu1 %v9812_v23  ;;  %v10290_v50 = vsel %vm5182_vm3, %v5281_v59, %v10218_v36  ;;  %5663 = vmatprep.mubr.f32.mxu1 %v10538_v62 }
0x1a95   :  { %7640 = vmatprep.subr.bf16.mxu1 %v9825_v13 }
0x1a96   :  { %v5177_v20 = vmax.f32 %v10232_v25, %v5174_v2  ;;  %v10297_v38 = vsel %vm5078_vm4, %v5174_v2, %v10225_v19 }
0x1a97   :  { %5352 = vmatmul.mubr.f32.vlgmr.msra.gmra.mrb[54].mxu0 %v10297_v38 }
0x1a98   :  { %7606 = vmatpush1.bf16.msra.mxu0 %v9804_v52  ;;  %7642 = vmatpush1.bf16.msra.mxu1 %v9833_v45  ;;  %v10304_v36 = vsel %vm5078_vm4, %v5177_v20, %v10232_v25 }
0x1a99   :  { %7608 = vmatprep.subr.bf16.mxu0 %v9808_v42  ;;  %7644 = vmatprep.subr.bf16.mxu1 %v9840_v5 }
0x1a9a   :  { %5559 = vmatprep.mubr.f32.mxu0 %v10538_v62 }
0x1a9c   :  { %7610 = vmatpush1.bf16.msra.mxu0 %v9818_v7  ;;  %7646 = vmatpush1.bf16.msra.mxu1 %v9848_v28 }
0x1a9d   :  { %7612 = vmatprep.subr.bf16.mxu0 %v9822_v61  ;;  %7648 = vmatprep.subr.bf16.mxu1 %v9856_v40 }
0x1aa0   :  { %7650 = vmatpush1.bf16.msra.mxu1 %v9864_v31  ;;  %7614 = vmatpush1.bf16.msra.mxu0 %v9831_v10 }
0x1aa1   :  { %7616 = vmatprep.subr.bf16.mxu0 %v9838_v1  ;;  %7652 = vmatprep.subr.bf16.mxu1 %v9872_v14 }
0x1aa4   :  { %7618 = vmatpush1.bf16.msra.mxu0 %v9846_v11  ;;  %7654 = vmatpush1.bf16.msra.mxu1 %v9880_v43 }
0x1aa5   :  { %7620 = vmatprep.subr.bf16.mxu0 %v9854_v16  ;;  %7656 = vmatprep.subr.bf16.mxu1 %v9888_v6 }
0x1aa8   :  { %7622 = vmatpush1.bf16.msra.mxu0 %v9862_v24  ;;  %7658 = vmatpush1.bf16.msra.mxu1 %v9896_v57 }
0x1aa9   :  { %7624 = vmatprep.subr.bf16.mxu0 %v9870_v34  ;;  %7660 = vmatprep.subr.bf16.mxu1 %v9904_v35 }
0x1aac   :  { %7626 = vmatpush1.bf16.msra.mxu0 %v9878_v37  ;;  %7662 = vmatpush1.bf16.msra.mxu1 %v9912_v47 }
0x1aad   :  { %7628 = vmatprep.subr.bf16.mxu0 %v9886_v17  ;;  %7664 = vmatprep.subr.bf16.mxu1 %v9916_v54 }
0x1ab0   :  { %7630 = vmatpush1.bf16.msra.mxu0 %v9894_v29  ;;  %7666 = vmatpush1.bf16.msra.mxu1 %v9924_v56 }
0x1ab1   :  { %7632 = vmatprep.subr.bf16.mxu0 %v9902_v44  ;;  %7700 = vmatprep.subr.bf16.mxu1 %v9800_v9 }
0x1ab4   :  { %7634 = vmatpush1.bf16.msra.mxu0 %v9910_v27 }
0x1ab5   :  { %7668 = vmatprep.subr.bf16.mxu0 %v9798_v22 }
0x1b66   :  { %v5457_v19 = vpop.f32.mrb[52].mxu1 }
0x1b67   :  { %v7799_v25 = vadd.f32 %v5457_v19, %v9979_v8  ;;  %v5459_v21 = vpop.f32.mrb[53].mxu1 }
0x1b68   :  { %v7800_v51 = vadd.f32 %v5459_v21, %v9984_v3 }
0x1b69   :  { %v6218_v49 = vmul.f32 -1.442695, %v7799_v25 }
0x1b6a   :  { %v6219_v30 = vmul.f32 -1.442695, %v7800_v51  ;;  %v5353_v60 = vpop.f32.mrb[54].mxu0 }
0x1b6b   :  { %8111 = vpow2.f32 %v6218_v49  ;;  %v7789_v63 = vadd.f32 %v5353_v60, %v9972_v0  ;;  %v5355_v39 = vpop.f32.mrb[55].mxu0  ;;  %v5389_v49 = vld [vmem:[#allocation10 + $0x68] sm:$0xff] }
0x1b6c   :  { %8113 = vpow2.f32 %v6219_v30  ;;  %v7790_v9 = vadd.f32 %v5355_v39, %v9975_v33  ;;  %vm5390_vm5 = vcmp.gt.f32.partialorder %v5389_v49, 0.0 }
0x1b6d   :  { %v6215_v46 = vmul.f32 -1.442695, %v7789_v63 }
0x1b6e   :  { %v6216_v48 = vmul.f32 -1.442695, %v7790_v9 }
0x1b6f   :  { %8115 = vpow2.f32 %v6215_v46  ;;  %v5285_v46 = vld [vmem:[#allocation10 + $0x28] sm:$0xff] }
0x1b70   :  { %8117 = vpow2.f32 %v6216_v48  ;;  %vm5286_vm6 = vcmp.gt.f32.partialorder %v5285_v46, 0.0 }
0x1b75   :  { %v8112_v22 = vpop.eup %8111 }
0x1b76   :  { %v8114_v12 = vpop.eup %8113  ;;  %v5470_v41 = vadd.f32 1.0, %v8112_v22 }
0x1b77   :  { %v5471_v53 = vadd.f32 1.0, %v8114_v12 }
0x1b78   :  { %8119 = vrcp.f32 %v5470_v41 }
0x1b79   :  { %v8116_v18 = vpop.eup %8115  ;;  %8121 = vrcp.f32 %v5471_v53 }
0x1b7a   :  { %v8118_v4 = vpop.eup %8117  ;;  %v5366_v59 = vadd.f32 1.0, %v8116_v18 }
0x1b7b   :  { %v5367_v26 = vadd.f32 1.0, %v8118_v4 }
0x1b7c   :  { %8123 = vrcp.f32 %v5366_v59 }
0x1b7d   :  { %8125 = vrcp.f32 %v5367_v26 }
0x1b82   :  { %v8120_v15 = vpop.eup %8119 }
0x1b83   :  { %v8122_v2 = vpop.eup %8121  ;;  %5478 = vrot.lane.b32.xlu0 %v8120_v15, %s8420_s25  ;;  %v5480_v60 = vmul.f32 %v8120_v15, %v10275_v58 }
0x1b84   :  { %5483 = vrot.lane.b32.xlu1 %v8122_v2, %s8420_s25  ;;  %v5476_v25 = vmul.f32 2.0, %v8122_v2 }
0x1b86   :  { %v8124_v20 = vpop.eup %8123  ;;  %v6220_v21 = vadd.f32 -1.0, %v5476_v25 }
0x1b87   :  { %v8126_v19 = vpop.eup %8125  ;;  %5374 = vrot.lane.b32.xlu0 %v8124_v20, %s8420_s25  ;;  %v5376_v22 = vmul.f32 %v8124_v20, %v10279_v32 }
0x1b88   :  { %5379 = vrot.lane.b32.xlu1 %v8126_v19, %s8420_s25  ;;  %v5372_v51 = vmul.f32 2.0, %v8126_v19 }
0x1b8a   :  { %v6217_v9 = vadd.f32 -1.0, %v5372_v51  ;;  %v5493_v51 = vld [vmem:[#allocation10 + $0x30] sm:$0xff] }
0x1b8b   :  { %vm5494_vm8 = vcmp.gt.f32.partialorder %v5493_v51, 0.0 }
0x1bf5   :  { %v5479_v30 = vpop.permute.xlu0 %5478 }
0x1bf6   :  { %v5481_v63 = vmul.f32 %v6220_v21, %v5479_v30  ;;  %v5484_v4 = vpop.permute.xlu1 %5483 }
0x1bf8   :  { %v5482_v39 = vadd.f32 %v5481_v63, %v5480_v60 }
0x1bf9   :  { %v5375_v48 = vpop.permute.xlu0 %5374 }
0x1bfa   :  { %8127 = vtanh.f32 %v5482_v39  ;;  %v5377_v12 = vmul.f32 %v6217_v9, %v5375_v48  ;;  %v10347_v41 = vsel %vm5390_vm5, %v5482_v39, %v10275_v58  ;;  %v5380_v19 = vpop.permute.xlu1 %5379 }
0x1bfc   :  { %v5378_v53 = vadd.f32 %v5377_v12, %v5376_v22 }
0x1bfe   :  { %8129 = vtanh.f32 %v5378_v53  ;;  %v10351_v18 = vsel %vm5286_vm6, %v5378_v53, %v10279_v32 }
0x1c04   :  { %v8128_v59 = vpop.eup %8127 }
0x1c05   :  { %v5486_v26 = vmul.f32 %v8128_v59, %v5484_v4 }
0x1c07   :  { %v5489_v15 = vmax.f32 %v10290_v50, %v5486_v26  ;;  %v10356_v2 = vsel %vm5390_vm5, %v5486_v26, %v10284_v55 }
0x1c08   :  { %v8130_v20 = vpop.eup %8129  ;;  %5664 = vmatmul.mubr.f32.vlgmr.msra.gmra.mrb[50].mxu1 %v10356_v2 }
0x1c09   :  { %v5382_v58 = vmul.f32 %v8130_v20, %v5380_v19  ;;  %7702 = vmatpush1.bf16.msra.mxu1 %v9812_v23  ;;  %v10362_v32 = vsel %vm5390_vm5, %v5489_v15, %v10290_v50  ;;  %5869 = vmatprep.mubr.f32.mxu1 %v10538_v62  ;;  %v5920_v19 = vld [vmem:[#allocation19 + $0x80] sm:$0xff] }
0x1c0a   :  { %7704 = vmatprep.subr.bf16.mxu1 %v9825_v13 }
0x1c0b   :  { %v5385_v25 = vmax.f32 %v10304_v36, %v5382_v58  ;;  %v10369_v55 = vsel %vm5286_vm6, %v5382_v58, %v10297_v38  ;;  %v5922_v58 = vld [vmem:[#allocation19 + $0x90] sm:$0xff] }
0x1c0c   :  { %5560 = vmatmul.mubr.f32.vlgmr.msra.gmra.mrb[56].mxu0 %v10369_v55 }
0x1c0d   :  { %7670 = vmatpush1.bf16.msra.mxu0 %v9804_v52  ;;  %7706 = vmatpush1.bf16.msra.mxu1 %v9833_v45  ;;  %v10376_v23 = vsel %vm5286_vm6, %v5385_v25, %v10304_v36  ;;  %v8421_v25 = vmov 0.0|0.0  }
0x1c0e   :  { %7672 = vmatprep.subr.bf16.mxu0 %v9808_v42  ;;  %7708 = vmatprep.subr.bf16.mxu1 %v9840_v5 }
0x1c0f   :  { %5767 = vmatprep.mubr.f32.mxu0 %v10538_v62 }
0x1c11   :  { %7674 = vmatpush1.bf16.msra.mxu0 %v9818_v7  ;;  %7710 = vmatpush1.bf16.msra.mxu1 %v9848_v28 }
0x1c12   :  { %7676 = vmatprep.subr.bf16.mxu0 %v9822_v61  ;;  %7712 = vmatprep.subr.bf16.mxu1 %v9856_v40 }
0x1c15   :  { %7714 = vmatpush1.bf16.msra.mxu1 %v9864_v31  ;;  %7678 = vmatpush1.bf16.msra.mxu0 %v9831_v10 }
0x1c16   :  { %7680 = vmatprep.subr.bf16.mxu0 %v9838_v1  ;;  %7716 = vmatprep.subr.bf16.mxu1 %v9872_v14 }
0x1c19   :  { %7682 = vmatpush1.bf16.msra.mxu0 %v9846_v11  ;;  %7718 = vmatpush1.bf16.msra.mxu1 %v9880_v43 }
0x1c1a   :  { %7684 = vmatprep.subr.bf16.mxu0 %v9854_v16  ;;  %7720 = vmatprep.subr.bf16.mxu1 %v9888_v6 }
0x1c1d   :  { %7686 = vmatpush1.bf16.msra.mxu0 %v9862_v24  ;;  %7722 = vmatpush1.bf16.msra.mxu1 %v9896_v57 }
0x1c1e   :  { %7688 = vmatprep.subr.bf16.mxu0 %v9870_v34  ;;  %7724 = vmatprep.subr.bf16.mxu1 %v9904_v35 }
0x1c21   :  { %7690 = vmatpush1.bf16.msra.mxu0 %v9878_v37  ;;  %7726 = vmatpush1.bf16.msra.mxu1 %v9912_v47 }
0x1c22   :  { %7692 = vmatprep.subr.bf16.mxu0 %v9886_v17  ;;  %7728 = vmatprep.subr.bf16.mxu1 %v9916_v54  ;;  %v5597_v54 = vld [vmem:[#allocation10 + $0x70] sm:$0xff] }
0x1c23   :  { %vm5598_vm7 = vcmp.gt.f32.partialorder %v5597_v54, 0.0 }
0x1c25   :  { %7694 = vmatpush1.bf16.msra.mxu0 %v9894_v29  ;;  %7730 = vmatpush1.bf16.msra.mxu1 %v9924_v56 }
0x1c26   :  { %7696 = vmatprep.subr.bf16.mxu0 %v9902_v44 }
0x1c29   :  { %7698 = vmatpush1.bf16.msra.mxu0 %v9910_v27 }
0x1c2a   :  { %7731 = vmatprep.subr.bf16.mxu0 %v8421_v25 }
0x1cdb   :  { %v5665_v52 = vpop.f32.mrb[50].mxu1 }
0x1cdc   :  { %v7797_v42 = vadd.f32 %v5665_v52, %v9979_v8  ;;  %v5667_v7 = vpop.f32.mrb[51].mxu1 }
0x1cdd   :  { %v7798_v61 = vadd.f32 %v5667_v7, %v9984_v3  ;;  %v5924_v7 = vld [vmem:[#allocation19 + $0xa0] sm:$0xff] }
0x1cde   :  { %v6224_v13 = vmul.f32 -1.442695, %v7797_v42  ;;  %v5923_v42 = vld [vmem:[#allocation19 + $0x98] sm:$0xff] }
0x1cdf   :  { %v6225_v10 = vmul.f32 -1.442695, %v7798_v61  ;;  %v5561_v45 = vpop.f32.mrb[56].mxu0  ;;  %v5925_v61 = vld [vmem:[#allocation19 + $0xa8] sm:$0xff] }
0x1ce0   :  { %8131 = vpow2.f32 %v6224_v13  ;;  %v7791_v1 = vadd.f32 %v5561_v45, %v9972_v0  ;;  %v5563_v5 = vpop.f32.mrb[57].mxu0 }
0x1ce1   :  { %8133 = vpow2.f32 %v6225_v10  ;;  %v7792_v11 = vadd.f32 %v5563_v5, %v9975_v33 }
0x1ce2   :  { %v6221_v28 = vmul.f32 -1.442695, %v7791_v1 }
0x1ce3   :  { %v6222_v16 = vmul.f32 -1.442695, %v7792_v11 }
0x1ce4   :  { %8135 = vpow2.f32 %v6221_v28 }
0x1ce5   :  { %8137 = vpow2.f32 %v6222_v16 }
0x1cea   :  { %v8132_v40 = vpop.eup %8131 }
0x1ceb   :  { %v8134_v24 = vpop.eup %8133  ;;  %v5678_v31 = vadd.f32 1.0, %v8132_v40 }
0x1cec   :  { %v5679_v34 = vadd.f32 1.0, %v8134_v24 }
0x1ced   :  { %8139 = vrcp.f32 %v5678_v31 }
0x1cee   :  { %v8136_v14 = vpop.eup %8135  ;;  %8141 = vrcp.f32 %v5679_v34 }
0x1cef   :  { %v8138_v37 = vpop.eup %8137  ;;  %v5574_v43 = vadd.f32 1.0, %v8136_v14  ;;  %v5926_v14 = vld [vmem:[#allocation19 + $0xb0] sm:$0xff] }
0x1cf0   :  { %v5575_v17 = vadd.f32 1.0, %v8138_v37 }
0x1cf1   :  { %8143 = vrcp.f32 %v5574_v43 }
0x1cf2   :  { %8145 = vrcp.f32 %v5575_v17 }
0x1cf7   :  { %v8140_v6 = vpop.eup %8139 }
0x1cf8   :  { %v8142_v29 = vpop.eup %8141  ;;  %5686 = vrot.lane.b32.xlu0 %v8140_v6, %s8420_s25  ;;  %v5688_v50 = vmul.f32 %v8140_v6, %v10347_v41 }
0x1cf9   :  { %5691 = vrot.lane.b32.xlu1 %v8142_v29, %s8420_s25  ;;  %v5684_v35 = vmul.f32 2.0, %v8142_v29  ;;  %v5929_v29 = vld [vmem:[#allocation19 + $0xc8] sm:$0xff] }
0x1cfb   :  { %v8144_v57 = vpop.eup %8143  ;;  %v6226_v27 = vadd.f32 -1.0, %v5684_v35 }
0x1cfc   :  { %v8146_v44 = vpop.eup %8145  ;;  %5582 = vrot.lane.b32.xlu0 %v8144_v57, %s8420_s25  ;;  %v5584_v30 = vmul.f32 %v8144_v57, %v10351_v18 }
0x1cfd   :  { %5587 = vrot.lane.b32.xlu1 %v8146_v44, %s8420_s25  ;;  %v5580_v47 = vmul.f32 2.0, %v8146_v44 }
0x1cff   :  { %v6223_v21 = vadd.f32 -1.0, %v5580_v47  ;;  %v5931_v47 = vld [vmem:[#allocation19 + $0xd8] sm:$0xff] }
0x1d6a   :  { %v5687_v56 = vpop.permute.xlu0 %5686 }
0x1d6b   :  { %v5689_v38 = vmul.f32 %v6226_v27, %v5687_v56  ;;  %v5692_v46 = vpop.permute.xlu1 %5691  ;;  %v5930_v27 = vld [vmem:[#allocation19 + $0xd0] sm:$0xff]  ;;  %v5932_v56 = vld [vmem:[#allocation19 + $0xe0] sm:$0xff] }
0x1d6c   :  { %v7747_v54 = vpack.c.bf16 %v5931_v47, %v5930_v27 }
0x1d6d   :  { %v5690_v36 = vadd.f32 %v5689_v38, %v5688_v50  ;;  %v5933_v50 = vld [vmem:[#allocation19 + $0xe8] sm:$0xff] }
0x1d6e   :  { %v5583_v49 = vpop.permute.xlu0 %5582 }
0x1d6f   :  { %8147 = vtanh.f32 %v5690_v36  ;;  %v5585_v60 = vmul.f32 %v6223_v21, %v5583_v49  ;;  %v10417_v63 = vsel %vm5598_vm7, %v5690_v36, %v10347_v41  ;;  %v5588_v59 = vpop.permute.xlu1 %5587  ;;  %v7750_v36 = vpack.c.bf16 %v5933_v50, %v5932_v56  ;;  %v5934_v49 = vld [vmem:[#allocation19 + $0xf0] sm:$0xff] }
0x1d71   :  { %v5586_v39 = vadd.f32 %v5585_v60, %v5584_v30  ;;  %v5935_v30 = vld [vmem:[#allocation19 + $0xf8] sm:$0xff] }
0x1d73   :  { %8149 = vtanh.f32 %v5586_v39  ;;  %v10421_v9 = vsel %vm5494_vm8, %v5586_v39, %v10351_v18  ;;  %v7753_v39 = vpack.c.bf16 %v5935_v30, %v5934_v49 }
0x1d79   :  { %v8148_v48 = vpop.eup %8147 }
0x1d7a   :  { %v5694_v22 = vmul.f32 %v8148_v48, %v5692_v46 }
0x1d7c   :  { %v5697_v12 = vmax.f32 %v10362_v32, %v5694_v22  ;;  %v5695_v53 = vsel %vm5598_vm7, %v5694_v22, %v10356_v2  ;;  %v5921_v2 = vld [vmem:[#allocation19 + $0x88] sm:$0xff] }
0x1d7d   :  { %v8150_v4 = vpop.eup %8149  ;;  %5870 = vmatmul.mubr.f32.vlgmr.msra.gmra.mrb[48].mxu1 %v5695_v53  ;;  %v7732_v52 = vpack.c.bf16 %v5921_v2, %v5920_v19  ;;  %v5803_v2 = vld [vmem:[#allocation10 + $0x78] sm:$0xff] }
0x1d7e   :  { %v5590_v41 = vmul.f32 %v8150_v4, %v5588_v59  ;;  %v10428_v26 = vsel %vm5598_vm7, %v5697_v12, %v10362_v32  ;;  %v7735_v32 = vpack.c.bf16 %v5923_v42, %v5922_v58  ;;  %v5904_v42 = vld [vmem:[#allocation19 + $0x8] sm:$0xff]  ;;  %vm5804_vm10 = vcmp.gt.f32.partialorder %v5803_v2, 0.0 }
0x1d80   :  { %v5593_v15 = vmax.f32 %v10376_v23, %v5590_v41  ;;  %v5591_v18 = vsel %vm5494_vm8, %v5590_v41, %v10369_v55  ;;  %v7738_v55 = vpack.c.bf16 %v5925_v61, %v5924_v7 }
0x1d81   :  { %5768 = vmatmul.mubr.f32.vlgmr.msra.gmra.mrb[58].mxu0 %v5591_v18 }
0x1d82   :  { %v10435_v20 = vsel %vm5494_vm8, %v5593_v15, %v10376_v23  ;;  %7733 = vmatpush3.bf16.msra.mxu0 %v7732_v52  ;;  %6437 = vmatprep.mubr.msk.f32.mxu0 %vm8422_vm9, %v10538_v62  ;;  %v5903_v52 = vld [vmem:[#allocation19] sm:$0xff] }
0x1d83   :  { %7734 = vmatprep.subr.bf16.mxu0 %v8421_v25  ;;  %v7756_v61 = vpack.c.bf16 %v5904_v42, %v5903_v52 }
0x1d86   :  { %7736 = vmatpush3.bf16.msra.mxu0 %v7735_v32 }
0x1d87   :  { %7737 = vmatprep.subr.bf16.mxu0 %v8421_v25 }
0x1d8a   :  { %7739 = vmatpush3.bf16.msra.mxu0 %v7738_v55  ;;  %v5701_v55 = vld [vmem:[#allocation10 + $0x38] sm:$0xff] }
0x1d8b   :  { %7740 = vmatprep.subr.bf16.mxu0 %v8421_v25  ;;  %vm5702_vm11 = vcmp.gt.f32.partialorder %v5701_v55, 0.0 }
0x1e50   :  { %v5871_v23 = vpop.f32.mrb[48].mxu1 }
0x1e51   :  { %v7795_v13 = vadd.f32 %v5871_v23, %v9979_v8  ;;  %v5873_v10 = vpop.f32.mrb[49].mxu1  ;;  %v5927_v8 = vld [vmem:[#allocation19 + $0xb8] sm:$0xff] }
0x1e52   :  { %v7796_v45 = vadd.f32 %v5873_v10, %v9984_v3  ;;  %v7741_v3 = vpack.c.bf16 %v5927_v8, %v5926_v14  ;;  %v5905_v10 = vld [vmem:[#allocation19 + $0x10] sm:$0xff]  ;;  %v5911_v8 = vld [vmem:[#allocation19 + $0x40] sm:$0xff] }
0x1e53   :  { %v6230_v1 = vmul.f32 -1.442695, %v7795_v13 }
0x1e54   :  { %v6231_v5 = vmul.f32 -1.442695, %v7796_v45  ;;  %v5769_v11 = vpop.f32.mrb[58].mxu0  ;;  %7742 = vmatpush3.bf16.msra.mxu0 %v7741_v3  ;;  %v5906_v45 = vld [vmem:[#allocation19 + $0x18] sm:$0xff] }
0x1e55   :  { %8151 = vpow2.f32 %v6230_v1  ;;  %v7793_v28 = vadd.f32 %v5769_v11, %v9972_v0  ;;  %v5771_v16 = vpop.f32.mrb[59].mxu0  ;;  %7743 = vmatprep.subr.bf16.mxu0 %v8421_v25  ;;  %v5928_v0 = vld [vmem:[#allocation19 + $0xc0] sm:$0xff]  ;;  %v5914_v3 = vld [vmem:[#allocation19 + $0x58] sm:$0xff] }
0x1e56   :  { %8153 = vpow2.f32 %v6231_v5  ;;  %v7794_v40 = vadd.f32 %v5771_v16, %v9975_v33  ;;  %v7744_v44 = vpack.c.bf16 %v5929_v29, %v5928_v0  ;;  %v5907_v16 = vld [vmem:[#allocation19 + $0x20] sm:$0xff]  ;;  %v5917_v29 = vld [vmem:[#allocation19 + $0x70] sm:$0xff] }
0x1e57   :  { %v6227_v24 = vmul.f32 -1.442695, %v7793_v28  ;;  %v7759_v28 = vpack.c.bf16 %v5906_v45, %v5905_v10 }
0x1e58   :  { %v6228_v31 = vmul.f32 -1.442695, %v7794_v40  ;;  %7745 = vmatpush3.bf16.msra.mxu0 %v7744_v44  ;;  %v5908_v40 = vld [vmem:[#allocation19 + $0x28] sm:$0xff] }
0x1e59   :  { %8155 = vpow2.f32 %v6227_v24  ;;  %7746 = vmatprep.subr.bf16.mxu0 %v8421_v25 }
0x1e5a   :  { %8157 = vpow2.f32 %v6228_v31  ;;  %v7762_v31 = vpack.c.bf16 %v5908_v40, %v5907_v16 }
0x1e5c   :  { %7748 = vmatpush3.bf16.msra.mxu0 %v7747_v54 }
0x1e5d   :  { %7749 = vmatprep.subr.bf16.mxu0 %v8421_v25 }
0x1e5f   :  { %v8152_v34 = vpop.eup %8151 }
0x1e60   :  { %v8154_v37 = vpop.eup %8153  ;;  %v5884_v43 = vadd.f32 1.0, %v8152_v34  ;;  %7751 = vmatpush3.bf16.msra.mxu0 %v7750_v36  ;;  %v5910_v34 = vld [vmem:[#allocation19 + $0x38] sm:$0xff] }
0x1e61   :  { %v5885_v17 = vadd.f32 1.0, %v8154_v37  ;;  %7752 = vmatprep.subr.bf16.mxu0 %v8421_v25  ;;  %v5912_v37 = vld [vmem:[#allocation19 + $0x48] sm:$0xff] }
0x1e62   :  { %8159 = vrcp.f32 %v5884_v43  ;;  %v5913_v43 = vld [vmem:[#allocation19 + $0x50] sm:$0xff] }
0x1e63   :  { %v8156_v6 = vpop.eup %8155  ;;  %8161 = vrcp.f32 %v5885_v17  ;;  %v5915_v17 = vld [vmem:[#allocation19 + $0x60] sm:$0xff] }
0x1e64   :  { %v8158_v33 = vpop.eup %8157  ;;  %v5782_v57 = vadd.f32 1.0, %v8156_v6  ;;  %7754 = vmatpush3.bf16.msra.mxu0 %v7753_v39  ;;  %v5916_v6 = vld [vmem:[#allocation19 + $0x68] sm:$0xff] }
0x1e65   :  { %v5783_v35 = vadd.f32 1.0, %v8158_v33  ;;  %7755 = vmatprep.subr.bf16.mxu0 %v8421_v25  ;;  %v7774_v0 = vpack.c.bf16 %v5916_v6, %v5915_v17  ;;  %v5918_v33 = vld [vmem:[#allocation19 + $0x78] sm:$0xff] }
0x1e66   :  { %8163 = vrcp.f32 %v5782_v57  ;;  %v7777_v57 = vpack.c.bf16 %v5918_v33, %v5917_v29 }
0x1e67   :  { %8165 = vrcp.f32 %v5783_v35 }
0x1e6c   :  { %v8160_v38 = vpop.eup %8159 }
0x1e6d   :  { %v8162_v21 = vpop.eup %8161  ;;  %5892 = vrot.lane.b32.xlu0 %v8160_v38, %s8420_s25  ;;  %v5894_v51 = vmul.f32 %v8160_v38, %v10417_v63 }
0x1e6e   :  { %5897 = vrot.lane.b32.xlu1 %v8162_v21, %s8420_s25  ;;  %v5890_v63 = vmul.f32 2.0, %v8162_v21 }
0x1e70   :  { %v8164_v60 = vpop.eup %8163  ;;  %v6232_v22 = vadd.f32 -1.0, %v5890_v63 }
0x1e71   :  { %v8166_v46 = vpop.eup %8165  ;;  %5790 = vrot.lane.b32.xlu0 %v8164_v60, %s8420_s25  ;;  %v5792_v48 = vmul.f32 %v8164_v60, %v10421_v9 }
0x1e72   :  { %5795 = vrot.lane.b32.xlu1 %v8166_v46, %s8420_s25  ;;  %v5788_v12 = vmul.f32 2.0, %v8166_v46  ;;  %s6083_s25 = sshll.u32 %s8423_s14, 4  ;;  %s6084_s25 = int_to_ptr.vmem [resolvable:$true] %s6083_s25 }
0x1e73   :  { %s8369_s20 = scalar_lea.vmem %s6084_s25, 128  ;;  %p8374_p3 = scmp.lt.s32.totalorder %s6084_s25, %s6084_s25 }
0x1e74   :  { %v6229_v41 = vadd.f32 -1.0, %v5788_v12  ;;  %p8370_p2 = scmp.ne.s32.totalorder %s6084_s25, %s8369_s20  ;;  %p8375_p4 = scmp.lt.s32.totalorder %s8369_s20, %s8369_s20 }
0x1e76   :  { %p8376_p5 = por %p8375_p4, %p8374_p3 }
0x1e78   :  { %p8377_p6 = pnand %p8376_p5, %p8370_p2 }
0x1edf   :  { %v5893_v53 = vpop.permute.xlu0 %5892 }
0x1ee0   :  { %v5895_v4 = vmul.f32 %v6232_v22, %v5893_v53  ;;  %v5898_v19 = vpop.permute.xlu1 %5897 }
0x1ee2   :  { %v5896_v59 = vadd.f32 %v5895_v4, %v5894_v51 }
0x1ee3   :  { %v5791_v15 = vpop.permute.xlu0 %5790 }
0x1ee4   :  { %8167 = vtanh.f32 %v5896_v59  ;;  %v5793_v18 = vmul.f32 %v6229_v41, %v5791_v15  ;;  %v5796_v13 = vpop.permute.xlu1 %5795 }
0x1ee6   :  { %v5794_v9 = vadd.f32 %v5793_v18, %v5792_v48 }
0x1ee8   :  { %8169 = vtanh.f32 %v5794_v9 }
0x1eee   :  { %v8168_v58 = vpop.eup %8167 }
0x1eef   :  { %v5900_v32 = vmul.f32 %v8168_v58, %v5898_v19 }
0x1ef1   :  { %v5901_v7 = vmax.f32 %v10428_v26, %v5900_v32 }
0x1ef2   :  { %v8170_v23 = vpop.eup %8169 }
0x1ef3   :  { %v5798_v1 = vmul.f32 %v8170_v23, %v5796_v13  ;;  %v5902_v5 = vsel %vm5804_vm10, %v5901_v7, %v10428_v26  ;;  %v5909_v26 = vld [vmem:[#allocation19 + $0x30] sm:$0xff] }
0x1ef4   :  { %6438 = vmatmul.mubr.f32.vlgmr.msra.gmra.mrb[60].mxu0 %v5902_v5  ;;  %v7765_v14 = vpack.c.bf16 %v5910_v34, %v5909_v26 }
0x1ef5   :  { %v5799_v11 = vmax.f32 %v10435_v20, %v5798_v1  ;;  %7757 = vmatpush3.bf16.msra.mxu0 %v7756_v61  ;;  %6472 = vmatprep.mubr.msk.f32.mxu0 %vm8422_vm9, %v10538_v62  ;;  %v7768_v62 = vpack.c.bf16 %v5912_v37, %v5911_v8 }
0x1ef6   :  { %7758 = vmatprep.subr.bf16.mxu0 %v8421_v25 }
0x1ef7   :  { %v5800_v24 = vsel %vm5702_vm11, %v5799_v11, %v10435_v20  ;;  %v7771_v20 = vpack.c.bf16 %v5914_v3, %v5913_v43 }
0x1ef9   :  { %7760 = vmatpush3.bf16.msra.mxu0 %v7759_v28 }
0x1efa   :  { %7761 = vmatprep.subr.bf16.mxu0 %v8421_v25 }
0x1efd   :  { %7763 = vmatpush3.bf16.msra.mxu0 %v7762_v31 }
0x1efe   :  { %7764 = vmatprep.subr.bf16.mxu0 %v8421_v25 }
0x1f01   :  { %7766 = vmatpush3.bf16.msra.mxu0 %v7765_v14 }
0x1f02   :  { %7767 = vmatprep.subr.bf16.mxu0 %v8421_v25 }
0x1f05   :  { %7769 = vmatpush3.bf16.msra.mxu0 %v7768_v62 }
0x1f06   :  { %7770 = vmatprep.subr.bf16.mxu0 %v8421_v25 }
0x1f09   :  { %7772 = vmatpush3.bf16.msra.mxu0 %v7771_v20 }
0x1f0a   :  { %7773 = vmatprep.subr.bf16.mxu0 %v8421_v25 }
0x1f0d   :  { %7775 = vmatpush3.bf16.msra.mxu0 %v7774_v0 }
0x1f0e   :  { %7776 = vmatprep.subr.bf16.mxu0 %v8421_v25 }
0x1f11   :  { %7778 = vmatpush3.bf16.msra.mxu0 %v7777_v57 }
0x1f14   :  { %6473 = vmatmul.mubr.f32.vlgmr.msra.gmra.mrb[60].mxu0 %v5800_v24 }
0x1fe7   :  { %v6072_v44 = vpop.f32.mrb[60].mxu0 }
0x1fe8   :  { %6076 = vst [vmem:[#allocation20] sm:$0xff] %v6072_v44  ;;  %v6474_v35 = vpop.f32.mrb[61].mxu0 }
0x1fe9   :  { %8380 = shalt.err (!%p8377_p6)
}
0x1fea   :  { %s8381_s9 = scalar_lea.hbm %s10500_s17, 128 }
0x1feb   :  { %p8382_p7 = scmp.ne.s32.totalorder %s10500_s17, %s8381_s9  ;;  %p8385_p8 = scmp.lt.u32.totalorder %s8381_s9, %s10500_s17 }
0x1fed   :  { %p8387_p9 = pnand %p8385_p8, %p8382_p7 }
0x1fef   :  { %8390 = shalt.err (!%p8387_p9)
}
0x1ff0   :  { %6086 = dma.vmem_to_hbm [thread:$0]  %s6084_s25, 128, %s10500_s17, [#allocation7]  }
0x1ff1   :  { %8401 = dma.done.wait [#allocation7], 128  }
0x1ff2   :  { %8402 = vsyncadd [#allocation7], 4294967168 }
0x1ff3   :  { %6090 = vsyncpa [#allocation6], 1 }
0x1ff4   :  { %6091 = vsyncpa [#allocation9], 1 }
0x1ff5   :  { %6092 = vsyncpa [#allocation12], 1 }
0x1ff6   :  { %6093 = vsyncpa [#allocation15], 1 }
0x1ff7   :  { %6094 = vsyncpa [#allocation18], 1 }
0x1ff8   :  { %6095 = vsyncpa [#allocation7], 1 }

</bundles_post_ra>
